<compile_context>
chip_gen: v7x
topology: tpu7x:2x2x1
jax: 0.10.0
libtpu: 0.0.40
codegen_flags: <defaults>
</compile_context>

<pallas_src>
import functools
import math

import jax
import jax.numpy as jnp
from jax.experimental import pallas as pl
from jax.experimental.pallas import tpu as pltpu


# ----------------------------------------------------------------------------- kernel
def _encoder_layer_kernel(
    src_ref,      # (Bt, S, D)  f32   input x (= value)
    pos_ref,      # (Bt, S, D)  f32   positional embedding
    wqk_ref,      # (D, 2D)     bf16  fused [Wq | Wk] transposed; 1/sqrt(hd) folded into Q half
    bqk_ref,      # (1, 2D)     f32   [bq*scale | bk]
    wv_ref,       # (D, D)      bf16
    bv_ref,       # (1, D)      f32
    wo_ref,       # (D, D)      bf16  out_proj weight, transposed
    bo_ref,       # (1, D)      f32
    w1_ref,       # (D, F)      bf16  linear1 weight, transposed
    b1_ref,       # (1, F)      f32
    w2_ref,       # (F, D)      bf16  linear2 weight, transposed
    b2_ref,       # (1, D)      f32
    ln1w_ref,     # (1, D)      f32
    ln1b_ref,     # (1, D)      f32
    ln2w_ref,     # (1, D)      f32
    ln2b_ref,     # (1, D)      f32
    out_ref,      # (Bt, S, D)  f32
    *, nhead: int,
):
    f32 = jnp.float32
    bf16 = jnp.bfloat16

    Bt, S, D = src_ref.shape
    N = Bt * S                       # rows for all linear layers (fills the MXU)
    hd = D // nhead
    eps = 1e-5

    x = src_ref[...].reshape(N, D).astype(f32)       # (N, D)
    pos = pos_ref[...].reshape(N, D).astype(f32)     # (N, D)

    # ---- fused Q/K projection (q = k input is src + pos), V projection from src ----
    qk_in = (x + pos).astype(bf16)
    qk = jnp.dot(qk_in, wqk_ref[...], preferred_element_type=f32) + bqk_ref[...]   # (N, 2D)
    v = jnp.dot(x.astype(bf16), wv_ref[...], preferred_element_type=f32) + bv_ref[...]  # (N, D)

    # ---- head-batched attention: single leading batch dim of size nhead*Bt ----
    # (static lane slices + leading-dim concat only; no in-kernel transposes)
    def split_heads(t2):             # (N, D) -> (nhead*Bt, S, hd), index = h*Bt + b
        parts = [t2[:, h * hd:(h + 1) * hd].reshape(Bt, S, hd) for h in range(nhead)]
        return jnp.concatenate(parts, axis=0)

    qh = split_heads(qk[:, :D]).astype(bf16)     # scale already folded into Wq/bq
    kh = split_heads(qk[:, D:]).astype(bf16)
    vh = split_heads(v).astype(bf16)

    # scores for all (batch, head) pairs in one batched contraction
    scores = jnp.einsum('bqd,bkd->bqk', qh, kh,
                        preferred_element_type=f32)            # (nhead*Bt, S, S) f32
    # TODO(synk): flash-style online softmax over key blocks for long S (v7x VMEM).
    scores = scores - jnp.max(scores, axis=-1, keepdims=True)
    p = jnp.exp(scores)
    p = p * pl.reciprocal(jnp.sum(p, axis=-1, keepdims=True), approx=True)
    o = jnp.einsum('bqk,bkd->bqd', p.astype(bf16), vh,
                   preferred_element_type=f32)                  # (nhead*Bt, S, hd)

    # ---- merge heads back to (N, D); one fused out-projection with K = D ----
    o_parts = [o[h * Bt:(h + 1) * Bt].reshape(N, hd) for h in range(nhead)]
    o2 = jnp.concatenate(o_parts, axis=-1)                      # (N, D)
    attn = jnp.dot(o2.astype(bf16), wo_ref[...],
                   preferred_element_type=f32) + bo_ref[...]    # (N, D)

    # ---- residual + LayerNorm 1 (f32); dropout1 is identity in eval mode ----
    x1 = x + attn
    mu = jnp.mean(x1, axis=-1, keepdims=True)
    var = jnp.mean((x1 - mu) ** 2, axis=-1, keepdims=True)
    x1n = (x1 - mu) * jax.lax.rsqrt(var + eps) * ln1w_ref[...] + ln1b_ref[...]

    # ---- feed-forward (relu); dropout is identity in eval mode ----
    h1 = jnp.dot(x1n.astype(bf16), w1_ref[...], preferred_element_type=f32) + b1_ref[...]
    h1 = jnp.maximum(h1, 0.0)
    ff = jnp.dot(h1.astype(bf16), w2_ref[...], preferred_element_type=f32) + b2_ref[...]

    # ---- residual + LayerNorm 2 (f32) ----
    x2 = x1n + ff
    mu2 = jnp.mean(x2, axis=-1, keepdims=True)
    var2 = jnp.mean((x2 - mu2) ** 2, axis=-1, keepdims=True)
    out = (x2 - mu2) * jax.lax.rsqrt(var2 + eps) * ln2w_ref[...] + ln2b_ref[...]

    out_ref[...] = out.reshape(Bt, S, D).astype(out_ref.dtype)


# ----------------------------------------------------------------------------- tiling
def _pick_block_b(B, S, nhead, D, F, target_rows=256, act_budget_bytes=24 << 20):
    """Batch elements per grid step: fill the MXU (rows >= target) but keep >= 2 grid
    steps when possible (two v7x TensorCores) and respect an activation VMEM budget."""
    divisors = [d for d in range(1, B + 1) if B % d == 0]
    bt = next((d for d in divisors if d * S >= target_rows), B)
    if bt == B and B > 1:
        bt = max(d for d in divisors if d < B)

    def act_bytes(d):
        rows = d * S
        return 4 * (rows * (4 * D + 2 * F) + 2 * d * nhead * S * S)

    while bt > 1 and act_bytes(bt) > act_budget_bytes:
        bt = max(d for d in divisors if d < bt)
    return bt


# ----------------------------------------------------------------------------- wrapper
def transformer_encoder_layer_batch_major(src, pos, params, *, nhead, block_b=None):
    """src, pos: (B, S, D) float32 batch-major.  Returns (B, S, D) float32."""
    B, S, D = src.shape
    assert D % nhead == 0
    F_ff = params["w1_t"].shape[1]
    hd = D // nhead

    bt = block_b if block_b is not None else _pick_block_b(B, S, nhead, D, F_ff)
    assert B % bt == 0, f"block_b={bt} must divide batch {B}"

    # fold the softmax 1/sqrt(hd) scale into the Q half of the fused QK projection
    scale = 1.0 / math.sqrt(hd)
    col_scale = jnp.concatenate(
        [jnp.full((1, D), scale, jnp.float32), jnp.ones((1, D), jnp.float32)], axis=1)
    wqk = params["wqk_t"] * col_scale
    bqk = params["bqk"] * col_scale

    # bf16 weights for the MXU; biases / LN params stay f32
    bf = lambda a: a.astype(jnp.bfloat16)
    operands = (
        src, pos,
        bf(wqk), bqk,
        bf(params["wv_t"]), params["bv"],
        bf(params["wo_t"]), params["bo"],
        bf(params["w1_t"]), params["b1"],
        bf(params["w2_t"]), params["b2"],
        params["ln1_w"], params["ln1_b"], params["ln2_w"], params["ln2_b"],
    )

    # VMEM budget: weights + double-buffered activation blocks + matmul/softmax
    # intermediates, clamped to the physical VMEM capacity of this TPU generation.
    weight_bytes = sum(int(a.size) * a.dtype.itemsize for a in operands[2:])
    block_bytes = 3 * bt * S * D * 4
    rows = bt * S
    act_bytes = 4 * (rows * (4 * D + 2 * F_ff) + 2 * bt * nhead * S * S)
    needed = 2 * weight_bytes + 2 * block_bytes + act_bytes + (8 << 20)
    try:
        vmem_cap = int(getattr(pltpu.get_tpu_info(), "vmem_capacity_bytes", 64 << 20))
    except Exception:
        vmem_cap = 64 << 20
    vmem_limit = int(min(max(needed, 32 << 20), int(0.9 * vmem_cap)))

    kernel = functools.partial(_encoder_layer_kernel, nhead=nhead)

    def make_call(weight_mode):
        def const_spec(a):   # grid-invariant weight / bias block
            return pl.BlockSpec(a.shape, lambda b, n=a.ndim: (0,) * n,
                                pipeline_mode=weight_mode)
        in_specs = [
            pl.BlockSpec((bt, S, D), lambda b: (b, 0, 0)),   # src
            pl.BlockSpec((bt, S, D), lambda b: (b, 0, 0)),   # pos
        ] + [const_spec(a) for a in operands[2:]]
        return pl.pallas_call(
            kernel,
            out_shape=jax.ShapeDtypeStruct((B, S, D), jnp.float32),
            grid_spec=pltpu.PrefetchScalarGridSpec(
                num_scalar_prefetch=0,
                grid=(B // bt,),
                in_specs=in_specs,
                out_specs=pl.BlockSpec((bt, S, D), lambda b: (b, 0, 0)),
            ),
            compiler_params=pltpu.CompilerParams(
                dimension_semantics=("parallel",),
                vmem_limit_bytes=vmem_limit,
            ),
        )

    try:
        # single-buffer the grid-invariant weights (halves their VMEM residency)
        return make_call(pl.Buffered(1))(*operands)
    except Exception:
        # TODO(synk): pipeline_mode=pl.Buffered(1) rejected by this jax/libtpu combo;
        # fall back to default double-buffered weight blocks.
        return make_call(None)(*operands)


def transformer_encoder_layer(src, pos, params, *, nhead, block_b=None):
    """src, pos: (S, B, D) float32 (PyTorch nn.MultiheadAttention layout).

    For a multi-layer encoder, call `transformer_encoder_layer_batch_major` directly
    and keep activations batch-major across the stack (one transpose per model, not
    two per layer)."""
    out = transformer_encoder_layer_batch_major(
        jnp.transpose(src, (1, 0, 2)), jnp.transpose(pos, (1, 0, 2)),
        params, nhead=nhead, block_b=block_b)
    return jnp.transpose(out, (1, 0, 2))


# --------------------------------------------------------------- reference (pure JAX, f32)
def _reference(src, pos, p, *, nhead):
    S, B, D = src.shape
    hd = D // nhead
    eps = 1e-5
    qk_in = src + pos
    qk = qk_in @ p["wqk_t"] + p["bqk"][0]                 # (S, B, 2D)
    q, k = qk[..., :D], qk[..., D:]
    v = src @ p["wv_t"] + p["bv"][0]

    def split(t):  # (S, B, D) -> (B, H, S, hd)
        return jnp.transpose(t.reshape(S, B, nhead, hd), (1, 2, 0, 3))

    qh, kh, vh = split(q), split(k), split(v)
    scores = jnp.einsum("bhqd,bhkd->bhqk", qh, kh) / math.sqrt(hd)
    pa = jax.nn.softmax(scores, axis=-1)
    o = jnp.einsum("bhqk,bhkd->bhqd", pa, vh)
    o = jnp.transpose(o, (2, 0, 1, 3)).reshape(S, B, D)
    attn = o @ p["wo_t"] + p["bo"][0]

    def ln(t, w, b):
        mu = jnp.mean(t, axis=-1, keepdims=True)
        var = jnp.mean((t - mu) ** 2, axis=-1, keepdims=True)
        return (t - mu) * jax.lax.rsqrt(var + eps) * w[0] + b[0]

    x1 = ln(src + attn, p["ln1_w"], p["ln1_b"])
    ff = jnp.maximum(x1 @ p["w1_t"] + p["b1"][0], 0.0) @ p["w2_t"] + p["b2"][0]
    return ln(x1 + ff, p["ln2_w"], p["ln2_b"])


# ----------------------------------------------------------------------------- main
if __name__ == "__main__":
    # small but lane-dense shapes: d_model multiple of 128, block_b*S >= 128 rows,
    # B large enough that the grid has >= 2 (parallel) steps.
    S, B, D, H, F_ff = 16, 16, 128, 4, 256

    key = jax.random.PRNGKey(0)
    ks = jax.random.split(key, 16)
    init = lambda k, shape, s=0.1: (s * jax.random.normal(k, shape)).astype(jnp.float32)

    # Synthetic parameters in PyTorch shapes, repacked for the kernel (f32 master copy).
    in_proj_w = init(ks[0], (3 * D, D))          # nn.MultiheadAttention.in_proj_weight
    in_proj_b = init(ks[1], (3 * D,))
    out_proj_w = init(ks[2], (D, D))             # out_proj.weight
    lin1_w = init(ks[3], (F_ff, D))              # linear1.weight
    lin2_w = init(ks[4], (D, F_ff))              # linear2.weight

    params = {
        # fused [Wq | Wk] transposed -> (D, 2D); [bq | bk] -> (1, 2D)
        "wqk_t": jnp.concatenate([in_proj_w[0:D].T, in_proj_w[D:2 * D].T], axis=1),
        "bqk":   in_proj_b[0:2 * D].reshape(1, 2 * D),
        "wv_t":  in_proj_w[2 * D:3 * D].T,
        "bv":    in_proj_b[2 * D:3 * D].reshape(1, D),
        "wo_t":  out_proj_w.T,
        "bo":    init(ks[5], (1, D)),
        "w1_t":  lin1_w.T,
        "b1":    init(ks[6], (1, F_ff)),
        "w2_t":  lin2_w.T,
        "b2":    init(ks[7], (1, D)),
        "ln1_w": (1.0 + 0.1 * jax.random.normal(ks[8], (1, D))).astype(jnp.float32),
        "ln1_b": init(ks[9], (1, D)),
        "ln2_w": (1.0 + 0.1 * jax.random.normal(ks[10], (1, D))).astype(jnp.float32),
        "ln2_b": init(ks[11], (1, D)),
    }

    src = init(ks[12], (S, B, D), s=1.0)         # (seq, batch, d_model) — PyTorch layout
    pos = init(ks[13], (S, B, D), s=1.0)

    out = transformer_encoder_layer(src, pos, params, nhead=H)
    out = jax.block_until_ready(out)

    ref = _reference(src, pos, params, nhead=H)
    assert out.shape == (S, B, D)
    err = float(jnp.max(jnp.abs(out - ref)))
    # bf16 MXU matmuls + approx softmax reciprocal vs a pure-f32 reference
    assert jnp.allclose(out, ref, atol=5e-2, rtol=3e-2), (
        f"mismatch vs pure-JAX reference; max abs err = {err}")

    print("KERNEL_OK")
</pallas_src>

<mosaic_0001>
module attributes {stable_mosaic.version = 11 : i64} {
  func.func @_encoder_layer_kernel(%arg0: i32, %arg1: memref<8x16x128xf32, #tpu.memory_space<vmem>>, %arg2: memref<8x16x128xf32, #tpu.memory_space<vmem>>, %arg3: memref<128x256xbf16, #tpu.memory_space<vmem>>, %arg4: memref<1x256xf32, #tpu.memory_space<vmem>>, %arg5: memref<128x128xbf16, #tpu.memory_space<vmem>>, %arg6: memref<1x128xf32, #tpu.memory_space<vmem>>, %arg7: memref<128x128xbf16, #tpu.memory_space<vmem>>, %arg8: memref<1x128xf32, #tpu.memory_space<vmem>>, %arg9: memref<128x256xbf16, #tpu.memory_space<vmem>>, %arg10: memref<1x256xf32, #tpu.memory_space<vmem>>, %arg11: memref<256x128xbf16, #tpu.memory_space<vmem>>, %arg12: memref<1x128xf32, #tpu.memory_space<vmem>>, %arg13: memref<1x128xf32, #tpu.memory_space<vmem>>, %arg14: memref<1x128xf32, #tpu.memory_space<vmem>>, %arg15: memref<1x128xf32, #tpu.memory_space<vmem>>, %arg16: memref<1x128xf32, #tpu.memory_space<vmem>>, %arg17: memref<8x16x128xf32, #tpu.memory_space<vmem>>) attributes {dimension_semantics = [#tpu.dimension_semantics<parallel>], iteration_bounds = array<i64: 2>, scalar_prefetch = 0 : i64, scratch_operands = 0 : i64, tpu.core_type = #tpu.core_type<tc>, window_params = [{transform_indices = @transform_0, window_bounds = array<i64: 8, 16, 128>}, {transform_indices = @transform_1, window_bounds = array<i64: 8, 16, 128>}, {pipeline_mode = #tpu.pipeline_mode<synchronous>, transform_indices = @transform_2, window_bounds = array<i64: 128, 256>}, {pipeline_mode = #tpu.pipeline_mode<synchronous>, transform_indices = @transform_3, window_bounds = array<i64: 1, 256>}, {pipeline_mode = #tpu.pipeline_mode<synchronous>, transform_indices = @transform_4, window_bounds = array<i64: 128, 128>}, {pipeline_mode = #tpu.pipeline_mode<synchronous>, transform_indices = @transform_5, window_bounds = array<i64: 1, 128>}, {pipeline_mode = #tpu.pipeline_mode<synchronous>, transform_indices = @transform_6, window_bounds = array<i64: 128, 128>}, {pipeline_mode = #tpu.pipeline_mode<synchronous>, transform_indices = @transform_7, window_bounds = array<i64: 1, 128>}, {pipeline_mode = #tpu.pipeline_mode<synchronous>, transform_indices = @transform_8, window_bounds = array<i64: 128, 256>}, {pipeline_mode = #tpu.pipeline_mode<synchronous>, transform_indices = @transform_9, window_bounds = array<i64: 1, 256>}, {pipeline_mode = #tpu.pipeline_mode<synchronous>, transform_indices = @transform_10, window_bounds = array<i64: 256, 128>}, {pipeline_mode = #tpu.pipeline_mode<synchronous>, transform_indices = @transform_11, window_bounds = array<i64: 1, 128>}, {pipeline_mode = #tpu.pipeline_mode<synchronous>, transform_indices = @transform_12, window_bounds = array<i64: 1, 128>}, {pipeline_mode = #tpu.pipeline_mode<synchronous>, transform_indices = @transform_13, window_bounds = array<i64: 1, 128>}, {pipeline_mode = #tpu.pipeline_mode<synchronous>, transform_indices = @transform_14, window_bounds = array<i64: 1, 128>}, {pipeline_mode = #tpu.pipeline_mode<synchronous>, transform_indices = @transform_15, window_bounds = array<i64: 1, 128>}, {transform_indices = @transform_16, window_bounds = array<i64: 8, 16, 128>}]} {
    %c0 = arith.constant 0 : index
    %c0_0 = arith.constant 0 : index
    %c0_1 = arith.constant 0 : index
    %0 = vector.load %arg1[%c0, %c0_0, %c0_1] : memref<8x16x128xf32, #tpu.memory_space<vmem>>, vector<8x16x128xf32>
    %1 = vector.shape_cast %0 : vector<8x16x128xf32> to vector<128x128xf32>
    %c0_2 = arith.constant 0 : index
    %c0_3 = arith.constant 0 : index
    %c0_4 = arith.constant 0 : index
    %2 = vector.load %arg2[%c0_2, %c0_3, %c0_4] : memref<8x16x128xf32, #tpu.memory_space<vmem>>, vector<8x16x128xf32>
    %3 = vector.shape_cast %2 : vector<8x16x128xf32> to vector<128x128xf32>
    %4 = arith.addf %1, %3 : vector<128x128xf32>
    %5 = arith.truncf %4 : vector<128x128xf32> to vector<128x128xbf16>
    %c0_5 = arith.constant 0 : index
    %c0_6 = arith.constant 0 : index
    %6 = vector.load %arg3[%c0_5, %c0_6] : memref<128x256xbf16, #tpu.memory_space<vmem>>, vector<128x256xbf16>
    %cst = arith.constant dense<0.000000e+00> : vector<128x256xf32>
    %7 = tpu.matmul %5, %6, %cst {dimension_numbers = #tpu.dot_dimension_numbers<[1], [0], [0], [1], [0, 0, 1, 1], [], []>} : vector<128x128xbf16>, vector<128x256xbf16>, vector<128x256xf32> -> vector<128x256xf32>
    %c0_7 = arith.constant 0 : index
    %c0_8 = arith.constant 0 : index
    %8 = vector.load %arg4[%c0_7, %c0_8] : memref<1x256xf32, #tpu.memory_space<vmem>>, vector<1x256xf32>
    %9 = vector.broadcast %8 : vector<1x256xf32> to vector<128x256xf32>
    %10 = arith.addf %7, %9 : vector<128x256xf32>
    %11 = arith.truncf %1 : vector<128x128xf32> to vector<128x128xbf16>
    %c0_9 = arith.constant 0 : index
    %c0_10 = arith.constant 0 : index
    %12 = vector.load %arg5[%c0_9, %c0_10] : memref<128x128xbf16, #tpu.memory_space<vmem>>, vector<128x128xbf16>
    %cst_11 = arith.constant dense<0.000000e+00> : vector<128x128xf32>
    %13 = tpu.matmul %11, %12, %cst_11 {dimension_numbers = #tpu.dot_dimension_numbers<[1], [0], [0], [1], [0, 0, 1, 1], [], []>} : vector<128x128xbf16>, vector<128x128xbf16>, vector<128x128xf32> -> vector<128x128xf32>
    %c0_12 = arith.constant 0 : index
    %c0_13 = arith.constant 0 : index
    %14 = vector.load %arg6[%c0_12, %c0_13] : memref<1x128xf32, #tpu.memory_space<vmem>>, vector<1x128xf32>
    %15 = vector.broadcast %14 : vector<1x128xf32> to vector<128x128xf32>
    %16 = arith.addf %13, %15 : vector<128x128xf32>
    %17 = vector.extract_strided_slice %10 {offsets = [0, 0], sizes = [128, 128], strides = [1, 1]} : vector<128x256xf32> to vector<128x128xf32>
    %18 = vector.extract_strided_slice %17 {offsets = [0, 0], sizes = [128, 32], strides = [1, 1]} : vector<128x128xf32> to vector<128x32xf32>
    %19 = vector.shape_cast %18 : vector<128x32xf32> to vector<8x16x32xf32>
    %20 = vector.extract_strided_slice %17 {offsets = [0, 32], sizes = [128, 32], strides = [1, 1]} : vector<128x128xf32> to vector<128x32xf32>
    %21 = vector.shape_cast %20 : vector<128x32xf32> to vector<8x16x32xf32>
    %22 = vector.extract_strided_slice %17 {offsets = [0, 64], sizes = [128, 32], strides = [1, 1]} : vector<128x128xf32> to vector<128x32xf32>
    %23 = vector.shape_cast %22 : vector<128x32xf32> to vector<8x16x32xf32>
    %24 = vector.extract_strided_slice %17 {offsets = [0, 96], sizes = [128, 32], strides = [1, 1]} : vector<128x128xf32> to vector<128x32xf32>
    %25 = vector.shape_cast %24 : vector<128x32xf32> to vector<8x16x32xf32>
    %26 = tpu.concatenate %19, %21, %23, %25 in 0 : vector<8x16x32xf32>, vector<8x16x32xf32>, vector<8x16x32xf32>, vector<8x16x32xf32> -> vector<32x16x32xf32>
    %27 = arith.truncf %26 : vector<32x16x32xf32> to vector<32x16x32xbf16>
    %28 = vector.extract_strided_slice %10 {offsets = [0, 128], sizes = [128, 128], strides = [1, 1]} : vector<128x256xf32> to vector<128x128xf32>
    %29 = vector.extract_strided_slice %28 {offsets = [0, 0], sizes = [128, 32], strides = [1, 1]} : vector<128x128xf32> to vector<128x32xf32>
    %30 = vector.shape_cast %29 : vector<128x32xf32> to vector<8x16x32xf32>
    %31 = vector.extract_strided_slice %28 {offsets = [0, 32], sizes = [128, 32], strides = [1, 1]} : vector<128x128xf32> to vector<128x32xf32>
    %32 = vector.shape_cast %31 : vector<128x32xf32> to vector<8x16x32xf32>
    %33 = vector.extract_strided_slice %28 {offsets = [0, 64], sizes = [128, 32], strides = [1, 1]} : vector<128x128xf32> to vector<128x32xf32>
    %34 = vector.shape_cast %33 : vector<128x32xf32> to vector<8x16x32xf32>
    %35 = vector.extract_strided_slice %28 {offsets = [0, 96], sizes = [128, 32], strides = [1, 1]} : vector<128x128xf32> to vector<128x32xf32>
    %36 = vector.shape_cast %35 : vector<128x32xf32> to vector<8x16x32xf32>
    %37 = tpu.concatenate %30, %32, %34, %36 in 0 : vector<8x16x32xf32>, vector<8x16x32xf32>, vector<8x16x32xf32>, vector<8x16x32xf32> -> vector<32x16x32xf32>
    %38 = arith.truncf %37 : vector<32x16x32xf32> to vector<32x16x32xbf16>
    %39 = vector.extract_strided_slice %16 {offsets = [0, 0], sizes = [128, 32], strides = [1, 1]} : vector<128x128xf32> to vector<128x32xf32>
    %40 = vector.shape_cast %39 : vector<128x32xf32> to vector<8x16x32xf32>
    %41 = vector.extract_strided_slice %16 {offsets = [0, 32], sizes = [128, 32], strides = [1, 1]} : vector<128x128xf32> to vector<128x32xf32>
    %42 = vector.shape_cast %41 : vector<128x32xf32> to vector<8x16x32xf32>
    %43 = vector.extract_strided_slice %16 {offsets = [0, 64], sizes = [128, 32], strides = [1, 1]} : vector<128x128xf32> to vector<128x32xf32>
    %44 = vector.shape_cast %43 : vector<128x32xf32> to vector<8x16x32xf32>
    %45 = vector.extract_strided_slice %16 {offsets = [0, 96], sizes = [128, 32], strides = [1, 1]} : vector<128x128xf32> to vector<128x32xf32>
    %46 = vector.shape_cast %45 : vector<128x32xf32> to vector<8x16x32xf32>
    %47 = tpu.concatenate %40, %42, %44, %46 in 0 : vector<8x16x32xf32>, vector<8x16x32xf32>, vector<8x16x32xf32>, vector<8x16x32xf32> -> vector<32x16x32xf32>
    %48 = arith.truncf %47 : vector<32x16x32xf32> to vector<32x16x32xbf16>
    "tpu.trace_start"() <{level = 10 : i32, message = "bqd,bkd->bqk"}> : () -> ()
    %cst_14 = arith.constant dense<0.000000e+00> : vector<32x16x16xf32>
    %49 = tpu.matmul %27, %38, %cst_14 {dimension_numbers = #tpu.dot_dimension_numbers<[2], [2], [1], [1], [0, 0, 0, 1, 1, 1], [0], [0]>} : vector<32x16x32xbf16>, vector<32x16x32xbf16>, vector<32x16x16xf32> -> vector<32x16x16xf32>
    "tpu.trace_stop"() : () -> ()
    %cst_15 = arith.constant dense<0xFF800000> : vector<32x16xf32>
    %50 = vector.multi_reduction <maximumf>, %49, %cst_15 [2] : vector<32x16x16xf32> to vector<32x16xf32>
    %51 = vector.shape_cast %50 : vector<32x16xf32> to vector<32x16x1xf32>
    %52 = vector.broadcast %51 : vector<32x16x1xf32> to vector<32x16x16xf32>
    %53 = arith.subf %49, %52 : vector<32x16x16xf32>
    %54 = math.exp %53 : vector<32x16x16xf32>
    %cst_16 = arith.constant dense<0.000000e+00> : vector<32x16xf32>
    %55 = vector.multi_reduction <add>, %54, %cst_16 [2] : vector<32x16x16xf32> to vector<32x16xf32>
    %56 = vector.shape_cast %55 : vector<32x16xf32> to vector<32x16x1xf32>
    %57 = tpu.reciprocal %56 {approx = true} : vector<32x16x1xf32> -> vector<32x16x1xf32>
    %58 = vector.broadcast %57 : vector<32x16x1xf32> to vector<32x16x16xf32>
    %59 = arith.mulf %54, %58 : vector<32x16x16xf32>
    %60 = arith.truncf %59 : vector<32x16x16xf32> to vector<32x16x16xbf16>
    "tpu.trace_start"() <{level = 10 : i32, message = "bqk,bkd->bqd"}> : () -> ()
    %cst_17 = arith.constant dense<0.000000e+00> : vector<32x16x32xf32>
    %61 = tpu.matmul %60, %48, %cst_17 {dimension_numbers = #tpu.dot_dimension_numbers<[2], [1], [1], [2], [0, 0, 0, 1, 1, 2], [0], [0]>} : vector<32x16x16xbf16>, vector<32x16x32xbf16>, vector<32x16x32xf32> -> vector<32x16x32xf32>
    "tpu.trace_stop"() : () -> ()
    %62 = vector.extract_strided_slice %61 {offsets = [0, 0, 0], sizes = [8, 16, 32], strides = [1, 1, 1]} : vector<32x16x32xf32> to vector<8x16x32xf32>
    %63 = vector.shape_cast %62 : vector<8x16x32xf32> to vector<128x32xf32>
    %64 = vector.extract_strided_slice %61 {offsets = [8, 0, 0], sizes = [8, 16, 32], strides = [1, 1, 1]} : vector<32x16x32xf32> to vector<8x16x32xf32>
    %65 = vector.shape_cast %64 : vector<8x16x32xf32> to vector<128x32xf32>
    %66 = vector.extract_strided_slice %61 {offsets = [16, 0, 0], sizes = [8, 16, 32], strides = [1, 1, 1]} : vector<32x16x32xf32> to vector<8x16x32xf32>
    %67 = vector.shape_cast %66 : vector<8x16x32xf32> to vector<128x32xf32>
    %68 = vector.extract_strided_slice %61 {offsets = [24, 0, 0], sizes = [8, 16, 32], strides = [1, 1, 1]} : vector<32x16x32xf32> to vector<8x16x32xf32>
    %69 = vector.shape_cast %68 : vector<8x16x32xf32> to vector<128x32xf32>
    %70 = tpu.concatenate %63, %65, %67, %69 in 1 : vector<128x32xf32>, vector<128x32xf32>, vector<128x32xf32>, vector<128x32xf32> -> vector<128x128xf32>
    %71 = arith.truncf %70 : vector<128x128xf32> to vector<128x128xbf16>
    %c0_18 = arith.constant 0 : index
    %c0_19 = arith.constant 0 : index
    %72 = vector.load %arg7[%c0_18, %c0_19] : memref<128x128xbf16, #tpu.memory_space<vmem>>, vector<128x128xbf16>
    %cst_20 = arith.constant dense<0.000000e+00> : vector<128x128xf32>
    %73 = tpu.matmul %71, %72, %cst_20 {dimension_numbers = #tpu.dot_dimension_numbers<[1], [0], [0], [1], [0, 0, 1, 1], [], []>} : vector<128x128xbf16>, vector<128x128xbf16>, vector<128x128xf32> -> vector<128x128xf32>
    %c0_21 = arith.constant 0 : index
    %c0_22 = arith.constant 0 : index
    %74 = vector.load %arg8[%c0_21, %c0_22] : memref<1x128xf32, #tpu.memory_space<vmem>>, vector<1x128xf32>
    %75 = vector.broadcast %74 : vector<1x128xf32> to vector<128x128xf32>
    %76 = arith.addf %73, %75 : vector<128x128xf32>
    %77 = arith.addf %1, %76 : vector<128x128xf32>
    %cst_23 = arith.constant dense<0.000000e+00> : vector<128xf32>
    %78 = vector.multi_reduction <add>, %77, %cst_23 [1] : vector<128x128xf32> to vector<128xf32>
    %79 = vector.shape_cast %78 : vector<128xf32> to vector<128x1xf32>
    %cst_24 = arith.constant 1.280000e+02 : f32
    %80 = vector.broadcast %cst_24 : f32 to vector<128x1xf32>
    %81 = arith.divf %79, %80 : vector<128x1xf32>
    %82 = vector.broadcast %81 : vector<128x1xf32> to vector<128x128xf32>
    %83 = arith.subf %77, %82 : vector<128x128xf32>
    %84 = arith.mulf %83, %83 : vector<128x128xf32>
    %cst_25 = arith.constant dense<0.000000e+00> : vector<128xf32>
    %85 = vector.multi_reduction <add>, %84, %cst_25 [1] : vector<128x128xf32> to vector<128xf32>
    %86 = vector.shape_cast %85 : vector<128xf32> to vector<128x1xf32>
    %cst_26 = arith.constant 1.280000e+02 : f32
    %87 = vector.broadcast %cst_26 : f32 to vector<128x1xf32>
    %88 = arith.divf %86, %87 : vector<128x1xf32>
    %89 = vector.broadcast %81 : vector<128x1xf32> to vector<128x128xf32>
    %90 = arith.subf %77, %89 : vector<128x128xf32>
    %cst_27 = arith.constant 9.99999974E-6 : f32
    %91 = vector.broadcast %cst_27 : f32 to vector<128x1xf32>
    %92 = arith.addf %88, %91 : vector<128x1xf32>
    %93 = math.rsqrt %92 : vector<128x1xf32>
    %94 = vector.broadcast %93 : vector<128x1xf32> to vector<128x128xf32>
    %95 = arith.mulf %90, %94 : vector<128x128xf32>
    %c0_28 = arith.constant 0 : index
    %c0_29 = arith.constant 0 : index
    %96 = vector.load %arg13[%c0_28, %c0_29] : memref<1x128xf32, #tpu.memory_space<vmem>>, vector<1x128xf32>
    %97 = vector.broadcast %96 : vector<1x128xf32> to vector<128x128xf32>
    %98 = arith.mulf %95, %97 : vector<128x128xf32>
    %c0_30 = arith.constant 0 : index
    %c0_31 = arith.constant 0 : index
    %99 = vector.load %arg14[%c0_30, %c0_31] : memref<1x128xf32, #tpu.memory_space<vmem>>, vector<1x128xf32>
    %100 = vector.broadcast %99 : vector<1x128xf32> to vector<128x128xf32>
    %101 = arith.addf %98, %100 : vector<128x128xf32>
    %102 = arith.truncf %101 : vector<128x128xf32> to vector<128x128xbf16>
    %c0_32 = arith.constant 0 : index
    %c0_33 = arith.constant 0 : index
    %103 = vector.load %arg9[%c0_32, %c0_33] : memref<128x256xbf16, #tpu.memory_space<vmem>>, vector<128x256xbf16>
    %cst_34 = arith.constant dense<0.000000e+00> : vector<128x256xf32>
    %104 = tpu.matmul %102, %103, %cst_34 {dimension_numbers = #tpu.dot_dimension_numbers<[1], [0], [0], [1], [0, 0, 1, 1], [], []>} : vector<128x128xbf16>, vector<128x256xbf16>, vector<128x256xf32> -> vector<128x256xf32>
    %c0_35 = arith.constant 0 : index
    %c0_36 = arith.constant 0 : index
    %105 = vector.load %arg10[%c0_35, %c0_36] : memref<1x256xf32, #tpu.memory_space<vmem>>, vector<1x256xf32>
    %106 = vector.broadcast %105 : vector<1x256xf32> to vector<128x256xf32>
    %107 = arith.addf %104, %106 : vector<128x256xf32>
    %cst_37 = arith.constant 0.000000e+00 : f32
    %108 = vector.broadcast %cst_37 : f32 to vector<128x256xf32>
    %109 = arith.maximumf %107, %108 : vector<128x256xf32>
    %110 = arith.truncf %109 : vector<128x256xf32> to vector<128x256xbf16>
    %c0_38 = arith.constant 0 : index
    %c0_39 = arith.constant 0 : index
    %111 = vector.load %arg11[%c0_38, %c0_39] : memref<256x128xbf16, #tpu.memory_space<vmem>>, vector<256x128xbf16>
    %cst_40 = arith.constant dense<0.000000e+00> : vector<128x128xf32>
    %112 = tpu.matmul %110, %111, %cst_40 {dimension_numbers = #tpu.dot_dimension_numbers<[1], [0], [0], [1], [0, 0, 1, 1], [], []>} : vector<128x256xbf16>, vector<256x128xbf16>, vector<128x128xf32> -> vector<128x128xf32>
    %c0_41 = arith.constant 0 : index
    %c0_42 = arith.constant 0 : index
    %113 = vector.load %arg12[%c0_41, %c0_42] : memref<1x128xf32, #tpu.memory_space<vmem>>, vector<1x128xf32>
    %114 = vector.broadcast %113 : vector<1x128xf32> to vector<128x128xf32>
    %115 = arith.addf %112, %114 : vector<128x128xf32>
    %116 = arith.addf %101, %115 : vector<128x128xf32>
    %cst_43 = arith.constant dense<0.000000e+00> : vector<128xf32>
    %117 = vector.multi_reduction <add>, %116, %cst_43 [1] : vector<128x128xf32> to vector<128xf32>
    %118 = vector.shape_cast %117 : vector<128xf32> to vector<128x1xf32>
    %cst_44 = arith.constant 1.280000e+02 : f32
    %119 = vector.broadcast %cst_44 : f32 to vector<128x1xf32>
    %120 = arith.divf %118, %119 : vector<128x1xf32>
    %121 = vector.broadcast %120 : vector<128x1xf32> to vector<128x128xf32>
    %122 = arith.subf %116, %121 : vector<128x128xf32>
    %123 = arith.mulf %122, %122 : vector<128x128xf32>
    %cst_45 = arith.constant dense<0.000000e+00> : vector<128xf32>
    %124 = vector.multi_reduction <add>, %123, %cst_45 [1] : vector<128x128xf32> to vector<128xf32>
    %125 = vector.shape_cast %124 : vector<128xf32> to vector<128x1xf32>
    %cst_46 = arith.constant 1.280000e+02 : f32
    %126 = vector.broadcast %cst_46 : f32 to vector<128x1xf32>
    %127 = arith.divf %125, %126 : vector<128x1xf32>
    %128 = vector.broadcast %120 : vector<128x1xf32> to vector<128x128xf32>
    %129 = arith.subf %116, %128 : vector<128x128xf32>
    %cst_47 = arith.constant 9.99999974E-6 : f32
    %130 = vector.broadcast %cst_47 : f32 to vector<128x1xf32>
    %131 = arith.addf %127, %130 : vector<128x1xf32>
    %132 = math.rsqrt %131 : vector<128x1xf32>
    %133 = vector.broadcast %132 : vector<128x1xf32> to vector<128x128xf32>
    %134 = arith.mulf %129, %133 : vector<128x128xf32>
    %c0_48 = arith.constant 0 : index
    %c0_49 = arith.constant 0 : index
    %135 = vector.load %arg15[%c0_48, %c0_49] : memref<1x128xf32, #tpu.memory_space<vmem>>, vector<1x128xf32>
    %136 = vector.broadcast %135 : vector<1x128xf32> to vector<128x128xf32>
    %137 = arith.mulf %134, %136 : vector<128x128xf32>
    %c0_50 = arith.constant 0 : index
    %c0_51 = arith.constant 0 : index
    %138 = vector.load %arg16[%c0_50, %c0_51] : memref<1x128xf32, #tpu.memory_space<vmem>>, vector<1x128xf32>
    %139 = vector.broadcast %138 : vector<1x128xf32> to vector<128x128xf32>
    %140 = arith.addf %137, %139 : vector<128x128xf32>
    %141 = vector.shape_cast %140 : vector<128x128xf32> to vector<8x16x128xf32>
    %c0_52 = arith.constant 0 : index
    %c0_53 = arith.constant 0 : index
    %c0_54 = arith.constant 0 : index
    %142 = vector.load %arg17[%c0_52, %c0_53, %c0_54] : memref<8x16x128xf32, #tpu.memory_space<vmem>>, vector<8x16x128xf32>
    tpu.vector_store %arg17[%c0_52, %c0_53, %c0_54], %141 {strides = array<i32>} : memref<8x16x128xf32, #tpu.memory_space<vmem>>, vector<8x16x128xf32>,
    return
  }
  func.func @transform_0(%arg0: i32) -> (i32, i32, i32) {
    %c0_i32 = arith.constant 0 : i32
    %c0_i32_0 = arith.constant 0 : i32
    %c0_i32_1 = arith.constant 0 : i32
    return %arg0, %c0_i32, %c0_i32_0 : i32, i32, i32
  }
  func.func @transform_1(%arg0: i32) -> (i32, i32, i32) {
    %c0_i32 = arith.constant 0 : i32
    %c0_i32_0 = arith.constant 0 : i32
    %c0_i32_1 = arith.constant 0 : i32
    return %arg0, %c0_i32, %c0_i32_0 : i32, i32, i32
  }
  func.func @transform_2(%arg0: i32) -> (i32, i32) {
    %c0_i32 = arith.constant 0 : i32
    %c0_i32_0 = arith.constant 0 : i32
    %c0_i32_1 = arith.constant 0 : i32
    return %c0_i32, %c0_i32_0 : i32, i32
  }
  func.func @transform_3(%arg0: i32) -> (i32, i32) {
    %c0_i32 = arith.constant 0 : i32
    %c0_i32_0 = arith.constant 0 : i32
    %c0_i32_1 = arith.constant 0 : i32
    return %c0_i32, %c0_i32_0 : i32, i32
  }
  func.func @transform_4(%arg0: i32) -> (i32, i32) {
    %c0_i32 = arith.constant 0 : i32
    %c0_i32_0 = arith.constant 0 : i32
    %c0_i32_1 = arith.constant 0 : i32
    return %c0_i32, %c0_i32_0 : i32, i32
  }
  func.func @transform_5(%arg0: i32) -> (i32, i32) {
    %c0_i32 = arith.constant 0 : i32
    %c0_i32_0 = arith.constant 0 : i32
    %c0_i32_1 = arith.constant 0 : i32
    return %c0_i32, %c0_i32_0 : i32, i32
  }
  func.func @transform_6(%arg0: i32) -> (i32, i32) {
    %c0_i32 = arith.constant 0 : i32
    %c0_i32_0 = arith.constant 0 : i32
    %c0_i32_1 = arith.constant 0 : i32
    return %c0_i32, %c0_i32_0 : i32, i32
  }
  func.func @transform_7(%arg0: i32) -> (i32, i32) {
    %c0_i32 = arith.constant 0 : i32
    %c0_i32_0 = arith.constant 0 : i32
    %c0_i32_1 = arith.constant 0 : i32
    return %c0_i32, %c0_i32_0 : i32, i32
  }
  func.func @transform_8(%arg0: i32) -> (i32, i32) {
    %c0_i32 = arith.constant 0 : i32
    %c0_i32_0 = arith.constant 0 : i32
    %c0_i32_1 = arith.constant 0 : i32
    return %c0_i32, %c0_i32_0 : i32, i32
  }
  func.func @transform_9(%arg0: i32) -> (i32, i32) {
    %c0_i32 = arith.constant 0 : i32
    %c0_i32_0 = arith.constant 0 : i32
    %c0_i32_1 = arith.constant 0 : i32
    return %c0_i32, %c0_i32_0 : i32, i32
  }
  func.func @transform_10(%arg0: i32) -> (i32, i32) {
    %c0_i32 = arith.constant 0 : i32
    %c0_i32_0 = arith.constant 0 : i32
    %c0_i32_1 = arith.constant 0 : i32
    return %c0_i32, %c0_i32_0 : i32, i32
  }
  func.func @transform_11(%arg0: i32) -> (i32, i32) {
    %c0_i32 = arith.constant 0 : i32
    %c0_i32_0 = arith.constant 0 : i32
    %c0_i32_1 = arith.constant 0 : i32
    return %c0_i32, %c0_i32_0 : i32, i32
  }
  func.func @transform_12(%arg0: i32) -> (i32, i32) {
    %c0_i32 = arith.constant 0 : i32
    %c0_i32_0 = arith.constant 0 : i32
    %c0_i32_1 = arith.constant 0 : i32
    return %c0_i32, %c0_i32_0 : i32, i32
  }
  func.func @transform_13(%arg0: i32) -> (i32, i32) {
    %c0_i32 = arith.constant 0 : i32
    %c0_i32_0 = arith.constant 0 : i32
    %c0_i32_1 = arith.constant 0 : i32
    return %c0_i32, %c0_i32_0 : i32, i32
  }
  func.func @transform_14(%arg0: i32) -> (i32, i32) {
    %c0_i32 = arith.constant 0 : i32
    %c0_i32_0 = arith.constant 0 : i32
    %c0_i32_1 = arith.constant 0 : i32
    return %c0_i32, %c0_i32_0 : i32, i32
  }
  func.func @transform_15(%arg0: i32) -> (i32, i32) {
    %c0_i32 = arith.constant 0 : i32
    %c0_i32_0 = arith.constant 0 : i32
    %c0_i32_1 = arith.constant 0 : i32
    return %c0_i32, %c0_i32_0 : i32, i32
  }
  func.func @transform_16(%arg0: i32) -> (i32, i32, i32) {
    %c0_i32 = arith.constant 0 : i32
    %c0_i32_0 = arith.constant 0 : i32
    %c0_i32_1 = arith.constant 0 : i32
    return %arg0, %c0_i32, %c0_i32_0 : i32, i32, i32
  }
}

module attributes {stable_mosaic.version = 11 : i64} {
  func.func @_encoder_layer_kernel(%arg0: i32, %arg1: memref<8x16x128xf32, #tpu.memory_space<vmem>>, %arg2: memref<8x16x128xf32, #tpu.memory_space<vmem>>, %arg3: memref<128x256xbf16, #tpu.memory_space<vmem>>, %arg4: memref<1x256xf32, #tpu.memory_space<vmem>>, %arg5: memref<128x128xbf16, #tpu.memory_space<vmem>>, %arg6: memref<1x128xf32, #tpu.memory_space<vmem>>, %arg7: memref<128x128xbf16, #tpu.memory_space<vmem>>, %arg8: memref<1x128xf32, #tpu.memory_space<vmem>>, %arg9: memref<128x256xbf16, #tpu.memory_space<vmem>>, %arg10: memref<1x256xf32, #tpu.memory_space<vmem>>, %arg11: memref<256x128xbf16, #tpu.memory_space<vmem>>, %arg12: memref<1x128xf32, #tpu.memory_space<vmem>>, %arg13: memref<1x128xf32, #tpu.memory_space<vmem>>, %arg14: memref<1x128xf32, #tpu.memory_space<vmem>>, %arg15: memref<1x128xf32, #tpu.memory_space<vmem>>, %arg16: memref<1x128xf32, #tpu.memory_space<vmem>>, %arg17: memref<8x16x128xf32, #tpu.memory_space<vmem>>) attributes {dimension_semantics = [#tpu.dimension_semantics<parallel>], iteration_bounds = array<i64: 2>, scalar_prefetch = 0 : i64, scratch_operands = 0 : i64, tpu.core_type = #tpu.core_type<tc>, window_params = [{transform_indices = @transform_0, window_bounds = array<i64: 8, 16, 128>}, {transform_indices = @transform_1, window_bounds = array<i64: 8, 16, 128>}, {pipeline_mode = #tpu.pipeline_mode<synchronous>, transform_indices = @transform_2, window_bounds = array<i64: 128, 256>}, {pipeline_mode = #tpu.pipeline_mode<synchronous>, transform_indices = @transform_3, window_bounds = array<i64: 1, 256>}, {pipeline_mode = #tpu.pipeline_mode<synchronous>, transform_indices = @transform_4, window_bounds = array<i64: 128, 128>}, {pipeline_mode = #tpu.pipeline_mode<synchronous>, transform_indices = @transform_5, window_bounds = array<i64: 1, 128>}, {pipeline_mode = #tpu.pipeline_mode<synchronous>, transform_indices = @transform_6, window_bounds = array<i64: 128, 128>}, {pipeline_mode = #tpu.pipeline_mode<synchronous>, transform_indices = @transform_7, window_bounds = array<i64: 1, 128>}, {pipeline_mode = #tpu.pipeline_mode<synchronous>, transform_indices = @transform_8, window_bounds = array<i64: 128, 256>}, {pipeline_mode = #tpu.pipeline_mode<synchronous>, transform_indices = @transform_9, window_bounds = array<i64: 1, 256>}, {pipeline_mode = #tpu.pipeline_mode<synchronous>, transform_indices = @transform_10, window_bounds = array<i64: 256, 128>}, {pipeline_mode = #tpu.pipeline_mode<synchronous>, transform_indices = @transform_11, window_bounds = array<i64: 1, 128>}, {pipeline_mode = #tpu.pipeline_mode<synchronous>, transform_indices = @transform_12, window_bounds = array<i64: 1, 128>}, {pipeline_mode = #tpu.pipeline_mode<synchronous>, transform_indices = @transform_13, window_bounds = array<i64: 1, 128>}, {pipeline_mode = #tpu.pipeline_mode<synchronous>, transform_indices = @transform_14, window_bounds = array<i64: 1, 128>}, {pipeline_mode = #tpu.pipeline_mode<synchronous>, transform_indices = @transform_15, window_bounds = array<i64: 1, 128>}, {transform_indices = @transform_16, window_bounds = array<i64: 8, 16, 128>}]} {
    %c0 = arith.constant 0 : index
    %c0_0 = arith.constant 0 : index
    %c0_1 = arith.constant 0 : index
    %0 = vector.load %arg1[%c0, %c0_0, %c0_1] : memref<8x16x128xf32, #tpu.memory_space<vmem>>, vector<8x16x128xf32>
    %1 = vector.shape_cast %0 : vector<8x16x128xf32> to vector<128x128xf32>
    %c0_2 = arith.constant 0 : index
    %c0_3 = arith.constant 0 : index
    %c0_4 = arith.constant 0 : index
    %2 = vector.load %arg2[%c0_2, %c0_3, %c0_4] : memref<8x16x128xf32, #tpu.memory_space<vmem>>, vector<8x16x128xf32>
    %3 = vector.shape_cast %2 : vector<8x16x128xf32> to vector<128x128xf32>
    %4 = arith.addf %1, %3 : vector<128x128xf32>
    %5 = arith.truncf %4 : vector<128x128xf32> to vector<128x128xbf16>
    %c0_5 = arith.constant 0 : index
    %c0_6 = arith.constant 0 : index
    %6 = vector.load %arg3[%c0_5, %c0_6] : memref<128x256xbf16, #tpu.memory_space<vmem>>, vector<128x256xbf16>
    %cst = arith.constant dense<0.000000e+00> : vector<128x256xf32>
    %7 = tpu.matmul %5, %6, %cst {dimension_numbers = #tpu.dot_dimension_numbers<[1], [0], [0], [1], [0, 0, 1, 1], [], []>} : vector<128x128xbf16>, vector<128x256xbf16>, vector<128x256xf32> -> vector<128x256xf32>
    %c0_7 = arith.constant 0 : index
    %c0_8 = arith.constant 0 : index
    %8 = vector.load %arg4[%c0_7, %c0_8] : memref<1x256xf32, #tpu.memory_space<vmem>>, vector<1x256xf32>
    %9 = vector.broadcast %8 : vector<1x256xf32> to vector<128x256xf32>
    %10 = arith.addf %7, %9 : vector<128x256xf32>
    %11 = arith.truncf %1 : vector<128x128xf32> to vector<128x128xbf16>
    %c0_9 = arith.constant 0 : index
    %c0_10 = arith.constant 0 : index
    %12 = vector.load %arg5[%c0_9, %c0_10] : memref<128x128xbf16, #tpu.memory_space<vmem>>, vector<128x128xbf16>
    %cst_11 = arith.constant dense<0.000000e+00> : vector<128x128xf32>
    %13 = tpu.matmul %11, %12, %cst_11 {dimension_numbers = #tpu.dot_dimension_numbers<[1], [0], [0], [1], [0, 0, 1, 1], [], []>} : vector<128x128xbf16>, vector<128x128xbf16>, vector<128x128xf32> -> vector<128x128xf32>
    %c0_12 = arith.constant 0 : index
    %c0_13 = arith.constant 0 : index
    %14 = vector.load %arg6[%c0_12, %c0_13] : memref<1x128xf32, #tpu.memory_space<vmem>>, vector<1x128xf32>
    %15 = vector.broadcast %14 : vector<1x128xf32> to vector<128x128xf32>
    %16 = arith.addf %13, %15 : vector<128x128xf32>
    %17 = vector.extract_strided_slice %10 {offsets = [0, 0], sizes = [128, 128], strides = [1, 1]} : vector<128x256xf32> to vector<128x128xf32>
    %18 = vector.extract_strided_slice %17 {offsets = [0, 0], sizes = [128, 32], strides = [1, 1]} : vector<128x128xf32> to vector<128x32xf32>
    %19 = vector.shape_cast %18 : vector<128x32xf32> to vector<8x16x32xf32>
    %20 = vector.extract_strided_slice %17 {offsets = [0, 32], sizes = [128, 32], strides = [1, 1]} : vector<128x128xf32> to vector<128x32xf32>
    %21 = vector.shape_cast %20 : vector<128x32xf32> to vector<8x16x32xf32>
    %22 = vector.extract_strided_slice %17 {offsets = [0, 64], sizes = [128, 32], strides = [1, 1]} : vector<128x128xf32> to vector<128x32xf32>
    %23 = vector.shape_cast %22 : vector<128x32xf32> to vector<8x16x32xf32>
    %24 = vector.extract_strided_slice %17 {offsets = [0, 96], sizes = [128, 32], strides = [1, 1]} : vector<128x128xf32> to vector<128x32xf32>
    %25 = vector.shape_cast %24 : vector<128x32xf32> to vector<8x16x32xf32>
    %26 = tpu.concatenate %19, %21, %23, %25 in 0 : vector<8x16x32xf32>, vector<8x16x32xf32>, vector<8x16x32xf32>, vector<8x16x32xf32> -> vector<32x16x32xf32>
    %27 = arith.truncf %26 : vector<32x16x32xf32> to vector<32x16x32xbf16>
    %28 = vector.extract_strided_slice %10 {offsets = [0, 128], sizes = [128, 128], strides = [1, 1]} : vector<128x256xf32> to vector<128x128xf32>
    %29 = vector.extract_strided_slice %28 {offsets = [0, 0], sizes = [128, 32], strides = [1, 1]} : vector<128x128xf32> to vector<128x32xf32>
    %30 = vector.shape_cast %29 : vector<128x32xf32> to vector<8x16x32xf32>
    %31 = vector.extract_strided_slice %28 {offsets = [0, 32], sizes = [128, 32], strides = [1, 1]} : vector<128x128xf32> to vector<128x32xf32>
    %32 = vector.shape_cast %31 : vector<128x32xf32> to vector<8x16x32xf32>
    %33 = vector.extract_strided_slice %28 {offsets = [0, 64], sizes = [128, 32], strides = [1, 1]} : vector<128x128xf32> to vector<128x32xf32>
    %34 = vector.shape_cast %33 : vector<128x32xf32> to vector<8x16x32xf32>
    %35 = vector.extract_strided_slice %28 {offsets = [0, 96], sizes = [128, 32], strides = [1, 1]} : vector<128x128xf32> to vector<128x32xf32>
    %36 = vector.shape_cast %35 : vector<128x32xf32> to vector<8x16x32xf32>
    %37 = tpu.concatenate %30, %32, %34, %36 in 0 : vector<8x16x32xf32>, vector<8x16x32xf32>, vector<8x16x32xf32>, vector<8x16x32xf32> -> vector<32x16x32xf32>
    %38 = arith.truncf %37 : vector<32x16x32xf32> to vector<32x16x32xbf16>
    %39 = vector.extract_strided_slice %16 {offsets = [0, 0], sizes = [128, 32], strides = [1, 1]} : vector<128x128xf32> to vector<128x32xf32>
    %40 = vector.shape_cast %39 : vector<128x32xf32> to vector<8x16x32xf32>
    %41 = vector.extract_strided_slice %16 {offsets = [0, 32], sizes = [128, 32], strides = [1, 1]} : vector<128x128xf32> to vector<128x32xf32>
    %42 = vector.shape_cast %41 : vector<128x32xf32> to vector<8x16x32xf32>
    %43 = vector.extract_strided_slice %16 {offsets = [0, 64], sizes = [128, 32], strides = [1, 1]} : vector<128x128xf32> to vector<128x32xf32>
    %44 = vector.shape_cast %43 : vector<128x32xf32> to vector<8x16x32xf32>
    %45 = vector.extract_strided_slice %16 {offsets = [0, 96], sizes = [128, 32], strides = [1, 1]} : vector<128x128xf32> to vector<128x32xf32>
    %46 = vector.shape_cast %45 : vector<128x32xf32> to vector<8x16x32xf32>
    %47 = tpu.concatenate %40, %42, %44, %46 in 0 : vector<8x16x32xf32>, vector<8x16x32xf32>, vector<8x16x32xf32>, vector<8x16x32xf32> -> vector<32x16x32xf32>
    %48 = arith.truncf %47 : vector<32x16x32xf32> to vector<32x16x32xbf16>
    "tpu.trace_start"() <{level = 10 : i32, message = "bqd,bkd->bqk"}> : () -> ()
    %cst_14 = arith.constant dense<0.000000e+00> : vector<32x16x16xf32>
    %49 = tpu.matmul %27, %38, %cst_14 {dimension_numbers = #tpu.dot_dimension_numbers<[2], [2], [1], [1], [0, 0, 0, 1, 1, 1], [0], [0]>} : vector<32x16x32xbf16>, vector<32x16x32xbf16>, vector<32x16x16xf32> -> vector<32x16x16xf32>
    "tpu.trace_stop"() : () -> ()
    %cst_15 = arith.constant dense<0xFF800000> : vector<32x16xf32>
    %50 = vector.multi_reduction <maximumf>, %49, %cst_15 [2] : vector<32x16x16xf32> to vector<32x16xf32>
    %51 = vector.shape_cast %50 : vector<32x16xf32> to vector<32x16x1xf32>
    %52 = vector.broadcast %51 : vector<32x16x1xf32> to vector<32x16x16xf32>
    %53 = arith.subf %49, %52 : vector<32x16x16xf32>
    %54 = math.exp %53 : vector<32x16x16xf32>
    %cst_16 = arith.constant dense<0.000000e+00> : vector<32x16xf32>
    %55 = vector.multi_reduction <add>, %54, %cst_16 [2] : vector<32x16x16xf32> to vector<32x16xf32>
    %56 = vector.shape_cast %55 : vector<32x16xf32> to vector<32x16x1xf32>
    %57 = tpu.reciprocal %56 {approx = true} : vector<32x16x1xf32> -> vector<32x16x1xf32>
    %58 = vector.broadcast %57 : vector<32x16x1xf32> to vector<32x16x16xf32>
    %59 = arith.mulf %54, %58 : vector<32x16x16xf32>
    %60 = arith.truncf %59 : vector<32x16x16xf32> to vector<32x16x16xbf16>
    "tpu.trace_start"() <{level = 10 : i32, message = "bqk,bkd->bqd"}> : () -> ()
    %cst_17 = arith.constant dense<0.000000e+00> : vector<32x16x32xf32>
    %61 = tpu.matmul %60, %48, %cst_17 {dimension_numbers = #tpu.dot_dimension_numbers<[2], [1], [1], [2], [0, 0, 0, 1, 1, 2], [0], [0]>} : vector<32x16x16xbf16>, vector<32x16x32xbf16>, vector<32x16x32xf32> -> vector<32x16x32xf32>
    "tpu.trace_stop"() : () -> ()
    %62 = vector.extract_strided_slice %61 {offsets = [0, 0, 0], sizes = [8, 16, 32], strides = [1, 1, 1]} : vector<32x16x32xf32> to vector<8x16x32xf32>
    %63 = vector.shape_cast %62 : vector<8x16x32xf32> to vector<128x32xf32>
    %64 = vector.extract_strided_slice %61 {offsets = [8, 0, 0], sizes = [8, 16, 32], strides = [1, 1, 1]} : vector<32x16x32xf32> to vector<8x16x32xf32>
    %65 = vector.shape_cast %64 : vector<8x16x32xf32> to vector<128x32xf32>
    %66 = vector.extract_strided_slice %61 {offsets = [16, 0, 0], sizes = [8, 16, 32], strides = [1, 1, 1]} : vector<32x16x32xf32> to vector<8x16x32xf32>
    %67 = vector.shape_cast %66 : vector<8x16x32xf32> to vector<128x32xf32>
    %68 = vector.extract_strided_slice %61 {offsets = [24, 0, 0], sizes = [8, 16, 32], strides = [1, 1, 1]} : vector<32x16x32xf32> to vector<8x16x32xf32>
    %69 = vector.shape_cast %68 : vector<8x16x32xf32> to vector<128x32xf32>
    %70 = tpu.concatenate %63, %65, %67, %69 in 1 : vector<128x32xf32>, vector<128x32xf32>, vector<128x32xf32>, vector<128x32xf32> -> vector<128x128xf32>
    %71 = arith.truncf %70 : vector<128x128xf32> to vector<128x128xbf16>
    %c0_18 = arith.constant 0 : index
    %c0_19 = arith.constant 0 : index
    %72 = vector.load %arg7[%c0_18, %c0_19] : memref<128x128xbf16, #tpu.memory_space<vmem>>, vector<128x128xbf16>
    %cst_20 = arith.constant dense<0.000000e+00> : vector<128x128xf32>
    %73 = tpu.matmul %71, %72, %cst_20 {dimension_numbers = #tpu.dot_dimension_numbers<[1], [0], [0], [1], [0, 0, 1, 1], [], []>} : vector<128x128xbf16>, vector<128x128xbf16>, vector<128x128xf32> -> vector<128x128xf32>
    %c0_21 = arith.constant 0 : index
    %c0_22 = arith.constant 0 : index
    %74 = vector.load %arg8[%c0_21, %c0_22] : memref<1x128xf32, #tpu.memory_space<vmem>>, vector<1x128xf32>
    %75 = vector.broadcast %74 : vector<1x128xf32> to vector<128x128xf32>
    %76 = arith.addf %73, %75 : vector<128x128xf32>
    %77 = arith.addf %1, %76 : vector<128x128xf32>
    %cst_23 = arith.constant dense<0.000000e+00> : vector<128xf32>
    %78 = vector.multi_reduction <add>, %77, %cst_23 [1] : vector<128x128xf32> to vector<128xf32>
    %79 = vector.shape_cast %78 : vector<128xf32> to vector<128x1xf32>
    %cst_24 = arith.constant 1.280000e+02 : f32
    %80 = vector.broadcast %cst_24 : f32 to vector<128x1xf32>
    %81 = arith.divf %79, %80 : vector<128x1xf32>
    %82 = vector.broadcast %81 : vector<128x1xf32> to vector<128x128xf32>
    %83 = arith.subf %77, %82 : vector<128x128xf32>
    %84 = arith.mulf %83, %83 : vector<128x128xf32>
    %cst_25 = arith.constant dense<0.000000e+00> : vector<128xf32>
    %85 = vector.multi_reduction <add>, %84, %cst_25 [1] : vector<128x128xf32> to vector<128xf32>
    %86 = vector.shape_cast %85 : vector<128xf32> to vector<128x1xf32>
    %cst_26 = arith.constant 1.280000e+02 : f32
    %87 = vector.broadcast %cst_26 : f32 to vector<128x1xf32>
    %88 = arith.divf %86, %87 : vector<128x1xf32>
    %89 = vector.broadcast %81 : vector<128x1xf32> to vector<128x128xf32>
    %90 = arith.subf %77, %89 : vector<128x128xf32>
    %cst_27 = arith.constant 9.99999974E-6 : f32
    %91 = vector.broadcast %cst_27 : f32 to vector<128x1xf32>
    %92 = arith.addf %88, %91 : vector<128x1xf32>
    %93 = math.rsqrt %92 : vector<128x1xf32>
    %94 = vector.broadcast %93 : vector<128x1xf32> to vector<128x128xf32>
    %95 = arith.mulf %90, %94 : vector<128x128xf32>
    %c0_28 = arith.constant 0 : index
    %c0_29 = arith.constant 0 : index
    %96 = vector.load %arg13[%c0_28, %c0_29] : memref<1x128xf32, #tpu.memory_space<vmem>>, vector<1x128xf32>
    %97 = vector.broadcast %96 : vector<1x128xf32> to vector<128x128xf32>
    %98 = arith.mulf %95, %97 : vector<128x128xf32>
    %c0_30 = arith.constant 0 : index
    %c0_31 = arith.constant 0 : index
    %99 = vector.load %arg14[%c0_30, %c0_31] : memref<1x128xf32, #tpu.memory_space<vmem>>, vector<1x128xf32>
    %100 = vector.broadcast %99 : vector<1x128xf32> to vector<128x128xf32>
    %101 = arith.addf %98, %100 : vector<128x128xf32>
    %102 = arith.truncf %101 : vector<128x128xf32> to vector<128x128xbf16>
    %c0_32 = arith.constant 0 : index
    %c0_33 = arith.constant 0 : index
    %103 = vector.load %arg9[%c0_32, %c0_33] : memref<128x256xbf16, #tpu.memory_space<vmem>>, vector<128x256xbf16>
    %cst_34 = arith.constant dense<0.000000e+00> : vector<128x256xf32>
    %104 = tpu.matmul %102, %103, %cst_34 {dimension_numbers = #tpu.dot_dimension_numbers<[1], [0], [0], [1], [0, 0, 1, 1], [], []>} : vector<128x128xbf16>, vector<128x256xbf16>, vector<128x256xf32> -> vector<128x256xf32>
    %c0_35 = arith.constant 0 : index
    %c0_36 = arith.constant 0 : index
    %105 = vector.load %arg10[%c0_35, %c0_36] : memref<1x256xf32, #tpu.memory_space<vmem>>, vector<1x256xf32>
    %106 = vector.broadcast %105 : vector<1x256xf32> to vector<128x256xf32>
    %107 = arith.addf %104, %106 : vector<128x256xf32>
    %cst_37 = arith.constant 0.000000e+00 : f32
    %108 = vector.broadcast %cst_37 : f32 to vector<128x256xf32>
    %109 = arith.maximumf %107, %108 : vector<128x256xf32>
    %110 = arith.truncf %109 : vector<128x256xf32> to vector<128x256xbf16>
    %c0_38 = arith.constant 0 : index
    %c0_39 = arith.constant 0 : index
    %111 = vector.load %arg11[%c0_38, %c0_39] : memref<256x128xbf16, #tpu.memory_space<vmem>>, vector<256x128xbf16>
    %cst_40 = arith.constant dense<0.000000e+00> : vector<128x128xf32>
    %112 = tpu.matmul %110, %111, %cst_40 {dimension_numbers = #tpu.dot_dimension_numbers<[1], [0], [0], [1], [0, 0, 1, 1], [], []>} : vector<128x256xbf16>, vector<256x128xbf16>, vector<128x128xf32> -> vector<128x128xf32>
    %c0_41 = arith.constant 0 : index
    %c0_42 = arith.constant 0 : index
    %113 = vector.load %arg12[%c0_41, %c0_42] : memref<1x128xf32, #tpu.memory_space<vmem>>, vector<1x128xf32>
    %114 = vector.broadcast %113 : vector<1x128xf32> to vector<128x128xf32>
    %115 = arith.addf %112, %114 : vector<128x128xf32>
    %116 = arith.addf %101, %115 : vector<128x128xf32>
    %cst_43 = arith.constant dense<0.000000e+00> : vector<128xf32>
    %117 = vector.multi_reduction <add>, %116, %cst_43 [1] : vector<128x128xf32> to vector<128xf32>
    %118 = vector.shape_cast %117 : vector<128xf32> to vector<128x1xf32>
    %cst_44 = arith.constant 1.280000e+02 : f32
    %119 = vector.broadcast %cst_44 : f32 to vector<128x1xf32>
    %120 = arith.divf %118, %119 : vector<128x1xf32>
    %121 = vector.broadcast %120 : vector<128x1xf32> to vector<128x128xf32>
    %122 = arith.subf %116, %121 : vector<128x128xf32>
    %123 = arith.mulf %122, %122 : vector<128x128xf32>
    %cst_45 = arith.constant dense<0.000000e+00> : vector<128xf32>
    %124 = vector.multi_reduction <add>, %123, %cst_45 [1] : vector<128x128xf32> to vector<128xf32>
    %125 = vector.shape_cast %124 : vector<128xf32> to vector<128x1xf32>
    %cst_46 = arith.constant 1.280000e+02 : f32
    %126 = vector.broadcast %cst_46 : f32 to vector<128x1xf32>
    %127 = arith.divf %125, %126 : vector<128x1xf32>
    %128 = vector.broadcast %120 : vector<128x1xf32> to vector<128x128xf32>
    %129 = arith.subf %116, %128 : vector<128x128xf32>
    %cst_47 = arith.constant 9.99999974E-6 : f32
    %130 = vector.broadcast %cst_47 : f32 to vector<128x1xf32>
    %131 = arith.addf %127, %130 : vector<128x1xf32>
    %132 = math.rsqrt %131 : vector<128x1xf32>
    %133 = vector.broadcast %132 : vector<128x1xf32> to vector<128x128xf32>
    %134 = arith.mulf %129, %133 : vector<128x128xf32>
    %c0_48 = arith.constant 0 : index
    %c0_49 = arith.constant 0 : index
    %135 = vector.load %arg15[%c0_48, %c0_49] : memref<1x128xf32, #tpu.memory_space<vmem>>, vector<1x128xf32>
    %136 = vector.broadcast %135 : vector<1x128xf32> to vector<128x128xf32>
    %137 = arith.mulf %134, %136 : vector<128x128xf32>
    %c0_50 = arith.constant 0 : index
    %c0_51 = arith.constant 0 : index
    %138 = vector.load %arg16[%c0_50, %c0_51] : memref<1x128xf32, #tpu.memory_space<vmem>>, vector<1x128xf32>
    %139 = vector.broadcast %138 : vector<1x128xf32> to vector<128x128xf32>
    %140 = arith.addf %137, %139 : vector<128x128xf32>
    %141 = vector.shape_cast %140 : vector<128x128xf32> to vector<8x16x128xf32>
    %c0_52 = arith.constant 0 : index
    %c0_53 = arith.constant 0 : index
    %c0_54 = arith.constant 0 : index
    %142 = vector.load %arg17[%c0_52, %c0_53, %c0_54] : memref<8x16x128xf32, #tpu.memory_space<vmem>>, vector<8x16x128xf32>
    tpu.vector_store %arg17[%c0_52, %c0_53, %c0_54], %141 {strides = array<i32>} : memref<8x16x128xf32, #tpu.memory_space<vmem>>, vector<8x16x128xf32>,
    return
  }
  func.func @transform_0(%arg0: i32) -> (i32, i32, i32) {
    %c0_i32 = arith.constant 0 : i32
    %c0_i32_0 = arith.constant 0 : i32
    %c0_i32_1 = arith.constant 0 : i32
    return %arg0, %c0_i32, %c0_i32_0 : i32, i32, i32
  }
  func.func @transform_1(%arg0: i32) -> (i32, i32, i32) {
    %c0_i32 = arith.constant 0 : i32
    %c0_i32_0 = arith.constant 0 : i32
    %c0_i32_1 = arith.constant 0 : i32
    return %arg0, %c0_i32, %c0_i32_0 : i32, i32, i32
  }
  func.func @transform_2(%arg0: i32) -> (i32, i32) {
    %c0_i32 = arith.constant 0 : i32
    %c0_i32_0 = arith.constant 0 : i32
    %c0_i32_1 = arith.constant 0 : i32
    return %c0_i32, %c0_i32_0 : i32, i32
  }
  func.func @transform_3(%arg0: i32) -> (i32, i32) {
    %c0_i32 = arith.constant 0 : i32
    %c0_i32_0 = arith.constant 0 : i32
    %c0_i32_1 = arith.constant 0 : i32
    return %c0_i32, %c0_i32_0 : i32, i32
  }
  func.func @transform_4(%arg0: i32) -> (i32, i32) {
    %c0_i32 = arith.constant 0 : i32
    %c0_i32_0 = arith.constant 0 : i32
    %c0_i32_1 = arith.constant 0 : i32
    return %c0_i32, %c0_i32_0 : i32, i32
  }
  func.func @transform_5(%arg0: i32) -> (i32, i32) {
    %c0_i32 = arith.constant 0 : i32
    %c0_i32_0 = arith.constant 0 : i32
    %c0_i32_1 = arith.constant 0 : i32
    return %c0_i32, %c0_i32_0 : i32, i32
  }
  func.func @transform_6(%arg0: i32) -> (i32, i32) {
    %c0_i32 = arith.constant 0 : i32
    %c0_i32_0 = arith.constant 0 : i32
    %c0_i32_1 = arith.constant 0 : i32
    return %c0_i32, %c0_i32_0 : i32, i32
  }
  func.func @transform_7(%arg0: i32) -> (i32, i32) {
    %c0_i32 = arith.constant 0 : i32
    %c0_i32_0 = arith.constant 0 : i32
    %c0_i32_1 = arith.constant 0 : i32
    return %c0_i32, %c0_i32_0 : i32, i32
  }
  func.func @transform_8(%arg0: i32) -> (i32, i32) {
    %c0_i32 = arith.constant 0 : i32
    %c0_i32_0 = arith.constant 0 : i32
    %c0_i32_1 = arith.constant 0 : i32
    return %c0_i32, %c0_i32_0 : i32, i32
  }
  func.func @transform_9(%arg0: i32) -> (i32, i32) {
    %c0_i32 = arith.constant 0 : i32
    %c0_i32_0 = arith.constant 0 : i32
    %c0_i32_1 = arith.constant 0 : i32
    return %c0_i32, %c0_i32_0 : i32, i32
  }
  func.func @transform_10(%arg0: i32) -> (i32, i32) {
    %c0_i32 = arith.constant 0 : i32
    %c0_i32_0 = arith.constant 0 : i32
    %c0_i32_1 = arith.constant 0 : i32
    return %c0_i32, %c0_i32_0 : i32, i32
  }
  func.func @transform_11(%arg0: i32) -> (i32, i32) {
    %c0_i32 = arith.constant 0 : i32
    %c0_i32_0 = arith.constant 0 : i32
    %c0_i32_1 = arith.constant 0 : i32
    return %c0_i32, %c0_i32_0 : i32, i32
  }
  func.func @transform_12(%arg0: i32) -> (i32, i32) {
    %c0_i32 = arith.constant 0 : i32
    %c0_i32_0 = arith.constant 0 : i32
    %c0_i32_1 = arith.constant 0 : i32
    return %c0_i32, %c0_i32_0 : i32, i32
  }
  func.func @transform_13(%arg0: i32) -> (i32, i32) {
    %c0_i32 = arith.constant 0 : i32
    %c0_i32_0 = arith.constant 0 : i32
    %c0_i32_1 = arith.constant 0 : i32
    return %c0_i32, %c0_i32_0 : i32, i32
  }
  func.func @transform_14(%arg0: i32) -> (i32, i32) {
    %c0_i32 = arith.constant 0 : i32
    %c0_i32_0 = arith.constant 0 : i32
    %c0_i32_1 = arith.constant 0 : i32
    return %c0_i32, %c0_i32_0 : i32, i32
  }
  func.func @transform_15(%arg0: i32) -> (i32, i32) {
    %c0_i32 = arith.constant 0 : i32
    %c0_i32_0 = arith.constant 0 : i32
    %c0_i32_1 = arith.constant 0 : i32
    return %c0_i32, %c0_i32_0 : i32, i32
  }
  func.func @transform_16(%arg0: i32) -> (i32, i32, i32) {
    %c0_i32 = arith.constant 0 : i32
    %c0_i32_0 = arith.constant 0 : i32
    %c0_i32_1 = arith.constant 0 : i32
    return %arg0, %c0_i32, %c0_i32_0 : i32, i32, i32
  }
}

</mosaic_0001>

<bundles_post_ra>
// kernel: tpu_custom_call.1
= control target key start
LH: loop header
LB: loop body
LE: loop exit
PB: predicated region body
PF: predicated region fallthrough
CT: control target
= control target key end

     0   :  { %s11739_s0 = inlined_call_operand.hbm [shape: f32[16,16,128], index: 0, kind: input, shape index: {}]   ;;  %s11740_s1 = inlined_call_operand.hbm [shape: f32[16,16,128], index: 1, kind: input, shape index: {}]   ;;  %s11741_s2 = inlined_call_operand.hbm [shape: bf16[128,256], index: 2, kind: input, shape index: {}]   ;;  %s11742_s3 = inlined_call_operand.vmem [shape: f32[1,256], index: 3, kind: input, shape index: {}]   ;;  %s11743_s4 = inlined_call_operand.hbm [shape: bf16[128,128], index: 4, kind: input, shape index: {}]   ;;  %s11744_s5 = inlined_call_operand.vmem [shape: f32[1,128], index: 5, kind: input, shape index: {}]   ;;  %s11745_s6 = inlined_call_operand.hbm [shape: bf16[128,128], index: 6, kind: input, shape index: {}]   ;;  %s11746_s7 = inlined_call_operand.vmem [shape: f32[1,128], index: 7, kind: input, shape index: {}]   ;;  %s11747_s8 = inlined_call_operand.hbm [shape: bf16[128,256], index: 8, kind: input, shape index: {}]   ;;  %s11748_s9 = inlined_call_operand.vmem [shape: f32[1,256], index: 9, kind: input, shape index: {}]   ;;  %s11749_s10 = inlined_call_operand.hbm [shape: bf16[256,128], index: 10, kind: input, shape index: {}]   ;;  %s11750_s11 = inlined_call_operand.vmem [shape: f32[1,128], index: 11, kind: input, shape index: {}]   ;;  %s11751_s12 = inlined_call_operand.vmem [shape: f32[1,128], index: 12, kind: input, shape index: {}]   ;;  %s11752_s13 = inlined_call_operand.vmem [shape: f32[1,128], index: 13, kind: input, shape index: {}]   ;;  %s11753_s14 = inlined_call_operand.vmem [shape: f32[1,128], index: 14, kind: input, shape index: {}]   ;;  %s11754_s15 = inlined_call_operand.vmem [shape: f32[1,128], index: 15, kind: input, shape index: {}]   ;;  %s11755_s16 = inlined_call_operand.hbm [shape: f32[16,16,128], index: 16, kind: output, shape index: {}]  }
   0x1   :  { %11828 = sst [smem:[#allocation73_spill]] %s11739_s0 }
   0x2   :  { %11829 = sst [smem:[#allocation74_spill]] %s11741_s2 }
   0x3   :  { %11830 = sst [smem:[#allocation75_spill]] %s11743_s4 }
   0x4   :  { %11831 = sst [smem:[#allocation76_spill]] %s11745_s6 }
   0x5   :  { %11832 = sst [smem:[#allocation77_spill]] %s11747_s8 }
   0x6   :  { %11833 = sst [smem:[#allocation78_spill]] %s11748_s9 }
   0x7   :  { %11834 = sst [smem:[#allocation79_spill]] %s11749_s10 }
   0x8   :  { %11835 = sst [smem:[#allocation80_spill]] %s11750_s11 }
   0x9   :  { %11836 = sst [smem:[#allocation81_spill]] %s11751_s12 }
   0xa   :  { %11837 = sst [smem:[#allocation82_spill]] %s11752_s13 }
   0xb   :  { %11838 = sst [smem:[#allocation83_spill]] %s11753_s14 }
   0xc   :  { %11839 = sst [smem:[#allocation84_spill]] %s11754_s15 }
   0xd   :  { %11840 = sst [smem:[#allocation85_spill]] %s11755_s16 }
   0xe   :  { %21 = vsyncpa [#allocation3], 0 }
   0xf   :  { %23 = vsyncpa [#allocation3 + $0x1], 0 }
  0x10   :  { %24 = vsyncpa [#allocation6], 0 }
  0x11   :  { %26 = vsyncpa [#allocation6 + $0x1], 0 }
  0x12   :  { %27 = vsyncpa [#allocation9], 0 }
  0x13   :  { %28 = vsyncpa [#allocation12], 0 }
  0x14   :  { %29 = vsyncpa [#allocation4], 0 }
  0x15   :  { %31 = vsyncpa [#allocation4 + $0x1], 0  ;;  %s9174_s21 = smov 0   ;;  %s9176_s22 = smov 0  }
  0x16   :  { %s9178_s23 = smov 0   ;;  %s9180_s24 = smov 0  }
  0x17 LB: > { %11841 = sst [smem:[#allocation21_spill]] %s9063_s23  ;;  %s9069_s25 = smov [#allocation7]   ;;  %s9067_s24 = sphi %s9180_s24, %s11992_s24   ;;  %s9063_s23 = sphi %s9178_s23, %s11989_s23   ;;  %s9059_s22 = sphi %s9176_s22, %s11991_s22   ;;  %s9055_s21 = sphi %s9174_s21, %s11990_s21  }
  0x18   : > { %s426_s26 = sshll.u32 %s9069_s25, 4  ;;  %s9195_s27 = sadd.s32 4294967295, %s9067_s24   ;;  %s9200_s26 = int_to_ptr.vmem [resolvable:$true] %s426_s26 }
  0x19   : > { %p6916_p0 = scmp.ge.s32.totalorder %s9067_s24, 1  ;;  %p11760_p1 = scmp.eq.s32.totalorder %s9195_s27, 0 }
  0x1a   : > { %p414_p2 = scmp.lt.s32.totalorder %s9067_s24, 3  ;;  %s9070_s29 = smov [#allocation8]  }
  0x1b   : > { %s442_s30 = sshll.u32 %s9070_s29, 4  ;;  %s9071_s17 = smov [#allocation11]   ;;  %s9215_s30 = int_to_ptr.vmem [resolvable:$true] %s442_s30 }
  0x1c   : > { %p9202_p3 = pnand %p6916_p0, %p414_p2  ;;  %s9217_s18 = sshll.u32 %s9071_s17, 4  ;;  %s475_s18 = int_to_ptr.vmem [resolvable:$true] %s9217_s18 }
  0x1d   : > { %s11844_s2 = sld [smem:[#allocation74_spill]] }
  0x1e   : > { %s11842_s28 = scalar_select %p9202_p3, 1, 0 }
  0x1f   : > { %p7801_p5 = pneg %p9202_p3 }
  0x21   : > { %p9211_p6 = pnand %p7801_p5, %p11760_p1 }
  0x23   : > { %s8785_s25 = scalar_lea.hbm %s11844_s2, 2048  ;;  %p9227_p8 = pneg %p9211_p6 }
  0x24   : > { %p8786_p7 = scmp.ne.s32.totalorder %s11844_s2, %s8785_s25  ;;  %p8792_p11 = scmp.lt.u32.totalorder %s8785_s25, %s11844_s2 }
  0x26   : > { %p8788_p9 = pnand %p9227_p8, %p8786_p7 }
  0x28   : > { %p8789_p10 = pneg %p8788_p9 }
  0x2a   : > { %p8794_p12 = pnand %p8792_p11, %p8789_p10 }
  0x2c   : > { %8797 = shalt.err (!%p8794_p12)
}
  0x2d   : > { %s8798_s15 = scalar_lea.vmem %s9200_s26, 2048  ;;  %p8806_p5 = scmp.lt.s32.totalorder %s9200_s26, %s9200_s26 }
  0x2e   : > { %p8799_p13 = scmp.ne.s32.totalorder %s9200_s26, %s8798_s15  ;;  %p8807_p4 = scmp.lt.s32.totalorder %s8798_s15, %s8798_s15 }
  0x30   : > { %p8801_p0 = pnand %p8799_p13, %p9227_p8  ;;  %p8808_p7 = por %p8807_p4, %p8806_p5 }
  0x32   : > { %p8802_p2 = pneg %p8801_p0 }
  0x34   : > { %p8809_p9 = pnand %p8808_p7, %p8802_p2 }
  0x36   : > { %8812 = shalt.err (!%p8809_p9)
}
  0x37   : > { %s11758_s16 = smov 128   ;;  %s11766_s14 = smov 8  }
  0x38   : > { %7804 = dma.hbm_to_vmem [thread:$0]  (!%p9211_p6), %s11844_s2, 2048, %s9200_s26, [#allocation6], %s11758_s16, %s11758_s16, %s11766_s14  }
  0x39   : > { %s11846_s4 = sld [smem:[#allocation75_spill]] }
  0x3f   : > { %s8813_s15 = scalar_lea.hbm %s11846_s4, 1024 }
  0x40   : > { %p8814_p4 = scmp.ne.s32.totalorder %s11846_s4, %s8813_s15  ;;  %p8820_p12 = scmp.lt.u32.totalorder %s8813_s15, %s11846_s4 }
  0x42   : > { %p8816_p10 = pnand %p8814_p4, %p9227_p8 }
  0x44   : > { %p8817_p11 = pneg %p8816_p10 }
  0x46   : > { %p8822_p13 = pnand %p8820_p12, %p8817_p11 }
  0x48   : > { %8825 = shalt.err (!%p8822_p13)
}
  0x49   : > { %s8826_s26 = scalar_lea.vmem %s9215_s30, 1024  ;;  %p8834_p7 = scmp.lt.s32.totalorder %s9215_s30, %s9215_s30 }
  0x4a   : > { %p8827_p0 = scmp.ne.s32.totalorder %s9215_s30, %s8826_s26  ;;  %p8835_p9 = scmp.lt.s32.totalorder %s8826_s26, %s8826_s26 }
  0x4c   : > { %p8829_p2 = pnand %p8827_p0, %p9227_p8  ;;  %p8836_p4 = por %p8835_p9, %p8834_p7 }
  0x4e   : > { %p8830_p5 = pneg %p8829_p2 }
  0x50   : > { %p8837_p10 = pnand %p8836_p4, %p8830_p5 }
  0x52   : > { %8840 = shalt.err (!%p8837_p10)
}
  0x53   : > { %s11762_s9 = smov 64   ;;  %s11764_s11 = smov 4  }
  0x54   : > { %7807 = dma.hbm_to_vmem [thread:$0]  (!%p9211_p6), %s11846_s4, 1024, %s9215_s30, [#allocation9], %s11762_s9, %s11762_s9, %s11764_s11  }
  0x55   : > { %s11847_s8 = sld [smem:[#allocation77_spill]] }
  0x5b   : > { %s8841_s25 = scalar_lea.hbm %s11847_s8, 2048 }
  0x5c   : > { %p8842_p11 = scmp.ne.s32.totalorder %s11847_s8, %s8841_s25  ;;  %p8848_p0 = scmp.lt.u32.totalorder %s8841_s25, %s11847_s8 }
  0x5e   : > { %p8844_p12 = pnand %p8842_p11, %p9227_p8 }
  0x60   : > { %p8845_p13 = pneg %p8844_p12 }
  0x62   : > { %p8850_p2 = pnand %p8848_p0, %p8845_p13 }
  0x64   : > { %8853 = shalt.err (!%p8850_p2)
}
  0x65   : > { %s8854_s12 = scalar_lea.vmem %s475_s18, 2048  ;;  %p8862_p4 = scmp.lt.s32.totalorder %s475_s18, %s475_s18 }
  0x66   : > { %p8855_p5 = scmp.ne.s32.totalorder %s475_s18, %s8854_s12  ;;  %p8863_p10 = scmp.lt.s32.totalorder %s8854_s12, %s8854_s12 }
  0x68   : > { %p8857_p7 = pnand %p8855_p5, %p9227_p8  ;;  %p8864_p1 = por %p8863_p10, %p8862_p4 }
  0x6a   : > { %p8858_p9 = pneg %p8857_p7 }
  0x6c   : > { %p8865_p3 = pnand %p8864_p1, %p8858_p9 }
  0x6e   : > { %8868 = shalt.err (!%p8865_p3)
}
  0x6f   : > { %s11848_s30 = smov 128   ;;  %s9076_s19 = smov [#allocation10]  }
  0x70   : > { %7813 = dma.hbm_to_vmem [thread:$0]  (!%p9211_p6), %s11847_s8, 2048, %s475_s18, [#allocation12], %s11848_s30, %s11848_s30, %s11766_s14  }
  0x71   : > { %s458_s20 = sshll.u32 %s9076_s19, 4  ;;  %s9077_s25 = smov [#allocation13]   ;;  %s459_s20 = int_to_ptr.vmem [resolvable:$true] %s458_s20 }
  0x72   : > { %s490_s17 = sshll.u32 %s9077_s25, 4  ;;  %s11849_s6 = sld [smem:[#allocation76_spill]]  ;;  %s491_s17 = int_to_ptr.vmem [resolvable:$true] %s490_s17 }
  0x78   : > { %s8869_s12 = scalar_lea.hbm %s11849_s6, 1024 }
  0x79   : > { %p8870_p1 = scmp.ne.s32.totalorder %s11849_s6, %s8869_s12  ;;  %p8876_p12 = scmp.lt.u32.totalorder %s8869_s12, %s11849_s6 }
  0x7b   : > { %p8872_p3 = pnand %p8870_p1, %p9227_p8 }
  0x7d   : > { %p8873_p11 = pneg %p8872_p3 }
  0x7f   : > { %p8878_p13 = pnand %p8876_p12, %p8873_p11 }
  0x81   : > { %8881 = shalt.err (!%p8878_p13)
}
  0x82   : > { %s8882_s18 = scalar_lea.vmem %s459_s20, 1024  ;;  %p8890_p7 = scmp.lt.s32.totalorder %s459_s20, %s459_s20 }
  0x83   : > { %p8883_p0 = scmp.ne.s32.totalorder %s459_s20, %s8882_s18  ;;  %p8891_p9 = scmp.lt.s32.totalorder %s8882_s18, %s8882_s18 }
  0x85   : > { %p8885_p2 = pnand %p8883_p0, %p9227_p8  ;;  %p8892_p4 = por %p8891_p9, %p8890_p7 }
  0x87   : > { %p8886_p5 = pneg %p8885_p2 }
  0x89   : > { %p8893_p10 = pnand %p8892_p4, %p8886_p5 }
  0x8b   : > { %8896 = shalt.err (!%p8893_p10)
}
  0x8c   : > { %s11850_s9 = smov 4   ;;  %s11851_s11 = smov 64  }
  0x8d   : > { %7810 = dma.hbm_to_vmem [thread:$0]  (!%p9211_p6), %s11849_s6, 1024, %s459_s20, [#allocation9], %s11851_s11, %s11851_s11, %s11850_s9  }
  0x8e   : > { %s11852_s10 = sld [smem:[#allocation79_spill]] }
  0x94   : > { %s8897_s15 = scalar_lea.hbm %s11852_s10, 2048 }
  0x95   : > { %p8898_p1 = scmp.ne.s32.totalorder %s11852_s10, %s8897_s15  ;;  %p8904_p12 = scmp.lt.u32.totalorder %s8897_s15, %s11852_s10 }
  0x97   : > { %p8900_p3 = pnand %p8898_p1, %p9227_p8 }
  0x99   : > { %p8901_p11 = pneg %p8900_p3 }
  0x9b   : > { %p8906_p13 = pnand %p8904_p12, %p8901_p11 }
  0x9d   : > { %8909 = shalt.err (!%p8906_p13)
}
  0x9e   : > { %s8910_s2 = scalar_lea.vmem %s491_s17, 2048  ;;  %p8918_p7 = scmp.lt.s32.totalorder %s491_s17, %s491_s17 }
  0x9f   : > { %p8911_p0 = scmp.ne.s32.totalorder %s491_s17, %s8910_s2  ;;  %p8919_p9 = scmp.lt.s32.totalorder %s8910_s2, %s8910_s2 }
  0xa1   : > { %p8913_p2 = pnand %p8911_p0, %p9227_p8  ;;  %p8920_p4 = por %p8919_p9, %p8918_p7 }
  0xa3   : > { %p8914_p5 = pneg %p8913_p2 }
  0xa5   : > { %p8921_p10 = pnand %p8920_p4, %p8914_p5 }
  0xa7   : > { %8924 = shalt.err (!%p8921_p10)
}
  0xa8   : > { %7816 = dma.hbm_to_vmem [thread:$0]  (!%p9211_p6), %s11852_s10, 2048, %s491_s17, [#allocation12], %s11851_s11, %s11851_s11, %s11850_s9  }
  0xa9   : > { %s6915_s0 = sadd.s32 4294967294, %s9067_s24   ;;  %s9343_s29 = sadd.s32 1, %s9067_s24  }
  0xaa   : > { %s44_s19 = sadd.s32 1, %s9063_s23  ;;  %s41_s25 = ssub.s32 %s9067_s24, %s9343_s29 }
  0xab   : > { %p51_p8 = scmp.ne.s32.totalorder %s9063_s23, %s9059_s22  ;;  %p42_p1 = scmp.eq.s32.totalorder %s41_s25, 0 }
  0xac   : > { %p52_p3 = scmp.eq.s32.totalorder %s9067_s24, 0  ;;  %p57_p11 = scmp.ne.s32.totalorder %s9059_s22, %s9055_s21 }
  0xad   : > { %p401_p12 = scmp.eq.s32.totalorder %s9195_s27, 1  ;;  %p11854_p0 = scmp.eq.s32.totalorder %s9195_s27, 0 }
  0xae   : > { %s9355_s15 = scalar_select %p42_p1, %s9063_s23, %s44_s19  }
  0xaf   : > { %p53_p13 = por %p52_p3, %p51_p8  ;;  %p9359_p2 = por %p11854_p0, %p57_p11 }
  0xb0   : > { %11853 = sst [smem:[#allocation22_spill]] %s9355_s15  ;;  %p9363_p6 = por %p401_p12, %p51_p8 }
  0xb1   : > { %p407_p5 = scmp.eq.s32.totalorder %s6915_s0, 1  ;;  %p7833_p7 = scmp.lt.s32.totalorder %s9067_s24, 2 }
  0xb2   : > { %s11856_s17 = scalar_select %p9363_p6, 1, 0 }
  0xb3   : > { %s519_s9 = sand.u32 1, %s9063_s23   ;;  %p9369_p9 = por %p407_p5, %p57_p11 }
  0xb4   : > { %s9373_s12 = sshll.u32 %s519_s9, 7  ;;  %s7082_s16 = sshll.u32 %s9067_s24, 11 }
  0xb5   : > { %s11857_s11 = scalar_select %p9369_p9, 1, 0 }
  0xb6   : > { %s11858_s20 = sld [smem:[#allocation73_spill]]  ;;  %s523_s0 = scalar_lea.vmem [#allocation2], %s9373_s12 }
  0xb7   : > { %s531_s19 = sshll.u32 %s523_s0, 4  ;;  %p9382_p4 = pnand %p7833_p7, %p53_p13  ;;  %s9386_s19 = int_to_ptr.vmem [resolvable:$true] %s531_s19 }
  0xb8   : > { %s9391_s18 = scalar_lea.hbm %s11740_s1, %s7082_s16  ;;  %s9393_s2 = scalar_lea.sflag [#allocation3], %s519_s9 }
  0xb9   : > { %p8927_p8 = pneg %p9382_p4 }
  0xbc   : > { %s9379_s13 = scalar_lea.hbm %s11858_s20, %s7082_s16  ;;  %s8930_s10 = scalar_lea.hbm %s11858_s20, 4096 }
  0xbd   : > { %s8925_s6 = scalar_lea.hbm %s9379_s13, 2048  ;;  %p8931_p11 = scmp.lt.u32.totalorder %s9379_s13, %s11858_s20 }
  0xbe   : > { %p8926_p10 = scmp.ne.s32.totalorder %s9379_s13, %s8925_s6  ;;  %p8932_p12 = scmp.lt.u32.totalorder %s8930_s10, %s8925_s6 }
  0xbf   : > { %p8934_p0 = scmp.lt.u32.totalorder %s8925_s6, %s9379_s13 }
  0xc0   : > { %p8928_p1 = pnand %p8927_p8, %p8926_p10  ;;  %p8933_p13 = por %p8932_p12, %p8931_p11 }
  0xc2   : > { %p8929_p3 = pneg %p8928_p1  ;;  %p8935_p5 = por %p8934_p0, %p8933_p13 }
  0xc4   : > { %p8936_p7 = pnand %p8935_p5, %p8929_p3 }
  0xc6   : > { %8939 = shalt.err (!%p8936_p7)
}
  0xc7   : > { %s8940_s4 = scalar_lea.vmem %s9386_s19, 2048  ;;  %s9078_s8 = smov [#allocation2]  }
  0xc8   : > { %p8941_p10 = scmp.ne.s32.totalorder %s9386_s19, %s8940_s4  ;;  %s8945_s14 = sshll.u32 %s9078_s8, 4  ;;  %s8946_s14 = int_to_ptr.vmem [resolvable:$false] %s8945_s14 }
  0xc9   : > { %s8947_s23 = scalar_lea.vmem %s8946_s14, 4096  ;;  %p8948_p6 = scmp.lt.s32.totalorder %s9386_s19, %s8946_s14 }
  0xca   : > { %p8943_p1 = pnand %p8941_p10, %p8927_p8  ;;  %p8949_p11 = scmp.lt.s32.totalorder %s8947_s23, %s8940_s4 }
  0xcc   : > { %p8944_p9 = pneg %p8943_p1  ;;  %p8950_p12 = por %p8949_p11, %p8948_p6 }
  0xce   : > { %p8951_p13 = pnand %p8950_p12, %p8944_p9 }
  0xd0   : > { %8954 = shalt.err (!%p8951_p13)
}
  0xd1   : > { %s11860_s6 = smov 8   ;;  %s545_s10 = scalar_lea.vmem [#allocation5], %s9373_s12 }
  0xd2   : > { %7820 = dma.hbm_to_vmem [thread:$0]  (!%p9382_p4), %s9379_s13, 2048, %s9386_s19, %s9393_s2, %s11848_s30, %s11848_s30, %s11860_s6  }
  0xd3   : > { %s553_s15 = sshll.u32 %s545_s10, 4  ;;  %s541_s9 = sand.u32 1, %s9067_s24   ;;  %s9426_s15 = int_to_ptr.vmem [resolvable:$true] %s553_s15 }
  0xd4   : > { %s9428_s16 = scalar_lea.sflag [#allocation6], %s541_s9  ;;  %s8955_s0 = scalar_lea.hbm %s9391_s18, 2048 }
  0xd5   : > { %p8956_p6 = scmp.ne.s32.totalorder %s9391_s18, %s8955_s0  ;;  %s8960_s14 = scalar_lea.hbm %s11740_s1, 4096 }
  0xd6   : > { %p8961_p0 = scmp.lt.u32.totalorder %s9391_s18, %s11740_s1  ;;  %p8962_p5 = scmp.lt.u32.totalorder %s8960_s14, %s8955_s0 }
  0xd7   : > { %p8958_p9 = pnand %p8956_p6, %p8927_p8  ;;  %p8964_p10 = scmp.lt.u32.totalorder %s8955_s0, %s9391_s18 }
  0xd8   : > { %p8963_p7 = por %p8962_p5, %p8961_p0 }
  0xd9   : > { %p8959_p3 = pneg %p8958_p9 }
  0xda   : > { %p8965_p1 = por %p8964_p10, %p8963_p7 }
  0xdc   : > { %p8966_p11 = pnand %p8965_p1, %p8959_p3 }
  0xde   : > { %8969 = shalt.err (!%p8966_p11)
}
  0xdf   : > { %s8970_s12 = scalar_lea.vmem %s9426_s15, 2048  ;;  %s9079_s13 = smov [#allocation5]  }
  0xe0   : > { %p8971_p12 = scmp.ne.s32.totalorder %s9426_s15, %s8970_s12  ;;  %s8975_s19 = sshll.u32 %s9079_s13, 4  ;;  %s8976_s19 = int_to_ptr.vmem [resolvable:$false] %s8975_s19 }
  0xe1   : > { %s8977_s20 = scalar_lea.vmem %s8976_s19, 4096  ;;  %p8978_p9 = scmp.lt.s32.totalorder %s9426_s15, %s8976_s19 }
  0xe2   : > { %p8973_p13 = pnand %p8971_p12, %p8927_p8  ;;  %p8979_p0 = scmp.lt.s32.totalorder %s8977_s20, %s8970_s12 }
  0xe4   : > { %p8974_p6 = pneg %p8973_p13  ;;  %p8980_p5 = por %p8979_p0, %p8978_p9 }
  0xe6   : > { %p8981_p7 = pnand %p8980_p5, %p8974_p6 }
  0xe8   : > { %8984 = shalt.err (!%p8981_p7)
}
  0xe9   : > { %7823 = dma.hbm_to_vmem [thread:$0]  (!%p9382_p4), %s9391_s18, 2048, %s9426_s15, %s9428_s16, %s11848_s30, %s11848_s30, %s11860_s6  }
  0xea   : > { %p11861_p8 = scmp.ne.s32.totalorder %s11842_s28, 0 }
  0xec   : > { %565 = sbr.rel (%p11861_p8) target bundleno = 3017 (0xbc9), region = 84 }
  0xf3   : > { %s9460_s2 = sand.u32 1, %s9059_s22  }
  0xf4   : > { %s9463_s10 = sshll.u32 %s9460_s2, 7  ;;  %s568_s25 = scalar_lea.sflag [#allocation3], %s9460_s2 }
  0xf5   : > { %s9467_s9 = scalar_lea.vmem [#allocation2], %s9463_s10 }
  0xf6   : > { %9030 = dma.done.wait (%p9359_p2), %s568_s25, 2048  }
  0xf7   : > { %9032 = vsyncadd (%p9359_p2), %s568_s25, 4294965248  ;;  %s576_s28 = sand.u32 1, %s9195_s27   ;;  %s9475_s18 = scalar_lea.vmem [#allocation5], %s9463_s10 }
  0xf8   : > { %s577_s30 = scalar_lea.sflag [#allocation6], %s576_s28 }
  0xf9   : > { %9034 = dma.done.wait (%p9359_p2), %s577_s30, 2048  }
  0xfa   : > { %9036 = vsyncadd (%p9359_p2), %s577_s30, 4294965248  ;;  %p11862_p4 = scmp.eq.s32.totalorder %s9195_s27, 0 }
  0xfc   : > { %9038 = dma.done.wait (%p11862_p4), [#allocation6], 2048   ;;  %p11863_p3 = pmov %p11862_p4 }
  0xfe   : > { %9040 = vsyncadd (%p11863_p3), [#allocation6], 4294965248  ;;  %p11864_p10 = pmov %p11863_p3 }
  0xff   : > { %p11865_p1 = pmov %p11863_p3 }
 0x100   : > { %9042 = dma.done.wait (%p11864_p10), [#allocation9], 2048  }
 0x101   : > { %9044 = vsyncadd (%p11865_p1), [#allocation9], 4294965248  ;;  %p11866_p11 = pmov %p11865_p1 }
 0x102   : > { %p11867_p12 = pmov %p11865_p1 }
 0x103   : > { %9046 = dma.done.wait (%p11866_p11), [#allocation12], 4096  }
 0x104   : > { %9048 = vsyncadd (%p11867_p12), [#allocation12], 4294963200  ;;  %v11773_v0 = vmov 0   ;;  %v8369_v1 = vld [vmem:[#allocation7 + $0x4] ss:$8 sps:$4 sm:$0xff]   ;;  %v8395_v25 = vld [vmem:[#allocation8 + $0x10] sm:$0xff]  }
 0x105   : > { %854 = vmatprep.mubr.bf16.mxu0 %v11773_v0  ;;  %v8371_v2 = vld [vmem:[#allocation7] ss:$8 sps:$4 sm:$0xff]   ;;  %822 = vmatprep.subr.bf16.mxu0 %v8369_v1  ;;  %v8372_v3 = vld [vmem:[#allocation7 + $0x14] ss:$8 sps:$4 sm:$0xff]   ;;  %v8374_v4 = vld [vmem:[#allocation7 + $0x10] ss:$8 sps:$4 sm:$0xff]  }
 0x106   : > { %823 = vmatpush1.bf16.msra.mxu0 %v8371_v2  ;;  %v8375_v5 = vld [vmem:[#allocation7 + $0x24] ss:$8 sps:$4 sm:$0xff]   ;;  %v8377_v6 = vld [vmem:[#allocation7 + $0x20] ss:$8 sps:$4 sm:$0xff]   ;;  %v8378_v7 = vld [vmem:[#allocation7 + $0x34] ss:$8 sps:$4 sm:$0xff]  }
 0x107   : > { %824 = vmatprep.subr.bf16.mxu0 %v8372_v3  ;;  %v8380_v8 = vld [vmem:[#allocation7 + $0x30] ss:$8 sps:$4 sm:$0xff]   ;;  %v658_v9 = vld [vmem:[%s9467_s9] sm:$0xff]  ;;  %v659_v10 = vld [vmem:[%s9467_s9 + $0x8] sm:$0xff]  ;;  %vm9082_vm0 = vmmov 0   ;;  %vm1687_vm1 = vcmask 261120  }
 0x108   : > { %v8381_v11 = vld [vmem:[#allocation7 + $0x44] ss:$8 sps:$4 sm:$0xff]   ;;  %v935_v12 = vpack.c.bf16 %v659_v10, %v658_v9  ;;  %v8383_v13 = vld [vmem:[#allocation7 + $0x40] ss:$8 sps:$4 sm:$0xff]   ;;  %v8384_v14 = vld [vmem:[#allocation7 + $0x54] ss:$8 sps:$4 sm:$0xff]  }
 0x109   : > { %v8386_v15 = vld [vmem:[#allocation7 + $0x50] ss:$8 sps:$4 sm:$0xff]   ;;  %v8387_v16 = vld [vmem:[#allocation7 + $0x64] ss:$8 sps:$4 sm:$0xff]   ;;  %v8389_v17 = vld [vmem:[#allocation7 + $0x60] ss:$8 sps:$4 sm:$0xff]  }
 0x10a   : > { %825 = vmatpush1.bf16.msra.mxu0 %v8374_v4  ;;  %7327 = vmatprep.mubr.bf16.mxu1 %v935_v12  ;;  %v674_v18 = vld [vmem:[%s9475_s18] sm:$0xff]  ;;  %v675_v19 = vld [vmem:[%s9475_s18 + $0x8] sm:$0xff]  ;;  %v8390_v22 = vld [vmem:[#allocation7 + $0x74] ss:$8 sps:$4 sm:$0xff]   ;;  %s9083_s15 = smov 96   ;;  %s9084_s4 = smov 64  }
 0x10b   : > { %826 = vmatprep.subr.bf16.mxu0 %v8375_v5  ;;  %v8393_v20 = vld [vmem:[#allocation8] sm:$0xff]   ;;  %v8394_v21 = vld [vmem:[#allocation8 + $0x8] sm:$0xff]   ;;  %v690_v23 = vadd.f32 %v674_v18, %v658_v9  ;;  %v691_v24 = vadd.f32 %v675_v19, %v659_v10  ;;  %v8392_v26 = vld [vmem:[#allocation7 + $0x70] ss:$8 sps:$4 sm:$0xff]   ;;  %s9085_s8 = smov 32   ;;  %vm3192_vm2 = vcmask 130048  }
 0x10c   : > { %7311 = vmatprep.subr.bf16.mxu1 %v8393_v20  ;;  %v660_v27 = vld [vmem:[%s9467_s9 + $0x10] sm:$0xff]  ;;  %v661_v28 = vld [vmem:[%s9467_s9 + $0x18] sm:$0xff]  ;;  %v8397_v33 = vld [vmem:[#allocation8 + $0x20] sm:$0xff]   ;;  %vm5545_vm3 = vcmask 523264   ;;  %vm5562_vm4 = vcmask 785408   ;;  %s11975_s19 = sld [smem:[#allocation81_spill]] }
 0x10d   : > { %7312 = vmatpush3.bf16.msra.mxu1 %v8393_v20  ;;  %v676_v29 = vld [vmem:[%s9475_s18 + $0x10] sm:$0xff]  ;;  %v677_v30 = vld [vmem:[%s9475_s18 + $0x18] sm:$0xff]  ;;  %v706_v32 = vpack.c.bf16 %v691_v24, %v690_v23  ;;  %v8398_v36 = vld [vmem:[#allocation8 + $0x28] sm:$0xff]   ;;  %v936_v53 = vpack.c.bf16 %v661_v28, %v660_v27  ;;  %s11983_s23 = sld [smem:[#allocation84_spill]]  ;;  %s11627_s12 = scalar_lea.vmem [#allocation14], %s9463_s10 }
 0x10e   : > { %827 = vmatpush1.bf16.msra.mxu0 %v8377_v6  ;;  %7313 = vmatprep.subr.bf16.mxu1 %v8394_v21  ;;  %v8396_v31 = vld [vmem:[#allocation8 + $0x18] sm:$0xff]   ;;  %v692_v34 = vadd.f32 %v676_v29, %v660_v27  ;;  %v693_v35 = vadd.f32 %v677_v30, %v661_v28  ;;  %v662_v37 = vld [vmem:[%s9467_s9 + $0x20] sm:$0xff]  ;;  %v663_v38 = vld [vmem:[%s9467_s9 + $0x28] sm:$0xff]  ;;  %v732_v27 = vlaneseq  ;;  %s7086_s10 = sshll.u32 %s9195_s27, 11  ;;  %s6772_s13 = sshll.u32 %s11627_s12, 4  ;;  %s11692_s13 = int_to_ptr.vmem [resolvable:$true] %s6772_s13 }
 0x10f   : > { %828 = vmatprep.subr.bf16.mxu0 %v8378_v7  ;;  %v678_v39 = vld [vmem:[%s9475_s18 + $0x20] sm:$0xff]  ;;  %v679_v40 = vld [vmem:[%s9475_s18 + $0x28] sm:$0xff]  ;;  %v8399_v42 = vld [vmem:[#allocation8 + $0x30] sm:$0xff]   ;;  %v937_v54 = vpack.c.bf16 %v663_v38, %v662_v37  ;;  %s11984_s25 = sld [smem:[#allocation85_spill]]  ;;  %s6758_s27 = scalar_lea.sflag [#allocation4], %s9460_s2 }
 0x110   : > { %v707_v41 = vpack.c.bf16 %v693_v35, %v692_v34  ;;  %v694_v43 = vadd.f32 %v678_v39, %v662_v37  ;;  %v695_v44 = vadd.f32 %v679_v40, %v663_v38  ;;  %v8400_v45 = vld [vmem:[#allocation8 + $0x38] sm:$0xff]   ;;  %v664_v46 = vld [vmem:[%s9467_s9 + $0x30] sm:$0xff]  ;;  %v666_v56 = vld [vmem:[%s9467_s9 + $0x40] sm:$0xff]  ;;  %v9539_v28 = vshrl.u32 %v732_v27, 7  ;;  %s8985_s28 = scalar_lea.vmem %s11692_s13, 2048  ;;  %p11985_p13 = scmp.ne.s32.totalorder %s11856_s17, 0 }
 0x111   : > { %7314 = vmatpush3.bf16.msra.mxu1 %v8394_v21  ;;  %v665_v47 = vld [vmem:[%s9467_s9 + $0x38] sm:$0xff]  ;;  %v680_v48 = vld [vmem:[%s9475_s18 + $0x30] sm:$0xff]  ;;  %v667_v57 = vld [vmem:[%s9467_s9 + $0x48] sm:$0xff]  ;;  %p8986_p2 = scmp.ne.s32.totalorder %s11692_s13, %s8985_s28  ;;  %s9086_s30 = smov [#allocation14]  }
 0x112   : > { %829 = vmatpush1.bf16.msra.mxu0 %v8380_v8  ;;  %7315 = vmatprep.subr.bf16.mxu1 %v8395_v25  ;;  %v681_v49 = vld [vmem:[%s9475_s18 + $0x38] sm:$0xff]  ;;  %v708_v50 = vpack.c.bf16 %v695_v44, %v694_v43  ;;  %v696_v51 = vadd.f32 %v680_v48, %v664_v46  ;;  %v682_v58 = vld [vmem:[%s9475_s18 + $0x40] sm:$0xff]  ;;  %v683_v59 = vld [vmem:[%s9475_s18 + $0x48] sm:$0xff]  ;;  %v938_v62 = vpack.c.bf16 %v665_v47, %v664_v46  ;;  %v11772_v29 = vsub.s32 0, %v9539_v28 }
 0x113   : > { %830 = vmatprep.subr.bf16.mxu0 %v8381_v11  ;;  %v697_v52 = vadd.f32 %v681_v49, %v665_v47  ;;  %v698_v60 = vadd.f32 %v682_v58, %v666_v56  ;;  %v699_v61 = vadd.f32 %v683_v59, %v667_v57  ;;  %v939_v63 = vpack.c.bf16 %v667_v57, %v666_v56  ;;  %v668_v2 = vld [vmem:[%s9467_s9 + $0x50] sm:$0xff]  ;;  %v669_v3 = vld [vmem:[%s9467_s9 + $0x58] sm:$0xff]  ;;  %v670_v8 = vld [vmem:[%s9467_s9 + $0x60] sm:$0xff]  ;;  %p8987_p6 = pnand %p8986_p2, %p11985_p13 }
 0x114   : > { %v684_v4 = vld [vmem:[%s9475_s18 + $0x50] sm:$0xff]  ;;  %v685_v5 = vld [vmem:[%s9475_s18 + $0x58] sm:$0xff]  ;;  %v671_v9 = vld [vmem:[%s9467_s9 + $0x68] sm:$0xff]  ;;  %v940_v10 = vpack.c.bf16 %v669_v3, %v668_v2  ;;  %11868 = vst [vmem:[#allocation23_spill] sm:$0xff] %v9539_v28 }
 0x115   : > { %7316 = vmatpush3.bf16.msra.mxu1 %v8395_v25  ;;  %v709_v55 = vpack.c.bf16 %v697_v52, %v696_v51  ;;  %v710_v1 = vpack.c.bf16 %v699_v61, %v698_v60  ;;  %v700_v6 = vadd.f32 %v684_v4, %v668_v2  ;;  %v701_v7 = vadd.f32 %v685_v5, %v669_v3  ;;  %v673_v18 = vld [vmem:[%s9467_s9 + $0x78] sm:$0xff]  ;;  %v688_v21 = vld [vmem:[%s9475_s18 + $0x70] sm:$0xff]  ;;  %v730_v30 = vld [vmem:[%s11742_s3] sm:$0x3]  ;;  %p8988_p9 = pneg %p8987_p6 }
 0x116   : > { %831 = vmatpush1.bf16.msra.mxu0 %v8383_v13  ;;  %7317 = vmatprep.subr.bf16.mxu1 %v8396_v31  ;;  %v941_v11 = vpack.c.bf16 %v671_v9, %v670_v8  ;;  %v686_v13 = vld [vmem:[%s9475_s18 + $0x60] sm:$0xff] }
 0x117   : > { %832 = vmatprep.subr.bf16.mxu0 %v8384_v14  ;;  %v711_v12 = vpack.c.bf16 %v701_v7, %v700_v6  ;;  %v687_v14 = vld [vmem:[%s9475_s18 + $0x68] sm:$0xff] }
 0x119   : > { %7318 = vmatpush3.bf16.msra.mxu1 %v8396_v31  ;;  %v11771_v31 = vsub.s32 1, %v9539_v28 }
 0x11a   : > { %833 = vmatpush1.bf16.msra.mxu0 %v8386_v15  ;;  %7319 = vmatprep.subr.bf16.mxu1 %v8397_v33  ;;  %v702_v15 = vadd.f32 %v686_v13, %v670_v8 }
 0x11b   : > { %834 = vmatprep.subr.bf16.mxu0 %v8387_v16  ;;  %v703_v16 = vadd.f32 %v687_v14, %v671_v9  ;;  %v9552_v34 = vrot.slane %v730_v30, %v11771_v31 }
 0x11d   : > { %7320 = vmatpush3.bf16.msra.mxu1 %v8397_v33  ;;  %v712_v20 = vpack.c.bf16 %v703_v16, %v702_v15 }
 0x11e   : > { %835 = vmatpush1.bf16.msra.mxu0 %v8389_v17  ;;  %7321 = vmatprep.subr.bf16.mxu1 %v8398_v36  ;;  %v672_v17 = vld [vmem:[%s9467_s9 + $0x70] sm:$0xff] }
 0x11f   : > { %836 = vmatprep.subr.bf16.mxu0 %v8390_v22  ;;  %v942_v19 = vpack.c.bf16 %v673_v18, %v672_v17  ;;  %v689_v22 = vld [vmem:[%s9475_s18 + $0x78] sm:$0xff]  ;;  %v704_v23 = vadd.f32 %v688_v21, %v672_v17  ;;  %s11977_s18 = sld [smem:[#allocation78_spill]] }
 0x120   : > { %v705_v24 = vadd.f32 %v689_v22, %v673_v18 }
 0x121   : > { %7322 = vmatpush3.bf16.msra.mxu1 %v8398_v36 }
 0x122   : > { %837 = vmatpush1.bf16.msra.mxu0 %v8392_v26  ;;  %7323 = vmatprep.subr.bf16.mxu1 %v8399_v42  ;;  %v713_v25 = vpack.c.bf16 %v705_v24, %v704_v23  ;;  %v11775_v26 = vmov 0.0  }
 0x123   : > { %7367 = vmatprep.subr.bf16.mxu0 %v11775_v26 }
 0x125   : > { %855 = vmatmul.mubr.bf16.vlgmr.msra.gmra.mrb[0].mxu0 %v706_v32  ;;  %7324 = vmatpush3.bf16.msra.mxu1 %v8399_v42  ;;  %v9548_v32 = vrot.slane %v730_v30, %v11772_v29 }
 0x126   : > { %864 = vmatprep.mubr.bf16.mxu0 %v11773_v0  ;;  %7325 = vmatprep.subr.bf16.mxu1 %v8400_v45 }
 0x129   : > { %7326 = vmatpush3.bf16.msra.mxu1 %v8400_v45 }
 0x12a   : > { %7343 = vmatprep.subr.bf16.mxu1 %v11775_v26 }
 0x12c   : > { %7328 = vmatmul.mubr.bf16.vlgmr.msra.gmra.mrb[0].mxu1 %v936_v53 }
 0x12d   : > { %865 = vmatmul.mubr.bf16.gmra.mrb[4].mxu0 %v707_v41  ;;  %7331 = vmatprep.mubr.bf16.mxu1 %v937_v54 }
 0x12e   : > { %874 = vmatprep.mubr.bf16.mxu0 %v11773_v0 }
 0x134   : > { %7332 = vmatmul.mubr.bf16.gmra.mrb[4].mxu1 %v938_v62 }
 0x135   : > { %875 = vmatmul.mubr.bf16.gmra.mrb[8].mxu0 %v708_v50  ;;  %7335 = vmatprep.mubr.bf16.mxu1 %v939_v63 }
 0x136   : > { %884 = vmatprep.mubr.bf16.mxu0 %v11773_v0 }
 0x13c   : > { %7336 = vmatmul.mubr.bf16.gmra.mrb[8].mxu1 %v940_v10  ;;  %v9596_v10 = vld [vmem:[%s11744_s5] ss:$0 sm:$0xff] }
 0x13d   : > { %885 = vmatmul.mubr.bf16.gmra.mrb[12].mxu0 %v709_v55  ;;  %7339 = vmatprep.mubr.bf16.mxu1 %v941_v11 }
 0x13e   : > { %894 = vmatprep.mubr.bf16.mxu0 %v11773_v0 }
 0x144   : > { %7340 = vmatmul.mubr.bf16.gmra.mrb[12].mxu1 %v942_v19 }
 0x145   : > { %895 = vmatmul.mubr.bf16.gmra.mrb[16].mxu0 %v710_v1  ;;  %7345 = vmatprep.mubr.msk.bf16.mxu1 %vm9082_vm0, %v11775_v26 }
 0x146   : > { %904 = vmatprep.mubr.bf16.mxu0 %v11773_v0 }
 0x14d   : > { %905 = vmatmul.mubr.bf16.gmra.mrb[20].mxu0 %v711_v12 }
 0x14e   : > { %914 = vmatprep.mubr.bf16.mxu0 %v11773_v0 }
 0x155   : > { %915 = vmatmul.mubr.bf16.gmra.mrb[24].mxu0 %v712_v20 }
 0x156   : > { %924 = vmatprep.mubr.bf16.mxu0 %v11773_v0 }
 0x15d   : > { %925 = vmatmul.mubr.bf16.gmra.mrb[28].mxu0 %v713_v25 }
 0x15e   : > { %7369 = vmatprep.mubr.msk.bf16.mxu0 %vm9082_vm0, %v11775_v26 }
 0x1f8   : > { %v856_v33 = vpop.f32.mrb[0].mxu0 }
 0x1f9   : > { %v858_v35 = vpop.f32.mrb[1].mxu0  ;;  %v857_v37 = vadd.f32 %v856_v33, %v9548_v32 }
 0x1fa   : > { %v860_v36 = vpop.f32.mrb[2].mxu0  ;;  %v859_v40 = vadd.f32 %v858_v35, %v9552_v34 }
 0x1fb   : > { %v861_v38 = vadd.f32 %v860_v36, %v9548_v32  ;;  %v862_v39 = vpop.f32.mrb[3].mxu0 }
 0x1fc   : > { %v863_v41 = vadd.f32 %v862_v39, %v9552_v34 }
 0x1fd   : > { %v1271_v42 = vpack.c.bf16 %v861_v38, %v857_v37  ;;  %v9558_v43 = vpack.i.bf16 %v861_v38, %v857_v37 }
 0x1fe   : > { %v9560_v44 = vpack.i.bf16 %v863_v41, %v859_v40  ;;  %v1463_v45 = vpack.c.bf16 %v863_v41, %v859_v40 }
 0x1ff   : > { %7900 = vrot.lane.b32.xlu1 %v9558_v43, %s9083_s15  ;;  %v7329_v9 = vpop.f32.mrb[0].mxu1 }
 0x200   : > { %v866_v46 = vpop.f32.mrb[4].mxu0  ;;  %7890 = vrot.lane.b32.xlu0 %v9560_v44, %s9083_s15  ;;  %v1692_v47 = vsel %vm1687_vm1, %v1463_v45, 0  ;;  %v9599_v11 = vadd.f32 %v7329_v9, %v9596_v10  ;;  %v1048_v12 = vpop.f32.mrb[1].mxu1 }
 0x201   : > { %v868_v48 = vpop.f32.mrb[5].mxu0  ;;  %7344 = vmatpush3.bf16.xpose.msra.mxu1 %v1692_v47  ;;  %v867_v50 = vadd.f32 %v866_v46, %v9548_v32  ;;  %v9607_v15 = vadd.f32 %v9596_v10, %v1048_v12  ;;  %v7330_v16 = vpop.f32.mrb[2].mxu1 }
 0x202   : > { %v870_v49 = vpop.f32.mrb[6].mxu0  ;;  %7349 = vmatprep.subr.bf16.mxu1 %v11775_v26  ;;  %v869_v53 = vadd.f32 %v868_v48, %v9552_v34  ;;  %v9611_v18 = vadd.f32 %v7330_v16, %v9596_v10  ;;  %v1051_v19 = vpop.f32.mrb[3].mxu1 }
 0x203   : > { %v871_v51 = vadd.f32 %v870_v49, %v9548_v32  ;;  %v872_v52 = vpop.f32.mrb[7].mxu0  ;;  %v9618_v23 = vadd.f32 %v9596_v10, %v1051_v19 }
 0x204   : > { %v873_v54 = vadd.f32 %v872_v52, %v9552_v34  ;;  %v9624_v27 = vpack.i.bf16 %v9611_v18, %v9599_v11  ;;  %v1656_v45 = vpack.c.bf16 %v9611_v18, %v9599_v11 }
 0x205   : > { %v1272_v55 = vpack.c.bf16 %v871_v51, %v867_v50  ;;  %v9572_v56 = vpack.i.bf16 %v871_v51, %v867_v50  ;;  %v9629_v33 = vpack.i.bf16 %v9618_v23, %v9607_v15 }
 0x206   : > { %v9574_v57 = vpack.i.bf16 %v873_v54, %v869_v53  ;;  %v1464_v58 = vpack.c.bf16 %v873_v54, %v869_v53 }
 0x207   : > { %v7333_v39 = vpop.f32.mrb[4].mxu1 }
 0x208   : > { %v876_v59 = vpop.f32.mrb[8].mxu0  ;;  %7895 = vrot.lane.b32.xlu0 %v9574_v57, %s9083_s15  ;;  %7346 = vmatmul.mubr.msk.bf16.vlgmr.msra.gmra.mrb[16].mxu1 %vm1687_vm1, %v1271_v42  ;;  %v1739_v60 = vsel %vm1687_vm1, %v1464_v58, 0  ;;  %v9638_v40 = vadd.f32 %v7333_v39, %v9596_v10  ;;  %v1064_v41 = vpop.f32.mrb[5].mxu1  ;;  %v1655_v42 = vpack.c.bf16 %v9618_v23, %v9607_v15 }
 0x209   : > { %v878_v61 = vpop.f32.mrb[9].mxu0  ;;  %7350 = vmatpush3.bf16.xpose.msra.mxu1 %v1739_v60  ;;  %7351 = vmatprep.mubr.msk.bf16.mxu1 %vm9082_vm0, %v11775_v26  ;;  %v877_v63 = vadd.f32 %v876_v59, %v9548_v32  ;;  %v9648_v48 = vadd.f32 %v9596_v10, %v1064_v41  ;;  %v7334_v49 = vpop.f32.mrb[6].mxu1 }
 0x20a   : > { %v880_v62 = vpop.f32.mrb[10].mxu0  ;;  %7355 = vmatprep.subr.bf16.mxu1 %v11775_v26  ;;  %v879_v3 = vadd.f32 %v878_v61, %v9552_v34  ;;  %v9652_v51 = vadd.f32 %v7334_v49, %v9596_v10  ;;  %v1067_v52 = vpop.f32.mrb[7].mxu1 }
 0x20b   : > { %v881_v1 = vadd.f32 %v880_v62, %v9548_v32  ;;  %v882_v2 = vpop.f32.mrb[11].mxu0  ;;  %v9659_v58 = vadd.f32 %v9596_v10, %v1067_v52 }
 0x20c   : > { %v883_v4 = vadd.f32 %v882_v2, %v9552_v34  ;;  %7905 = vrot.lane.b32.xlu0 %v9572_v56, %s9083_s15  ;;  %v9665_v61 = vpack.i.bf16 %v9652_v51, %v9638_v40 }
 0x20d   : > { %v1273_v5 = vpack.c.bf16 %v881_v1, %v877_v63  ;;  %v9589_v6 = vpack.i.bf16 %v881_v1, %v877_v63  ;;  %v9670_v63 = vpack.i.bf16 %v9659_v58, %v9648_v48 }
 0x20e   : > { %v9591_v7 = vpack.i.bf16 %v883_v4, %v879_v3  ;;  %v1465_v8 = vpack.c.bf16 %v883_v4, %v879_v3 }
 0x210   : > { %v886_v13 = vpop.f32.mrb[12].mxu0  ;;  %7910 = vrot.lane.b32.xlu0 %v9589_v6, %s9083_s15  ;;  %7915 = vrot.lane.b32.xlu1 %v9591_v7, %s9083_s15  ;;  %v1786_v14 = vsel %vm1687_vm1, %v1465_v8, 0 }
 0x211   : > { %7352 = vmatmul.mubr.msk.bf16.vlgmr.msra.gmra.mrb[20].mxu1 %vm1687_vm1, %v1272_v55  ;;  %v888_v17 = vpop.f32.mrb[13].mxu0  ;;  %v887_v20 = vadd.f32 %v886_v13, %v9548_v32 }
 0x212   : > { %v889_v21 = vadd.f32 %v888_v17, %v9552_v34  ;;  %7356 = vmatpush3.bf16.xpose.msra.mxu1 %v1786_v14  ;;  %v890_v22 = vpop.f32.mrb[14].mxu0  ;;  %7357 = vmatprep.mubr.msk.bf16.mxu1 %vm9082_vm0, %v11775_v26 }
 0x213   : > { %v891_v24 = vadd.f32 %v890_v22, %v9548_v32  ;;  %v892_v25 = vpop.f32.mrb[15].mxu0  ;;  %7361 = vmatprep.subr.bf16.mxu1 %v11775_v26 }
 0x214   : > { %v893_v30 = vadd.f32 %v892_v25, %v9552_v34 }
 0x215   : > { %v1274_v35 = vpack.c.bf16 %v891_v24, %v887_v20  ;;  %v9631_v36 = vpack.i.bf16 %v891_v24, %v887_v20 }
 0x216   : > { %v9633_v37 = vpack.i.bf16 %v893_v30, %v889_v21  ;;  %v1466_v38 = vpack.c.bf16 %v893_v30, %v889_v21 }
 0x217   : > { %7920 = vrot.lane.b32.xlu0 %v9631_v36, %s9083_s15 }
 0x218   : > { %v896_v46 = vpop.f32.mrb[16].mxu0  ;;  %7925 = vrot.lane.b32.xlu1 %v9633_v37, %s9083_s15  ;;  %v1833_v47 = vsel %vm1687_vm1, %v1466_v38, 0 }
 0x219   : > { %7358 = vmatmul.mubr.msk.bf16.vlgmr.msra.gmra.mrb[24].mxu1 %vm1687_vm1, %v1273_v5  ;;  %v898_v50 = vpop.f32.mrb[17].mxu0  ;;  %v897_v53 = vadd.f32 %v896_v46, %v9548_v32  ;;  %v7337_v5 = vpop.f32.mrb[8].mxu1 }
 0x21a   : > { %v899_v54 = vadd.f32 %v898_v50, %v9552_v34  ;;  %7362 = vmatpush3.bf16.xpose.msra.mxu1 %v1833_v47  ;;  %v900_v55 = vpop.f32.mrb[18].mxu0  ;;  %7363 = vmatprep.mubr.msk.bf16.mxu1 %vm9082_vm0, %v11775_v26  ;;  %v9679_v8 = vadd.f32 %v7337_v5, %v9596_v10  ;;  %v1080_v9 = vpop.f32.mrb[9].mxu1 }
 0x21b   : > { %v901_v59 = vadd.f32 %v900_v55, %v9548_v32  ;;  %v902_v60 = vpop.f32.mrb[19].mxu0  ;;  %7373 = vmatprep.subr.bf16.mxu1 %v11775_v26  ;;  %v9689_v17 = vadd.f32 %v9596_v10, %v1080_v9  ;;  %v7338_v19 = vpop.f32.mrb[10].mxu1 }
 0x21c   : > { %v903_v62 = vadd.f32 %v902_v60, %v9552_v34  ;;  %11869 = vst [vmem:[#allocation24_spill] sm:$0xff] %v9679_v8  ;;  %v9693_v21 = vadd.f32 %v7338_v19, %v9596_v10  ;;  %v1083_v22 = vpop.f32.mrb[11].mxu1 }
 0x21d   : > { %v1275_v1 = vpack.c.bf16 %v901_v59, %v897_v53  ;;  %v9672_v2 = vpack.i.bf16 %v901_v59, %v897_v53  ;;  %v9701_v38 = vadd.f32 %v9596_v10, %v1083_v22  ;;  %v7341_v59 = vpop.f32.mrb[12].mxu1 }
 0x21e   : > { %v9674_v3 = vpack.i.bf16 %v903_v62, %v899_v54  ;;  %v1467_v4 = vpack.c.bf16 %v903_v62, %v899_v54  ;;  %11870 = vst [vmem:[#allocation25_spill] sm:$0xff] %v9693_v21  ;;  %v9706_v41 = vpack.i.bf16 %v9693_v21, %v9679_v8  ;;  %v9724_v60 = vadd.f32 %v7341_v59, %v9596_v10  ;;  %v1096_v62 = vpop.f32.mrb[13].mxu1 }
 0x21f   : > { %7930 = vrot.lane.b32.xlu0 %v9672_v2, %s9083_s15  ;;  %v9713_v49 = vpack.i.bf16 %v9701_v38, %v9689_v17  ;;  %v9731_v9 = vadd.f32 %v9596_v10, %v1096_v62 }
 0x220   : > { %v906_v14 = vpop.f32.mrb[20].mxu0  ;;  %7935 = vrot.lane.b32.xlu1 %v9674_v3, %s9083_s15  ;;  %v1880_v16 = vsel %vm1687_vm1, %v1467_v4, 0  ;;  %11871 = vst [vmem:[#allocation26_spill] sm:$0xff] %v9706_v41  ;;  %11873 = vst [vmem:[#allocation28_spill] sm:$0xff] %v9724_v60 }
 0x221   : > { %7364 = vmatmul.mubr.msk.bf16.vlgmr.msra.gmra.mrb[28].mxu1 %vm1687_vm1, %v1274_v35  ;;  %v908_v20 = vpop.f32.mrb[21].mxu0  ;;  %7368 = vmatpush3.bf16.xpose.msra.mxu0 %v1880_v16  ;;  %v907_v24 = vadd.f32 %v906_v14, %v9548_v32  ;;  %11872 = vst [vmem:[#allocation27_spill] sm:$0xff] %v9713_v49  ;;  %11874 = vst [vmem:[#allocation29_spill] sm:$0xff] %v9731_v9  ;;  %v7342_v14 = vpop.f32.mrb[14].mxu1 }
 0x222   : > { %v909_v25 = vadd.f32 %v908_v20, %v9552_v34  ;;  %v910_v30 = vpop.f32.mrb[22].mxu0  ;;  %7375 = vmatprep.mubr.msk.bf16.mxu1 %vm9082_vm0, %v11775_v26  ;;  %7379 = vmatprep.subr.bf16.mxu0 %v11775_v26  ;;  %v9736_v19 = vadd.f32 %v7342_v14, %v9596_v10  ;;  %v1099_v20 = vpop.f32.mrb[15].mxu1 }
 0x223   : > { %v911_v35 = vadd.f32 %v910_v30, %v9548_v32  ;;  %v912_v39 = vpop.f32.mrb[23].mxu0 }
 0x224   : > { %v913_v47 = vadd.f32 %v912_v39, %v9552_v34  ;;  %11875 = vst [vmem:[#allocation30_spill] sm:$0xff] %v9736_v19  ;;  %v9747_v39 = vpack.i.bf16 %v9736_v19, %v9724_v60 }
 0x225   : > { %v1276_v52 = vpack.c.bf16 %v911_v35, %v907_v24  ;;  %v9717_v53 = vpack.i.bf16 %v911_v35, %v907_v24 }
 0x226   : > { %v9719_v54 = vpack.i.bf16 %v913_v47, %v909_v25  ;;  %v1468_v55 = vpack.c.bf16 %v913_v47, %v909_v25  ;;  %v9742_v25 = vadd.f32 %v9596_v10, %v1099_v20  ;;  %11877 = vst [vmem:[#allocation32_spill] sm:$0xff] %v9747_v39 }
 0x227   : > { %7940 = vrot.lane.b32.xlu0 %v9717_v53, %s9083_s15 }
 0x228   : > { %v916_v4 = vpop.f32.mrb[24].mxu0  ;;  %7370 = vmatmul.mubr.msk.bf16.vlgmr.msra.gmra.mrb[32].mxu0 %vm1687_vm1, %v1275_v1  ;;  %7945 = vrot.lane.b32.xlu1 %v9719_v54, %s9083_s15  ;;  %v1927_v5 = vsel %vm1687_vm1, %v1468_v55, 0  ;;  %11876 = vst [vmem:[#allocation31_spill] sm:$0xff] %v9742_v25  ;;  %v9754_v59 = vpack.i.bf16 %v9742_v25, %v9731_v9 }
 0x229   : > { %v918_v16 = vpop.f32.mrb[25].mxu0  ;;  %7374 = vmatpush3.bf16.xpose.msra.mxu1 %v1927_v5  ;;  %7381 = vmatprep.mubr.msk.bf16.mxu0 %vm9082_vm0, %v11775_v26  ;;  %v917_v1 = vadd.f32 %v916_v4, %v9548_v32 }
 0x22a   : > { %v919_v22 = vadd.f32 %v918_v16, %v9552_v34  ;;  %v920_v24 = vpop.f32.mrb[26].mxu0  ;;  %7385 = vmatprep.subr.bf16.mxu1 %v11775_v26  ;;  %11878 = vst [vmem:[#allocation33_spill] sm:$0xff] %v9754_v59 }
 0x22b   : > { %v921_v30 = vadd.f32 %v920_v24, %v9548_v32  ;;  %v922_v35 = vpop.f32.mrb[27].mxu0 }
 0x22c   : > { %v923_v55 = vadd.f32 %v922_v35, %v9552_v34 }
 0x22d   : > { %v1277_v62 = vpack.c.bf16 %v921_v30, %v917_v1  ;;  %v9758_v4 = vpack.i.bf16 %v921_v30, %v917_v1 }
 0x22e   : > { %v7954_v5 = vpack.i.bf16 %v923_v55, %v919_v22  ;;  %v1469_v14 = vpack.c.bf16 %v923_v55, %v919_v22 }
 0x22f   : > { %7950 = vrot.lane.b32.xlu0 %v9758_v4, %s9083_s15 }
 0x230   : > { %v926_v16 = vpop.f32.mrb[28].mxu0  ;;  %7955 = vrot.lane.b32.xlu1 %v7954_v5, %s9083_s15  ;;  %7376 = vmatmul.mubr.msk.bf16.vlgmr.msra.gmra.mrb[32].mxu1 %vm1687_vm1, %v1276_v52  ;;  %v1974_v20 = vsel %vm1687_vm1, %v1469_v14, 0 }
 0x231   : > { %v928_v24 = vpop.f32.mrb[29].mxu0  ;;  %7380 = vmatpush3.bf16.xpose.msra.mxu0 %v1974_v20  ;;  %7387 = vmatprep.mubr.msk.bf16.mxu1 %vm9082_vm0, %v11775_v26  ;;  %v927_v1 = vadd.f32 %v926_v16, %v9548_v32 }
 0x232   : > { %v930_v35 = vpop.f32.mrb[30].mxu0  ;;  %7391 = vmatprep.subr.bf16.mxu0 %v11775_v26  ;;  %v929_v55 = vadd.f32 %v928_v24, %v9552_v34 }
 0x233   : > { %v931_v22 = vadd.f32 %v930_v35, %v9548_v32  ;;  %v932_v30 = vpop.f32.mrb[31].mxu0 }
 0x234   : > { %v933_v31 = vadd.f32 %v932_v30, %v9552_v34 }
 0x235   : > { %v1278_v52 = vpack.c.bf16 %v931_v22, %v927_v1  ;;  %v7969_v29 = vpack.i.bf16 %v931_v22, %v927_v1 }
 0x236   : > { %v7959_v14 = vpack.i.bf16 %v933_v31, %v929_v55  ;;  %v1470_v0 = vpack.c.bf16 %v933_v31, %v929_v55 }
 0x237   : > { %7970 = vrot.lane.b32.xlu0 %v7969_v29, %s9083_s15 }
 0x238   : > { %7382 = vmatmul.mubr.msk.bf16.vlgmr.msra.gmra.mrb[36].mxu0 %vm1687_vm1, %v1277_v62  ;;  %7960 = vrot.lane.b32.xlu1 %v7959_v14, %s9083_s15  ;;  %v2021_v20 = vsel %vm1687_vm1, %v1470_v0, 0 }
 0x239   : > { %7386 = vmatpush3.bf16.xpose.msra.mxu1 %v2021_v20  ;;  %7393 = vmatprep.mubr.msk.bf16.mxu0 %vm9082_vm0, %v11775_v26 }
 0x23a   : > { %7397 = vmatprep.subr.bf16.mxu1 %v11775_v26 }
 0x23b   : > { %7980 = vrot.lane.b32.xlu0 %v9558_v43, %s9084_s4 }
 0x23c   : > { %7965 = vrot.lane.b32.xlu1 %v9560_v44, %s9084_s4 }
 0x23f   : > { %7990 = vrot.lane.b32.xlu0 %v9572_v56, %s9084_s4 }
 0x240   : > { %7975 = vrot.lane.b32.xlu1 %v9574_v57, %s9084_s4  ;;  %7388 = vmatmul.mubr.msk.bf16.vlgmr.msra.gmra.mrb[36].mxu1 %vm1687_vm1, %v1278_v52 }
 0x241   : > { %7399 = vmatprep.mubr.msk.bf16.mxu1 %vm9082_vm0, %v11775_v26 }
 0x243   : > { %8000 = vrot.lane.b32.xlu0 %v9589_v6, %s9084_s4 }
 0x244   : > { %7985 = vrot.lane.b32.xlu1 %v9591_v7, %s9084_s4 }
 0x247   : > { %8010 = vrot.lane.b32.xlu0 %v9631_v36, %s9084_s4 }
 0x248   : > { %7995 = vrot.lane.b32.xlu1 %v9633_v37, %s9084_s4 }
 0x24b   : > { %8020 = vrot.lane.b32.xlu0 %v9672_v2, %s9084_s4 }
 0x24c   : > { %8005 = vrot.lane.b32.xlu1 %v9674_v3, %s9084_s4 }
 0x24f   : > { %8030 = vrot.lane.b32.xlu0 %v9717_v53, %s9084_s4 }
 0x250   : > { %8015 = vrot.lane.b32.xlu1 %v9719_v54, %s9084_s4 }
 0x253   : > { %8035 = vrot.lane.b32.xlu0 %v9758_v4, %s9084_s4 }
 0x254   : > { %8025 = vrot.lane.b32.xlu1 %v7954_v5, %s9084_s4 }
 0x257   : > { %8050 = vrot.lane.b32.xlu0 %v7969_v29, %s9084_s4 }
 0x258   : > { %8040 = vrot.lane.b32.xlu1 %v7959_v14, %s9084_s4 }
 0x25b   : > { %8060 = vrot.lane.b32.xlu0 %v9558_v43, %s9085_s8 }
 0x25c   : > { %8045 = vrot.lane.b32.xlu1 %v9560_v44, %s9085_s8 }
 0x25f   : > { %8070 = vrot.lane.b32.xlu0 %v9591_v7, %s9085_s8 }
 0x260   : > { %8055 = vrot.lane.b32.xlu1 %v9574_v57, %s9085_s8 }
 0x263   : > { %8080 = vrot.lane.b32.xlu0 %v9589_v6, %s9085_s8 }
 0x264   : > { %8065 = vrot.lane.b32.xlu1 %v9572_v56, %s9085_s8 }
 0x267   : > { %8090 = vrot.lane.b32.xlu0 %v9674_v3, %s9085_s8 }
 0x268   : > { %8075 = vrot.lane.b32.xlu1 %v9633_v37, %s9085_s8 }
 0x26b   : > { %8100 = vrot.lane.b32.xlu0 %v9672_v2, %s9085_s8 }
 0x26c   : > { %8085 = vrot.lane.b32.xlu1 %v9631_v36, %s9085_s8 }
 0x26f   : > { %8110 = vrot.lane.b32.xlu0 %v7954_v5, %s9085_s8 }
 0x270   : > { %8095 = vrot.lane.b32.xlu1 %v9719_v54, %s9085_s8 }
 0x271   : > { %v7901_v43 = vpop.permute.xlu1 %7900 }
 0x272   : > { %v7891_v0 = vpop.permute.xlu0 %7890  ;;  %v7903_v56 = vunpack.i.h.bf16 %v7901_v43  ;;  %v7902_v57 = vunpack.i.l.bf16 %v7901_v43 }
 0x273   : > { %v7893_v31 = vunpack.i.h.bf16 %v7891_v0  ;;  %v7892_v32 = vunpack.i.l.bf16 %v7891_v0  ;;  %8120 = vrot.lane.b32.xlu0 %v9758_v4, %s9085_s8 }
 0x274   : > { %8105 = vrot.lane.b32.xlu1 %v9717_v53, %s9085_s8  ;;  %v1279_v37 = vpack.c.bf16 %v7903_v56, %v7902_v57 }
 0x275   : > { %v1471_v34 = vpack.c.bf16 %v7893_v31, %v7892_v32 }
 0x277   : > { %v2068_v44 = vsel %vm1687_vm1, %v1471_v34, 0  ;;  %8140 = vrot.lane.b32.xlu0 %v9670_v63, %s9083_s15 }
 0x278   : > { %7392 = vmatpush3.bf16.xpose.msra.mxu0 %v2068_v44  ;;  %8115 = vrot.lane.b32.xlu1 %v7959_v14, %s9085_s8 }
 0x279   : > { %7403 = vmatprep.subr.bf16.mxu0 %v11775_v26 }
 0x27a   : > { %v7896_v6 = vpop.permute.xlu0 %7895 }
 0x27b   : > { %v7898_v7 = vunpack.i.h.bf16 %v7896_v6  ;;  %v7897_v36 = vunpack.i.l.bf16 %v7896_v6  ;;  %8150 = vrot.lane.b32.xlu0 %v9713_v49, %s9083_s15 }
 0x27c   : > { %8125 = vrot.lane.b32.xlu1 %v7969_v29, %s9085_s8 }
 0x27d   : > { %v1472_v2 = vpack.c.bf16 %v7898_v7, %v7897_v36 }
 0x27e   : > { %v7906_v3 = vpop.permute.xlu0 %7905 }
 0x27f   : > { %7394 = vmatmul.mubr.msk.bf16.vlgmr.msra.gmra.mrb[40].mxu0 %vm1687_vm1, %v1279_v37  ;;  %v2115_v53 = vsel %vm1687_vm1, %v1472_v2, 0  ;;  %8160 = vrot.lane.b32.xlu0 %v9754_v59, %s9083_s15  ;;  %v7908_v54 = vunpack.i.h.bf16 %v7906_v3  ;;  %v7907_v62 = vunpack.i.l.bf16 %v7906_v3 }
 0x280   : > { %7398 = vmatpush3.bf16.xpose.msra.mxu1 %v2115_v53  ;;  %7405 = vmatprep.mubr.msk.bf16.mxu0 %vm9082_vm0, %v11775_v26 }
 0x281   : > { %7409 = vmatprep.subr.bf16.mxu1 %v11775_v26  ;;  %8130 = vrot.lane.b32.xlu1 %v9629_v33, %s9083_s15  ;;  %v1280_v16 = vpack.c.bf16 %v7908_v54, %v7907_v62 }
 0x282   : > { %v7916_v29 = vpop.permute.xlu1 %7915  ;;  %v7911_v35 = vpop.permute.xlu0 %7910 }
 0x283   : > { %v7918_v4 = vunpack.i.h.bf16 %v7916_v29  ;;  %v7917_v5 = vunpack.i.l.bf16 %v7916_v29  ;;  %8170 = vrot.lane.b32.xlu0 %v9629_v33, %s9084_s4  ;;  %v7913_v22 = vunpack.i.h.bf16 %v7911_v35  ;;  %v7912_v30 = vunpack.i.l.bf16 %v7911_v35 }
 0x285   : > { %v1473_v24 = vpack.c.bf16 %v7918_v4, %v7917_v5  ;;  %8135 = vrot.lane.b32.xlu1 %v9624_v27, %s9083_s15  ;;  %v1281_v20 = vpack.c.bf16 %v7913_v22, %v7912_v30 }
 0x287   : > { %7400 = vmatmul.mubr.msk.bf16.vlgmr.msra.gmra.mrb[40].mxu1 %vm1687_vm1, %v1280_v16  ;;  %v2162_v1 = vsel %vm1687_vm1, %v1473_v24, 0  ;;  %8180 = vrot.lane.b32.xlu0 %v9670_v63, %s9084_s4 }
 0x288   : > { %7404 = vmatpush3.bf16.xpose.msra.mxu0 %v2162_v1  ;;  %7411 = vmatprep.mubr.msk.bf16.mxu1 %vm9082_vm0, %v11775_v26 }
 0x289   : > { %7415 = vmatprep.subr.bf16.mxu0 %v11775_v26  ;;  %8145 = vrot.lane.b32.xlu1 %v9665_v61, %s9083_s15  ;;  %v7921_v31 = vpop.permute.xlu0 %7920 }
 0x28a   : > { %v7926_v55 = vpop.permute.xlu1 %7925  ;;  %v7923_v34 = vunpack.i.h.bf16 %v7921_v31  ;;  %v7922_v43 = vunpack.i.l.bf16 %v7921_v31 }
 0x28b   : > { %v7928_v52 = vunpack.i.h.bf16 %v7926_v55  ;;  %v7927_v14 = vunpack.i.l.bf16 %v7926_v55  ;;  %8190 = vrot.lane.b32.xlu0 %v9713_v49, %s9084_s4 }
 0x28c   : > { %v1282_v6 = vpack.c.bf16 %v7923_v34, %v7922_v43 }
 0x28d   : > { %v1474_v0 = vpack.c.bf16 %v7928_v52, %v7927_v14  ;;  %8155 = vrot.lane.b32.xlu1 %v9706_v41, %s9083_s15 }
 0x28f   : > { %7406 = vmatmul.mubr.msk.bf16.vlgmr.msra.gmra.mrb[44].mxu0 %vm1687_vm1, %v1281_v20  ;;  %v2209_v32 = vsel %vm1687_vm1, %v1474_v0, 0  ;;  %8195 = vrot.lane.b32.xlu0 %v9706_v41, %s9084_s4 }
 0x290   : > { %7410 = vmatpush3.bf16.xpose.msra.mxu1 %v2209_v32  ;;  %7417 = vmatprep.mubr.msk.bf16.mxu0 %vm9082_vm0, %v11775_v26 }
 0x291   : > { %7421 = vmatprep.subr.bf16.mxu1 %v11775_v26  ;;  %8165 = vrot.lane.b32.xlu1 %v9747_v39, %s9083_s15  ;;  %v7931_v36 = vpop.permute.xlu0 %7930 }
 0x292   : > { %v7936_v44 = vpop.permute.xlu1 %7935  ;;  %v7933_v2 = vunpack.i.h.bf16 %v7931_v36  ;;  %v7932_v3 = vunpack.i.l.bf16 %v7931_v36 }
 0x293   : > { %v7938_v56 = vunpack.i.h.bf16 %v7936_v44  ;;  %v7937_v57 = vunpack.i.l.bf16 %v7936_v44  ;;  %8200 = vrot.lane.b32.xlu0 %v9754_v59, %s9084_s4 }
 0x294   : > { %v1283_v29 = vpack.c.bf16 %v7933_v2, %v7932_v3 }
 0x295   : > { %v1475_v7 = vpack.c.bf16 %v7938_v56, %v7937_v57  ;;  %8175 = vrot.lane.b32.xlu1 %v9624_v27, %s9084_s4 }
 0x297   : > { %7412 = vmatmul.mubr.msk.bf16.vlgmr.msra.gmra.mrb[44].mxu1 %vm1687_vm1, %v1282_v6  ;;  %v2256_v37 = vsel %vm1687_vm1, %v1475_v7, 0  ;;  %8210 = vrot.lane.b32.xlu0 %v9629_v33, %s9085_s8 }
 0x298   : > { %7416 = vmatpush3.bf16.xpose.msra.mxu0 %v2256_v37  ;;  %7423 = vmatprep.mubr.msk.bf16.mxu1 %vm9082_vm0, %v11775_v26 }
 0x299   : > { %7427 = vmatprep.subr.bf16.mxu0 %v11775_v26  ;;  %8185 = vrot.lane.b32.xlu1 %v9665_v61, %s9084_s4  ;;  %v7941_v33 = vpop.permute.xlu0 %7940 }
 0x29a   : > { %v7946_v53 = vpop.permute.xlu1 %7945  ;;  %v7943_v16 = vunpack.i.h.bf16 %v7941_v33  ;;  %v7942_v24 = vunpack.i.l.bf16 %v7941_v33 }
 0x29b   : > { %v7948_v54 = vunpack.i.h.bf16 %v7946_v53  ;;  %v7947_v62 = vunpack.i.l.bf16 %v7946_v53  ;;  %8220 = vrot.lane.b32.xlu0 %v9670_v63, %s9085_s8 }
 0x29c   : > { %v1284_v22 = vpack.c.bf16 %v7943_v16, %v7942_v24 }
 0x29d   : > { %v1476_v4 = vpack.c.bf16 %v7948_v54, %v7947_v62  ;;  %8205 = vrot.lane.b32.xlu1 %v9747_v39, %s9084_s4 }
 0x29f   : > { %7418 = vmatmul.mubr.msk.bf16.vlgmr.msra.gmra.mrb[48].mxu0 %vm1687_vm1, %v1283_v29  ;;  %v2303_v5 = vsel %vm1687_vm1, %v1476_v4, 0 }
 0x2a0   : > { %7422 = vmatpush3.bf16.xpose.msra.mxu1 %v2303_v5  ;;  %7429 = vmatprep.mubr.msk.bf16.mxu0 %vm9082_vm0, %v11775_v26 }
 0x2a1   : > { %7433 = vmatprep.subr.bf16.mxu1 %v11775_v26  ;;  %8215 = vrot.lane.b32.xlu1 %v9624_v27, %s9085_s8  ;;  %v7951_v30 = vpop.permute.xlu0 %7950 }
 0x2a2   : > { %v7956_v63 = vpop.permute.xlu1 %7955  ;;  %v7953_v14 = vunpack.i.h.bf16 %v7951_v30  ;;  %v7952_v20 = vunpack.i.l.bf16 %v7951_v30 }
 0x2a3   : > { %v7958_v35 = vunpack.i.h.bf16 %v7956_v63  ;;  %v7957_v1 = vunpack.i.l.bf16 %v7956_v63 }
 0x2a4   : > { %v1285_v34 = vpack.c.bf16 %v7953_v14, %v7952_v20 }
 0x2a5   : > { %v1477_v55 = vpack.c.bf16 %v7958_v35, %v7957_v1  ;;  %8225 = vrot.lane.b32.xlu1 %v9665_v61, %s9085_s8 }
 0x2a7   : > { %7424 = vmatmul.mubr.msk.bf16.vlgmr.msra.gmra.mrb[48].mxu1 %vm1687_vm1, %v1284_v22  ;;  %v2350_v52 = vsel %vm1687_vm1, %v1477_v55, 0 }
 0x2a8   : > { %7428 = vmatpush3.bf16.xpose.msra.mxu0 %v2350_v52  ;;  %7435 = vmatprep.mubr.msk.bf16.mxu1 %vm9082_vm0, %v11775_v26 }
 0x2a9   : > { %v7971_v27 = vpop.permute.xlu0 %7970  ;;  %7439 = vmatprep.subr.bf16.mxu0 %v11775_v26 }
 0x2aa   : > { %v7961_v0 = vpop.permute.xlu1 %7960  ;;  %v7973_v7 = vunpack.i.h.bf16 %v7971_v27  ;;  %v7972_v36 = vunpack.i.l.bf16 %v7971_v27 }
 0x2ab   : > { %v7963_v31 = vunpack.i.h.bf16 %v7961_v0  ;;  %v7962_v32 = vunpack.i.l.bf16 %v7961_v0 }
 0x2ac   : > { %v1286_v29 = vpack.c.bf16 %v7973_v7, %v7972_v36 }
 0x2ad   : > { %v7981_v43 = vpop.permute.xlu0 %7980  ;;  %v1478_v44 = vpack.c.bf16 %v7963_v31, %v7962_v32 }
 0x2ae   : > { %v7966_v61 = vpop.permute.xlu1 %7965  ;;  %v7983_v4 = vunpack.i.h.bf16 %v7981_v43  ;;  %v7982_v33 = vunpack.i.l.bf16 %v7981_v43 }
 0x2af   : > { %v7968_v56 = vunpack.i.h.bf16 %v7966_v61  ;;  %v7967_v57 = vunpack.i.l.bf16 %v7966_v61  ;;  %7430 = vmatmul.mubr.msk.bf16.vlgmr.msra.gmra.mrb[52].mxu0 %vm1687_vm1, %v1285_v34  ;;  %v2397_v6 = vsel %vm1687_vm1, %v1478_v44, 0 }
 0x2b0   : > { %7434 = vmatpush3.bf16.xpose.msra.mxu1 %v2397_v6  ;;  %7441 = vmatprep.mubr.msk.bf16.mxu0 %vm9082_vm0, %v11775_v26  ;;  %v1287_v22 = vpack.c.bf16 %v7983_v4, %v7982_v33 }
 0x2b1   : > { %v7991_v37 = vpop.permute.xlu0 %7990  ;;  %v1479_v2 = vpack.c.bf16 %v7968_v56, %v7967_v57  ;;  %7445 = vmatprep.subr.bf16.mxu1 %v11775_v26 }
 0x2b2   : > { %v7976_v3 = vpop.permute.xlu1 %7975  ;;  %v7993_v30 = vunpack.i.h.bf16 %v7991_v37  ;;  %v7992_v55 = vunpack.i.l.bf16 %v7991_v37 }
 0x2b3   : > { %v7978_v53 = vunpack.i.h.bf16 %v7976_v3  ;;  %v7977_v54 = vunpack.i.l.bf16 %v7976_v3  ;;  %v2444_v62 = vsel %vm1687_vm1, %v1479_v2, 0 }
 0x2b4   : > { %7440 = vmatpush3.bf16.xpose.msra.mxu0 %v2444_v62  ;;  %v1288_v32 = vpack.c.bf16 %v7993_v30, %v7992_v55 }
 0x2b5   : > { %v8001_v5 = vpop.permute.xlu0 %8000  ;;  %v1480_v16 = vpack.c.bf16 %v7978_v53, %v7977_v54  ;;  %7451 = vmatprep.subr.bf16.mxu0 %v11775_v26 }
 0x2b6   : > { %v7986_v24 = vpop.permute.xlu1 %7985  ;;  %v8003_v34 = vunpack.i.h.bf16 %v8001_v5  ;;  %v8002_v43 = vunpack.i.l.bf16 %v8001_v5 }
 0x2b7   : > { %v7988_v63 = vunpack.i.h.bf16 %v7986_v24  ;;  %v7987_v35 = vunpack.i.l.bf16 %v7986_v24  ;;  %7436 = vmatmul.mubr.msk.bf16.vlgmr.msra.gmra.mrb[52].mxu1 %vm1687_vm1, %v1286_v29  ;;  %v2491_v1 = vsel %vm1687_vm1, %v1480_v16, 0 }
 0x2b8   : > { %7446 = vmatpush3.bf16.xpose.msra.mxu1 %v2491_v1  ;;  %7447 = vmatprep.mubr.msk.bf16.mxu1 %vm9082_vm0, %v11775_v26  ;;  %v1289_v36 = vpack.c.bf16 %v8003_v34, %v8002_v43 }
 0x2b9   : > { %v8011_v52 = vpop.permute.xlu0 %8010  ;;  %v1481_v14 = vpack.c.bf16 %v7988_v63, %v7987_v35  ;;  %7457 = vmatprep.subr.bf16.mxu1 %v11775_v26 }
 0x2ba   : > { %v7996_v20 = vpop.permute.xlu1 %7995  ;;  %v8013_v37 = vunpack.i.h.bf16 %v8011_v52  ;;  %v8012_v2 = vunpack.i.l.bf16 %v8011_v52 }
 0x2bb   : > { %v7998_v27 = vunpack.i.h.bf16 %v7996_v20  ;;  %v7997_v0 = vunpack.i.l.bf16 %v7996_v20  ;;  %7442 = vmatmul.mubr.msk.bf16.vlgmr.msra.gmra.mrb[56].mxu0 %vm1687_vm1, %v1287_v22  ;;  %v2538_v31 = vsel %vm1687_vm1, %v1481_v14, 0 }
 0x2bc   : > { %7452 = vmatpush3.bf16.xpose.msra.mxu0 %v2538_v31  ;;  %7453 = vmatprep.mubr.msk.bf16.mxu0 %vm9082_vm0, %v11775_v26  ;;  %v1290_v33 = vpack.c.bf16 %v8013_v37, %v8012_v2 }
 0x2bd   : > { %v8021_v44 = vpop.permute.xlu0 %8020  ;;  %v1482_v61 = vpack.c.bf16 %v7998_v27, %v7997_v0  ;;  %7463 = vmatprep.subr.bf16.mxu0 %v11775_v26 }
 0x2be   : > { %v8006_v56 = vpop.permute.xlu1 %8005  ;;  %v8023_v5 = vunpack.i.h.bf16 %v8021_v44  ;;  %v8022_v16 = vunpack.i.l.bf16 %v8021_v44 }
 0x2bf   : > { %v8008_v57 = vunpack.i.h.bf16 %v8006_v56  ;;  %v8007_v6 = vunpack.i.l.bf16 %v8006_v56  ;;  %7448 = vmatmul.mubr.msk.bf16.vlgmr.msra.gmra.mrb[56].mxu1 %vm1687_vm1, %v1288_v32  ;;  %v2585_v7 = vsel %vm1687_vm1, %v1482_v61, 0 }
 0x2c0   : > { %7458 = vmatpush3.bf16.xpose.msra.mxu1 %v2585_v7  ;;  %7459 = vmatprep.mubr.msk.bf16.mxu1 %vm9082_vm0, %v11775_v26  ;;  %v1291_v55 = vpack.c.bf16 %v8023_v5, %v8022_v16 }
 0x2c1   : > { %v8031_v3 = vpop.permute.xlu0 %8030  ;;  %v1483_v53 = vpack.c.bf16 %v8008_v57, %v8007_v6  ;;  %7469 = vmatprep.subr.bf16.mxu1 %v11775_v26 }
 0x2c2   : > { %v8016_v54 = vpop.permute.xlu1 %8015  ;;  %v8033_v52 = vunpack.i.h.bf16 %v8031_v3  ;;  %v8032_v14 = vunpack.i.l.bf16 %v8031_v3 }
 0x2c3   : > { %v8018_v62 = vunpack.i.h.bf16 %v8016_v54  ;;  %v8017_v29 = vunpack.i.l.bf16 %v8016_v54  ;;  %7454 = vmatmul.mubr.msk.bf16.vlgmr.msra.gmra.mrb[60].mxu0 %vm1687_vm1, %v1289_v36  ;;  %v2632_v4 = vsel %vm1687_vm1, %v1483_v53, 0 }
 0x2c4   : > { %7464 = vmatpush3.bf16.xpose.msra.mxu0 %v2632_v4  ;;  %7465 = vmatprep.mubr.msk.bf16.mxu0 %vm9082_vm0, %v11775_v26  ;;  %v1292_v43 = vpack.c.bf16 %v8033_v52, %v8032_v14 }
 0x2c5   : > { %v8036_v24 = vpop.permute.xlu0 %8035  ;;  %v1484_v63 = vpack.c.bf16 %v8018_v62, %v8017_v29  ;;  %7475 = vmatprep.subr.bf16.mxu0 %v11775_v26 }
 0x2c6   : > { %v8026_v35 = vpop.permute.xlu1 %8025  ;;  %v8038_v44 = vunpack.i.h.bf16 %v8036_v24  ;;  %v8037_v61 = vunpack.i.l.bf16 %v8036_v24 }
 0x2c7   : > { %v8028_v1 = vunpack.i.h.bf16 %v8026_v35  ;;  %v8027_v22 = vunpack.i.l.bf16 %v8026_v35  ;;  %7460 = vmatmul.mubr.msk.bf16.vlgmr.msra.gmra.mrb[60].mxu1 %vm1687_vm1, %v1290_v33  ;;  %v2679_v30 = vsel %vm1687_vm1, %v1484_v63, 0 }
 0x2c8   : > { %7470 = vmatpush3.bf16.xpose.msra.mxu1 %v2679_v30  ;;  %7471 = vmatprep.mubr.msk.bf16.mxu1 %vm9082_vm0, %v11775_v26  ;;  %v1293_v2 = vpack.c.bf16 %v8038_v44, %v8037_v61 }
 0x2c9   : > { %v8051_v20 = vpop.permute.xlu0 %8050  ;;  %v1485_v27 = vpack.c.bf16 %v8028_v1, %v8027_v22  ;;  %7481 = vmatprep.subr.bf16.mxu1 %v11775_v26 }
 0x2ca   : > { %v8041_v0 = vpop.permute.xlu1 %8040  ;;  %v8053_v3 = vunpack.i.h.bf16 %v8051_v20  ;;  %v8052_v53 = vunpack.i.l.bf16 %v8051_v20 }
 0x2cb   : > { %v8043_v31 = vunpack.i.h.bf16 %v8041_v0  ;;  %v8042_v32 = vunpack.i.l.bf16 %v8041_v0  ;;  %7466 = vmatmul.mubr.msk.bf16.vlgmr.msra.gmra.mrb[64].mxu0 %vm1687_vm1, %v1291_v55  ;;  %v2726_v34 = vsel %vm1687_vm1, %v1485_v27, 0 }
 0x2cc   : > { %7476 = vmatpush3.bf16.xpose.msra.mxu0 %v2726_v34  ;;  %7477 = vmatprep.mubr.msk.bf16.mxu0 %vm9082_vm0, %v11775_v26  ;;  %v1294_v63 = vpack.c.bf16 %v8053_v3, %v8052_v53 }
 0x2cd   : > { %v8061_v56 = vpop.permute.xlu0 %8060  ;;  %v1486_v57 = vpack.c.bf16 %v8043_v31, %v8042_v32  ;;  %7487 = vmatprep.subr.bf16.mxu0 %v11775_v26 }
 0x2ce   : > { %v8046_v6 = vpop.permute.xlu1 %8045  ;;  %v8063_v35 = vunpack.i.h.bf16 %v8061_v56  ;;  %v8062_v1 = vunpack.i.l.bf16 %v8061_v56 }
 0x2cf   : > { %v8048_v7 = vunpack.i.h.bf16 %v8046_v6  ;;  %v8047_v36 = vunpack.i.l.bf16 %v8046_v6  ;;  %7472 = vmatmul.mubr.msk.bf16.vlgmr.msra.gmra.mrb[64].mxu1 %vm1687_vm1, %v1292_v43  ;;  %v2773_v37 = vsel %vm1687_vm1, %v1486_v57, 0 }
 0x2d0   : > { %7482 = vmatpush3.bf16.xpose.msra.mxu1 %v2773_v37  ;;  %7483 = vmatprep.mubr.msk.bf16.mxu1 %vm9082_vm0, %v11775_v26  ;;  %v1295_v20 = vpack.c.bf16 %v8063_v35, %v8062_v1 }
 0x2d1   : > { %v8071_v54 = vpop.permute.xlu0 %8070  ;;  %v1487_v62 = vpack.c.bf16 %v8048_v7, %v8047_v36  ;;  %7493 = vmatprep.subr.bf16.mxu1 %v11775_v26 }
 0x2d2   : > { %v8073_v29 = vunpack.i.h.bf16 %v8071_v54  ;;  %v8056_v4 = vpop.permute.xlu1 %8055  ;;  %v8072_v33 = vunpack.i.l.bf16 %v8071_v54 }
 0x2d3   : > { %v8058_v5 = vunpack.i.h.bf16 %v8056_v4  ;;  %v8057_v16 = vunpack.i.l.bf16 %v8056_v4  ;;  %7478 = vmatmul.mubr.msk.bf16.vlgmr.msra.gmra.mrb[68].mxu0 %vm1687_vm1, %v1293_v2  ;;  %v2820_v24 = vsel %vm1687_vm1, %v1487_v62, 0 }
 0x2d4   : > { %7488 = vmatpush3.bf16.xpose.msra.mxu0 %v2820_v24  ;;  %7489 = vmatprep.mubr.msk.bf16.mxu0 %vm9082_vm0, %v11775_v26  ;;  %v1489_v14 = vpack.c.bf16 %v8073_v29, %v8072_v33 }
 0x2d5   : > { %v8081_v22 = vpop.permute.xlu0 %8080  ;;  %v1488_v30 = vpack.c.bf16 %v8058_v5, %v8057_v16  ;;  %7499 = vmatprep.subr.bf16.mxu0 %v11775_v26 }
 0x2d6   : > { %v8066_v55 = vpop.permute.xlu1 %8065  ;;  %v2914_v57 = vsel %vm1687_vm1, %v1489_v14, 0  ;;  %v8083_v36 = vunpack.i.h.bf16 %v8081_v22  ;;  %v8082_v37 = vunpack.i.l.bf16 %v8081_v22 }
 0x2d7   : > { %7484 = vmatmul.mubr.msk.bf16.vlgmr.msra.gmra.mrb[68].mxu1 %vm1687_vm1, %v1294_v63  ;;  %v2867_v52 = vsel %vm1687_vm1, %v1488_v30, 0  ;;  %v8068_v27 = vunpack.i.h.bf16 %v8066_v55  ;;  %v8067_v0 = vunpack.i.l.bf16 %v8066_v55 }
 0x2d8   : > { %7494 = vmatpush3.bf16.xpose.msra.mxu1 %v2867_v52  ;;  %7495 = vmatprep.mubr.msk.bf16.mxu1 %vm9082_vm0, %v11775_v26  ;;  %v1297_v16 = vpack.c.bf16 %v8083_v36, %v8082_v37 }
 0x2d9   : > { %v8091_v31 = vpop.permute.xlu0 %8090  ;;  %7505 = vmatprep.subr.bf16.mxu1 %v11775_v26  ;;  %v1296_v2 = vpack.c.bf16 %v8068_v27, %v8067_v0 }
 0x2da   : > { %v8093_v32 = vunpack.i.h.bf16 %v8091_v31  ;;  %v8092_v34 = vunpack.i.l.bf16 %v8091_v31  ;;  %v8076_v43 = vpop.permute.xlu1 %8075 }
 0x2db   : > { %v8078_v44 = vunpack.i.h.bf16 %v8076_v43  ;;  %v8077_v61 = vunpack.i.l.bf16 %v8076_v43  ;;  %v9964_v56 = vpop.f32.mrb[16].mxu1  ;;  %7490 = vmatmul.mubr.msk.bf16.vlgmr.msra.gmra.mrb[72].mxu0 %vm1687_vm1, %v1295_v20 }
 0x2dc   : > { %v7347_v6 = vpop.f32.mrb[17].mxu1  ;;  %7500 = vmatpush3.bf16.xpose.msra.mxu0 %v2914_v57  ;;  %v3193_v7 = vsel %vm3192_vm2, %v9964_v56, -inf  ;;  %7501 = vmatprep.mubr.msk.bf16.mxu0 %vm9082_vm0, %v11775_v26  ;;  %v1491_v33 = vpack.c.bf16 %v8093_v32, %v8092_v34 }
 0x2dd   : > { %v8101_v3 = vpop.permute.xlu0 %8100  ;;  %3194 = vmax.xlane.f32.xlu0 %v3193_v7  ;;  %v9972_v53 = vpop.f32.mrb[18].mxu1  ;;  %v1490_v54 = vpack.c.bf16 %v8078_v44, %v8077_v61  ;;  %7511 = vmatprep.subr.bf16.mxu0 %v11775_v26 }
 0x2de   : > { %v8086_v62 = vpop.permute.xlu1 %8085  ;;  %v7348_v29 = vpop.f32.mrb[19].mxu1  ;;  %v3196_v4 = vsel %vm3192_vm2, %v9972_v53, -inf  ;;  %v3008_v22 = vsel %vm1687_vm1, %v1491_v33, 0  ;;  %v8103_v20 = vunpack.i.h.bf16 %v8101_v3  ;;  %v8102_v0 = vunpack.i.l.bf16 %v8101_v3 }
 0x2df   : > { %7496 = vmatmul.mubr.msk.bf16.vlgmr.msra.gmra.mrb[72].mxu1 %vm1687_vm1, %v1296_v2  ;;  %3197 = vmax.xlane.f32.xlu1 %v3196_v4  ;;  %v2961_v5 = vsel %vm1687_vm1, %v1490_v54, 0  ;;  %v8088_v24 = vunpack.i.h.bf16 %v8086_v62  ;;  %v8087_v63 = vunpack.i.l.bf16 %v8086_v62 }
 0x2e0   : > { %7506 = vmatpush3.bf16.xpose.msra.mxu1 %v2961_v5  ;;  %7507 = vmatprep.mubr.msk.bf16.mxu1 %vm9082_vm0, %v11775_v26  ;;  %v1299_v36 = vpack.c.bf16 %v8103_v20, %v8102_v0 }
 0x2e1   : > { %v8111_v35 = vpop.permute.xlu0 %8110  ;;  %7517 = vmatprep.subr.bf16.mxu1 %v11775_v26  ;;  %v1298_v31 = vpack.c.bf16 %v8088_v24, %v8087_v63 }
 0x2e2   : > { %v8096_v1 = vpop.permute.xlu1 %8095  ;;  %v8113_v30 = vunpack.i.h.bf16 %v8111_v35  ;;  %v8112_v55 = vunpack.i.l.bf16 %v8111_v35 }
 0x2e3   : > { %v8098_v52 = vunpack.i.h.bf16 %v8096_v1  ;;  %v8097_v14 = vunpack.i.l.bf16 %v8096_v1  ;;  %7502 = vmatmul.mubr.msk.bf16.vlgmr.msra.gmra.mrb[76].mxu0 %vm1687_vm1, %v1297_v16 }
 0x2e4   : > { %v9984_v27 = vpop.f32.mrb[20].mxu1  ;;  %7512 = vmatpush3.bf16.xpose.msra.mxu0 %v3008_v22  ;;  %7513 = vmatprep.mubr.msk.bf16.mxu0 %vm9082_vm0, %v11775_v26  ;;  %v1493_v7 = vpack.c.bf16 %v8113_v30, %v8112_v55 }
 0x2e5   : > { %v7353_v32 = vpop.f32.mrb[21].mxu1  ;;  %v3199_v34 = vsel %vm3192_vm2, %v9984_v27, -inf  ;;  %v1492_v43 = vpack.c.bf16 %v8098_v52, %v8097_v14  ;;  %7523 = vmatprep.subr.bf16.mxu0 %v11775_v26  ;;  %v8121_v37 = vpop.permute.xlu0 %8120 }
 0x2e6   : > { %3200 = vmax.xlane.f32.xlu0 %v3199_v34  ;;  %v9991_v44 = vpop.f32.mrb[22].mxu1  ;;  %v8106_v61 = vpop.permute.xlu1 %8105  ;;  %v3102_v33 = vsel %vm1687_vm1, %v1493_v7, 0  ;;  %v8123_v5 = vunpack.i.h.bf16 %v8121_v37  ;;  %v8122_v24 = vunpack.i.l.bf16 %v8121_v37 }
 0x2e7   : > { %v7354_v57 = vpop.f32.mrb[23].mxu1  ;;  %7508 = vmatmul.mubr.msk.bf16.vlgmr.msra.gmra.mrb[76].mxu1 %vm1687_vm1, %v1298_v31  ;;  %v3055_v6 = vsel %vm1687_vm1, %v1492_v43, 0  ;;  %v8108_v2 = vunpack.i.h.bf16 %v8106_v61  ;;  %v8107_v3 = vunpack.i.l.bf16 %v8106_v61  ;;  %v3202_v54 = vsel %vm3192_vm2, %v9991_v44, -inf }
 0x2e8   : > { %7518 = vmatpush3.bf16.xpose.msra.mxu1 %v3055_v6  ;;  %7519 = vmatprep.mubr.msk.bf16.mxu1 %vm9082_vm0, %v11775_v26  ;;  %v1301_v0 = vpack.c.bf16 %v8123_v5, %v8122_v24 }
 0x2e9   : > { %7529 = vmatprep.subr.bf16.mxu1 %v11775_v26  ;;  %v1300_v63 = vpack.c.bf16 %v8108_v2, %v8107_v3 }
 0x2ea   : > { %3203 = vmax.xlane.f32.xlu0 %v3202_v54  ;;  %v8116_v62 = vpop.permute.xlu1 %8115 }
 0x2eb   : > { %v8118_v29 = vunpack.i.h.bf16 %v8116_v62  ;;  %v8117_v4 = vunpack.i.l.bf16 %v8116_v62  ;;  %7514 = vmatmul.mubr.msk.bf16.vlgmr.msra.gmra.mrb[80].mxu0 %vm1687_vm1, %v1299_v36 }
 0x2ec   : > { %v10002_v16 = vpop.f32.mrb[24].mxu1  ;;  %7524 = vmatpush3.bf16.xpose.msra.mxu0 %v3102_v33  ;;  %7525 = vmatprep.mubr.msk.bf16.mxu0 %vm9082_vm0, %v11775_v26 }
 0x2ed   : > { %v7359_v35 = vpop.f32.mrb[25].mxu1  ;;  %v3205_v1 = vsel %vm3192_vm2, %v10002_v16, -inf  ;;  %v1494_v22 = vpack.c.bf16 %v8118_v29, %v8117_v4  ;;  %7535 = vmatprep.subr.bf16.mxu0 %v11775_v26 }
 0x2ee   : > { %3206 = vmax.xlane.f32.xlu1 %v3205_v1  ;;  %v10009_v30 = vpop.f32.mrb[26].mxu1  ;;  %v8126_v55 = vpop.permute.xlu1 %8125 }
 0x2ef   : > { %v7360_v52 = vpop.f32.mrb[27].mxu1  ;;  %7520 = vmatmul.mubr.msk.bf16.vlgmr.msra.gmra.mrb[80].mxu1 %vm1687_vm1, %v1300_v63  ;;  %v3208_v14 = vsel %vm3192_vm2, %v10009_v30, -inf  ;;  %v3149_v20 = vsel %vm1687_vm1, %v1494_v22, 0  ;;  %v8128_v31 = vunpack.i.h.bf16 %v8126_v55  ;;  %v8127_v32 = vunpack.i.l.bf16 %v8126_v55 }
 0x2f0   : > { %3209 = vmax.xlane.f32.xlu0 %v3208_v14  ;;  %7530 = vmatpush3.bf16.xpose.msra.mxu1 %v3149_v20 }
 0x2f1   : > { %7531 = vmatprep.mubr.msk.bf16.mxu1 %vm9082_vm0, %v11775_v26  ;;  %7541 = vmatprep.subr.bf16.mxu1 %v11775_v26  ;;  %v1302_v43 = vpack.c.bf16 %v8128_v31, %v8127_v32 }
 0x2f3   : > { %7526 = vmatmul.mubr.msk.bf16.vlgmr.msra.gmra.mrb[84].mxu0 %vm1687_vm1, %v1301_v0  ;;  %v10072_v0 = vpop.permute.xlu0 %8140  ;;  %v10074_v31 = vpop.permute.xlu1 %8130 }
 0x2f4   : > { %v10019_v34 = vpop.f32.mrb[28].mxu1  ;;  %7536 = vmatpush3.bf16.msra.mxu0 %v1655_v42  ;;  %7537 = vmatprep.mubr.msk.bf16.mxu0 %vm9082_vm0, %v11775_v26  ;;  %11879 = vst [vmem:[#allocation34_spill] sm:$0xff] %v10072_v0  ;;  %11880 = vst [vmem:[#allocation35_spill] sm:$0xff] %v10074_v31 }
 0x2f5   : > { %v7365_v61 = vpop.f32.mrb[29].mxu1  ;;  %v3211_v57 = vsel %vm3192_vm2, %v10019_v34, -inf  ;;  %7547 = vmatprep.subr.bf16.mxu0 %v11775_v26 }
 0x2f6   : > { %3212 = vmax.xlane.f32.xlu1 %v3211_v57  ;;  %v10029_v6 = vpop.f32.mrb[30].mxu1 }
 0x2f7   : > { %v7366_v7 = vpop.f32.mrb[31].mxu1  ;;  %7532 = vmatmul.mubr.msk.bf16.vlgmr.msra.gmra.mrb[84].mxu1 %vm1687_vm1, %v1302_v43  ;;  %v3214_v15 = vsel %vm3192_vm2, %v10029_v6, -inf  ;;  %v10076_v32 = vpop.permute.xlu0 %8150 }
 0x2f8   : > { %3215 = vmax.xlane.f32.xlu0 %v3214_v15  ;;  %7542 = vmatpush3.bf16.msra.mxu1 %v1656_v45  ;;  %11881 = vst [vmem:[#allocation36_spill] sm:$0xff] %v10076_v32  ;;  %v10078_v43 = vpop.permute.xlu1 %8135 }
 0x2f9   : > { %7543 = vmatprep.mubr.msk.bf16.mxu1 %vm9082_vm0, %v11775_v26  ;;  %7553 = vmatprep.subr.bf16.mxu1 %v11775_v26  ;;  %11882 = vst [vmem:[#allocation37_spill] sm:$0xff] %v10078_v43 }
 0x2fb   : > { %v10040_v23 = vpop.f32.mrb[32].mxu0  ;;  %v10080_v61 = vpop.permute.xlu0 %8160 }
 0x2fc   : > { %v7371_v42 = vpop.f32.mrb[33].mxu0  ;;  %v3217_v36 = vsel %vm3192_vm2, %v10040_v23, -inf  ;;  %11883 = vst [vmem:[#allocation38_spill] sm:$0xff] %v10080_v61  ;;  %v10082_v57 = vpop.permute.xlu1 %8145 }
 0x2fd   : > { %v10044_v37 = vpop.f32.mrb[34].mxu0  ;;  %3218 = vmax.xlane.f32.xlu1 %v3217_v36  ;;  %11884 = vst [vmem:[#allocation39_spill] sm:$0xff] %v10082_v57 }
 0x2fe   : > { %v7372_v2 = vpop.f32.mrb[35].mxu0  ;;  %v3220_v3 = vsel %vm3192_vm2, %v10044_v37, -inf }
 0x2ff   : > { %3221 = vmax.xlane.f32.xlu0 %v3220_v3  ;;  %v10084_v7 = vpop.permute.xlu0 %8170 }
 0x300   : > { %11885 = vst [vmem:[#allocation40_spill] sm:$0xff] %v10084_v7  ;;  %v10086_v15 = vpop.permute.xlu1 %8155 }
 0x301   : > { %11886 = vst [vmem:[#allocation41_spill] sm:$0xff] %v10086_v15 }
 0x303   : > { %v10048_v11 = vpop.f32.mrb[32].mxu1  ;;  %v10088_v42 = vpop.permute.xlu0 %8180 }
 0x304   : > { %v7377_v18 = vpop.f32.mrb[33].mxu1  ;;  %v3223_v45 = vsel %vm3192_vm2, %v10048_v11, -inf  ;;  %11887 = vst [vmem:[#allocation42_spill] sm:$0xff] %v10088_v42  ;;  %v10090_v36 = vpop.permute.xlu1 %8165 }
 0x305   : > { %3224 = vmax.xlane.f32.xlu1 %v3223_v45  ;;  %v10052_v54 = vpop.f32.mrb[34].mxu1  ;;  %11888 = vst [vmem:[#allocation43_spill] sm:$0xff] %v10090_v36 }
 0x306   : > { %v3226_v62 = vsel %vm3192_vm2, %v10052_v54, -inf  ;;  %v7378_v29 = vpop.f32.mrb[35].mxu1 }
 0x307   : > { %3227 = vmax.xlane.f32.xlu0 %v3226_v62  ;;  %v10092_v2 = vpop.permute.xlu0 %8190 }
 0x308   : > { %11889 = vst [vmem:[#allocation44_spill] sm:$0xff] %v10092_v2  ;;  %v10094_v3 = vpop.permute.xlu1 %8175 }
 0x309   : > { %11890 = vst [vmem:[#allocation45_spill] sm:$0xff] %v10094_v3 }
 0x30b   : > { %v10056_v4 = vpop.f32.mrb[36].mxu0  ;;  %v10100_v29 = vpop.permute.xlu0 %8195 }
 0x30c   : > { %v7383_v33 = vpop.f32.mrb[37].mxu0  ;;  %v3229_v5 = vsel %vm3192_vm2, %v10056_v4, -inf  ;;  %11891 = vst [vmem:[#allocation46_spill] sm:$0xff] %v10100_v29 }
 0x30d   : > { %v10060_v24 = vpop.f32.mrb[38].mxu0  ;;  %3230 = vmax.xlane.f32.xlu1 %v3229_v5 }
 0x30e   : > { %v3232_v63 = vsel %vm3192_vm2, %v10060_v24, -inf  ;;  %v7384_v35 = vpop.f32.mrb[39].mxu0 }
 0x30f   : > { %3233 = vmax.xlane.f32.xlu0 %v3232_v63  ;;  %v10106_v35 = vpop.permute.xlu1 %8185 }
 0x310   : > { %11892 = vst [vmem:[#allocation47_spill] sm:$0xff] %v10106_v35 }
 0x313   : > { %v10064_v1 = vpop.f32.mrb[36].mxu1 }
 0x314   : > { %v7389_v22 = vpop.f32.mrb[37].mxu1  ;;  %v3235_v55 = vsel %vm3192_vm2, %v10064_v1, -inf }
 0x315   : > { %3236 = vmax.xlane.f32.xlu1 %v3235_v55  ;;  %v10068_v52 = vpop.f32.mrb[38].mxu1  ;;  %v10108_v22 = vpop.permute.xlu0 %8200 }
 0x316   : > { %v3238_v14 = vsel %vm3192_vm2, %v10068_v52, -inf  ;;  %v7390_v20 = vpop.f32.mrb[39].mxu1  ;;  %11893 = vst [vmem:[#allocation48_spill] sm:$0xff] %v10108_v22 }
 0x317   : > { %3239 = vmax.xlane.f32.xlu0 %v3238_v14 }
 0x319   : > { %v10120_v10 = vpop.permute.xlu0 %8210 }
 0x31a   : > { %11895 = vst [vmem:[#allocation50_spill] sm:$0xff] %v10120_v10 }
 0x31d   : > { %v10132_v26 = vpop.permute.xlu0 %8220 }
 0x31e   : > { %11897 = vst [vmem:[#allocation52_spill] sm:$0xff] %v10132_v26 }
 0x352   : > { %v10096_v18 = vpop.f32.mrb[40].mxu0 }
 0x353   : > { %v7395_v45 = vpop.f32.mrb[41].mxu0  ;;  %v3241_v62 = vsel %vm3192_vm2, %v10096_v18, -inf }
 0x354   : > { %v10102_v33 = vpop.f32.mrb[42].mxu0  ;;  %3242 = vmax.xlane.f32.xlu1 %v3241_v62  ;;  %v10114_v45 = vpop.permute.xlu1 %8205 }
 0x355   : > { %v7396_v5 = vpop.f32.mrb[43].mxu0  ;;  %v3244_v63 = vsel %vm3192_vm2, %v10102_v33, -inf  ;;  %11894 = vst [vmem:[#allocation49_spill] sm:$0xff] %v10114_v45 }
 0x356   : > { %3245 = vmax.xlane.f32.xlu0 %v3244_v63 }
 0x358   : > { %v10122_v63 = vpop.permute.xlu1 %8215 }
 0x359   : > { %11896 = vst [vmem:[#allocation51_spill] sm:$0xff] %v10122_v63 }
 0x35a   : > { %v10110_v55 = vpop.f32.mrb[40].mxu1 }
 0x35b   : > { %v7401_v14 = vpop.f32.mrb[41].mxu1  ;;  %v3247_v20 = vsel %vm3192_vm2, %v10110_v55, -inf }
 0x35c   : > { %3248 = vmax.xlane.f32.xlu1 %v3247_v20  ;;  %v10116_v47 = vpop.f32.mrb[42].mxu1 }
 0x35d   : > { %v7402_v62 = vpop.f32.mrb[43].mxu1  ;;  %v3250_v5 = vsel %vm3192_vm2, %v10116_v47, -inf }
 0x35e   : > { %3251 = vmax.xlane.f32.xlu0 %v3250_v5  ;;  %v10134_v5 = vpop.permute.xlu1 %8225 }
 0x35f   : > { %11898 = vst [vmem:[#allocation53_spill] sm:$0xff] %v10134_v5 }
 0x362   : > { %v10124_v46 = vpop.f32.mrb[44].mxu0 }
 0x363   : > { %v7407_v14 = vpop.f32.mrb[45].mxu0  ;;  %v3253_v50 = vsel %vm3192_vm2, %v10124_v46, -inf }
 0x364   : > { %v10128_v13 = vpop.f32.mrb[46].mxu0  ;;  %3254 = vmax.xlane.f32.xlu1 %v3253_v50 }
 0x365   : > { %v7408_v20 = vpop.f32.mrb[47].mxu0  ;;  %v3256_v62 = vsel %vm3192_vm2, %v10128_v13, -inf }
 0x366   : > { %3257 = vmax.xlane.f32.xlu0 %v3256_v62 }
 0x36a   : > { %v3195_v12 = vpop.xlane.xlu0 %3194  ;;  %v10136_v28 = vpop.f32.mrb[44].mxu1 }
 0x36b   : > { %v3385_v14 = vsub.f32 %v9964_v56, %v3195_v12  ;;  %v7413_v63 = vpop.f32.mrb[45].mxu1  ;;  %v3259_v45 = vsel %vm3192_vm2, %v10136_v28, -inf }
 0x36c   : > { %v3198_v10 = vpop.xlane.xlu1 %3197  ;;  %3260 = vmax.xlane.f32.xlu1 %v3259_v45  ;;  %v10141_v50 = vpop.f32.mrb[46].mxu1 }
 0x36d   : > { %v3386_v20 = vsub.f32 %v9972_v53, %v3198_v10  ;;  %v7414_v29 = vpop.f32.mrb[47].mxu1  ;;  %v3262_v62 = vsel %vm3192_vm2, %v10141_v50, -inf  ;;  %v3449_v5 = vmul.f32 1.442695, %v3385_v14 }
 0x36e   : > { %3263 = vmax.xlane.f32.xlu0 %v3262_v62 }
 0x36f   : > { %v3451_v26 = vmul.f32 1.442695, %v3386_v20  ;;  %8449 = vpow2.f32 %v3449_v5 }
 0x371   : > { %8451 = vpow2.f32 %v3451_v26 }
 0x372   : > { %v10146_v22 = vpop.f32.mrb[48].mxu0 }
 0x373   : > { %v3201_v12 = vpop.xlane.xlu0 %3200  ;;  %v7419_v56 = vpop.f32.mrb[49].mxu0  ;;  %v3265_v63 = vsel %vm3192_vm2, %v10146_v22, -inf }
 0x374   : > { %v3387_v45 = vsub.f32 %v9984_v27, %v3201_v12  ;;  %v10151_v35 = vpop.f32.mrb[50].mxu0  ;;  %3266 = vmax.xlane.f32.xlu1 %v3265_v63 }
 0x375   : > { %v7420_v10 = vpop.f32.mrb[51].mxu0  ;;  %v3268_v53 = vsel %vm3192_vm2, %v10151_v35, -inf }
 0x376   : > { %v3453_v29 = vmul.f32 1.442695, %v3387_v45  ;;  %3269 = vmax.xlane.f32.xlu0 %v3268_v53 }
 0x377   : > { %v3204_v5 = vpop.xlane.xlu0 %3203 }
 0x378   : > { %v3388_v14 = vsub.f32 %v9991_v44, %v3204_v5  ;;  %8453 = vpow2.f32 %v3453_v29 }
 0x379   : > { %v10160_v12 = vpop.eup %8449 }
 0x37a   : > { %v3455_v20 = vmul.f32 1.442695, %v3388_v14  ;;  %v10156_v62 = vpop.f32.mrb[48].mxu1  ;;  %v3577_v5 = vsel %vm3192_vm2, %v10160_v12, 0.0 }
 0x37b   : > { %v3207_v56 = vpop.xlane.xlu1 %3206  ;;  %v7425_v26 = vpop.f32.mrb[49].mxu1  ;;  %v3271_v27 = vsel %vm3192_vm2, %v10156_v62, -inf }
 0x37c   : > { %8455 = vpow2.f32 %v3455_v20  ;;  %3272 = vmax.xlane.f32.xlu1 %v3271_v27  ;;  %v10162_v63 = vpop.f32.mrb[50].mxu1  ;;  %v10166_v53 = vpop.eup %8451  ;;  %v3389_v29 = vsub.f32 %v10002_v16, %v3207_v56 }
 0x37d   : > { %v3210_v45 = vpop.xlane.xlu0 %3209  ;;  %v3274_v10 = vsel %vm3192_vm2, %v10162_v63, -inf  ;;  %v7426_v44 = vpop.f32.mrb[51].mxu1  ;;  %v3580_v20 = vsel %vm3192_vm2, %v10166_v53, 0.0 }
 0x37e   : > { %3275 = vmax.xlane.f32.xlu0 %v3274_v10  ;;  %v3390_v14 = vsub.f32 %v10009_v30, %v3210_v45  ;;  %v3457_v26 = vmul.f32 1.442695, %v3389_v29 }
 0x380   : > { %3578 = vadd.xlane.f32.xlu1 %v3577_v5  ;;  %v3459_v16 = vmul.f32 1.442695, %v3390_v14  ;;  %8457 = vpow2.f32 %v3457_v26 }
 0x382   : > { %v10174_v27 = vpop.f32.mrb[52].mxu0  ;;  %3581 = vadd.xlane.f32.xlu0 %v3580_v20  ;;  %v10178_v2 = vpop.eup %8453  ;;  %8459 = vpow2.f32 %v3459_v16 }
 0x383   : > { %v7431_v39 = vpop.f32.mrb[53].mxu0  ;;  %v3277_v44 = vsel %vm3192_vm2, %v10174_v27, -inf  ;;  %v3213_v29 = vpop.xlane.xlu1 %3212 }
 0x384   : > { %v10180_v56 = vpop.f32.mrb[54].mxu0  ;;  %3278 = vmax.xlane.f32.xlu1 %v3277_v44  ;;  %v3583_v39 = vsel %vm3192_vm2, %v10178_v2, 0.0  ;;  %v3391_v20 = vsub.f32 %v10019_v34, %v3213_v29 }
 0x385   : > { %v3280_v30 = vsel %vm3192_vm2, %v10180_v56, -inf  ;;  %v7432_v45 = vpop.f32.mrb[55].mxu0  ;;  %v3216_v5 = vpop.xlane.xlu0 %3215 }
 0x386   : > { %v10184_v10 = vpop.eup %8455  ;;  %3281 = vmax.xlane.f32.xlu0 %v3280_v30  ;;  %v3392_v30 = vsub.f32 %v10029_v6, %v3216_v5  ;;  %v3461_v42 = vmul.f32 1.442695, %v3391_v20 }
 0x387   : > { %v3586_v14 = vsel %vm3192_vm2, %v10184_v10, 0.0 }
 0x388   : > { %3584 = vadd.xlane.f32.xlu1 %v3583_v39  ;;  %8461 = vpow2.f32 %v3461_v42 }
 0x38a   : > { %3587 = vadd.xlane.f32.xlu0 %v3586_v14  ;;  %v10191_v44 = vpop.f32.mrb[52].mxu1  ;;  %v10204_v14 = vpop.eup %8457 }
 0x38b   : > { %v7437_v45 = vpop.f32.mrb[53].mxu1  ;;  %v3283_v26 = vsel %vm3192_vm2, %v10191_v44, -inf }
 0x38c   : > { %3284 = vmax.xlane.f32.xlu1 %v3283_v26  ;;  %v10196_v3 = vpop.f32.mrb[54].mxu1  ;;  %v3463_v45 = vmul.f32 1.442695, %v3392_v30  ;;  %v10210_v26 = vpop.eup %8459 }
 0x38d   : > { %v3286_v16 = vsel %vm3192_vm2, %v10196_v3, -inf  ;;  %v7438_v39 = vpop.f32.mrb[55].mxu1  ;;  %v3592_v36 = vsel %vm3192_vm2, %v10210_v26, 0.0 }
 0x38e   : > { %v10200_v59 = vpop.f32.mrb[56].mxu0  ;;  %3287 = vmax.xlane.f32.xlu0 %v3286_v16  ;;  %v3219_v16 = vpop.xlane.xlu1 %3218  ;;  %8463 = vpow2.f32 %v3463_v45 }
 0x38f   : > { %v7443_v34 = vpop.f32.mrb[57].mxu0  ;;  %v3289_v29 = vsel %vm3192_vm2, %v10200_v59, -inf  ;;  %v3393_v61 = vsub.f32 %v10040_v23, %v3219_v16 }
 0x390   : > { %v10206_v7 = vpop.f32.mrb[58].mxu0  ;;  %3290 = vmax.xlane.f32.xlu1 %v3289_v29  ;;  %v3589_v34 = vsel %vm3192_vm2, %v10204_v14, 0.0  ;;  %v3222_v29 = vpop.xlane.xlu0 %3221 }
 0x391   : > { %v7444_v6 = vpop.f32.mrb[59].mxu0  ;;  %v3292_v5 = vsel %vm3192_vm2, %v10206_v7, -inf  ;;  %v3394_v15 = vsub.f32 %v10044_v37, %v3222_v29  ;;  %v3465_v49 = vmul.f32 1.442695, %v3393_v61 }
 0x392   : > { %3293 = vmax.xlane.f32.xlu0 %v3292_v5  ;;  %v10212_v20 = vpop.f32.mrb[56].mxu1  ;;  %v10234_v16 = vpop.eup %8461 }
 0x393   : > { %v7449_v39 = vpop.f32.mrb[57].mxu1  ;;  %8465 = vpow2.f32 %v3465_v49  ;;  %v3595_v57 = vsel %vm3192_vm2, %v10234_v16, 0.0 }
 0x394   : > { %3590 = vadd.xlane.f32.xlu1 %v3589_v34  ;;  %v10216_v30 = vpop.f32.mrb[58].mxu1  ;;  %v3295_v39 = vsel %vm3192_vm2, %v10212_v20, -inf }
 0x395   : > { %v7450_v6 = vpop.f32.mrb[59].mxu1 }
 0x396   : > { %v10221_v42 = vpop.f32.mrb[60].mxu0  ;;  %3593 = vadd.xlane.f32.xlu0 %v3592_v36  ;;  %v3298_v6 = vsel %vm3192_vm2, %v10216_v30, -inf }
 0x397   : > { %v7455_v5 = vpop.f32.mrb[61].mxu0  ;;  %v3301_v36 = vsel %vm3192_vm2, %v10221_v42, -inf }
 0x398   : > { %v10226_v45 = vpop.f32.mrb[62].mxu0  ;;  %3296 = vmax.xlane.f32.xlu1 %v3295_v39  ;;  %v3467_v5 = vmul.f32 1.442695, %v3394_v15 }
 0x399   : > { %v7456_v34 = vpop.f32.mrb[63].mxu0  ;;  %v3304_v39 = vsel %vm3192_vm2, %v10226_v45, -inf }
 0x39a   : > { %3299 = vmax.xlane.f32.xlu0 %v3298_v6  ;;  %v10230_v32 = vpop.f32.mrb[60].mxu1  ;;  %v10240_v34 = vpop.eup %8463  ;;  %8467 = vpow2.f32 %v3467_v5 }
 0x39b   : > { %v7461_v23 = vpop.f32.mrb[61].mxu1  ;;  %v3225_v6 = vpop.xlane.xlu1 %3224  ;;  %v3598_v0 = vsel %vm3192_vm2, %v10240_v34, 0.0 }
 0x39c   : > { %3302 = vmax.xlane.f32.xlu1 %v3301_v36  ;;  %v10236_v37 = vpop.f32.mrb[62].mxu1  ;;  %v3228_v36 = vpop.xlane.xlu0 %3227  ;;  %v3395_v41 = vsub.f32 %v10048_v11, %v3225_v6 }
 0x39d   : > { %v7462_v29 = vpop.f32.mrb[63].mxu1  ;;  %v3396_v43 = vsub.f32 %v10052_v54, %v3228_v36  ;;  %v10264_v6 = vpop.eup %8465 }
 0x39e   : > { %v10242_v61 = vpop.f32.mrb[64].mxu0  ;;  %3305 = vmax.xlane.f32.xlu0 %v3304_v39  ;;  %v3469_v31 = vmul.f32 1.442695, %v3395_v41  ;;  %11901 = vst [vmem:[#allocation56_spill] sm:$0xff] %v10264_v6 }
 0x39f   : > { %v7467_v23 = vpop.f32.mrb[65].mxu0 }
 0x3a0   : > { %v10246_v15 = vpop.f32.mrb[66].mxu0  ;;  %3596 = vadd.xlane.f32.xlu1 %v3595_v57  ;;  %v3307_v23 = vsel %vm3192_vm2, %v10230_v32, -inf  ;;  %8469 = vpow2.f32 %v3469_v31 }
 0x3a1   : > { %v7468_v29 = vpop.f32.mrb[67].mxu0  ;;  %v3316_v36 = vsel %vm3192_vm2, %v10246_v15, -inf }
 0x3a2   : > { %3599 = vadd.xlane.f32.xlu0 %v3598_v0  ;;  %v10251_v49 = vpop.f32.mrb[64].mxu1  ;;  %v3310_v29 = vsel %vm3192_vm2, %v10236_v37, -inf  ;;  %v3313_v0 = vsel %vm3192_vm2, %v10242_v61, -inf }
 0x3a3   : > { %v7473_v39 = vpop.f32.mrb[65].mxu1 }
 0x3a4   : > { %3308 = vmax.xlane.f32.xlu1 %v3307_v23  ;;  %v10256_v5 = vpop.f32.mrb[66].mxu1  ;;  %v3471_v39 = vmul.f32 1.442695, %v3396_v43  ;;  %v10270_v23 = vpop.eup %8467 }
 0x3a5   : > { %11899 = vst [vmem:[#allocation54_spill] sm:$0xff] %v10256_v5  ;;  %v7474_v57 = vpop.f32.mrb[67].mxu1  ;;  %11903 = vst [vmem:[#allocation58_spill] sm:$0xff] %v10270_v23  ;;  %v3604_v9 = vsel %vm3192_vm2, %v10270_v23, 0.0 }
 0x3a6   : > { %v10260_v60 = vpop.f32.mrb[68].mxu0  ;;  %3311 = vmax.xlane.f32.xlu0 %v3310_v29  ;;  %v3231_v57 = vpop.xlane.xlu1 %3230  ;;  %8471 = vpow2.f32 %v3471_v39 }
 0x3a7   : > { %11900 = vst [vmem:[#allocation55_spill] sm:$0xff] %v10260_v60  ;;  %v7479_v11 = vpop.f32.mrb[69].mxu0  ;;  %v3397_v25 = vsub.f32 %v10056_v4, %v3231_v57 }
 0x3a8   : > { %v10266_v19 = vpop.f32.mrb[70].mxu0  ;;  %3314 = vmax.xlane.f32.xlu1 %v3313_v0  ;;  %v3601_v11 = vsel %vm3192_vm2, %v10264_v6, 0.0  ;;  %v3234_v0 = vpop.xlane.xlu0 %3233 }
 0x3a9   : > { %11902 = vst [vmem:[#allocation57_spill] sm:$0xff] %v10266_v19  ;;  %v7480_v54 = vpop.f32.mrb[71].mxu0  ;;  %v3398_v6 = vsub.f32 %v10060_v24, %v3234_v0  ;;  %v3473_v8 = vmul.f32 1.442695, %v3397_v25 }
 0x3aa   : > { %3317 = vmax.xlane.f32.xlu0 %v3316_v36  ;;  %v10272_v41 = vpop.f32.mrb[68].mxu1  ;;  %v10294_v57 = vpop.eup %8469 }
 0x3ab   : > { %11904 = vst [vmem:[#allocation59_spill] sm:$0xff] %v10272_v41  ;;  %v7485_v29 = vpop.f32.mrb[69].mxu1  ;;  %11906 = vst [vmem:[#allocation61_spill] sm:$0xff] %v10294_v57  ;;  %8473 = vpow2.f32 %v3473_v8 }
 0x3ac   : > { %3602 = vadd.xlane.f32.xlu1 %v3601_v11  ;;  %v10276_v43 = vpop.f32.mrb[70].mxu1  ;;  %v3319_v29 = vsel %vm3192_vm2, %v10251_v49, -inf }
 0x3ad   : > { %v7486_v54 = vpop.f32.mrb[71].mxu1 }
 0x3ae   : > { %v10281_v31 = vpop.f32.mrb[72].mxu0  ;;  %3605 = vadd.xlane.f32.xlu0 %v3604_v9  ;;  %v3322_v54 = vsel %vm3192_vm2, %v10256_v5, -inf  ;;  %v3325_v9 = vsel %vm3192_vm2, %v10260_v60, -inf  ;;  %v3607_v60 = vsel %vm3192_vm2, %v10294_v57, 0.0 }
 0x3af   : > { %v7491_v36 = vpop.f32.mrb[73].mxu0 }
 0x3b0   : > { %v10286_v39 = vpop.f32.mrb[74].mxu0  ;;  %3320 = vmax.xlane.f32.xlu1 %v3319_v29  ;;  %v3475_v36 = vmul.f32 1.442695, %v3398_v6  ;;  %v3328_v29 = vsel %vm3192_vm2, %v10266_v19, -inf }
 0x3b1   : > { %11905 = vst [vmem:[#allocation60_spill] sm:$0xff] %v10286_v39  ;;  %v7492_v11 = vpop.f32.mrb[75].mxu0 }
 0x3b2   : > { %3323 = vmax.xlane.f32.xlu0 %v3322_v54  ;;  %v10290_v23 = vpop.f32.mrb[72].mxu1  ;;  %v10300_v11 = vpop.eup %8471  ;;  %8475 = vpow2.f32 %v3475_v36 }
 0x3b3   : > { %v7497_v4 = vpop.f32.mrb[73].mxu1  ;;  %11907 = vst [vmem:[#allocation62_spill] sm:$0xff] %v10300_v11  ;;  %v3237_v54 = vpop.xlane.xlu1 %3236  ;;  %v3610_v19 = vsel %vm3192_vm2, %v10300_v11, 0.0 }
 0x3b4   : > { %3326 = vmax.xlane.f32.xlu1 %v3325_v9  ;;  %v10296_v24 = vpop.f32.mrb[74].mxu1  ;;  %v3240_v9 = vpop.xlane.xlu0 %3239  ;;  %v3399_v21 = vsub.f32 %v10064_v1, %v3237_v54  ;;  %v3337_v1 = vsel %vm3192_vm2, %v10281_v31, -inf }
 0x3b5   : > { %v7498_v0 = vpop.f32.mrb[75].mxu1  ;;  %v3400_v57 = vsub.f32 %v10068_v52, %v3240_v9  ;;  %v10324_v54 = vpop.eup %8473  ;;  %v3340_v9 = vsel %vm3192_vm2, %v10286_v39, -inf }
 0x3b6   : > { %v10302_v25 = vpop.f32.mrb[76].mxu0  ;;  %3329 = vmax.xlane.f32.xlu0 %v3328_v29  ;;  %v3477_v5 = vmul.f32 1.442695, %v3399_v21  ;;  %11909 = vst [vmem:[#allocation64_spill] sm:$0xff] %v10324_v54 }
 0x3b7   : > { %v7503_v4 = vpop.f32.mrb[77].mxu0 }
 0x3b8   : > { %v10306_v6 = vpop.f32.mrb[78].mxu0  ;;  %3608 = vadd.xlane.f32.xlu1 %v3607_v60  ;;  %v3331_v4 = vsel %vm3192_vm2, %v10272_v41, -inf  ;;  %8477 = vpow2.f32 %v3477_v5  ;;  %v3343_v5 = vsel %vm3192_vm2, %v10290_v23, -inf }
 0x3b9   : > { %11908 = vst [vmem:[#allocation63_spill] sm:$0xff] %v10306_v6  ;;  %v7504_v0 = vpop.f32.mrb[79].mxu0 }
 0x3ba   : > { %3611 = vadd.xlane.f32.xlu0 %v3610_v19  ;;  %v10311_v8 = vpop.f32.mrb[76].mxu1  ;;  %v3334_v0 = vsel %vm3192_vm2, %v10276_v43, -inf }
 0x3bb   : > { %v7509_v29 = vpop.f32.mrb[77].mxu1 }
 0x3bc   : > { %3332 = vmax.xlane.f32.xlu1 %v3331_v4  ;;  %v10316_v36 = vpop.f32.mrb[78].mxu1  ;;  %v3479_v29 = vmul.f32 1.442695, %v3400_v57  ;;  %v10330_v4 = vpop.eup %8475 }
 0x3bd   : > { %v7510_v60 = vpop.f32.mrb[79].mxu1  ;;  %11910 = vst [vmem:[#allocation65_spill] sm:$0xff] %v10330_v4 }
 0x3be   : > { %v10320_v11 = vpop.f32.mrb[80].mxu0  ;;  %3335 = vmax.xlane.f32.xlu0 %v3334_v0  ;;  %v3613_v0 = vsel %vm3192_vm2, %v10324_v54, 0.0  ;;  %8479 = vpow2.f32 %v3479_v29  ;;  %v3346_v29 = vsel %vm3192_vm2, %v10296_v24, -inf }
 0x3bf   : > { %v7515_v19 = vpop.f32.mrb[81].mxu0 }
 0x3c0   : > { %v10326_v41 = vpop.f32.mrb[82].mxu0  ;;  %3338 = vmax.xlane.f32.xlu1 %v3337_v1  ;;  %v3616_v1 = vsel %vm3192_vm2, %v10330_v4, 0.0  ;;  %v3349_v4 = vsel %vm3192_vm2, %v10302_v25, -inf }
 0x3c1   : > { %v7516_v52 = vpop.f32.mrb[83].mxu0 }
 0x3c2   : > { %3341 = vmax.xlane.f32.xlu0 %v3340_v9  ;;  %v10332_v21 = vpop.f32.mrb[80].mxu1  ;;  %v10352_v54 = vpop.eup %8477 }
 0x3c3   : > { %11911 = vst [vmem:[#allocation66_spill] sm:$0xff] %v10332_v21  ;;  %v7521_v60 = vpop.f32.mrb[81].mxu1  ;;  %11913 = vst [vmem:[#allocation68_spill] sm:$0xff] %v10352_v54 }
 0x3c4   : > { %3614 = vadd.xlane.f32.xlu1 %v3613_v0  ;;  %v10336_v57 = vpop.f32.mrb[82].mxu1 }
 0x3c5   : > { %11912 = vst [vmem:[#allocation67_spill] sm:$0xff] %v10336_v57  ;;  %v7522_v19 = vpop.f32.mrb[83].mxu1 }
 0x3c6   : > { %v10340_v52 = vpop.f32.mrb[84].mxu0  ;;  %3617 = vadd.xlane.f32.xlu0 %v3616_v1 }
 0x3c7   : > { %v7527_v39 = vpop.f32.mrb[85].mxu0 }
 0x3c8   : > { %v10344_v9 = vpop.f32.mrb[86].mxu0  ;;  %3344 = vmax.xlane.f32.xlu1 %v3343_v5  ;;  %v3352_v5 = vsel %vm3192_vm2, %v10306_v6, -inf  ;;  %v3361_v6 = vsel %vm3192_vm2, %v10320_v11, -inf }
 0x3c9   : > { %v7528_v60 = vpop.f32.mrb[87].mxu0 }
 0x3ca   : > { %3347 = vmax.xlane.f32.xlu0 %v3346_v29  ;;  %v10348_v0 = vpop.f32.mrb[84].mxu1  ;;  %v10358_v60 = vpop.eup %8479  ;;  %v3619_v29 = vsel %vm3192_vm2, %v10352_v54, 0.0 }
 0x3cb   : > { %v7533_v19 = vpop.f32.mrb[85].mxu1  ;;  %11915 = vst [vmem:[#allocation70_spill] sm:$0xff] %v10358_v60 }
 0x3cc   : > { %3350 = vmax.xlane.f32.xlu1 %v3349_v4  ;;  %v10354_v39 = vpop.f32.mrb[86].mxu1  ;;  %v3622_v19 = vsel %vm3192_vm2, %v10358_v60, 0.0  ;;  %v3355_v4 = vsel %vm3192_vm2, %v10311_v8, -inf }
 0x3cd   : > { %11914 = vst [vmem:[#allocation69_spill] sm:$0xff] %v10354_v39  ;;  %v7534_v1 = vpop.f32.mrb[87].mxu1 }
 0x3ce   : > { %3353 = vmax.xlane.f32.xlu0 %v3352_v5  ;;  %v3358_v1 = vsel %vm3192_vm2, %v10316_v36, -inf  ;;  %v3364_v5 = vsel %vm3192_vm2, %v10326_v41, -inf }
 0x3d0   : > { %3620 = vadd.xlane.f32.xlu1 %v3619_v29  ;;  %v3367_v29 = vsel %vm3192_vm2, %v10332_v21, -inf }
 0x3d2   : > { %3623 = vadd.xlane.f32.xlu0 %v3622_v19  ;;  %v3373_v19 = vsel %vm3192_vm2, %v10340_v52, -inf }
 0x3d4   : > { %3356 = vmax.xlane.f32.xlu1 %v3355_v4  ;;  %v3382_v4 = vsel %vm3192_vm2, %v10354_v39, -inf }
 0x3d6   : > { %3359 = vmax.xlane.f32.xlu0 %v3358_v1 }
 0x3d8   : > { %3362 = vmax.xlane.f32.xlu1 %v3361_v6  ;;  %v3370_v6 = vsel %vm3192_vm2, %v10336_v57, -inf }
 0x3da   : > { %3365 = vmax.xlane.f32.xlu0 %v3364_v5 }
 0x3dc   : > { %3368 = vmax.xlane.f32.xlu1 %v3367_v29  ;;  %v3376_v29 = vsel %vm3192_vm2, %v10344_v9, -inf }
 0x3de   : > { %3374 = vmax.xlane.f32.xlu0 %v3373_v19 }
 0x3e0   : > { %3383 = vmax.xlane.f32.xlu1 %v3382_v4  ;;  %v3379_v4 = vsel %vm3192_vm2, %v10348_v0, -inf }
 0x3e1   : > { %v3243_v1 = vpop.xlane.xlu1 %3242 }
 0x3e2   : > { %v3401_v60 = vsub.f32 %v10096_v18, %v3243_v1  ;;  %3371 = vmax.xlane.f32.xlu0 %v3370_v6 }
 0x3e3   : > { %v3246_v5 = vpop.xlane.xlu0 %3245 }
 0x3e4   : > { %v3481_v54 = vmul.f32 1.442695, %v3401_v60  ;;  %v3402_v21 = vsub.f32 %v10102_v33, %v3246_v5 }
 0x3e6   : > { %8481 = vpow2.f32 %v3481_v54  ;;  %v3483_v19 = vmul.f32 1.442695, %v3402_v21  ;;  %3377 = vmax.xlane.f32.xlu0 %v3376_v29 }
 0x3e8   : > { %8483 = vpow2.f32 %v3483_v19 }
 0x3e9   : > { %v3249_v39 = vpop.xlane.xlu1 %3248 }
 0x3ea   : > { %v3403_v57 = vsub.f32 %v10110_v55, %v3249_v39  ;;  %3380 = vmax.xlane.f32.xlu0 %v3379_v4 }
 0x3eb   : > { %v3252_v18 = vpop.xlane.xlu0 %3251 }
 0x3ec   : > { %v3485_v1 = vmul.f32 1.442695, %v3403_v57  ;;  %v3404_v60 = vsub.f32 %v10116_v47, %v3252_v18 }
 0x3ee   : > { %8485 = vpow2.f32 %v3485_v1  ;;  %v3487_v33 = vmul.f32 1.442695, %v3404_v60 }
 0x3f0   : > { %v10388_v6 = vpop.eup %8481  ;;  %8487 = vpow2.f32 %v3487_v33 }
 0x3f1   : > { %v3255_v54 = vpop.xlane.xlu1 %3254  ;;  %v3625_v21 = vsel %vm3192_vm2, %v10388_v6, 0.0 }
 0x3f2   : > { %v10392_v5 = vpop.eup %8483  ;;  %v3405_v29 = vsub.f32 %v10124_v46, %v3255_v54  ;;  %3626 = vadd.xlane.f32.xlu1 %v3625_v21 }
 0x3f3   : > { %v3258_v55 = vpop.xlane.xlu0 %3257  ;;  %v3628_v57 = vsel %vm3192_vm2, %v10392_v5, 0.0 }
 0x3f4   : > { %v3489_v39 = vmul.f32 1.442695, %v3405_v29  ;;  %v3406_v47 = vsub.f32 %v10128_v13, %v3258_v55  ;;  %3629 = vadd.xlane.f32.xlu0 %v3628_v57 }
 0x3f6   : > { %8489 = vpow2.f32 %v3489_v39  ;;  %v3491_v19 = vmul.f32 1.442695, %v3406_v47 }
 0x3f8   : > { %v10398_v4 = vpop.eup %8485  ;;  %8491 = vpow2.f32 %v3491_v19 }
 0x3f9   : > { %v3261_v18 = vpop.xlane.xlu1 %3260  ;;  %v3631_v1 = vsel %vm3192_vm2, %v10398_v4, 0.0 }
 0x3fa   : > { %v10402_v60 = vpop.eup %8487  ;;  %v3407_v46 = vsub.f32 %v10136_v28, %v3261_v18  ;;  %3632 = vadd.xlane.f32.xlu1 %v3631_v1 }
 0x3fb   : > { %v3264_v33 = vpop.xlane.xlu0 %3263  ;;  %v3634_v54 = vsel %vm3192_vm2, %v10402_v60, 0.0 }
 0x3fc   : > { %v3493_v13 = vmul.f32 1.442695, %v3407_v46  ;;  %v3408_v21 = vsub.f32 %v10141_v50, %v3264_v33  ;;  %3635 = vadd.xlane.f32.xlu0 %v3634_v54 }
 0x3fe   : > { %8493 = vpow2.f32 %v3493_v13  ;;  %v3495_v29 = vmul.f32 1.442695, %v3408_v21 }
 0x400   : > { %v10408_v55 = vpop.eup %8489  ;;  %8495 = vpow2.f32 %v3495_v29 }
 0x401   : > { %v3267_v57 = vpop.xlane.xlu1 %3266  ;;  %v3637_v39 = vsel %vm3192_vm2, %v10408_v55, 0.0 }
 0x402   : > { %v10412_v47 = vpop.eup %8491  ;;  %v3409_v28 = vsub.f32 %v10146_v22, %v3267_v57  ;;  %3638 = vadd.xlane.f32.xlu1 %v3637_v39 }
 0x403   : > { %v3270_v19 = vpop.xlane.xlu0 %3269  ;;  %v3640_v18 = vsel %vm3192_vm2, %v10412_v47, 0.0 }
 0x404   : > { %v3497_v50 = vmul.f32 1.442695, %v3409_v28  ;;  %v3410_v1 = vsub.f32 %v10151_v35, %v3270_v19  ;;  %3641 = vadd.xlane.f32.xlu0 %v3640_v18 }
 0x406   : > { %8497 = vpow2.f32 %v3497_v50  ;;  %v3499_v46 = vmul.f32 1.442695, %v3410_v1 }
 0x408   : > { %v10418_v33 = vpop.eup %8493  ;;  %8499 = vpow2.f32 %v3499_v46 }
 0x409   : > { %v3273_v54 = vpop.xlane.xlu1 %3272  ;;  %v3643_v13 = vsel %vm3192_vm2, %v10418_v33, 0.0 }
 0x40a   : > { %v10422_v21 = vpop.eup %8495  ;;  %v3411_v22 = vsub.f32 %v10156_v62, %v3273_v54  ;;  %3644 = vadd.xlane.f32.xlu1 %v3643_v13 }
 0x40b   : > { %v3276_v29 = vpop.xlane.xlu0 %3275  ;;  %v3646_v57 = vsel %vm3192_vm2, %v10422_v21, 0.0 }
 0x40c   : > { %v3501_v35 = vmul.f32 1.442695, %v3411_v22  ;;  %v3412_v39 = vsub.f32 %v10162_v63, %v3276_v29  ;;  %3647 = vadd.xlane.f32.xlu0 %v3646_v57 }
 0x40d   : > { %v3579_v28 = vpop.xlane.xlu1 %3578 }
 0x40e   : > { %8501 = vpow2.f32 %v3501_v35  ;;  %v3503_v19 = vmul.f32 1.442695, %v3412_v39 }
 0x40f   : > { %8503 = vrcp.f32 %v3579_v28  ;;  %v3582_v18 = vpop.xlane.xlu0 %3581 }
 0x410   : > { %v10428_v50 = vpop.eup %8497  ;;  %8505 = vpow2.f32 %v3503_v19 }
 0x411   : > { %8507 = vrcp.f32 %v3582_v18  ;;  %v3279_v1 = vpop.xlane.xlu1 %3278  ;;  %v3649_v62 = vsel %vm3192_vm2, %v10428_v50, 0.0 }
 0x412   : > { %v10432_v46 = vpop.eup %8499  ;;  %v3413_v54 = vsub.f32 %v10174_v27, %v3279_v1  ;;  %3650 = vadd.xlane.f32.xlu1 %v3649_v62 }
 0x413   : > { %11916 = vst [vmem:[#allocation71_spill] sm:$0xff] %v10432_v46  ;;  %v3282_v63 = vpop.xlane.xlu0 %3281  ;;  %v3652_v13 = vsel %vm3192_vm2, %v10432_v46, 0.0 }
 0x414   : > { %v3505_v22 = vmul.f32 1.442695, %v3413_v54  ;;  %v3414_v29 = vsub.f32 %v10180_v56, %v3282_v63  ;;  %3653 = vadd.xlane.f32.xlu0 %v3652_v13 }
 0x415   : > { %v3585_v57 = vpop.xlane.xlu1 %3584 }
 0x416   : > { %8509 = vpow2.f32 %v3505_v22  ;;  %v3507_v35 = vmul.f32 1.442695, %v3414_v29 }
 0x417   : > { %8511 = vrcp.f32 %v3585_v57  ;;  %v3588_v39 = vpop.xlane.xlu0 %3587 }
 0x418   : > { %v10438_v28 = vpop.eup %8501  ;;  %8513 = vpow2.f32 %v3507_v35 }
 0x419   : > { %11917 = vst [vmem:[#allocation72_spill] sm:$0xff] %v10438_v28  ;;  %v8504_v19 = vpop.eup %8503  ;;  %8515 = vrcp.f32 %v3588_v39  ;;  %v3285_v27 = vpop.xlane.xlu1 %3284  ;;  %v3655_v18 = vsel %vm3192_vm2, %v10438_v28, 0.0 }
 0x41a   : > { %v10442_v1 = vpop.eup %8505  ;;  %v3415_v62 = vsub.f32 %v10191_v44, %v3285_v27  ;;  %3656 = vadd.xlane.f32.xlu1 %v3655_v18  ;;  %v3833_v13 = vmul.f32 %v8504_v19, %v10160_v12 }
 0x41b   : > { %v8508_v56 = vpop.eup %8507  ;;  %v3288_v54 = vpop.xlane.xlu0 %3287  ;;  %v3658_v63 = vsel %vm3192_vm2, %v10442_v1, 0.0 }
 0x41c   : > { %v3834_v22 = vmul.f32 %v8508_v56, %v10166_v53  ;;  %v3509_v29 = vmul.f32 1.442695, %v3415_v62  ;;  %v3416_v57 = vsub.f32 %v10196_v3, %v3288_v54  ;;  %3659 = vadd.xlane.f32.xlu0 %v3658_v63  ;;  %v11918_v3 = vpack.c.bf16 %v9659_v58, %v9648_v48 }
 0x41d   : > { %v3291_v35 = vpop.xlane.xlu1 %3290 }
 0x41e   : > { %8517 = vpow2.f32 %v3509_v29  ;;  %v3511_v39 = vmul.f32 1.442695, %v3416_v57  ;;  %v3417_v28 = vsub.f32 %v10200_v59, %v3291_v35  ;;  %v3897_v44 = vpack.c.bf16 %v3834_v22, %v3833_v13 }
 0x41f   : > { %v3294_v27 = vpop.xlane.xlu0 %3293  ;;  %v11919_v59 = vmov 0.0  }
 0x420   : > { %v10451_v18 = vpop.eup %8509  ;;  %v3513_v46 = vmul.f32 1.442695, %v3417_v28  ;;  %7538 = vmatmul.mubr.msk.bf16.vlgmr.msra.gmra.mrb[88].mxu0 %vm3192_vm2, %v3897_v44  ;;  %v3418_v12 = vsub.f32 %v10206_v7, %v3294_v27  ;;  %8519 = vpow2.f32 %v3511_v39 }
 0x421   : > { %v8512_v19 = vpop.eup %8511  ;;  %7548 = vmatpush3.bf16.msra.mxu0 %v11918_v3  ;;  %v3591_v53 = vpop.xlane.xlu1 %3590  ;;  %v3661_v62 = vsel %vm3192_vm2, %v10451_v18, 0.0  ;;  %7549 = vmatprep.mubr.msk.bf16.mxu0 %vm9082_vm0, %v11919_v59 }
 0x422   : > { %v10462_v56 = vpop.eup %8513  ;;  %8521 = vpow2.f32 %v3513_v46  ;;  %v3515_v28 = vmul.f32 1.442695, %v3418_v12  ;;  %3662 = vadd.xlane.f32.xlu0 %v3661_v62  ;;  %7559 = vmatprep.subr.bf16.mxu0 %v11919_v59  ;;  %v3835_v48 = vmul.f32 %v8512_v19, %v10178_v2 }
 0x423   : > { %v8516_v7 = vpop.eup %8515  ;;  %8523 = vrcp.f32 %v3591_v53  ;;  %v3594_v54 = vpop.xlane.xlu0 %3593  ;;  %v3664_v13 = vsel %vm3192_vm2, %v10462_v56, 0.0 }
 0x424   : > { %v3836_v58 = vmul.f32 %v8516_v7, %v10184_v10  ;;  %8525 = vpow2.f32 %v3515_v28  ;;  %v11920_v10 = vpack.c.bf16 %v9652_v51, %v9638_v40 }
 0x425   : > { %8527 = vrcp.f32 %v3594_v54  ;;  %v3297_v63 = vpop.xlane.xlu1 %3296 }
 0x426   : > { %v3419_v22 = vsub.f32 %v10212_v20, %v3297_v63  ;;  %3665 = vadd.xlane.f32.xlu0 %v3664_v13  ;;  %v3898_v46 = vpack.c.bf16 %v3836_v58, %v3835_v48 }
 0x427   : > { %v3300_v29 = vpop.xlane.xlu0 %3299 }
 0x428   : > { %v10470_v57 = vpop.eup %8517  ;;  %v3517_v35 = vmul.f32 1.442695, %v3419_v22  ;;  %7544 = vmatmul.mubr.msk.bf16.vlgmr.msra.gmra.mrb[88].mxu1 %vm3192_vm2, %v3898_v46  ;;  %v3420_v2 = vsub.f32 %v10216_v30, %v3300_v29 }
 0x429   : > { %7554 = vmatpush3.bf16.msra.mxu1 %v11920_v10  ;;  %v3303_v39 = vpop.xlane.xlu1 %3302  ;;  %v3667_v44 = vsel %vm3192_vm2, %v10470_v57, 0.0  ;;  %7555 = vmatprep.mubr.msk.bf16.mxu1 %vm9082_vm0, %v11919_v59 }
 0x42a   : > { %8529 = vpow2.f32 %v3517_v35  ;;  %v3519_v20 = vmul.f32 1.442695, %v3420_v2  ;;  %v3421_v27 = vsub.f32 %v10221_v42, %v3303_v39  ;;  %3668 = vadd.xlane.f32.xlu0 %v3667_v44  ;;  %7565 = vmatprep.subr.bf16.mxu1 %v11919_v59  ;;  %v10483_v12 = vpop.eup %8519 }
 0x42b   : > { %v3306_v30 = vpop.xlane.xlu0 %3305  ;;  %v3670_v13 = vsel %vm3192_vm2, %v10483_v12, 0.0 }
 0x42c   : > { %v10485_v19 = vpop.eup %8521  ;;  %v3521_v40 = vmul.f32 1.442695, %v3421_v27  ;;  %v3422_v51 = vsub.f32 %v10226_v45, %v3306_v30  ;;  %8531 = vpow2.f32 %v3519_v20 }
 0x42d   : > { %v8524_v3 = vpop.eup %8523  ;;  %v3597_v53 = vpop.xlane.xlu1 %3596  ;;  %v3673_v62 = vsel %vm3192_vm2, %v10485_v19, 0.0 }
 0x42e   : > { %v10490_v28 = vpop.eup %8525  ;;  %8533 = vpow2.f32 %v3521_v40  ;;  %v3523_v42 = vmul.f32 1.442695, %v3422_v51  ;;  %3674 = vadd.xlane.f32.xlu0 %v3673_v62  ;;  %v3837_v58 = vmul.f32 %v8524_v3, %v10204_v14 }
 0x42f   : > { %v8528_v7 = vpop.eup %8527  ;;  %8535 = vrcp.f32 %v3597_v53  ;;  %v3600_v54 = vpop.xlane.xlu0 %3599  ;;  %v3676_v48 = vsel %vm3192_vm2, %v10490_v28, 0.0 }
 0x430   : > { %v3838_v45 = vmul.f32 %v8528_v7, %v10210_v26  ;;  %8537 = vpow2.f32 %v3523_v42  ;;  %3677 = vadd.xlane.f32.xlu1 %v3676_v48  ;;  %v11921_v26 = vpack.c.bf16 %v9701_v38, %v9689_v17 }
 0x431   : > { %8539 = vrcp.f32 %v3600_v54  ;;  %v3309_v63 = vpop.xlane.xlu1 %3308 }
 0x432   : > { %v3423_v22 = vsub.f32 %v10230_v32, %v3309_v63  ;;  %3671 = vadd.xlane.f32.xlu0 %v3670_v13  ;;  %v3899_v46 = vpack.c.bf16 %v3838_v45, %v3837_v58 }
 0x433   : > { %v3312_v29 = vpop.xlane.xlu0 %3311 }
 0x434   : > { %v10499_v35 = vpop.eup %8529  ;;  %v3525_v2 = vmul.f32 1.442695, %v3423_v22  ;;  %7550 = vmatmul.mubr.msk.bf16.vlgmr.msra.gmra.mrb[92].mxu0 %vm3192_vm2, %v3899_v46  ;;  %v3424_v14 = vsub.f32 %v10236_v37, %v3312_v29  ;;  %v11924_v29 = vld [vmem:[#allocation24_spill] sm:$0xff] }
 0x435   : > { %7560 = vmatpush3.bf16.msra.mxu0 %v11921_v26  ;;  %v3315_v10 = vpop.xlane.xlu1 %3314  ;;  %v3679_v39 = vsel %vm3192_vm2, %v10499_v35, 0.0  ;;  %7561 = vmatprep.mubr.msk.bf16.mxu0 %vm9082_vm0, %v11919_v59 }
 0x436   : > { %8541 = vpow2.f32 %v3525_v2  ;;  %v3527_v32 = vmul.f32 1.442695, %v3424_v14  ;;  %v3425_v44 = vsub.f32 %v10242_v61, %v3315_v10  ;;  %3680 = vadd.xlane.f32.xlu1 %v3679_v39  ;;  %7571 = vmatprep.subr.bf16.mxu0 %v11919_v59  ;;  %v10512_v20 = vpop.eup %8531  ;;  %v11926_v10 = vld [vmem:[#allocation55_spill] sm:$0xff] }
 0x437   : > { %v3318_v37 = vpop.xlane.xlu0 %3317  ;;  %v3682_v48 = vsel %vm3192_vm2, %v10512_v20, 0.0 }
 0x438   : > { %v10514_v27 = vpop.eup %8533  ;;  %v3529_v17 = vmul.f32 1.442695, %v3425_v44  ;;  %v3426_v38 = vsub.f32 %v10246_v15, %v3318_v37  ;;  %8543 = vpow2.f32 %v3527_v32 }
 0x439   : > { %v8536_v30 = vpop.eup %8535  ;;  %v3603_v40 = vpop.xlane.xlu1 %3602  ;;  %v3685_v51 = vsel %vm3192_vm2, %v10514_v27, 0.0 }
 0x43a   : > { %v10519_v3 = vpop.eup %8537  ;;  %8545 = vpow2.f32 %v3529_v17  ;;  %v3531_v61 = vmul.f32 1.442695, %v3426_v38  ;;  %3686 = vadd.xlane.f32.xlu0 %v3685_v51  ;;  %v3839_v7 = vmul.f32 %v8536_v30, %v10234_v16  ;;  %v11922_v16 = vld [vmem:[#allocation54_spill] sm:$0xff]  ;;  %v11927_v38 = vld [vmem:[#allocation57_spill] sm:$0xff] }
 0x43b   : > { %v8540_v53 = vpop.eup %8539  ;;  %8547 = vrcp.f32 %v3603_v40  ;;  %v3606_v62 = vpop.xlane.xlu0 %3605  ;;  %v3688_v42 = vsel %vm3192_vm2, %v10519_v3, 0.0 }
 0x43c   : > { %v3840_v15 = vmul.f32 %v8540_v53, %v10240_v34  ;;  %8549 = vpow2.f32 %v3531_v61  ;;  %3689 = vadd.xlane.f32.xlu1 %v3688_v42  ;;  %v11923_v34 = vld [vmem:[#allocation25_spill] sm:$0xff] }
 0x43d   : > { %8551 = vrcp.f32 %v3606_v62  ;;  %v3321_v54 = vpop.xlane.xlu1 %3320  ;;  %v11925_v2 = vpack.c.bf16 %v11923_v34, %v11924_v29 }
 0x43e   : > { %v3427_v58 = vsub.f32 %v10251_v49, %v3321_v54  ;;  %3683 = vadd.xlane.f32.xlu0 %v3682_v48  ;;  %v3900_v45 = vpack.c.bf16 %v3840_v15, %v3839_v7  ;;  %v11928_v54 = vld [vmem:[#allocation56_spill] sm:$0xff] }
 0x43f   : > { %v3324_v63 = vpop.xlane.xlu0 %3323 }
 0x440   : > { %v10528_v13 = vpop.eup %8541  ;;  %v3533_v22 = vmul.f32 1.442695, %v3427_v58  ;;  %7556 = vmatmul.mubr.msk.bf16.vlgmr.msra.gmra.mrb[92].mxu1 %vm3192_vm2, %v3900_v45  ;;  %v3428_v46 = vsub.f32 %v11922_v16, %v3324_v63  ;;  %v11929_v58 = vld [vmem:[#allocation58_spill] sm:$0xff]  ;;  %v11930_v16 = vld [vmem:[#allocation59_spill] sm:$0xff] }
 0x441   : > { %7566 = vmatpush3.bf16.msra.mxu1 %v11925_v2  ;;  %v3327_v14 = vpop.xlane.xlu1 %3326  ;;  %v3691_v26 = vsel %vm3192_vm2, %v10528_v13, 0.0  ;;  %7567 = vmatprep.mubr.msk.bf16.mxu1 %vm9082_vm0, %v11919_v59 }
 0x442   : > { %8553 = vpow2.f32 %v3533_v22  ;;  %v3535_v49 = vmul.f32 1.442695, %v3428_v46  ;;  %v3429_v39 = vsub.f32 %v11926_v10, %v3327_v14  ;;  %3692 = vadd.xlane.f32.xlu1 %v3691_v26  ;;  %7577 = vmatprep.subr.bf16.mxu1 %v11919_v59  ;;  %v10541_v32 = vpop.eup %8543  ;;  %v11932_v10 = vld [vmem:[#allocation29_spill] sm:$0xff] }
 0x443   : > { %v3330_v44 = vpop.xlane.xlu0 %3329  ;;  %v3694_v22 = vsel %vm3192_vm2, %v10541_v32, 0.0 }
 0x444   : > { %v10543_v37 = vpop.eup %8545  ;;  %v3537_v17 = vmul.f32 1.442695, %v3429_v39  ;;  %v3430_v30 = vsub.f32 %v11927_v38, %v3330_v44  ;;  %8555 = vpow2.f32 %v3535_v49  ;;  %v11931_v49 = vld [vmem:[#allocation31_spill] sm:$0xff] }
 0x445   : > { %v8548_v40 = vpop.eup %8547  ;;  %v3609_v51 = vpop.xlane.xlu1 %3608  ;;  %v3697_v61 = vsel %vm3192_vm2, %v10543_v37, 0.0  ;;  %v11933_v39 = vpack.c.bf16 %v11931_v49, %v11932_v10 }
 0x446   : > { %v10548_v53 = vpop.eup %8549  ;;  %8557 = vpow2.f32 %v3537_v17  ;;  %v3539_v62 = vmul.f32 1.442695, %v3430_v30  ;;  %3698 = vadd.xlane.f32.xlu0 %v3697_v61  ;;  %v3841_v48 = vmul.f32 %v8548_v40, %v11928_v54 }
 0x447   : > { %v8552_v42 = vpop.eup %8551  ;;  %8559 = vrcp.f32 %v3609_v51  ;;  %v3612_v7 = vpop.xlane.xlu0 %3611  ;;  %v3700_v15 = vsel %vm3192_vm2, %v10548_v53, 0.0 }
 0x448   : > { %v3842_v45 = vmul.f32 %v8552_v42, %v11929_v58  ;;  %8561 = vpow2.f32 %v3539_v62  ;;  %3701 = vadd.xlane.f32.xlu1 %v3700_v15  ;;  %v11934_v62 = vld [vmem:[#allocation60_spill] sm:$0xff] }
 0x449   : > { %8563 = vrcp.f32 %v3612_v7  ;;  %v3333_v63 = vpop.xlane.xlu1 %3332 }
 0x44a   : > { %v3431_v46 = vsub.f32 %v11930_v16, %v3333_v63  ;;  %3695 = vadd.xlane.f32.xlu0 %v3694_v22  ;;  %v3901_v34 = vpack.c.bf16 %v3842_v45, %v3841_v48  ;;  %v11935_v22 = vld [vmem:[#allocation61_spill] sm:$0xff] }
 0x44b   : > { %v3336_v29 = vpop.xlane.xlu0 %3335 }
 0x44c   : > { %v10557_v2 = vpop.eup %8553  ;;  %v3541_v14 = vmul.f32 1.442695, %v3431_v46  ;;  %7562 = vmatmul.mubr.msk.bf16.vlgmr.msra.gmra.mrb[96].mxu0 %vm3192_vm2, %v3901_v34  ;;  %v3432_v26 = vsub.f32 %v10276_v43, %v3336_v29  ;;  %v11936_v46 = vld [vmem:[#allocation62_spill] sm:$0xff] }
 0x44d   : > { %7572 = vmatpush3.bf16.msra.mxu0 %v11933_v39  ;;  %v3339_v44 = vpop.xlane.xlu1 %3338  ;;  %v3703_v17 = vsel %vm3192_vm2, %v10557_v2, 0.0  ;;  %7573 = vmatprep.mubr.msk.bf16.mxu0 %vm9082_vm0, %v11919_v59 }
 0x44e   : > { %8565 = vpow2.f32 %v3541_v14  ;;  %v3543_v38 = vmul.f32 1.442695, %v3432_v26  ;;  %v3433_v30 = vsub.f32 %v10281_v31, %v3339_v44  ;;  %3704 = vadd.xlane.f32.xlu1 %v3703_v17  ;;  %7583 = vmatprep.subr.bf16.mxu0 %v11919_v59  ;;  %v10570_v40 = vpop.eup %8555 }
 0x44f   : > { %v3342_v43 = vpop.xlane.xlu0 %3341  ;;  %v3706_v14 = vsel %vm3192_vm2, %v10570_v40, 0.0 }
 0x450   : > { %v10572_v51 = vpop.eup %8557  ;;  %v3545_v61 = vmul.f32 1.442695, %v3433_v30  ;;  %v3434_v42 = vsub.f32 %v11934_v62, %v3342_v43  ;;  %8567 = vpow2.f32 %v3543_v38  ;;  %v11937_v38 = vld [vmem:[#allocation30_spill] sm:$0xff]  ;;  %v11938_v30 = vld [vmem:[#allocation28_spill] sm:$0xff] }
 0x451   : > { %v8560_v7 = vpop.eup %8559  ;;  %v3615_v15 = vpop.xlane.xlu1 %3614  ;;  %v3709_v54 = vsel %vm3192_vm2, %v10572_v51, 0.0  ;;  %v11939_v43 = vpack.c.bf16 %v11937_v38, %v11938_v30 }
 0x452   : > { %v10577_v48 = vpop.eup %8561  ;;  %8569 = vpow2.f32 %v3545_v61  ;;  %v3547_v31 = vmul.f32 1.442695, %v3434_v42  ;;  %3710 = vadd.xlane.f32.xlu0 %v3709_v54  ;;  %v3843_v16 = vmul.f32 %v8560_v7, %v11935_v22 }
 0x453   : > { %v8564_v58 = vpop.eup %8563  ;;  %8571 = vrcp.f32 %v3615_v15  ;;  %v3618_v45 = vpop.xlane.xlu0 %3617  ;;  %v3712_v63 = vsel %vm3192_vm2, %v10577_v48, 0.0 }
 0x454   : > { %v3844_v34 = vmul.f32 %v8564_v58, %v11936_v46  ;;  %8573 = vpow2.f32 %v3547_v31  ;;  %3713 = vadd.xlane.f32.xlu1 %v3712_v63  ;;  %v11940_v31 = vld [vmem:[#allocation63_spill] sm:$0xff] }
 0x455   : > { %8575 = vrcp.f32 %v3618_v45  ;;  %v3345_v29 = vpop.xlane.xlu1 %3344 }
 0x456   : > { %v3435_v26 = vsub.f32 %v10290_v23, %v3345_v29  ;;  %3707 = vadd.xlane.f32.xlu0 %v3706_v14  ;;  %v3902_v49 = vpack.c.bf16 %v3844_v34, %v3843_v16  ;;  %v11941_v34 = vld [vmem:[#allocation35_spill] sm:$0xff] }
 0x457   : > { %v3348_v10 = vpop.xlane.xlu0 %3347  ;;  %v8133_v29 = vunpack.i.h.bf16 %v11941_v34  ;;  %v8132_v14 = vunpack.i.l.bf16 %v11941_v34 }
 0x458   : > { %v10586_v39 = vpop.eup %8565  ;;  %v3549_v44 = vmul.f32 1.442695, %v3435_v26  ;;  %7568 = vmatmul.mubr.msk.bf16.vlgmr.msra.gmra.mrb[96].mxu1 %vm3192_vm2, %v3902_v49  ;;  %v3436_v17 = vsub.f32 %v10296_v24, %v3348_v10  ;;  %v11942_v10 = vld [vmem:[#allocation64_spill] sm:$0xff] }
 0x459   : > { %7578 = vmatpush3.bf16.msra.mxu1 %v11939_v43  ;;  %v3351_v61 = vpop.xlane.xlu1 %3350  ;;  %v3715_v62 = vsel %vm3192_vm2, %v10586_v39, 0.0  ;;  %7579 = vmatprep.mubr.msk.bf16.mxu1 %vm9082_vm0, %v11919_v59 }
 0x45a   : > { %8577 = vpow2.f32 %v3549_v44  ;;  %v3551_v23 = vmul.f32 1.442695, %v3436_v17  ;;  %v3437_v42 = vsub.f32 %v10302_v25, %v3351_v61  ;;  %3716 = vadd.xlane.f32.xlu1 %v3715_v62  ;;  %7589 = vmatprep.subr.bf16.mxu1 %v11919_v59  ;;  %v10599_v7 = vpop.eup %8567  ;;  %v11943_v17 = vld [vmem:[#allocation65_spill] sm:$0xff] }
 0x45b   : > { %v3354_v24 = vpop.xlane.xlu0 %3353  ;;  %v3718_v43 = vsel %vm3192_vm2, %v10599_v7, 0.0 }
 0x45c   : > { %v10601_v15 = vpop.eup %8569  ;;  %8579 = vpow2.f32 %v3551_v23  ;;  %v3553_v54 = vmul.f32 1.442695, %v3437_v42  ;;  %v3438_v58 = vsub.f32 %v11940_v31, %v3354_v24  ;;  %v1663_v23 = vpack.c.bf16 %v8133_v29, %v8132_v14 }
 0x45d   : > { %v8572_v45 = vpop.eup %8571  ;;  %v3621_v63 = vpop.xlane.xlu1 %3620  ;;  %v3721_v22 = vsel %vm3192_vm2, %v10601_v15, 0.0 }
 0x45e   : > { %v10606_v16 = vpop.eup %8573  ;;  %8581 = vpow2.f32 %v3553_v54  ;;  %v3555_v25 = vmul.f32 1.442695, %v3438_v58  ;;  %3722 = vadd.xlane.f32.xlu0 %v3721_v22  ;;  %v3845_v44 = vmul.f32 %v8572_v45, %v11942_v10  ;;  %v11944_v10 = vld [vmem:[#allocation37_spill] sm:$0xff] }
 0x45f   : > { %v8576_v46 = vpop.eup %8575  ;;  %8583 = vrcp.f32 %v3621_v63  ;;  %v3624_v26 = vpop.xlane.xlu0 %3623  ;;  %v3724_v49 = vsel %vm3192_vm2, %v10606_v16, 0.0 }
 0x460   : > { %v3846_v38 = vmul.f32 %v8576_v46, %v11943_v17  ;;  %8585 = vpow2.f32 %v3555_v25  ;;  %3725 = vadd.xlane.f32.xlu1 %v3724_v49 }
 0x461   : > { %8587 = vrcp.f32 %v3624_v26  ;;  %v3357_v30 = vpop.xlane.xlu1 %3356 }
 0x462   : > { %v3439_v61 = vsub.f32 %v10311_v8, %v3357_v30  ;;  %3719 = vadd.xlane.f32.xlu0 %v3718_v43  ;;  %v3903_v62 = vpack.c.bf16 %v3846_v38, %v3845_v44  ;;  %v8138_v44 = vunpack.i.h.bf16 %v11944_v10  ;;  %v11945_v38 = vld [vmem:[#allocation66_spill] sm:$0xff] }
 0x463   : > { %v3360_v42 = vpop.xlane.xlu0 %3359 }
 0x464   : > { %v10617_v24 = vpop.eup %8577  ;;  %v3557_v54 = vmul.f32 1.442695, %v3439_v61  ;;  %7574 = vmatmul.mubr.msk.bf16.vlgmr.msra.gmra.mrb[100].mxu0 %vm3192_vm2, %v3903_v62  ;;  %v3440_v31 = vsub.f32 %v10316_v36, %v3360_v42  ;;  %v8137_v61 = vunpack.i.l.bf16 %v11944_v10  ;;  %v11946_v62 = vld [vmem:[#allocation68_spill] sm:$0xff] }
 0x465   : > { %7584 = vmatpush3.bf16.msra.mxu0 %v1663_v23  ;;  %v3363_v58 = vpop.xlane.xlu1 %3362  ;;  %v3727_v45 = vsel %vm3192_vm2, %v10617_v24, 0.0  ;;  %7585 = vmatprep.mubr.msk.bf16.mxu0 %vm9082_vm0, %v11919_v59 }
 0x466   : > { %v10625_v8 = vpop.eup %8579  ;;  %8589 = vpow2.f32 %v3557_v54  ;;  %v3441_v63 = vsub.f32 %v10320_v11, %v3363_v58  ;;  %3728 = vadd.xlane.f32.xlu1 %v3727_v45  ;;  %7595 = vmatprep.subr.bf16.mxu0 %v11919_v59  ;;  %v3559_v22 = vmul.f32 1.442695, %v3440_v31  ;;  %v11947_v54 = vld [vmem:[#allocation70_spill] sm:$0xff] }
 0x467   : > { %v3366_v25 = vpop.xlane.xlu0 %3365  ;;  %v3730_v36 = vsel %vm3192_vm2, %v10625_v8, 0.0 }
 0x468   : > { %v10631_v46 = vpop.eup %8581  ;;  %v3561_v34 = vmul.f32 1.442695, %v3441_v63  ;;  %v3442_v29 = vsub.f32 %v10326_v41, %v3366_v25  ;;  %3731 = vadd.xlane.f32.xlu0 %v3730_v36  ;;  %v1664_v25 = vpack.c.bf16 %v8138_v44, %v8137_v61 }
 0x469   : > { %v8584_v14 = vpop.eup %8583  ;;  %v3369_v26 = vpop.xlane.xlu1 %3368  ;;  %v3733_v49 = vsel %vm3192_vm2, %v10631_v46, 0.0 }
 0x46a   : > { %v10636_v11 = vpop.eup %8585  ;;  %8591 = vpow2.f32 %v3561_v34  ;;  %v3563_v17 = vmul.f32 1.442695, %v3442_v29  ;;  %v3443_v30 = vsub.f32 %v11945_v38, %v3369_v26  ;;  %3734 = vadd.xlane.f32.xlu1 %v3733_v49  ;;  %v3847_v41 = vmul.f32 %v8584_v14, %v11946_v62 }
 0x46b   : > { %v8588_v43 = vpop.eup %8587  ;;  %8593 = vpow2.f32 %v3559_v22  ;;  %v3375_v23 = vpop.xlane.xlu0 %3374  ;;  %v3736_v42 = vsel %vm3192_vm2, %v10636_v11, 0.0  ;;  %v11948_v22 = vld [vmem:[#allocation67_spill] sm:$0xff] }
 0x46c   : > { %v3848_v31 = vmul.f32 %v8588_v43, %v11947_v54  ;;  %8595 = vpow2.f32 %v3563_v17  ;;  %v3565_v58 = vmul.f32 1.442695, %v3443_v30  ;;  %v3445_v45 = vsub.f32 %v10340_v52, %v3375_v23  ;;  %3737 = vadd.xlane.f32.xlu0 %v3736_v42 }
 0x46d   : > { %v10669_v62 = vpop.xlane.xlu1 %3383 }
 0x46e   : > { %v3904_v63 = vpack.c.bf16 %v3848_v31, %v3847_v41  ;;  %8597 = vpow2.f32 %v3565_v58  ;;  %v3569_v29 = vmul.f32 1.442695, %v3445_v45 }
 0x46f   : > { %v3372_v36 = vpop.xlane.xlu0 %3371 }
 0x470   : > { %v10646_v34 = vpop.eup %8589  ;;  %7580 = vmatmul.mubr.msk.bf16.vlgmr.msra.gmra.mrb[100].mxu1 %vm3192_vm2, %v3904_v63  ;;  %v3444_v14 = vsub.f32 %v11948_v22, %v3372_v36  ;;  %8599 = vpow2.f32 %v3569_v29  ;;  %v11949_v29 = vld [vmem:[#allocation26_spill] sm:$0xff] }
 0x471   : > { %7590 = vmatpush3.bf16.msra.mxu1 %v1664_v25  ;;  %v3739_v26 = vsel %vm3192_vm2, %v10646_v34, 0.0  ;;  %7591 = vmatprep.mubr.msk.bf16.mxu1 %vm9082_vm0, %v11919_v59 }
 0x472   : > { %3740 = vadd.xlane.f32.xlu1 %v3739_v26  ;;  %7601 = vmatprep.subr.bf16.mxu1 %v11919_v59  ;;  %v3567_v49 = vmul.f32 1.442695, %v3444_v14  ;;  %v11950_v26 = vld [vmem:[#allocation34_spill] sm:$0xff] }
 0x473   : > { %v3378_v38 = vpop.xlane.xlu0 %3377 }
 0x474   : > { %v10655_v52 = vpop.eup %8591  ;;  %8601 = vpow2.f32 %v3567_v49  ;;  %v8143_v49 = vunpack.i.h.bf16 %v11950_v26 }
 0x475   : > { %v10657_v10 = vpop.eup %8593  ;;  %v3745_v44 = vsel %vm3192_vm2, %v10655_v52, 0.0 }
 0x476   : > { %v10661_v17 = vpop.eup %8595  ;;  %3746 = vadd.xlane.f32.xlu0 %v3745_v44  ;;  %v3742_v43 = vsel %vm3192_vm2, %v10657_v10, 0.0  ;;  %v8142_v44 = vunpack.i.l.bf16 %v11950_v26 }
 0x477   : > { %v3748_v30 = vsel %vm3192_vm2, %v10661_v17, 0.0  ;;  %v10671_v41 = vpop.xlane.xlu0 %3380 }
 0x478   : > { %3749 = vadd.xlane.f32.xlu1 %v3748_v30  ;;  %v10667_v61 = vpop.eup %8597 }
 0x479   : > { %v3751_v23 = vsel %vm3192_vm2, %v10667_v61, 0.0 }
 0x47a   : > { %3743 = vadd.xlane.f32.xlu0 %v3742_v43  ;;  %v10675_v42 = vpop.eup %8599 }
 0x47b   : > { %v3757_v58 = vsel %vm3192_vm2, %v10675_v42, 0.0 }
 0x47e   : > { %3752 = vadd.xlane.f32.xlu0 %v3751_v23  ;;  %v10679_v45 = vpop.eup %8601 }
 0x47f   : > { %v3627_v54 = vpop.xlane.xlu1 %3626  ;;  %v3754_v63 = vsel %vm3192_vm2, %v10679_v45, 0.0 }
 0x480   : > { %8603 = vrcp.f32 %v3627_v54 }
 0x481   : > { %v3630_v31 = vpop.xlane.xlu0 %3629 }
 0x482   : > { %8605 = vrcp.f32 %v3630_v31  ;;  %3758 = vadd.xlane.f32.xlu0 %v3757_v58  ;;  %v1665_v31 = vpack.c.bf16 %v8143_v49, %v8142_v44 }
 0x486   : > { %3755 = vadd.xlane.f32.xlu0 %v3754_v63 }
 0x487   : > { %v3633_v25 = vpop.xlane.xlu1 %3632 }
 0x488   : > { %8607 = vrcp.f32 %v3633_v25 }
 0x489   : > { %v3636_v36 = vpop.xlane.xlu0 %3635  ;;  %8235 = vrot.lane.b32.xlu1 %v11949_v29, %s9085_s8 }
 0x48a   : > { %v8604_v22 = vpop.eup %8603  ;;  %8609 = vrcp.f32 %v3636_v36  ;;  %v11951_v36 = vld [vmem:[#allocation39_spill] sm:$0xff] }
 0x48b   : > { %v3849_v30 = vmul.f32 %v8604_v22, %v10388_v6  ;;  %v8148_v6 = vunpack.i.h.bf16 %v11951_v36 }
 0x48c   : > { %v8606_v14 = vpop.eup %8605 }
 0x48d   : > { %v3850_v43 = vmul.f32 %v8606_v14, %v10392_v5  ;;  %v8147_v5 = vunpack.i.l.bf16 %v11951_v36  ;;  %v3446_v14 = vsub.f32 %v10344_v9, %v3378_v38  ;;  %v11953_v38 = vld [vmem:[#allocation27_spill] sm:$0xff] }
 0x48f   : > { %v3639_v23 = vpop.xlane.xlu1 %3638  ;;  %v3905_v54 = vpack.c.bf16 %v3850_v43, %v3849_v30  ;;  %v1666_v44 = vpack.c.bf16 %v8148_v6, %v8147_v5 }
 0x490   : > { %8611 = vrcp.f32 %v3639_v23  ;;  %v3571_v23 = vmul.f32 1.442695, %v3446_v14  ;;  %v3447_v14 = vsub.f32 %v10348_v0, %v10671_v41 }
 0x491   : > { %v3642_v58 = vpop.xlane.xlu0 %3641  ;;  %7586 = vmatmul.mubr.msk.bf16.vlgmr.msra.gmra.mrb[104].mxu0 %vm3192_vm2, %v3905_v54 }
 0x492   : > { %v8608_v63 = vpop.eup %8607  ;;  %8613 = vrcp.f32 %v3642_v58  ;;  %7596 = vmatpush3.bf16.msra.mxu0 %v1665_v31  ;;  %7597 = vmatprep.mubr.msk.bf16.mxu0 %vm9082_vm0, %v11919_v59 }
 0x493   : > { %7607 = vmatprep.subr.bf16.mxu0 %v11919_v59  ;;  %v3851_v29 = vmul.f32 %v8608_v63, %v10398_v4 }
 0x494   : > { %v8610_v25 = vpop.eup %8609 }
 0x495   : > { %v3852_v22 = vmul.f32 %v8610_v25, %v10402_v60  ;;  %v11952_v60 = vld [vmem:[#allocation36_spill] sm:$0xff] }
 0x496   : > { %v8153_v54 = vunpack.i.h.bf16 %v11952_v60  ;;  %v8152_v9 = vunpack.i.l.bf16 %v11952_v60 }
 0x497   : > { %v3645_v26 = vpop.xlane.xlu1 %3644  ;;  %v3906_v49 = vpack.c.bf16 %v3852_v22, %v3851_v29 }
 0x498   : > { %8615 = vrcp.f32 %v3645_v26  ;;  %v1667_v36 = vpack.c.bf16 %v8153_v54, %v8152_v9  ;;  %v3573_v54 = vmul.f32 1.442695, %v3447_v14 }
 0x499   : > { %v3648_v30 = vpop.xlane.xlu0 %3647  ;;  %7592 = vmatmul.mubr.msk.bf16.vlgmr.msra.gmra.mrb[104].mxu1 %vm3192_vm2, %v3906_v49 }
 0x49a   : > { %v8612_v43 = vpop.eup %8611  ;;  %8617 = vrcp.f32 %v3648_v30  ;;  %7602 = vmatpush3.bf16.msra.mxu1 %v1666_v44  ;;  %7603 = vmatprep.mubr.msk.bf16.mxu1 %vm9082_vm0, %v11919_v59 }
 0x49b   : > { %7613 = vmatprep.subr.bf16.mxu1 %v11919_v59  ;;  %v3853_v31 = vmul.f32 %v8612_v43, %v10408_v55  ;;  %8619 = vpow2.f32 %v3571_v23  ;;  %v11954_v55 = vld [vmem:[#allocation41_spill] sm:$0xff] }
 0x49c   : > { %v8614_v4 = vpop.eup %8613  ;;  %8230 = vrot.lane.b32.xlu0 %v11953_v38, %s9085_s8  ;;  %v8158_v22 = vunpack.i.h.bf16 %v11954_v55 }
 0x49d   : > { %v3854_v58 = vmul.f32 %v8614_v4, %v10412_v47  ;;  %v8157_v47 = vunpack.i.l.bf16 %v11954_v55  ;;  %v11955_v4 = vld [vmem:[#allocation69_spill] sm:$0xff] }
 0x49e   : > { %v3448_v60 = vsub.f32 %v11955_v4, %v10669_v62 }
 0x49f   : > { %v3651_v63 = vpop.xlane.xlu1 %3650  ;;  %v3907_v25 = vpack.c.bf16 %v3854_v58, %v3853_v31  ;;  %v1668_v43 = vpack.c.bf16 %v8158_v22, %v8157_v47 }
 0x4a0   : > { %8621 = vrcp.f32 %v3651_v63  ;;  %v3575_v31 = vmul.f32 1.442695, %v3448_v60  ;;  %v11957_v63 = vld [vmem:[#allocation71_spill] sm:$0xff] }
 0x4a1   : > { %v3654_v6 = vpop.xlane.xlu0 %3653  ;;  %7598 = vmatmul.mubr.msk.bf16.vlgmr.msra.gmra.mrb[108].mxu0 %vm3192_vm2, %v3907_v25 }
 0x4a2   : > { %v8616_v5 = vpop.eup %8615  ;;  %8623 = vrcp.f32 %v3654_v6  ;;  %7608 = vmatpush3.bf16.msra.mxu0 %v1667_v36  ;;  %7609 = vmatprep.mubr.msk.bf16.mxu0 %vm9082_vm0, %v11919_v59 }
 0x4a3   : > { %7619 = vmatprep.subr.bf16.mxu0 %v11919_v59  ;;  %v3855_v26 = vmul.f32 %v8616_v5, %v10418_v33  ;;  %v11956_v33 = vld [vmem:[#allocation38_spill] sm:$0xff] }
 0x4a4   : > { %v8618_v29 = vpop.eup %8617  ;;  %v8162_v41 = vunpack.i.l.bf16 %v11956_v33 }
 0x4a5   : > { %v3856_v49 = vmul.f32 %v8618_v29, %v10422_v21  ;;  %v10718_v23 = vpop.eup %8619  ;;  %v8163_v21 = vunpack.i.h.bf16 %v11956_v33 }
 0x4a6   : > { %v3760_v62 = vsel %vm3192_vm2, %v10718_v23, 0.0 }
 0x4a7   : > { %v3657_v44 = vpop.xlane.xlu1 %3656  ;;  %v3908_v30 = vpack.c.bf16 %v3856_v49, %v3855_v26  ;;  %v1669_v5 = vpack.c.bf16 %v8163_v21, %v8162_v41  ;;  %v11959_v26 = vld [vmem:[#allocation72_spill] sm:$0xff] }
 0x4a8   : > { %8625 = vrcp.f32 %v3657_v44  ;;  %v11960_v21 = vld [vmem:[#allocation40_spill] sm:$0xff] }
 0x4a9   : > { %v3660_v9 = vpop.xlane.xlu0 %3659  ;;  %7604 = vmatmul.mubr.msk.bf16.vlgmr.msra.gmra.mrb[108].mxu1 %vm3192_vm2, %v3908_v30  ;;  %v8173_v41 = vunpack.i.h.bf16 %v11960_v21 }
 0x4aa   : > { %v8622_v38 = vpop.eup %8621  ;;  %8627 = vrcp.f32 %v3660_v9  ;;  %7614 = vmatpush3.bf16.msra.mxu1 %v1668_v43  ;;  %7615 = vmatprep.mubr.msk.bf16.mxu1 %vm9082_vm0, %v11919_v59 }
 0x4ab   : > { %7625 = vmatprep.subr.bf16.mxu1 %v11919_v59  ;;  %8629 = vpow2.f32 %v3573_v54  ;;  %v3857_v58 = vmul.f32 %v8622_v38, %v10428_v50  ;;  %v11958_v50 = vld [vmem:[#allocation43_spill] sm:$0xff] }
 0x4ac   : > { %v8624_v0 = vpop.eup %8623  ;;  %8631 = vpow2.f32 %v3575_v31  ;;  %v8168_v47 = vunpack.i.h.bf16 %v11958_v50  ;;  %v8167_v14 = vunpack.i.l.bf16 %v11958_v50  ;;  %v11961_v31 = vld [vmem:[#allocation33_spill] sm:$0xff] }
 0x4ad   : > { %v3858_v25 = vmul.f32 %v8624_v0, %v11957_v63  ;;  %3761 = vadd.xlane.f32.xlu1 %v3760_v62  ;;  %v8172_v62 = vunpack.i.l.bf16 %v11960_v21 }
 0x4ae   : > { %v1670_v60 = vpack.c.bf16 %v8168_v47, %v8167_v14  ;;  %v11962_v47 = vld [vmem:[#allocation42_spill] sm:$0xff] }
 0x4af   : > { %v3663_v36 = vpop.xlane.xlu0 %3662  ;;  %v3909_v6 = vpack.c.bf16 %v3858_v25, %v3857_v58  ;;  %v8182_v14 = vunpack.i.l.bf16 %v11962_v47 }
 0x4b0   : > { %8633 = vrcp.f32 %v3663_v36 }
 0x4b1   : > { %7610 = vmatmul.mubr.msk.bf16.vlgmr.msra.gmra.mrb[112].mxu0 %vm3192_vm2, %v3909_v6 }
 0x4b2   : > { %v8626_v29 = vpop.eup %8625  ;;  %7620 = vmatpush3.bf16.msra.mxu0 %v1669_v5  ;;  %7621 = vmatprep.mubr.msk.bf16.mxu0 %vm9082_vm0, %v11919_v59  ;;  %v1671_v5 = vpack.c.bf16 %v8173_v41, %v8172_v62 }
 0x4b3   : > { %v3666_v55 = vpop.xlane.xlu0 %3665  ;;  %7631 = vmatprep.subr.bf16.mxu0 %v11919_v59  ;;  %v3859_v49 = vmul.f32 %v8626_v29, %v11959_v26 }
 0x4b4   : > { %v8628_v22 = vpop.eup %8627  ;;  %8635 = vrcp.f32 %v3666_v55 }
 0x4b5   : > { %v3860_v44 = vmul.f32 %v8628_v22, %v10442_v1  ;;  %v10740_v30 = vpop.eup %8629 }
 0x4b6   : > { %v3763_v54 = vsel %vm3192_vm2, %v10740_v30, 0.0  ;;  %v10747_v9 = vpop.eup %8631 }
 0x4b7   : > { %v3669_v43 = vpop.xlane.xlu0 %3668  ;;  %v3910_v4 = vpack.c.bf16 %v3860_v44, %v3859_v49  ;;  %v3766_v58 = vsel %vm3192_vm2, %v10747_v9, 0.0 }
 0x4b9   : > { %7616 = vmatmul.mubr.msk.bf16.vlgmr.msra.gmra.mrb[112].mxu1 %vm3192_vm2, %v3910_v4  ;;  %v11963_v4 = vld [vmem:[#allocation45_spill] sm:$0xff] }
 0x4ba   : > { %7626 = vmatpush3.bf16.msra.mxu1 %v1670_v60  ;;  %7627 = vmatprep.mubr.msk.bf16.mxu1 %vm9082_vm0, %v11919_v59  ;;  %v8634_v1 = vpop.eup %8633  ;;  %v8178_v60 = vunpack.i.h.bf16 %v11963_v4 }
 0x4bb   : > { %3764 = vadd.xlane.f32.xlu0 %v3763_v54  ;;  %v3675_v38 = vpop.xlane.xlu0 %3674  ;;  %7637 = vmatprep.subr.bf16.mxu1 %v11919_v59  ;;  %v3861_v63 = vmul.f32 %v8634_v1, %v10451_v18  ;;  %v8177_v54 = vunpack.i.l.bf16 %v11963_v4 }
 0x4bc   : > { %8637 = vrcp.f32 %v3675_v38 }
 0x4bd   : > { %8639 = vrcp.f32 %v3669_v43  ;;  %v3678_v0 = vpop.xlane.xlu1 %3677 }
 0x4be   : > { %v8636_v33 = vpop.eup %8635  ;;  %8641 = vrcp.f32 %v3678_v0  ;;  %8240 = vrot.lane.b32.xlu1 %v11961_v31, %s9085_s8 }
 0x4bf   : > { %v3862_v25 = vmul.f32 %v8636_v33, %v10462_v56  ;;  %v3672_v36 = vpop.xlane.xlu0 %3671  ;;  %3767 = vadd.xlane.f32.xlu0 %v3766_v58  ;;  %v8183_v56 = vunpack.i.h.bf16 %v11962_v47  ;;  %v11964_v58 = vld [vmem:[#allocation44_spill] sm:$0xff] }
 0x4c0   : > { %8643 = vrcp.f32 %v3672_v36 }
 0x4c1   : > { %v3911_v6 = vpack.c.bf16 %v3862_v25, %v3861_v63  ;;  %v1673_v21 = vpack.c.bf16 %v8183_v56, %v8182_v14  ;;  %v8193_v63 = vunpack.i.h.bf16 %v11964_v58  ;;  %v8192_v25 = vunpack.i.l.bf16 %v11964_v58 }
 0x4c3   : > { %7622 = vmatmul.mubr.msk.bf16.vlgmr.msra.gmra.mrb[116].mxu0 %vm3192_vm2, %v3911_v6  ;;  %v3681_v29 = vpop.xlane.xlu1 %3680 }
 0x4c4   : > { %7632 = vmatpush3.bf16.msra.mxu0 %v1671_v5  ;;  %7633 = vmatprep.mubr.msk.bf16.mxu0 %vm9082_vm0, %v11919_v59  ;;  %v11965_v5 = vld [vmem:[#allocation32_spill] sm:$0xff] }
 0x4c5   : > { %7643 = vmatprep.subr.bf16.mxu0 %v11919_v59 }
 0x4c6   : > { %v8638_v55 = vpop.eup %8637 }
 0x4c7   : > { %v8640_v22 = vpop.eup %8639  ;;  %v3687_v50 = vpop.xlane.xlu0 %3686  ;;  %v3865_v26 = vmul.f32 %v8638_v55, %v10485_v19 }
 0x4c8   : > { %v8642_v18 = vpop.eup %8641  ;;  %8645 = vrcp.f32 %v3687_v50  ;;  %v3863_v38 = vmul.f32 %v8640_v22, %v10470_v57  ;;  %v11966_v22 = vld [vmem:[#allocation47_spill] sm:$0xff] }
 0x4c9   : > { %v3866_v49 = vmul.f32 %v8642_v18, %v10490_v28  ;;  %8647 = vrcp.f32 %v3681_v29  ;;  %v3690_v44 = vpop.xlane.xlu1 %3689  ;;  %v1672_v28 = vpack.c.bf16 %v8178_v60, %v8177_v54  ;;  %v8188_v50 = vunpack.i.h.bf16 %v11966_v22  ;;  %v11967_v60 = vld [vmem:[#allocation48_spill] sm:$0xff] }
 0x4ca   : > { %v8644_v43 = vpop.eup %8643  ;;  %8649 = vrcp.f32 %v3690_v44  ;;  %v8187_v18 = vunpack.i.l.bf16 %v11966_v22  ;;  %v8203_v54 = vunpack.i.h.bf16 %v11967_v60 }
 0x4cb   : > { %v3864_v1 = vmul.f32 %v8644_v43, %v10483_v12  ;;  %v3684_v0 = vpop.xlane.xlu0 %3683  ;;  %v3913_v33 = vpack.c.bf16 %v3866_v49, %v3865_v26 }
 0x4cc   : > { %8651 = vrcp.f32 %v3684_v0  ;;  %v1674_v49 = vpack.c.bf16 %v8188_v50, %v8187_v18 }
 0x4cd   : > { %7634 = vmatmul.mubr.msk.bf16.vlgmr.msra.gmra.mrb[120].mxu0 %vm3192_vm2, %v3913_v33  ;;  %v3912_v19 = vpack.c.bf16 %v3864_v1, %v3863_v38  ;;  %v8202_v38 = vunpack.i.l.bf16 %v11967_v60 }
 0x4ce   : > { %7644 = vmatpush3.bf16.msra.mxu0 %v1673_v21  ;;  %7645 = vmatprep.mubr.msk.bf16.mxu0 %vm9082_vm0, %v11919_v59 }
 0x4cf   : > { %7628 = vmatmul.mubr.msk.bf16.vlgmr.msra.gmra.mrb[116].mxu1 %vm3192_vm2, %v3912_v19  ;;  %7655 = vmatprep.subr.bf16.mxu0 %v11919_v59  ;;  %v3693_v57 = vpop.xlane.xlu1 %3692  ;;  %v11968_v19 = vld [vmem:[#allocation46_spill] sm:$0xff]  ;;  %v1677_v58 = vpack.c.bf16 %v8203_v54, %v8202_v38 }
 0x4d0   : > { %7638 = vmatpush3.bf16.msra.mxu1 %v1672_v28  ;;  %7639 = vmatprep.mubr.msk.bf16.mxu1 %vm9082_vm0, %v11919_v59  ;;  %v8198_v28 = vunpack.i.h.bf16 %v11968_v19 }
 0x4d1   : > { %7649 = vmatprep.subr.bf16.mxu1 %v11919_v59 }
 0x4d2   : > { %v8646_v12 = vpop.eup %8645 }
 0x4d3   : > { %v8648_v41 = vpop.eup %8647  ;;  %v3699_v62 = vpop.xlane.xlu0 %3698  ;;  %v3869_v36 = vmul.f32 %v8646_v12, %v10514_v27  ;;  %v1675_v27 = vpack.c.bf16 %v8193_v63, %v8192_v25 }
 0x4d4   : > { %v8650_v31 = vpop.eup %8649  ;;  %8653 = vrcp.f32 %v3699_v62  ;;  %v3867_v47 = vmul.f32 %v8648_v41, %v10499_v35 }
 0x4d5   : > { %v3870_v6 = vmul.f32 %v8650_v31, %v10519_v3  ;;  %8655 = vrcp.f32 %v3693_v57  ;;  %8245 = vrot.lane.b32.xlu0 %v11965_v5, %s9085_s8  ;;  %v3702_v29 = vpop.xlane.xlu1 %3701  ;;  %v8197_v57 = vunpack.i.l.bf16 %v11968_v19 }
 0x4d6   : > { %v8652_v55 = vpop.eup %8651  ;;  %8657 = vrcp.f32 %v3702_v29 }
 0x4d7   : > { %v3868_v56 = vmul.f32 %v8652_v55, %v10512_v20  ;;  %v3696_v14 = vpop.xlane.xlu0 %3695  ;;  %v3915_v26 = vpack.c.bf16 %v3870_v6, %v3869_v36  ;;  %v11969_v6 = vld [vmem:[#allocation50_spill] sm:$0xff] }
 0x4d8   : > { %8659 = vrcp.f32 %v3696_v14  ;;  %v8213_v5 = vunpack.i.h.bf16 %v11969_v6  ;;  %v8212_v29 = vunpack.i.l.bf16 %v11969_v6 }
 0x4d9   : > { %7646 = vmatmul.mubr.msk.bf16.vlgmr.msra.gmra.mrb[124].mxu0 %vm3192_vm2, %v3915_v26  ;;  %v3914_v3 = vpack.c.bf16 %v3868_v56, %v3867_v47  ;;  %v11970_v47 = vld [vmem:[#allocation49_spill] sm:$0xff] }
 0x4da   : > { %7656 = vmatpush3.bf16.msra.mxu0 %v1675_v27  ;;  %7657 = vmatprep.mubr.msk.bf16.mxu0 %vm9082_vm0, %v11919_v59  ;;  %v8208_v56 = vunpack.i.h.bf16 %v11970_v47  ;;  %v8207_v14 = vunpack.i.l.bf16 %v11970_v47 }
 0x4db   : > { %7640 = vmatmul.mubr.msk.bf16.vlgmr.msra.gmra.mrb[120].mxu1 %vm3192_vm2, %v3914_v3  ;;  %7667 = vmatprep.subr.bf16.mxu0 %v11919_v59  ;;  %v3705_v35 = vpop.xlane.xlu1 %3704 }
 0x4dc   : > { %7650 = vmatpush3.bf16.msra.mxu1 %v1674_v49  ;;  %7651 = vmatprep.mubr.msk.bf16.mxu1 %vm9082_vm0, %v11919_v59 }
 0x4dd   : > { %7661 = vmatprep.subr.bf16.mxu1 %v11919_v59 }
 0x4de   : > { %v8654_v20 = vpop.eup %8653 }
 0x4df   : > { %v8656_v44 = vpop.eup %8655  ;;  %v3711_v43 = vpop.xlane.xlu0 %3710  ;;  %v3873_v1 = vmul.f32 %v8654_v20, %v10543_v37 }
 0x4e0   : > { %v8658_v4 = vpop.eup %8657  ;;  %8661 = vrcp.f32 %v3711_v43  ;;  %v3871_v12 = vmul.f32 %v8656_v44, %v10528_v13 }
 0x4e1   : > { %v3874_v0 = vmul.f32 %v8658_v4, %v10548_v53  ;;  %8663 = vrcp.f32 %v3705_v35  ;;  %v3714_v33 = vpop.xlane.xlu1 %3713  ;;  %v1676_v53 = vpack.c.bf16 %v8198_v28, %v8197_v57  ;;  %v1679_v35 = vpack.c.bf16 %v8213_v5, %v8212_v29  ;;  %v11973_v29 = vld [vmem:[#allocation53_spill] sm:$0xff] }
 0x4e2   : > { %v8660_v21 = vpop.eup %8659  ;;  %8665 = vrcp.f32 %v3714_v33 }
 0x4e3   : > { %v3872_v41 = vmul.f32 %v8660_v21, %v10541_v32  ;;  %v3708_v62 = vpop.xlane.xlu0 %3707  ;;  %v3917_v31 = vpack.c.bf16 %v3874_v0, %v3873_v1  ;;  %v11971_v0 = vld [vmem:[#allocation52_spill] sm:$0xff] }
 0x4e4   : > { %8667 = vrcp.f32 %v3708_v62  ;;  %v8223_v33 = vunpack.i.h.bf16 %v11971_v0  ;;  %v8222_v21 = vunpack.i.l.bf16 %v11971_v0 }
 0x4e5   : > { %7658 = vmatmul.mubr.msk.bf16.vlgmr.msra.gmra.mrb[128].mxu0 %vm3192_vm2, %v3917_v31  ;;  %v3916_v37 = vpack.c.bf16 %v3872_v41, %v3871_v12  ;;  %v11972_v41 = vld [vmem:[#allocation51_spill] sm:$0xff] }
 0x4e6   : > { %7668 = vmatpush3.bf16.msra.mxu0 %v1677_v58  ;;  %7669 = vmatprep.mubr.msk.bf16.mxu0 %vm9082_vm0, %v11919_v59  ;;  %v8218_v62 = vunpack.i.h.bf16 %v11972_v41  ;;  %v8217_v31 = vunpack.i.l.bf16 %v11972_v41 }
 0x4e7   : > { %7652 = vmatmul.mubr.msk.bf16.vlgmr.msra.gmra.mrb[124].mxu1 %vm3192_vm2, %v3916_v37  ;;  %7679 = vmatprep.subr.bf16.mxu0 %v11919_v59  ;;  %v3717_v13 = vpop.xlane.xlu1 %3716 }
 0x4e8   : > { %7662 = vmatpush3.bf16.msra.mxu1 %v1676_v53  ;;  %7663 = vmatprep.mubr.msk.bf16.mxu1 %vm9082_vm0, %v11919_v59 }
 0x4e9   : > { %7673 = vmatprep.subr.bf16.mxu1 %v11919_v59 }
 0x4ea   : > { %v8662_v32 = vpop.eup %8661 }
 0x4eb   : > { %v8664_v63 = vpop.eup %8663  ;;  %v3723_v25 = vpop.xlane.xlu0 %3722  ;;  %v3877_v55 = vmul.f32 %v8662_v32, %v10572_v51  ;;  %v1681_v32 = vpack.c.bf16 %v8223_v33, %v8222_v21 }
 0x4ec   : > { %v8666_v36 = vpop.eup %8665  ;;  %8669 = vrcp.f32 %v3723_v25  ;;  %v3875_v26 = vmul.f32 %v8664_v63, %v10557_v2 }
 0x4ed   : > { %v3878_v22 = vmul.f32 %v8666_v36, %v10577_v48  ;;  %8671 = vrcp.f32 %v3717_v13  ;;  %v3726_v50 = vpop.xlane.xlu1 %3725  ;;  %v1678_v48 = vpack.c.bf16 %v8208_v56, %v8207_v14 }
 0x4ee   : > { %v8668_v18 = vpop.eup %8667  ;;  %8673 = vrcp.f32 %v3726_v50 }
 0x4ef   : > { %v3876_v27 = vmul.f32 %v8668_v18, %v10570_v40  ;;  %v3720_v3 = vpop.xlane.xlu0 %3719  ;;  %v3919_v49 = vpack.c.bf16 %v3878_v22, %v3877_v55  ;;  %v8228_v55 = vunpack.i.h.bf16 %v11973_v29  ;;  %v8227_v22 = vunpack.i.l.bf16 %v11973_v29 }
 0x4f0   : > { %8675 = vrcp.f32 %v3720_v3 }
 0x4f1   : > { %7670 = vmatmul.mubr.msk.bf16.vlgmr.msra.gmra.mrb[132].mxu0 %vm3192_vm2, %v3919_v49  ;;  %v3918_v51 = vpack.c.bf16 %v3876_v27, %v3875_v26  ;;  %v1682_v3 = vpack.c.bf16 %v8228_v55, %v8227_v22 }
 0x4f2   : > { %7680 = vmatpush3.bf16.msra.mxu0 %v1679_v35  ;;  %7681 = vmatprep.mubr.msk.bf16.mxu0 %vm9082_vm0, %v11919_v59 }
 0x4f3   : > { %v10823_v20 = vpop.f32.mrb[88].mxu0  ;;  %7664 = vmatmul.mubr.msk.bf16.vlgmr.msra.gmra.mrb[128].mxu1 %vm3192_vm2, %v3918_v51  ;;  %v3729_v44 = vpop.xlane.xlu1 %3728  ;;  %7691 = vmatprep.subr.bf16.mxu0 %v11919_v59 }
 0x4f4   : > { %v7539_v2 = vpop.f32.mrb[89].mxu0  ;;  %7674 = vmatpush3.bf16.msra.mxu1 %v1678_v48  ;;  %7675 = vmatprep.mubr.msk.bf16.mxu1 %vm9082_vm0, %v11919_v59  ;;  %8677 = vrcp.f32 %v3729_v44 }
 0x4f5   : > { %v10829_v40 = vpop.f32.mrb[90].mxu0  ;;  %v3732_v43 = vpop.xlane.xlu0 %3731  ;;  %7685 = vmatprep.subr.bf16.mxu1 %v11919_v59 }
 0x4f6   : > { %v8670_v4 = vpop.eup %8669  ;;  %v7540_v60 = vpop.f32.mrb[91].mxu0  ;;  %8679 = vrcp.f32 %v3732_v43 }
 0x4f7   : > { %v8672_v54 = vpop.eup %8671  ;;  %v3735_v38 = vpop.xlane.xlu1 %3734  ;;  %v3881_v19 = vmul.f32 %v8670_v4, %v10601_v15 }
 0x4f8   : > { %v8674_v1 = vpop.eup %8673  ;;  %8681 = vrcp.f32 %v3735_v38  ;;  %v3879_v58 = vmul.f32 %v8672_v54, %v10586_v39 }
 0x4f9   : > { %v3882_v28 = vmul.f32 %v8674_v1, %v10606_v16  ;;  %v3738_v57 = vpop.xlane.xlu0 %3737  ;;  %v1680_v16 = vpack.c.bf16 %v8218_v62, %v8217_v31 }
 0x4fa   : > { %v8676_v12 = vpop.eup %8675  ;;  %8683 = vrcp.f32 %v3738_v57 }
 0x4fb   : > { %v3880_v37 = vmul.f32 %v8676_v12, %v10599_v7  ;;  %v10840_v53 = vpop.f32.mrb[88].mxu1  ;;  %v3921_v13 = vpack.c.bf16 %v3882_v28, %v3881_v19 }
 0x4fc   : > { %v7545_v63 = vpop.f32.mrb[89].mxu1 }
 0x4fd   : > { %v10842_v25 = vpop.f32.mrb[90].mxu1  ;;  %7682 = vmatmul.mubr.msk.bf16.vlgmr.msra.gmra.mrb[136].mxu0 %vm3192_vm2, %v3921_v13  ;;  %v3920_v15 = vpack.c.bf16 %v3880_v37, %v3879_v58 }
 0x4fe   : > { %v7546_v36 = vpop.f32.mrb[91].mxu1  ;;  %7692 = vmatpush3.bf16.msra.mxu0 %v1681_v32  ;;  %7693 = vmatprep.mubr.msk.bf16.mxu0 %vm9082_vm0, %v11919_v59  ;;  %v8678_v6 = vpop.eup %8677 }
 0x4ff   : > { %7676 = vmatmul.mubr.msk.bf16.vlgmr.msra.gmra.mrb[132].mxu1 %vm3192_vm2, %v3920_v15  ;;  %7703 = vmatprep.subr.bf16.mxu0 %v11919_v59  ;;  %v3883_v50 = vmul.f32 %v8678_v6, %v10617_v24  ;;  %v3741_v18 = vpop.xlane.xlu1 %3740 }
 0x500   : > { %v8680_v39 = vpop.eup %8679  ;;  %7686 = vmatpush3.bf16.msra.mxu1 %v1680_v16  ;;  %7687 = vmatprep.mubr.msk.bf16.mxu1 %vm9082_vm0, %v11919_v59  ;;  %8685 = vrcp.f32 %v3741_v18 }
 0x501   : > { %v3884_v7 = vmul.f32 %v8680_v39, %v10625_v8  ;;  %7697 = vmatprep.subr.bf16.mxu1 %v11919_v59 }
 0x502   : > { %v8682_v5 = vpop.eup %8681 }
 0x503   : > { %v3747_v47 = vpop.xlane.xlu0 %3746  ;;  %v3885_v14 = vmul.f32 %v8682_v5, %v10631_v46  ;;  %v3922_v27 = vpack.c.bf16 %v3884_v7, %v3883_v50 }
 0x504   : > { %v8684_v56 = vpop.eup %8683 }
 0x505   : > { %v3886_v26 = vmul.f32 %v8684_v56, %v10636_v11  ;;  %v3750_v24 = vpop.xlane.xlu1 %3749 }
 0x507   : > { %v10858_v8 = vpop.f32.mrb[92].mxu0  ;;  %v3744_v49 = vpop.xlane.xlu0 %3743  ;;  %7688 = vmatmul.mubr.msk.bf16.vlgmr.msra.gmra.mrb[136].mxu1 %vm3192_vm2, %v3922_v27  ;;  %v3923_v35 = vpack.c.bf16 %v3886_v26, %v3885_v14 }
 0x508   : > { %v7551_v51 = vpop.f32.mrb[93].mxu0  ;;  %8687 = vrcp.f32 %v3744_v49  ;;  %7698 = vmatpush3.bf16.msra.mxu1 %v1682_v3  ;;  %7699 = vmatprep.mubr.msk.bf16.mxu1 %vm9082_vm0, %v11919_v59 }
 0x509   : > { %v10863_v48 = vpop.f32.mrb[94].mxu0  ;;  %7694 = vmatmul.mubr.msk.bf16.vlgmr.msra.gmra.mrb[140].mxu0 %vm3192_vm2, %v3923_v35  ;;  %7709 = vmatprep.subr.bf16.mxu1 %v11919_v59  ;;  %8689 = vrcp.f32 %v3750_v24  ;;  %v8236_v44 = vpop.permute.xlu1 %8235 }
 0x50a   : > { %v7552_v46 = vpop.f32.mrb[95].mxu0  ;;  %7705 = vmatprep.mubr.msk.bf16.mxu0 %vm9082_vm0, %v11919_v59  ;;  %8691 = vrcp.f32 %v3747_v47  ;;  %v8686_v43 = vpop.eup %8685  ;;  %v8238_v60 = vunpack.i.h.bf16 %v8236_v44  ;;  %v8237_v54 = vunpack.i.l.bf16 %v8236_v44 }
 0x50b   : > { %v3753_v11 = vpop.xlane.xlu0 %3752  ;;  %v3887_v38 = vmul.f32 %v8686_v43, %v10646_v34 }
 0x50c   : > { %8693 = vrcp.f32 %v3753_v11  ;;  %v1684_v12 = vpack.c.bf16 %v8238_v60, %v8237_v54 }
 0x50f   : > { %v3759_v2 = vpop.xlane.xlu0 %3758 }
 0x512   : > { %v8688_v4 = vpop.eup %8687 }
 0x513   : > { %v3888_v1 = vmul.f32 %v8688_v4, %v10657_v10  ;;  %v10871_v0 = vpop.f32.mrb[92].mxu1  ;;  %v3756_v33 = vpop.xlane.xlu0 %3755 }
 0x514   : > { %8695 = vrcp.f32 %v3756_v33  ;;  %v7557_v21 = vpop.f32.mrb[93].mxu1  ;;  %v8690_v57 = vpop.eup %8689 }
 0x515   : > { %v10873_v19 = vpop.f32.mrb[94].mxu1  ;;  %v3924_v28 = vpack.c.bf16 %v3888_v1, %v3887_v38  ;;  %v8692_v31 = vpop.eup %8691  ;;  %v3890_v34 = vmul.f32 %v8690_v57, %v10661_v17  ;;  %8697 = vrcp.f32 %v3759_v2 }
 0x516   : > { %v7558_v41 = vpop.f32.mrb[95].mxu1  ;;  %v3889_v13 = vmul.f32 %v8692_v31, %v10655_v52  ;;  %v8694_v32 = vpop.eup %8693 }
 0x517   : > { %v8231_v62 = vpop.permute.xlu0 %8230  ;;  %7700 = vmatmul.mubr.msk.bf16.vlgmr.msra.gmra.mrb[140].mxu1 %vm3192_vm2, %v3924_v28  ;;  %v3891_v16 = vmul.f32 %v8694_v32, %v10667_v61  ;;  %v11974_v28 = vmov 0  }
 0x518   : > { %v8233_v58 = vunpack.i.h.bf16 %v8231_v62  ;;  %v8232_v37 = vunpack.i.l.bf16 %v8231_v62  ;;  %7710 = vmatpush3.bf16.msra.mxu1 %v1684_v12  ;;  %7711 = vmatprep.mubr.msk.bf16.mxu1 %vm9082_vm0, %v11919_v59  ;;  %v3925_v63 = vpack.c.bf16 %v3890_v34, %v3889_v13 }
 0x519   : > { %7721 = vmatprep.subr.bf16.mxu1 %v11919_v59 }
 0x51a   : > { %v1683_v10 = vpack.c.bf16 %v8233_v58, %v8232_v37 }
 0x51c   : > { %7704 = vmatpush3.bf16.msra.mxu0 %v1683_v10 }
 0x51d   : > { %7715 = vmatprep.subr.bf16.mxu0 %v11919_v59 }
 0x51e   : > { %v8696_v15 = vpop.eup %8695 }
 0x51f   : > { %v3892_v36 = vmul.f32 %v8696_v15, %v10679_v45  ;;  %v10884_v6 = vpop.f32.mrb[96].mxu0  ;;  %7706 = vmatmul.mubr.msk.bf16.vlgmr.msra.gmra.mrb[144].mxu0 %vm3192_vm2, %v3925_v63 }
 0x520   : > { %v7563_v17 = vpop.f32.mrb[97].mxu0  ;;  %7717 = vmatprep.mubr.msk.bf16.mxu0 %vm9082_vm0, %v11919_v59 }
 0x521   : > { %v10889_v39 = vpop.f32.mrb[98].mxu0  ;;  %v3926_v52 = vpack.c.bf16 %v3892_v36, %v3891_v16 }
 0x522   : > { %v7564_v7 = vpop.f32.mrb[99].mxu0 }
 0x523   : > { %7712 = vmatmul.mubr.msk.bf16.vlgmr.msra.gmra.mrb[144].mxu1 %vm3192_vm2, %v3926_v52 }
 0x524   : > { %7723 = vmatprep.mubr.msk.bf16.mxu1 %vm9082_vm0, %v11919_v59  ;;  %v8698_v59 = vpop.eup %8697 }
 0x525   : > { %v3893_v24 = vmul.f32 %v8698_v59, %v10675_v42 }
 0x52b   : > { %v10894_v61 = vpop.f32.mrb[96].mxu1 }
 0x52c   : > { %v7569_v45 = vpop.f32.mrb[97].mxu1 }
 0x52d   : > { %v10896_v5 = vpop.f32.mrb[98].mxu1 }
 0x52e   : > { %v7570_v29 = vpop.f32.mrb[99].mxu1 }
 0x537   : > { %v10898_v55 = vpop.f32.mrb[100].mxu0 }
 0x538   : > { %v7575_v22 = vpop.f32.mrb[101].mxu0 }
 0x539   : > { %v10900_v50 = vpop.f32.mrb[102].mxu0 }
 0x53a   : > { %v7576_v18 = vpop.f32.mrb[103].mxu0  ;;  %v3762_v47 = vpop.xlane.xlu1 %3761 }
 0x53b   : > { %8699 = vrcp.f32 %v3762_v47 }
 0x53e   : > { %v8241_v56 = vpop.permute.xlu1 %8240 }
 0x53f   : > { %v8243_v14 = vunpack.i.h.bf16 %v8241_v56  ;;  %v8242_v26 = vunpack.i.l.bf16 %v8241_v56 }
 0x541   : > { %v1685_v27 = vpack.c.bf16 %v8243_v14, %v8242_v26 }
 0x543   : > { %v10902_v3 = vpop.f32.mrb[100].mxu1  ;;  %7716 = vmatpush3.bf16.msra.mxu0 %v1685_v27 }
 0x544   : > { %v7581_v49 = vpop.f32.mrb[101].mxu1 }
 0x545   : > { %v8700_v35 = vpop.eup %8699  ;;  %v10904_v51 = vpop.f32.mrb[102].mxu1 }
 0x546   : > { %v3894_v46 = vmul.f32 %v8700_v35, %v10718_v23  ;;  %v7582_v11 = vpop.f32.mrb[103].mxu1 }
 0x548   : > { %v3765_v44 = vpop.xlane.xlu0 %3764  ;;  %v3927_v2 = vpack.c.bf16 %v3894_v46, %v3893_v24 }
 0x549   : > { %8701 = vrcp.f32 %v3765_v44 }
 0x54a   : > { %7718 = vmatmul.mubr.msk.bf16.vlgmr.msra.gmra.mrb[148].mxu0 %vm3192_vm2, %v3927_v2 }
 0x54c   : > { %v3768_v43 = vpop.xlane.xlu0 %3767 }
 0x54d   : > { %8703 = vrcp.f32 %v3768_v43 }
 0x550   : > { %v8246_v4 = vpop.permute.xlu0 %8245 }
 0x551   : > { %v8248_v60 = vunpack.i.h.bf16 %v8246_v4  ;;  %v8247_v54 = vunpack.i.l.bf16 %v8246_v4 }
 0x553   : > { %v1686_v38 = vpack.c.bf16 %v8248_v60, %v8247_v54  ;;  %v8702_v1 = vpop.eup %8701 }
 0x554   : > { %v3895_v21 = vmul.f32 %v8702_v1, %v10740_v30 }
 0x555   : > { %7722 = vmatpush3.bf16.msra.mxu1 %v1686_v38 }
 0x557   : > { %v8704_v33 = vpop.eup %8703 }
 0x558   : > { %v3896_v42 = vmul.f32 %v8704_v33, %v10747_v9 }
 0x55a   : > { %v3928_v23 = vpack.c.bf16 %v3896_v42, %v3895_v21 }
 0x55c   : > { %7724 = vmatmul.mubr.msk.bf16.vlgmr.msra.gmra.mrb[148].mxu1 %vm3192_vm2, %v3928_v23 }
 0x55d   : > { %6142 = vmatprep.mubr.bf16.mxu1 %v11974_v28 }
 0x564   : > { %v4318_v57 = vpop.f32.mrb[104].mxu0 }
 0x565   : > { %v7587_v12 = vpop.f32.mrb[105].mxu0 }
 0x566   : > { %v4321_v41 = vpop.f32.mrb[106].mxu0 }
 0x567   : > { %v8249_v62 = vpack.i.bf16 %v4321_v41, %v4318_v57  ;;  %v7588_v31 = vpop.f32.mrb[107].mxu0 }
 0x569   : > { %8250 = vrot.lane.b32.xlu1 %v8249_v62, %s9085_s8 }
 0x56c   : > { %v4362_v58 = vpop.f32.mrb[104].mxu1 }
 0x56d   : > { %v7593_v37 = vpop.f32.mrb[105].mxu1 }
 0x56e   : > { %v4365_v34 = vpop.f32.mrb[106].mxu1 }
 0x56f   : > { %v8254_v10 = vpack.i.bf16 %v4365_v34, %v4362_v58  ;;  %v7594_v13 = vpop.f32.mrb[107].mxu1 }
 0x570   : > { %v8402_v13 = vld [vmem:[#allocation10 + $0x8] sm:$0xff]  }
 0x571   : > { %8255 = vrot.lane.b32.xlu0 %v8254_v10, %s9085_s8  ;;  %v8401_v10 = vld [vmem:[#allocation10] sm:$0xff]  }
 0x572   : > { %7727 = vmatprep.subr.bf16.mxu0 %v8401_v10 }
 0x573   : > { %7728 = vmatpush3.bf16.msra.mxu0 %v8401_v10  ;;  %v8407_v10 = vld [vmem:[#allocation10 + $0x30] sm:$0xff]  }
 0x574   : > { %v10915_v30 = vpop.f32.mrb[108].mxu0  ;;  %7729 = vmatprep.subr.bf16.mxu0 %v8402_v13 }
 0x575   : > { %v7599_v9 = vpop.f32.mrb[109].mxu0 }
 0x576   : > { %v10917_v32 = vpop.f32.mrb[110].mxu0 }
 0x577   : > { %v8279_v63 = vpack.i.bf16 %v10917_v32, %v10915_v30  ;;  %v7600_v15 = vpop.f32.mrb[111].mxu0  ;;  %7730 = vmatpush3.bf16.msra.mxu0 %v8402_v13 }
 0x578   : > { %v8403_v15 = vld [vmem:[#allocation10 + $0x10] sm:$0xff]  }
 0x579   : > { %7731 = vmatprep.subr.bf16.mxu0 %v8403_v15 }
 0x57b   : > { %7732 = vmatpush3.bf16.msra.mxu0 %v8403_v15 }
 0x57c   : > { %v10921_v16 = vpop.f32.mrb[108].mxu1 }
 0x57d   : > { %v7605_v36 = vpop.f32.mrb[109].mxu1 }
 0x57e   : > { %v10923_v17 = vpop.f32.mrb[110].mxu1 }
 0x57f   : > { %v8284_v52 = vpack.i.bf16 %v10923_v17, %v10921_v16  ;;  %v7606_v7 = vpop.f32.mrb[111].mxu1 }
 0x584   : > { %v10927_v45 = vpop.f32.mrb[112].mxu0 }
 0x585   : > { %v7611_v29 = vpop.f32.mrb[113].mxu0 }
 0x586   : > { %v10929_v22 = vpop.f32.mrb[114].mxu0 }
 0x587   : > { %v8309_v18 = vpack.i.bf16 %v10929_v22, %v10927_v45  ;;  %v7612_v47 = vpop.f32.mrb[115].mxu0 }
 0x58c   : > { %v10933_v56 = vpop.f32.mrb[112].mxu1 }
 0x58d   : > { %v7617_v14 = vpop.f32.mrb[113].mxu1 }
 0x58e   : > { %v10935_v26 = vpop.f32.mrb[114].mxu1 }
 0x58f   : > { %v8314_v27 = vpack.i.bf16 %v10935_v26, %v10933_v56  ;;  %v7618_v59 = vpop.f32.mrb[115].mxu1 }
 0x596   : > { %v10939_v49 = vpop.f32.mrb[116].mxu0 }
 0x597   : > { %v7623_v35 = vpop.f32.mrb[117].mxu0 }
 0x598   : > { %v10941_v24 = vpop.f32.mrb[118].mxu0 }
 0x599   : > { %v8339_v46 = vpack.i.bf16 %v10941_v24, %v10939_v49  ;;  %v7624_v11 = vpop.f32.mrb[119].mxu0 }
 0x59a   : > { %v8404_v11 = vld [vmem:[#allocation10 + $0x18] sm:$0xff]  }
 0x59b   : > { %7733 = vmatprep.subr.bf16.mxu0 %v8404_v11 }
 0x59c   : > { %7734 = vmatpush3.bf16.msra.mxu0 %v8404_v11 }
 0x5a0   : > { %v4670_v44 = vpop.f32.mrb[120].mxu0 }
 0x5a1   : > { %v7635_v2 = vpop.f32.mrb[121].mxu0 }
 0x5a2   : > { %v10945_v43 = vpop.f32.mrb[116].mxu1  ;;  %v4673_v4 = vpop.f32.mrb[122].mxu0 }
 0x5a3   : > { %v8259_v60 = vpack.i.bf16 %v4673_v4, %v4670_v44  ;;  %v7629_v54 = vpop.f32.mrb[117].mxu1  ;;  %v7636_v38 = vpop.f32.mrb[123].mxu0 }
 0x5a4   : > { %v10947_v1 = vpop.f32.mrb[118].mxu1 }
 0x5a5   : > { %v8344_v33 = vpack.i.bf16 %v10947_v1, %v10945_v43  ;;  %8260 = vrot.lane.b32.xlu1 %v8259_v60, %s9084_s4  ;;  %v7630_v21 = vpop.f32.mrb[119].mxu1 }
 0x5ac   : > { %v10952_v42 = vpop.f32.mrb[124].mxu0 }
 0x5ad   : > { %v7647_v23 = vpop.f32.mrb[125].mxu0 }
 0x5ae   : > { %v4714_v57 = vpop.f32.mrb[120].mxu1  ;;  %v10954_v12 = vpop.f32.mrb[126].mxu0 }
 0x5af   : > { %v8289_v41 = vpack.i.bf16 %v10954_v12, %v10952_v42  ;;  %v7641_v62 = vpop.f32.mrb[121].mxu1  ;;  %v7648_v31 = vpop.f32.mrb[127].mxu0 }
 0x5b0   : > { %v4717_v58 = vpop.f32.mrb[122].mxu1  ;;  %v8405_v62 = vld [vmem:[#allocation10 + $0x20] sm:$0xff]  }
 0x5b1   : > { %v8264_v37 = vpack.i.bf16 %v4717_v58, %v4714_v57  ;;  %v7642_v34 = vpop.f32.mrb[123].mxu1  ;;  %7735 = vmatprep.subr.bf16.mxu0 %v8405_v62 }
 0x5b2   : > { %7736 = vmatpush3.bf16.msra.mxu0 %v8405_v62  ;;  %v8406_v34 = vld [vmem:[#allocation10 + $0x28] sm:$0xff]  }
 0x5b3   : > { %8265 = vrot.lane.b32.xlu0 %v8264_v37, %s9084_s4  ;;  %7737 = vmatprep.subr.bf16.mxu0 %v8406_v34 }
 0x5b6   : > { %7738 = vmatpush3.bf16.msra.mxu0 %v8406_v34 }
 0x5b7   : > { %7739 = vmatprep.subr.bf16.mxu0 %v8407_v10 }
 0x5b8   : > { %v10959_v9 = vpop.f32.mrb[128].mxu0 }
 0x5b9   : > { %v7659_v36 = vpop.f32.mrb[129].mxu0 }
 0x5ba   : > { %v10961_v7 = vpop.f32.mrb[124].mxu1  ;;  %v10963_v29 = vpop.f32.mrb[130].mxu0  ;;  %7740 = vmatpush3.bf16.msra.mxu0 %v8407_v10 }
 0x5bb   : > { %v8319_v47 = vpack.i.bf16 %v10963_v29, %v10959_v9  ;;  %v7653_v14 = vpop.f32.mrb[125].mxu1  ;;  %v7660_v59 = vpop.f32.mrb[131].mxu0 }
 0x5bc   : > { %v4805_v35 = vpop.f32.mrb[126].mxu1  ;;  %v8408_v59 = vld [vmem:[#allocation10 + $0x38] sm:$0xff]  }
 0x5bd   : > { %v8294_v44 = vpack.i.bf16 %v4805_v35, %v10961_v7  ;;  %v7654_v2 = vpop.f32.mrb[127].mxu1  ;;  %7741 = vmatprep.subr.bf16.mxu0 %v8408_v59 }
 0x5be   : > { %7742 = vmatpush3.bf16.msra.mxu0 %v8408_v59 }
 0x5c4   : > { %v10968_v4 = vpop.f32.mrb[132].mxu0 }
 0x5c5   : > { %v7671_v60 = vpop.f32.mrb[133].mxu0 }
 0x5c6   : > { %v10970_v54 = vpop.f32.mrb[128].mxu1  ;;  %v10972_v38 = vpop.f32.mrb[134].mxu0 }
 0x5c7   : > { %v8349_v21 = vpack.i.bf16 %v10972_v38, %v10968_v4  ;;  %v7665_v23 = vpop.f32.mrb[129].mxu1  ;;  %v7672_v57 = vpop.f32.mrb[135].mxu0 }
 0x5c8   : > { %v4893_v31 = vpop.f32.mrb[130].mxu1 }
 0x5c9   : > { %v8324_v58 = vpack.i.bf16 %v4893_v31, %v10970_v54  ;;  %v7666_v37 = vpop.f32.mrb[131].mxu1 }
 0x5d0   : > { %v5022_v13 = vpop.f32.mrb[136].mxu0 }
 0x5d1   : > { %v7683_v9 = vpop.f32.mrb[137].mxu0 }
 0x5d2   : > { %v4978_v15 = vpop.f32.mrb[132].mxu1  ;;  %v5025_v36 = vpop.f32.mrb[138].mxu0 }
 0x5d3   : > { %v8269_v7 = vpack.i.bf16 %v5025_v36, %v5022_v13  ;;  %v7677_v29 = vpop.f32.mrb[133].mxu1  ;;  %v7684_v14 = vpop.f32.mrb[139].mxu0 }
 0x5d4   : > { %v4981_v35 = vpop.f32.mrb[134].mxu1 }
 0x5d5   : > { %v8354_v11 = vpack.i.bf16 %v4981_v35, %v4978_v15  ;;  %8270 = vrot.lane.b32.xlu1 %v8269_v7, %s9083_s15  ;;  %v7678_v2 = vpop.f32.mrb[135].mxu1 }
 0x5d9   : > { %8280 = vrot.lane.b32.xlu1 %v8279_v63, %s9085_s8 }
 0x5da   : > { %v5066_v60 = vpop.f32.mrb[136].mxu1 }
 0x5db   : > { %v7689_v54 = vpop.f32.mrb[137].mxu1  ;;  %v8251_v38 = vpop.permute.xlu1 %8250 }
 0x5dc   : > { %v5069_v23 = vpop.f32.mrb[138].mxu1  ;;  %v5110_v57 = vpop.f32.mrb[140].mxu0  ;;  %v8253_v43 = vunpack.i.h.bf16 %v8251_v38  ;;  %v8252_v1 = vunpack.i.l.bf16 %v8251_v38 }
 0x5dd   : > { %v8274_v62 = vpack.i.bf16 %v5069_v23, %v5066_v60  ;;  %8290 = vrot.lane.b32.xlu1 %v8289_v41, %s9084_s4  ;;  %v7690_v31 = vpop.f32.mrb[139].mxu1  ;;  %v7695_v37 = vpop.f32.mrb[141].mxu0 }
 0x5de   : > { %v5113_v34 = vpop.f32.mrb[142].mxu0  ;;  %v5530_v14 = vsel %vm1687_vm1, %v10829_v40, %v8253_v43  ;;  %v5529_v59 = vsel %vm1687_vm1, %v10823_v20, %v8252_v1 }
 0x5df   : > { %v8299_v10 = vpack.i.bf16 %v5113_v34, %v5110_v57  ;;  %v7696_v13 = vpop.f32.mrb[143].mxu0  ;;  %8275 = vrot.lane.b32.xlu0 %v8274_v62, %s9083_s15 }
 0x5e1   : > { %8300 = vrot.lane.b32.xlu1 %v8299_v10, %s9083_s15 }
 0x5e3   : > { %8285 = vrot.lane.b32.xlu0 %v8284_v52, %s9085_s8  ;;  %v8256_v35 = vpop.permute.xlu0 %8255 }
 0x5e4   : > { %v8258_v34 = vunpack.i.h.bf16 %v8256_v35  ;;  %v8257_v40 = vunpack.i.l.bf16 %v8256_v35 }
 0x5e5   : > { %8310 = vrot.lane.b32.xlu1 %v8309_v18, %s9085_s8 }
 0x5e7   : > { %8295 = vrot.lane.b32.xlu0 %v8294_v44, %s9084_s4 }
 0x5e9   : > { %8320 = vrot.lane.b32.xlu1 %v8319_v47, %s9084_s4 }
 0x5ea   : > { %v5154_v30 = vpop.f32.mrb[140].mxu1 }
 0x5eb   : > { %v7701_v32 = vpop.f32.mrb[141].mxu1 }
 0x5ec   : > { %v5157_v63 = vpop.f32.mrb[142].mxu1 }
 0x5ed   : > { %v8304_v42 = vpack.i.bf16 %v5157_v63, %v5154_v30  ;;  %v7702_v12 = vpop.f32.mrb[143].mxu1 }
 0x5ef   : > { %8305 = vrot.lane.b32.xlu0 %v8304_v42, %s9083_s15 }
 0x5f2   : > { %v5198_v41 = vpop.f32.mrb[144].mxu0 }
 0x5f3   : > { %v7707_v9 = vpop.f32.mrb[145].mxu0  ;;  %8315 = vrot.lane.b32.xlu0 %v8314_v27, %s9085_s8 }
 0x5f4   : > { %v5201_v16 = vpop.f32.mrb[146].mxu0  ;;  %v5531_v9 = vsel %vm1687_vm1, %v10840_v53, %v8257_v40 }
 0x5f5   : > { %v8329_v17 = vpack.i.bf16 %v5201_v16, %v5198_v41  ;;  %v7708_v52 = vpop.f32.mrb[147].mxu0  ;;  %v5532_v41 = vsel %vm1687_vm1, %v10842_v25, %v8258_v34 }
 0x5f6   : > { %v5242_v45 = vpop.f32.mrb[144].mxu1 }
 0x5f7   : > { %8330 = vrot.lane.b32.xlu1 %v8329_v17, %s9083_s15  ;;  %8325 = vrot.lane.b32.xlu0 %v8324_v58, %s9084_s4  ;;  %v7713_v22 = vpop.f32.mrb[145].mxu1 }
 0x5f8   : > { %v5245_v18 = vpop.f32.mrb[146].mxu1 }
 0x5f9   : > { %v8334_v47 = vpack.i.bf16 %v5245_v18, %v5242_v45  ;;  %v7714_v44 = vpop.f32.mrb[147].mxu1 }
 0x5fb   : > { %8340 = vrot.lane.b32.xlu1 %v8339_v46, %s9085_s8  ;;  %8335 = vrot.lane.b32.xlu0 %v8334_v47, %s9083_s15 }
 0x5ff   : > { %8350 = vrot.lane.b32.xlu1 %v8349_v21, %s9084_s4  ;;  %8345 = vrot.lane.b32.xlu0 %v8344_v33, %s9085_s8 }
 0x603   : > { %8355 = vrot.lane.b32.xlu0 %v8354_v11, %s9084_s4  ;;  %s11982_s4 = sld [smem:[#allocation83_spill]] }
 0x617   : > { %v8261_v21 = vpop.permute.xlu1 %8260 }
 0x618   : > { %v8263_v33 = vunpack.i.h.bf16 %v8261_v21  ;;  %v8262_v7 = vunpack.i.l.bf16 %v8261_v21 }
 0x61a   : > { %v5546_v60 = vsel %vm5545_vm3, %v5529_v59, %v8262_v7  ;;  %v5547_v54 = vsel %vm5545_vm3, %v5530_v14, %v8263_v33 }
 0x61d   : > { %v5286_v56 = vpop.f32.mrb[148].mxu0 }
 0x61e   : > { %v7719_v26 = vpop.f32.mrb[149].mxu0 }
 0x61f   : > { %v5289_v27 = vpop.f32.mrb[150].mxu0 }
 0x620   : > { %v8359_v58 = vpack.i.bf16 %v5289_v27, %v5286_v56  ;;  %v7720_v49 = vpop.f32.mrb[151].mxu0 }
 0x622   : > { %8360 = vrot.lane.b32.xlu1 %v8359_v58, %s9083_s15 }
 0x625   : > { %v8266_v37 = vpop.permute.xlu0 %8265 }
 0x626   : > { %v8268_v10 = vunpack.i.h.bf16 %v8266_v37  ;;  %v8267_v13 = vunpack.i.l.bf16 %v8266_v37 }
 0x628   : > { %v5549_v52 = vsel %vm5545_vm3, %v5532_v41, %v8268_v10  ;;  %v5548_v45 = vsel %vm5545_vm3, %v5531_v9, %v8267_v13 }
 0x62f   : > { %v5330_v24 = vpop.f32.mrb[148].mxu1 }
 0x630   : > { %v7725_v46 = vpop.f32.mrb[149].mxu1 }
 0x631   : > { %v5333_v15 = vpop.f32.mrb[150].mxu1 }
 0x632   : > { %v8364_v36 = vpack.i.bf16 %v5333_v15, %v5330_v24  ;;  %v7726_v4 = vpop.f32.mrb[151].mxu1 }
 0x634   : > { %8365 = vrot.lane.b32.xlu0 %v8364_v36, %s9083_s15  ;;  %s11981_s15 = sld [smem:[#allocation80_spill]] }
 0x647   : > { %v8271_v29 = vpop.permute.xlu1 %8270 }
 0x648   : > { %v8273_v11 = vunpack.i.h.bf16 %v8271_v29  ;;  %v8272_v2 = vunpack.i.l.bf16 %v8271_v29 }
 0x64a   : > { %v5563_v23 = vsel %vm5562_vm4, %v5546_v60, %v8272_v2  ;;  %v5564_v57 = vsel %vm5562_vm4, %v5547_v54, %v8273_v11 }
 0x64b   : > { %v8281_v62 = vpop.permute.xlu1 %8280  ;;  %v5579_v31 = vpack.c.bf16 %v5564_v57, %v5563_v23 }
 0x64c   : > { %v8283_v20 = vunpack.i.h.bf16 %v8281_v62  ;;  %v8282_v30 = vunpack.i.l.bf16 %v8281_v62 }
 0x64d   : > { %7743 = vmatprep.mubr.bf16.mxu0 %v5579_v31 }
 0x64e   : > { %v5534_v22 = vsel %vm1687_vm1, %v10863_v48, %v8283_v20  ;;  %v5533_v18 = vsel %vm1687_vm1, %v10858_v8, %v8282_v30 }
 0x64f   : > { %v8291_v32 = vpop.permute.xlu1 %8290 }
 0x650   : > { %v8293_v63 = vunpack.i.h.bf16 %v8291_v32  ;;  %v8292_v42 = vunpack.i.l.bf16 %v8291_v32 }
 0x651   : > { %v8276_v12 = vpop.permute.xlu0 %8275 }
 0x652   : > { %v8278_v16 = vunpack.i.h.bf16 %v8276_v12  ;;  %v8277_v17 = vunpack.i.l.bf16 %v8276_v12  ;;  %v5550_v53 = vsel %vm5545_vm3, %v5533_v18, %v8292_v42  ;;  %v5551_v27 = vsel %vm5545_vm3, %v5534_v22, %v8293_v63 }
 0x653   : > { %v8301_v47 = vpop.permute.xlu1 %8300 }
 0x654   : > { %v5566_v44 = vsel %vm5562_vm4, %v5549_v52, %v8278_v16  ;;  %v5565_v25 = vsel %vm5562_vm4, %v5548_v45, %v8277_v17  ;;  %v8303_v56 = vunpack.i.h.bf16 %v8301_v47  ;;  %v8302_v26 = vunpack.i.l.bf16 %v8301_v47 }
 0x655   : > { %v5580_v58 = vpack.c.bf16 %v5566_v44, %v5565_v25  ;;  %v8286_v49 = vpop.permute.xlu0 %8285 }
 0x656   : > { %v5567_v24 = vsel %vm5562_vm4, %v5550_v53, %v8302_v26  ;;  %v5568_v48 = vsel %vm5562_vm4, %v5551_v27, %v8303_v56  ;;  %v8288_v15 = vunpack.i.h.bf16 %v8286_v49  ;;  %v8287_v36 = vunpack.i.l.bf16 %v8286_v49 }
 0x657   : > { %7744 = vmatmul.mubr.bf16.vlgmr.msra.gmra.mrb[152].mxu0 %v5580_v58  ;;  %v5581_v46 = vpack.c.bf16 %v5568_v48, %v5567_v24  ;;  %v8311_v4 = vpop.permute.xlu1 %8310 }
 0x658   : > { %v5536_v1 = vsel %vm1687_vm1, %v10873_v19, %v8288_v15  ;;  %v5535_v33 = vsel %vm1687_vm1, %v10871_v0, %v8287_v36  ;;  %v8313_v60 = vunpack.i.h.bf16 %v8311_v4  ;;  %v8312_v54 = vunpack.i.l.bf16 %v8311_v4 }
 0x659   : > { %7747 = vmatprep.mubr.bf16.mxu0 %v5581_v46  ;;  %v8296_v8 = vpop.permute.xlu0 %8295 }
 0x65a   : > { %v8298_v38 = vunpack.i.h.bf16 %v8296_v8  ;;  %v8297_v21 = vunpack.i.l.bf16 %v8296_v8  ;;  %v5538_v0 = vsel %vm1687_vm1, %v10889_v39, %v8313_v60  ;;  %v5537_v31 = vsel %vm1687_vm1, %v10884_v6, %v8312_v54 }
 0x65b   : > { %v8321_v35 = vpop.permute.xlu1 %8320 }
 0x65c   : > { %v5552_v14 = vsel %vm5545_vm3, %v5535_v33, %v8297_v21  ;;  %v5553_v59 = vsel %vm5545_vm3, %v5536_v1, %v8298_v38  ;;  %v8323_v62 = vunpack.i.h.bf16 %v8321_v35  ;;  %v8322_v19 = vunpack.i.l.bf16 %v8321_v35 }
 0x65e   : > { %v5554_v30 = vsel %vm5545_vm3, %v5537_v31, %v8322_v19  ;;  %v5555_v32 = vsel %vm5545_vm3, %v5538_v0, %v8323_v62  ;;  %v8769_v0 = vld [vmem:[%s9467_s9] sm:$0xff] }
 0x661   : > { %v8306_v43 = vpop.permute.xlu0 %8305 }
 0x662   : > { %v8308_v7 = vunpack.i.h.bf16 %v8306_v43  ;;  %v8307_v29 = vunpack.i.l.bf16 %v8306_v43 }
 0x664   : > { %v5569_v11 = vsel %vm5562_vm4, %v5552_v14, %v8307_v29  ;;  %v5570_v2 = vsel %vm5562_vm4, %v5553_v59, %v8308_v7 }
 0x665   : > { %v8316_v23 = vpop.permute.xlu0 %8315  ;;  %v5582_v57 = vpack.c.bf16 %v5570_v2, %v5569_v11 }
 0x666   : > { %v8318_v40 = vunpack.i.h.bf16 %v8316_v23  ;;  %v8317_v10 = vunpack.i.l.bf16 %v8316_v23 }
 0x667   : > { %7748 = vmatmul.mubr.bf16.gmra.mrb[156].mxu0 %v5582_v57 }
 0x668   : > { %v5540_v6 = vsel %vm1687_vm1, %v10896_v5, %v8318_v40  ;;  %v5539_v16 = vsel %vm1687_vm1, %v10894_v61, %v8317_v10  ;;  %v8770_v10 = vld [vmem:[%s9467_s9 + $0x8] sm:$0xff] }
 0x669   : > { %v8331_v37 = vpop.permute.xlu1 %8330  ;;  %v8326_v34 = vpop.permute.xlu0 %8325 }
 0x66a   : > { %v8333_v13 = vunpack.i.h.bf16 %v8331_v37  ;;  %v8332_v20 = vunpack.i.l.bf16 %v8331_v37  ;;  %v8328_v63 = vunpack.i.h.bf16 %v8326_v34  ;;  %v8327_v42 = vunpack.i.l.bf16 %v8326_v34 }
 0x66c   : > { %v5571_v12 = vsel %vm5562_vm4, %v5554_v30, %v8332_v20  ;;  %v5572_v41 = vsel %vm5562_vm4, %v5555_v32, %v8333_v13  ;;  %v5556_v45 = vsel %vm5545_vm3, %v5539_v16, %v8327_v42  ;;  %v5557_v22 = vsel %vm5545_vm3, %v5540_v6, %v8328_v63  ;;  %v8771_v20 = vld [vmem:[%s9467_s9 + $0x18] sm:$0xff]  ;;  %v8772_v32 = vld [vmem:[%s9467_s9 + $0x10] sm:$0xff]  ;;  %v8773_v16 = vld [vmem:[%s9467_s9 + $0x20] sm:$0xff] }
 0x66d   : > { %v8336_v39 = vpop.permute.xlu0 %8335  ;;  %v5583_v9 = vpack.c.bf16 %v5572_v41, %v5571_v12  ;;  %v8341_v25 = vpop.permute.xlu1 %8340 }
 0x66e   : > { %v8338_v17 = vunpack.i.h.bf16 %v8336_v39  ;;  %v8337_v52 = vunpack.i.l.bf16 %v8336_v39  ;;  %v8343_v26 = vunpack.i.h.bf16 %v8341_v25  ;;  %v8342_v5 = vunpack.i.l.bf16 %v8341_v25  ;;  %v8776_v25 = vld [vmem:[%s9467_s9 + $0x38] sm:$0xff] }
 0x66f   : > { %7751 = vmatprep.mubr.bf16.mxu0 %v5583_v9 }
 0x670   : > { %v5573_v18 = vsel %vm5562_vm4, %v5556_v45, %v8337_v52  ;;  %v5574_v47 = vsel %vm5562_vm4, %v5557_v22, %v8338_v17  ;;  %v5542_v58 = vsel %vm1687_vm1, %v10900_v50, %v8343_v26  ;;  %v5541_v49 = vsel %vm1687_vm1, %v10898_v55, %v8342_v5  ;;  %v8774_v22 = vld [vmem:[%s9467_s9 + $0x28] sm:$0xff] }
 0x671   : > { %v5584_v44 = vpack.c.bf16 %v5574_v47, %v5573_v18  ;;  %v8351_v56 = vpop.permute.xlu1 %8350  ;;  %v8346_v38 = vpop.permute.xlu0 %8345  ;;  %v8775_v47 = vld [vmem:[%s9467_s9 + $0x30] sm:$0xff] }
 0x672   : > { %v8353_v53 = vunpack.i.h.bf16 %v8351_v56  ;;  %v8352_v27 = vunpack.i.l.bf16 %v8351_v56  ;;  %v8348_v43 = vunpack.i.h.bf16 %v8346_v38  ;;  %v8347_v1 = vunpack.i.l.bf16 %v8346_v38  ;;  %v8780_v38 = vld [vmem:[%s9467_s9 + $0x58] sm:$0xff] }
 0x673   : > { %7752 = vmatmul.mubr.bf16.gmra.mrb[160].mxu0 %v5584_v44 }
 0x674   : > { %v5558_v46 = vsel %vm5545_vm3, %v5541_v49, %v8352_v27  ;;  %v5559_v8 = vsel %vm5545_vm3, %v5542_v58, %v8353_v53  ;;  %v5544_v55 = vsel %vm1687_vm1, %v10904_v51, %v8348_v43  ;;  %v5543_v29 = vsel %vm1687_vm1, %v10902_v3, %v8347_v1  ;;  %v11088_v51 = vld [vmem:[%s11746_s7] ss:$0 sm:$0xff] }
 0x675   : > { %v8356_v21 = vpop.permute.xlu0 %8355  ;;  %v8777_v49 = vld [vmem:[%s9467_s9 + $0x40] sm:$0xff] }
 0x676   : > { %v8358_v50 = vunpack.i.h.bf16 %v8356_v21  ;;  %v8357_v33 = vunpack.i.l.bf16 %v8356_v21 }
 0x678   : > { %v5560_v35 = vsel %vm5545_vm3, %v5543_v29, %v8357_v33  ;;  %v5561_v11 = vsel %vm5545_vm3, %v5544_v55, %v8358_v50  ;;  %v8781_v29 = vld [vmem:[%s9467_s9 + $0x60] sm:$0xff] }
 0x694   : > { %v8361_v61 = vpop.permute.xlu1 %8360 }
 0x695   : > { %v8363_v24 = vunpack.i.h.bf16 %v8361_v61  ;;  %v8362_v48 = vunpack.i.l.bf16 %v8361_v61 }
 0x697   : > { %v5575_v15 = vsel %vm5562_vm4, %v5558_v46, %v8362_v48  ;;  %v5576_v36 = vsel %vm5562_vm4, %v5559_v8, %v8363_v24  ;;  %v8778_v8 = vld [vmem:[%s9467_s9 + $0x48] sm:$0xff] }
 0x698   : > { %v5585_v4 = vpack.c.bf16 %v5576_v36, %v5575_v15  ;;  %v8779_v36 = vld [vmem:[%s9467_s9 + $0x50] sm:$0xff] }
 0x69a   : > { %7755 = vmatprep.mubr.bf16.mxu0 %v5585_v4 }
 0x6a6   : > { %v8366_v7 = vpop.permute.xlu0 %8365 }
 0x6a7   : > { %v8368_v14 = vunpack.i.h.bf16 %v8366_v7  ;;  %v8367_v59 = vunpack.i.l.bf16 %v8366_v7 }
 0x6a9   : > { %v5577_v2 = vsel %vm5562_vm4, %v5560_v35, %v8367_v59  ;;  %v5578_v60 = vsel %vm5562_vm4, %v5561_v11, %v8368_v14  ;;  %v8782_v11 = vld [vmem:[%s9467_s9 + $0x68] sm:$0xff] }
 0x6aa   : > { %v5586_v54 = vpack.c.bf16 %v5578_v60, %v5577_v2  ;;  %v8783_v60 = vld [vmem:[%s9467_s9 + $0x70] sm:$0xff] }
 0x6ac   : > { %7756 = vmatmul.mubr.bf16.gmra.mrb[164].mxu0 %v5586_v54 }
 0x72a   : > { %v7745_v3 = vpop.f32.mrb[152].mxu0 }
 0x72b   : > { %v5692_v23 = vpop.f32.mrb[153].mxu0  ;;  %v5701_v40 = vadd.f32 %v7745_v3, %v11088_v51  ;;  %v8784_v3 = vld [vmem:[%s9467_s9 + $0x78] sm:$0xff]  ;;  %s11976_s9 = sld [smem:[#allocation82_spill]] }
 0x72c   : > { %v5693_v57 = vadd.f32 %v11088_v51, %v5692_v23  ;;  %v7746_v62 = vpop.f32.mrb[154].mxu0 }
 0x72d   : > { %v5695_v19 = vpop.f32.mrb[155].mxu0  ;;  %v5704_v37 = vadd.f32 %v7746_v62, %v11088_v51  ;;  %v11106_v63 = vadd.f32 %v8772_v32, %v5701_v40  ;;  %v8411_v62 = vld [vmem:[#allocation11 + $0x4] ss:$8 sps:$4 sm:$0xff]  }
 0x72e   : > { %v11092_v31 = vadd.f32 %v8769_v0, %v5693_v57  ;;  %v5696_v34 = vadd.f32 %v11088_v51, %v5695_v19  ;;  %v8409_v57 = vld [vmem:[#allocation11] ss:$8 sps:$4 sm:$0xff]   ;;  %6110 = vmatprep.subr.bf16.mxu1 %v8411_v62  ;;  %v8412_v19 = vld [vmem:[#allocation11 + $0x10] ss:$8 sps:$4 sm:$0xff]  }
 0x72f   : > { %v11102_v30 = vadd.f32 %v8771_v20, %v5704_v37  ;;  %6111 = vmatpush1.bf16.msra.mxu1 %v8409_v57  ;;  %v8424_v57 = vld [vmem:[#allocation11 + $0x50] ss:$8 sps:$4 sm:$0xff]  }
 0x730   : > { %v11098_v13 = vadd.f32 %v8770_v10, %v5696_v34  ;;  %5771 = vadd.xlane.f32.xlu1 %v11092_v31 }
 0x732   : > { %5773 = vadd.xlane.f32.xlu0 %v11098_v13 }
 0x734   : > { %5777 = vadd.xlane.f32.xlu1 %v11102_v30 }
 0x736   : > { %5775 = vadd.xlane.f32.xlu0 %v11106_v63 }
 0x73a   : > { %v7749_v42 = vpop.f32.mrb[156].mxu0 }
 0x73b   : > { %v5708_v12 = vpop.f32.mrb[157].mxu0  ;;  %v5717_v6 = vadd.f32 %v7749_v42, %v11088_v51 }
 0x73c   : > { %v5709_v41 = vadd.f32 %v11088_v51, %v5708_v12  ;;  %v7750_v39 = vpop.f32.mrb[158].mxu0 }
 0x73d   : > { %v5711_v9 = vpop.f32.mrb[159].mxu0  ;;  %v5720_v45 = vadd.f32 %v7750_v39, %v11088_v51  ;;  %v11122_v44 = vadd.f32 %v8775_v47, %v5717_v6 }
 0x73e   : > { %v11113_v17 = vadd.f32 %v8773_v16, %v5709_v41  ;;  %v5712_v52 = vadd.f32 %v11088_v51, %v5711_v9 }
 0x73f   : > { %v11126_v56 = vadd.f32 %v8776_v25, %v5720_v45 }
 0x740   : > { %v11118_v18 = vadd.f32 %v8774_v22, %v5712_v52  ;;  %5779 = vadd.xlane.f32.xlu0 %v11113_v17 }
 0x742   : > { %5781 = vadd.xlane.f32.xlu1 %v11118_v18 }
 0x744   : > { %5783 = vadd.xlane.f32.xlu0 %v11122_v44 }
 0x746   : > { %5785 = vadd.xlane.f32.xlu1 %v11126_v56  ;;  %v7753_v26 = vpop.f32.mrb[160].mxu0 }
 0x747   : > { %v5724_v5 = vpop.f32.mrb[161].mxu0  ;;  %v5733_v58 = vadd.f32 %v7753_v26, %v11088_v51 }
 0x748   : > { %v5725_v53 = vadd.f32 %v11088_v51, %v5724_v5  ;;  %v7754_v27 = vpop.f32.mrb[162].mxu0 }
 0x749   : > { %v5727_v61 = vpop.f32.mrb[163].mxu0  ;;  %v5736_v46 = vadd.f32 %v7754_v27, %v11088_v51  ;;  %v11142_v4 = vadd.f32 %v8779_v36, %v5733_v58  ;;  %v8417_v27 = vld [vmem:[#allocation11 + $0x24] ss:$8 sps:$4 sm:$0xff]  }
 0x74a   : > { %v11133_v24 = vadd.f32 %v8777_v49, %v5725_v53  ;;  %v5728_v48 = vadd.f32 %v11088_v51, %v5727_v61  ;;  %v8415_v49 = vld [vmem:[#allocation11 + $0x20] ss:$8 sps:$4 sm:$0xff]  }
 0x74b   : > { %v11146_v21 = vadd.f32 %v8780_v38, %v5736_v46  ;;  %v8420_v46 = vld [vmem:[#allocation11 + $0x34] ss:$8 sps:$4 sm:$0xff]  }
 0x74c   : > { %v11138_v15 = vadd.f32 %v8778_v8, %v5728_v48  ;;  %5787 = vadd.xlane.f32.xlu0 %v11133_v24  ;;  %v8418_v8 = vld [vmem:[#allocation11 + $0x30] ss:$8 sps:$4 sm:$0xff]  }
 0x74e   : > { %5789 = vadd.xlane.f32.xlu1 %v11138_v15 }
 0x750   : > { %5791 = vadd.xlane.f32.xlu0 %v11142_v4 }
 0x752   : > { %5793 = vadd.xlane.f32.xlu1 %v11146_v21 }
 0x77f   : > { %v7757_v43 = vpop.f32.mrb[164].mxu0 }
 0x780   : > { %v5740_v1 = vpop.f32.mrb[165].mxu0  ;;  %v5749_v55 = vadd.f32 %v7757_v43, %v11088_v51 }
 0x781   : > { %v5741_v50 = vadd.f32 %v11088_v51, %v5740_v1  ;;  %v7758_v33 = vpop.f32.mrb[166].mxu0  ;;  %v8423_v1 = vld [vmem:[#allocation11 + $0x44] ss:$8 sps:$4 sm:$0xff]  }
 0x782   : > { %v5743_v7 = vpop.f32.mrb[167].mxu0  ;;  %v5752_v35 = vadd.f32 %v7758_v33, %v11088_v51  ;;  %v11162_v54 = vadd.f32 %v8783_v60, %v5749_v55  ;;  %v8421_v33 = vld [vmem:[#allocation11 + $0x40] ss:$8 sps:$4 sm:$0xff]  }
 0x783   : > { %v11153_v14 = vadd.f32 %v8781_v29, %v5741_v50  ;;  %v5744_v59 = vadd.f32 %v11088_v51, %v5743_v7  ;;  %v8414_v51 = vld [vmem:[#allocation11 + $0x14] ss:$8 sps:$4 sm:$0xff]  }
 0x784   : > { %v11166_v23 = vadd.f32 %v8784_v3, %v5752_v35  ;;  %6112 = vmatprep.subr.bf16.mxu1 %v8414_v51  ;;  %v8429_v51 = vld [vmem:[#allocation11 + $0x64] ss:$8 sps:$4 sm:$0xff]  }
 0x785   : > { %v11158_v2 = vadd.f32 %v8782_v11, %v5744_v59  ;;  %5795 = vadd.xlane.f32.xlu0 %v11153_v14  ;;  %6113 = vmatpush1.bf16.msra.mxu1 %v8412_v19  ;;  %v8426_v11 = vld [vmem:[#allocation11 + $0x54] ss:$8 sps:$4 sm:$0xff]   ;;  %v8427_v19 = vld [vmem:[#allocation11 + $0x60] ss:$8 sps:$4 sm:$0xff]  }
 0x786   : > { %6114 = vmatprep.subr.bf16.mxu1 %v8417_v27 }
 0x787   : > { %5797 = vadd.xlane.f32.xlu1 %v11158_v2 }
 0x789   : > { %5799 = vadd.xlane.f32.xlu0 %v11162_v54  ;;  %6115 = vmatpush1.bf16.msra.mxu1 %v8415_v49  ;;  %v11267_v49 = vld [vmem:[#allocation13 + $0x18] sm:$0xff]  }
 0x78a   : > { %6116 = vmatprep.subr.bf16.mxu1 %v8420_v46 }
 0x78b   : > { %5801 = vadd.xlane.f32.xlu1 %v11166_v23 }
 0x78d   : > { %6117 = vmatpush1.bf16.msra.mxu1 %v8418_v8 }
 0x78e   : > { %6118 = vmatprep.subr.bf16.mxu1 %v8423_v1 }
 0x791   : > { %6119 = vmatpush1.bf16.msra.mxu1 %v8421_v33  ;;  %v11276_v33 = vld [vmem:[#allocation13 + $0x68] sm:$0xff]  }
 0x792   : > { %6120 = vmatprep.subr.bf16.mxu1 %v8426_v11 }
 0x795   : > { %6121 = vmatpush1.bf16.msra.mxu1 %v8424_v57 }
 0x796   : > { %6122 = vmatprep.subr.bf16.mxu1 %v8429_v51 }
 0x799   : > { %6123 = vmatpush1.bf16.msra.mxu1 %v8427_v19 }
 0x7bd   : > { %v5772_v0 = vpop.xlane.xlu1 %5771 }
 0x7be   : > { %v5804_v37 = vmul.f32 0.0078125, %v5772_v0  ;;  %v8432_v0 = vld [vmem:[#allocation11 + $0x74] ss:$8 sps:$4 sm:$0xff]  }
 0x7bf   : > { %v5774_v34 = vpop.xlane.xlu0 %5773  ;;  %6124 = vmatprep.subr.bf16.mxu1 %v8432_v0 }
 0x7c0   : > { %v11171_v40 = vsub.f32 %v11092_v31, %v5804_v37  ;;  %v5805_v10 = vmul.f32 0.0078125, %v5774_v34  ;;  %v8430_v37 = vld [vmem:[#allocation11 + $0x70] ss:$8 sps:$4 sm:$0xff]  }
 0x7c1   : > { %v5778_v20 = vpop.xlane.xlu1 %5777  ;;  %6125 = vmatpush1.bf16.msra.mxu1 %v8430_v37  ;;  %v11291_v37 = vld [vmem:[%s11976_s9] ss:$0 sm:$0xff]  ;;  %s11690_s9 = scalar_lea.hbm %s11984_s25, %s7086_s10 }
 0x7c2   : > { %v11174_v32 = vsub.f32 %v11098_v13, %v5805_v10  ;;  %v5807_v42 = vmul.f32 0.0078125, %v5778_v20  ;;  %v5836_v12 = vmul.f32 %v11171_v40, %v11171_v40 }
 0x7c3   : > { %v5776_v41 = vpop.xlane.xlu0 %5775 }
 0x7c4   : > { %v11179_v39 = vsub.f32 %v11102_v30, %v5807_v42  ;;  %v5806_v9 = vmul.f32 0.0078125, %v5776_v41  ;;  %5852 = vadd.xlane.f32.xlu0 %v5836_v12  ;;  %v5837_v6 = vmul.f32 %v11174_v32, %v11174_v32 }
 0x7c6   : > { %v11184_v31 = vsub.f32 %v11106_v63, %v5806_v9  ;;  %5854 = vadd.xlane.f32.xlu1 %v5837_v6  ;;  %v5839_v13 = vmul.f32 %v11179_v39, %v11179_v39 }
 0x7c8   : > { %v5838_v16 = vmul.f32 %v11184_v31, %v11184_v31 }
 0x7ca   : > { %5858 = vadd.xlane.f32.xlu1 %v5839_v13  ;;  %5856 = vadd.xlane.f32.xlu0 %v5838_v16 }
 0x7cd   : > { %v5780_v52 = vpop.xlane.xlu0 %5779 }
 0x7ce   : > { %v5808_v30 = vmul.f32 0.0078125, %v5780_v52 }
 0x7cf   : > { %v5782_v45 = vpop.xlane.xlu1 %5781 }
 0x7d0   : > { %v11191_v22 = vsub.f32 %v11113_v17, %v5808_v30  ;;  %v5809_v47 = vmul.f32 0.0078125, %v5782_v45 }
 0x7d1   : > { %v5784_v25 = vpop.xlane.xlu0 %5783 }
 0x7d2   : > { %v11194_v63 = vsub.f32 %v11118_v18, %v5809_v47  ;;  %v5810_v26 = vmul.f32 0.0078125, %v5784_v25  ;;  %v5840_v5 = vmul.f32 %v11191_v22, %v11191_v22  ;;  %v8433_v47 = vld [vmem:[#allocation13 + $0x40] sm:$0xff]   ;;  %v11252_v25 = vld [vmem:[#allocation13 + $0x48] sm:$0xff]  }
 0x7d3   : > { %v5786_v53 = vpop.xlane.xlu1 %5785  ;;  %7247 = vmatprep.subr.bf16.mxu0 %v8433_v47  ;;  %7759 = vmatprep.subr.bf16.mxu1 %v8433_v47 }
 0x7d4   : > { %v11199_v61 = vsub.f32 %v11122_v44, %v5810_v26  ;;  %v5811_v58 = vmul.f32 0.0078125, %v5786_v53  ;;  %5860 = vadd.xlane.f32.xlu0 %v5840_v5  ;;  %v5841_v17 = vmul.f32 %v11194_v63, %v11194_v63  ;;  %v11258_v26 = vld [vmem:[#allocation13 + $0x50] sm:$0xff]   ;;  %v11264_v53 = vld [vmem:[#allocation13 + $0x58] sm:$0xff]  }
 0x7d5   : > { %v11261_v5 = vld [vmem:[#allocation13 + $0x10] sm:$0xff]  }
 0x7d6   : > { %v11204_v48 = vsub.f32 %v11126_v56, %v5811_v58  ;;  %5862 = vadd.xlane.f32.xlu1 %v5841_v17  ;;  %v5842_v18 = vmul.f32 %v11199_v61, %v11199_v61 }
 0x7d8   : > { %5864 = vadd.xlane.f32.xlu0 %v5842_v18  ;;  %v5843_v44 = vmul.f32 %v11204_v48, %v11204_v48 }
 0x7d9   : > { %v5788_v36 = vpop.xlane.xlu0 %5787 }
 0x7da   : > { %v5812_v38 = vmul.f32 0.0078125, %v5788_v36  ;;  %5866 = vadd.xlane.f32.xlu1 %v5843_v44  ;;  %v11270_v44 = vld [vmem:[#allocation13 + $0x60] sm:$0xff]  }
 0x7db   : > { %v5790_v43 = vpop.xlane.xlu1 %5789 }
 0x7dc   : > { %v11211_v56 = vsub.f32 %v11133_v24, %v5812_v38  ;;  %v5813_v50 = vmul.f32 0.0078125, %v5790_v43  ;;  %v11273_v43 = vld [vmem:[#allocation13 + $0x20] sm:$0xff]  }
 0x7dd   : > { %v5792_v7 = vpop.xlane.xlu0 %5791 }
 0x7de   : > { %v11214_v55 = vsub.f32 %v11138_v15, %v5813_v50  ;;  %v5814_v29 = vmul.f32 0.0078125, %v5792_v7  ;;  %v5844_v59 = vmul.f32 %v11211_v56, %v11211_v56 }
 0x7df   : > { %v5794_v35 = vpop.xlane.xlu1 %5793 }
 0x7e0   : > { %v11219_v60 = vsub.f32 %v11142_v4, %v5814_v29  ;;  %v5815_v3 = vmul.f32 0.0078125, %v5794_v35  ;;  %5868 = vadd.xlane.f32.xlu0 %v5844_v59  ;;  %v5845_v24 = vmul.f32 %v11214_v55, %v11214_v55  ;;  %v11283_v35 = vld [vmem:[%s11975_s19] ss:$0 sm:$0xff] }
 0x7e2   : > { %v11224_v15 = vsub.f32 %v11146_v21, %v5815_v3  ;;  %5870 = vadd.xlane.f32.xlu1 %v5845_v24  ;;  %v5846_v62 = vmul.f32 %v11219_v60, %v11219_v60 }
 0x7e4   : > { %5872 = vadd.xlane.f32.xlu0 %v5846_v62  ;;  %v5847_v4 = vmul.f32 %v11224_v15, %v11224_v15 }
 0x7e6   : > { %5874 = vadd.xlane.f32.xlu1 %v5847_v4 }
 0x812   : > { %v5796_v21 = vpop.xlane.xlu0 %5795 }
 0x813   : > { %v5816_v34 = vmul.f32 0.0078125, %v5796_v21 }
 0x814   : > { %v5798_v10 = vpop.xlane.xlu1 %5797 }
 0x815   : > { %v11231_v20 = vsub.f32 %v11153_v14, %v5816_v34  ;;  %v5817_v42 = vmul.f32 0.0078125, %v5798_v10 }
 0x816   : > { %v5800_v12 = vpop.xlane.xlu0 %5799 }
 0x817   : > { %v11234_v41 = vsub.f32 %v11158_v2, %v5817_v42  ;;  %v5818_v9 = vmul.f32 0.0078125, %v5800_v12  ;;  %v5848_v6 = vmul.f32 %v11231_v20, %v11231_v20 }
 0x818   : > { %v5802_v13 = vpop.xlane.xlu1 %5801 }
 0x819   : > { %v11239_v16 = vsub.f32 %v11162_v54, %v5818_v9  ;;  %v5819_v52 = vmul.f32 0.0078125, %v5802_v13  ;;  %5876 = vadd.xlane.f32.xlu0 %v5848_v6  ;;  %v5849_v30 = vmul.f32 %v11234_v41, %v11234_v41  ;;  %v11250_v54 = vld [vmem:[#allocation13] sm:$0xff]  }
 0x81a   : > { %7248 = vmatpush3.bf16.msra.mxu0 %v11250_v54 }
 0x81b   : > { %v11244_v14 = vsub.f32 %v11166_v23, %v5819_v52  ;;  %5878 = vadd.xlane.f32.xlu1 %v5849_v30  ;;  %v5850_v2 = vmul.f32 %v11239_v16, %v11239_v16  ;;  %v11255_v23 = vld [vmem:[#allocation13 + $0x8] sm:$0xff]   ;;  %7249 = vmatprep.subr.bf16.mxu0 %v11252_v25 }
 0x81d   : > { %5880 = vadd.xlane.f32.xlu0 %v5850_v2  ;;  %v5851_v45 = vmul.f32 %v11244_v14, %v11244_v14 }
 0x81e   : > { %7250 = vmatpush3.bf16.msra.mxu0 %v11255_v23 }
 0x81f   : > { %5882 = vadd.xlane.f32.xlu1 %v5851_v45  ;;  %7251 = vmatprep.subr.bf16.mxu0 %v11258_v26 }
 0x822   : > { %7252 = vmatpush3.bf16.msra.mxu0 %v11261_v5 }
 0x823   : > { %7253 = vmatprep.subr.bf16.mxu0 %v11264_v53 }
 0x826   : > { %7254 = vmatpush3.bf16.msra.mxu0 %v11267_v49 }
 0x827   : > { %7255 = vmatprep.subr.bf16.mxu0 %v11270_v44 }
 0x82a   : > { %7256 = vmatpush3.bf16.msra.mxu0 %v11273_v43 }
 0x82b   : > { %7257 = vmatprep.subr.bf16.mxu0 %v11276_v33 }
 0x851   : > { %v5853_v27 = vpop.xlane.xlu0 %5852 }
 0x852   : > { %v5884_v58 = vmul.f32 0.0078125, %v5853_v27 }
 0x853   : > { %v5855_v17 = vpop.xlane.xlu1 %5854 }
 0x854   : > { %v5900_v18 = vadd.f32 1e-05, %v5884_v58  ;;  %v5885_v46 = vmul.f32 0.0078125, %v5855_v17 }
 0x856   : > { %8705 = vrsqrt.f32 %v5900_v18  ;;  %v5901_v8 = vadd.f32 1e-05, %v5885_v46 }
 0x857   : > { %v5859_v36 = vpop.xlane.xlu1 %5858  ;;  %v5857_v38 = vpop.xlane.xlu0 %5856 }
 0x858   : > { %8707 = vrsqrt.f32 %v5901_v8  ;;  %v5887_v1 = vmul.f32 0.0078125, %v5859_v36  ;;  %v5886_v50 = vmul.f32 0.0078125, %v5857_v38 }
 0x85a   : > { %v5903_v7 = vadd.f32 1e-05, %v5887_v1  ;;  %v5902_v29 = vadd.f32 1e-05, %v5886_v50 }
 0x85c   : > { %8709 = vrsqrt.f32 %v5903_v7 }
 0x85d   : > { %8711 = vrsqrt.f32 %v5902_v29 }
 0x860   : > { %v8706_v59 = vpop.eup %8705 }
 0x861   : > { %v5932_v11 = vmul.f32 %v8706_v59, %v11171_v40  ;;  %v5861_v3 = vpop.xlane.xlu0 %5860 }
 0x862   : > { %v8708_v24 = vpop.eup %8707  ;;  %v5888_v57 = vmul.f32 0.0078125, %v5861_v3 }
 0x863   : > { %v5933_v62 = vmul.f32 %v8708_v24, %v11174_v32  ;;  %v5863_v51 = vpop.xlane.xlu1 %5862  ;;  %v5955_v4 = vmul.f32 %v11283_v35, %v5932_v11 }
 0x864   : > { %v5904_v19 = vadd.f32 1e-05, %v5888_v57  ;;  %v5889_v0 = vmul.f32 0.0078125, %v5863_v51 }
 0x865   : > { %v5865_v21 = vpop.xlane.xlu0 %5864  ;;  %v5956_v34 = vmul.f32 %v11283_v35, %v5933_v62  ;;  %v11295_v32 = vadd.f32 %v11291_v37, %v5955_v4 }
 0x866   : > { %v8710_v10 = vpop.eup %8709  ;;  %8713 = vrsqrt.f32 %v5904_v19  ;;  %v5905_v40 = vadd.f32 1e-05, %v5889_v0  ;;  %v5890_v42 = vmul.f32 0.0078125, %v5865_v21 }
 0x867   : > { %v8712_v12 = vpop.eup %8711  ;;  %v5867_v9 = vpop.xlane.xlu1 %5866  ;;  %v11298_v6 = vadd.f32 %v11291_v37, %v5956_v34  ;;  %v5935_v13 = vmul.f32 %v8710_v10, %v11179_v39 }
 0x868   : > { %8715 = vrsqrt.f32 %v5905_v40  ;;  %v5906_v52 = vadd.f32 1e-05, %v5890_v42  ;;  %v5891_v30 = vmul.f32 0.0078125, %v5867_v9  ;;  %v5934_v2 = vmul.f32 %v8712_v12, %v11184_v31 }
 0x869   : > { %v5994_v45 = vpack.c.bf16 %v11298_v6, %v11295_v32  ;;  %v5958_v47 = vmul.f32 %v11283_v35, %v5935_v13 }
 0x86a   : > { %8717 = vrsqrt.f32 %v5906_v52  ;;  %v5907_v27 = vadd.f32 1e-05, %v5891_v30  ;;  %v5957_v58 = vmul.f32 %v11283_v35, %v5934_v2 }
 0x86b   : > { %6143 = vmatmul.mubr.bf16.vlgmr.msra.gmra.mrb[152].mxu1 %v5994_v45  ;;  %v11312_v31 = vadd.f32 %v11291_v37, %v5958_v47 }
 0x86c   : > { %8719 = vrsqrt.f32 %v5907_v27  ;;  %6152 = vmatprep.mubr.bf16.mxu1 %v11974_v28  ;;  %7767 = vmatpush3.bf16.msra.mxu1 %v11250_v54  ;;  %v11309_v17 = vadd.f32 %v11291_v37, %v5957_v58 }
 0x86d   : > { %v5869_v39 = vpop.xlane.xlu0 %5868  ;;  %7760 = vmatprep.subr.bf16.mxu1 %v11252_v25 }
 0x86e   : > { %v5892_v18 = vmul.f32 0.0078125, %v5869_v39  ;;  %v5995_v54 = vpack.c.bf16 %v11312_v31, %v11309_v17 }
 0x86f   : > { %v5871_v46 = vpop.xlane.xlu1 %5870 }
 0x870   : > { %v8714_v8 = vpop.eup %8713  ;;  %v5908_v36 = vadd.f32 1e-05, %v5892_v18  ;;  %v5893_v38 = vmul.f32 0.0078125, %v5871_v46  ;;  %7768 = vmatpush3.bf16.msra.mxu1 %v11255_v23 }
 0x871   : > { %v5873_v1 = vpop.xlane.xlu0 %5872  ;;  %v5936_v50 = vmul.f32 %v8714_v8, %v11191_v22  ;;  %7761 = vmatprep.subr.bf16.mxu1 %v11258_v26 }
 0x872   : > { %v8716_v7 = vpop.eup %8715  ;;  %8721 = vrsqrt.f32 %v5908_v36  ;;  %v5909_v29 = vadd.f32 1e-05, %v5893_v38  ;;  %v5894_v59 = vmul.f32 0.0078125, %v5873_v1 }
 0x873   : > { %v5875_v25 = vpop.xlane.xlu1 %5874  ;;  %6153 = vmatmul.mubr.bf16.gmra.mrb[156].mxu1 %v5995_v54  ;;  %v5937_v11 = vmul.f32 %v8716_v7, %v11194_v63  ;;  %v5959_v3 = vmul.f32 %v11283_v35, %v5936_v50 }
 0x874   : > { %v8718_v24 = vpop.eup %8717  ;;  %8723 = vrsqrt.f32 %v5909_v29  ;;  %v5895_v23 = vmul.f32 0.0078125, %v5875_v25  ;;  %6162 = vmatprep.mubr.bf16.mxu1 %v11974_v28  ;;  %7769 = vmatpush3.bf16.msra.mxu1 %v11261_v5  ;;  %v5910_v57 = vadd.f32 1e-05, %v5894_v59 }
 0x875   : > { %v5960_v22 = vmul.f32 %v11283_v35, %v5937_v11  ;;  %7762 = vmatprep.subr.bf16.mxu1 %v11264_v53  ;;  %v11327_v51 = vadd.f32 %v11291_v37, %v5959_v3  ;;  %v5938_v4 = vmul.f32 %v8718_v24, %v11199_v61 }
 0x876   : > { %v8720_v26 = vpop.eup %8719  ;;  %v5911_v62 = vadd.f32 1e-05, %v5895_v23 }
 0x877   : > { %v11330_v63 = vadd.f32 %v11291_v37, %v5960_v22  ;;  %v5939_v19 = vmul.f32 %v8720_v26, %v11204_v48  ;;  %v5961_v0 = vmul.f32 %v11283_v35, %v5938_v4 }
 0x878   : > { %8725 = vrsqrt.f32 %v5911_v62  ;;  %7770 = vmatpush3.bf16.msra.mxu1 %v11267_v49  ;;  %v8444_v62 = vld [vmem:[#allocation13 + $0x28] sm:$0xff]  }
 0x879   : > { %v5996_v5 = vpack.c.bf16 %v11330_v63, %v11327_v51  ;;  %v5962_v53 = vmul.f32 %v11283_v35, %v5939_v19  ;;  %7763 = vmatprep.subr.bf16.mxu1 %v11270_v44  ;;  %8727 = vrsqrt.f32 %v5910_v57  ;;  %v11347_v49 = vadd.f32 %v11291_v37, %v5961_v0  ;;  %7258 = vmatpush3.bf16.msra.mxu0 %v8444_v62  ;;  %v8445_v19 = vld [vmem:[#allocation13 + $0x70] sm:$0xff]   ;;  %v8448_v0 = vld [vmem:[#allocation13 + $0x38] sm:$0xff]  }
 0x87a   : > { %7259 = vmatprep.subr.bf16.mxu0 %v8445_v19 }
 0x87b   : > { %6163 = vmatmul.mubr.bf16.gmra.mrb[160].mxu1 %v5996_v5  ;;  %v11343_v61 = vadd.f32 %v11291_v37, %v5962_v53  ;;  %v8447_v53 = vld [vmem:[#allocation13 + $0x78] sm:$0xff]  }
 0x87c   : > { %v8722_v21 = vpop.eup %8721  ;;  %6172 = vmatprep.mubr.bf16.mxu1 %v11974_v28  ;;  %7771 = vmatpush3.bf16.msra.mxu1 %v11273_v43 }
 0x87d   : > { %7764 = vmatprep.subr.bf16.mxu1 %v11276_v33  ;;  %v5940_v44 = vmul.f32 %v8722_v21, %v11211_v56  ;;  %v5997_v10 = vpack.c.bf16 %v11343_v61, %v11347_v49  ;;  %v11978_v21 = vld [vmem:[#allocation23_spill] sm:$0xff] }
 0x87e   : > { %v8724_v48 = vpop.eup %8723 }
 0x87f   : > { %v5941_v34 = vmul.f32 %v8724_v48, %v11214_v55  ;;  %v5963_v43 = vmul.f32 %v11283_v35, %v5940_v44  ;;  %v11979_v48 = vsub.s32 0, %v11978_v21  ;;  %v11980_v44 = vsub.s32 1, %v11978_v21 }
 0x880   : > { %7772 = vmatpush3.bf16.msra.mxu1 %v8444_v62 }
 0x881   : > { %v5964_v40 = vmul.f32 %v11283_v35, %v5941_v34  ;;  %v11361_v56 = vadd.f32 %v11291_v37, %v5963_v43  ;;  %7765 = vmatprep.subr.bf16.mxu1 %v8445_v19 }
 0x882   : > { %v8726_v42 = vpop.eup %8725 }
 0x883   : > { %6173 = vmatmul.mubr.bf16.gmra.mrb[164].mxu1 %v5997_v10  ;;  %v8728_v12 = vpop.eup %8727  ;;  %v11357_v33 = vadd.f32 %v11291_v37, %v5964_v40  ;;  %v5943_v9 = vmul.f32 %v8726_v42, %v11224_v15 }
 0x884   : > { %6182 = vmatprep.mubr.bf16.mxu1 %v11974_v28  ;;  %v5942_v55 = vmul.f32 %v8728_v12, %v11219_v60 }
 0x885   : > { %v5998_v13 = vpack.c.bf16 %v11357_v33, %v11361_v56  ;;  %v5966_v52 = vmul.f32 %v11283_v35, %v5943_v9 }
 0x886   : > { %v5965_v30 = vmul.f32 %v11283_v35, %v5942_v55 }
 0x887   : > { %v11370_v2 = vadd.f32 %v11291_v37, %v5966_v52 }
 0x888   : > { %v11373_v15 = vadd.f32 %v11291_v37, %v5965_v30 }
 0x88a   : > { %v5999_v45 = vpack.c.bf16 %v11370_v2, %v11373_v15 }
 0x88b   : > { %6183 = vmatmul.mubr.bf16.gmra.mrb[168].mxu1 %v5998_v13 }
 0x88c   : > { %6192 = vmatprep.mubr.bf16.mxu1 %v11974_v28 }
 0x893   : > { %6193 = vmatmul.mubr.bf16.gmra.mrb[172].mxu1 %v5999_v45 }
 0x894   : > { %6202 = vmatprep.mubr.bf16.mxu1 %v11974_v28 }
 0x8a6   : > { %v5877_v60 = vpop.xlane.xlu0 %5876 }
 0x8a7   : > { %v5896_v47 = vmul.f32 0.0078125, %v5877_v60 }
 0x8a8   : > { %v5879_v27 = vpop.xlane.xlu1 %5878 }
 0x8a9   : > { %v5912_v58 = vadd.f32 1e-05, %v5896_v47  ;;  %v5897_v39 = vmul.f32 0.0078125, %v5879_v27 }
 0x8aa   : > { %v5881_v18 = vpop.xlane.xlu0 %5880 }
 0x8ab   : > { %8729 = vrsqrt.f32 %v5912_v58  ;;  %v5913_v46 = vadd.f32 1e-05, %v5897_v39  ;;  %v5898_v8 = vmul.f32 0.0078125, %v5881_v18 }
 0x8ac   : > { %v5883_v36 = vpop.xlane.xlu1 %5882 }
 0x8ad   : > { %8731 = vrsqrt.f32 %v5913_v46  ;;  %v5914_v38 = vadd.f32 1e-05, %v5898_v8  ;;  %v5899_v1 = vmul.f32 0.0078125, %v5883_v36 }
 0x8af   : > { %8733 = vrsqrt.f32 %v5914_v38  ;;  %v5915_v54 = vadd.f32 1e-05, %v5899_v1 }
 0x8b1   : > { %8735 = vrsqrt.f32 %v5915_v54 }
 0x8b5   : > { %v8730_v50 = vpop.eup %8729 }
 0x8b6   : > { %v5944_v7 = vmul.f32 %v8730_v50, %v11231_v20 }
 0x8b7   : > { %v8732_v29 = vpop.eup %8731 }
 0x8b8   : > { %v5945_v59 = vmul.f32 %v8732_v29, %v11234_v41  ;;  %v5967_v25 = vmul.f32 %v11283_v35, %v5944_v7 }
 0x8b9   : > { %v8734_v11 = vpop.eup %8733 }
 0x8ba   : > { %v5968_v3 = vmul.f32 %v11283_v35, %v5945_v59  ;;  %v11383_v23 = vadd.f32 %v11291_v37, %v5967_v25  ;;  %v5946_v26 = vmul.f32 %v8734_v11, %v11239_v16  ;;  %v8446_v16 = vld [vmem:[#allocation13 + $0x30] sm:$0xff]  }
 0x8bb   : > { %v8736_v24 = vpop.eup %8735  ;;  %7260 = vmatpush3.bf16.msra.mxu0 %v8446_v16  ;;  %7773 = vmatpush3.bf16.msra.mxu1 %v8446_v16 }
 0x8bc   : > { %v11386_v22 = vadd.f32 %v11291_v37, %v5968_v3  ;;  %v5947_v57 = vmul.f32 %v8736_v24, %v11244_v14  ;;  %v5969_v4 = vmul.f32 %v11283_v35, %v5946_v26  ;;  %7261 = vmatprep.subr.bf16.mxu0 %v8447_v53  ;;  %7766 = vmatprep.subr.bf16.mxu1 %v8447_v53 }
 0x8be   : > { %v6000_v20 = vpack.c.bf16 %v11386_v22, %v11383_v23  ;;  %v5970_v41 = vmul.f32 %v11283_v35, %v5947_v57  ;;  %v11399_v14 = vadd.f32 %v11291_v37, %v5969_v4 }
 0x8bf   : > { %7262 = vmatpush3.bf16.msra.mxu0 %v8448_v0  ;;  %7774 = vmatpush3.bf16.msra.mxu1 %v8448_v0 }
 0x8c0   : > { %6203 = vmatmul.mubr.bf16.gmra.mrb[176].mxu1 %v6000_v20  ;;  %v11396_v5 = vadd.f32 %v11291_v37, %v5970_v41 }
 0x8c1   : > { %6212 = vmatprep.mubr.bf16.mxu1 %v11974_v28  ;;  %v6018_v28 = vld [vmem:[%s11977_s18] sm:$0x3]  ;;  %s8989_s18 = sshll.u32 %s9086_s30, 4  ;;  %s8990_s18 = int_to_ptr.vmem [resolvable:$false] %s8989_s18 }
 0x8c2   : > { %v6001_v35 = vpack.c.bf16 %v11396_v5, %v11399_v14  ;;  %v11408_v37 = vrot.slane %v6018_v28, %v11979_v48  ;;  %v11412_v34 = vrot.slane %v6018_v28, %v11980_v44  ;;  %s8991_s26 = scalar_lea.vmem %s8990_s18, 4096  ;;  %p8992_p0 = scmp.lt.s32.totalorder %s11692_s13, %s8990_s18 }
 0x8c3   : > { %p8993_p5 = scmp.lt.s32.totalorder %s8991_s26, %s8985_s28 }
 0x8c5   : > { %p8994_p7 = por %p8993_p5, %p8992_p0 }
 0x8c7   : > { %p8995_p8 = pnand %p8994_p7, %p8988_p9 }
 0x8c8   : > { %6213 = vmatmul.mubr.bf16.gmra.mrb[180].mxu1 %v6001_v35 }
 0x93e   : > { %v6144_v10 = vpop.f32.mrb[152].mxu1 }
 0x93f   : > { %v6145_v40 = vadd.f32 %v6144_v10, %v11408_v37  ;;  %v6146_v42 = vpop.f32.mrb[153].mxu1 }
 0x940   : > { %v6147_v43 = vadd.f32 %v6146_v42, %v11412_v34  ;;  %v6148_v12 = vpop.f32.mrb[154].mxu1 }
 0x941   : > { %v6149_v9 = vadd.f32 %v6148_v12, %v11408_v37  ;;  %v6150_v55 = vpop.f32.mrb[155].mxu1  ;;  %v6223_v52 = vmax.f32 %v6145_v40, 0.0 }
 0x942   : > { %v6151_v13 = vadd.f32 %v6150_v55, %v11412_v34  ;;  %v6224_v45 = vmax.f32 %v6147_v43, 0.0 }
 0x943   : > { %v6225_v30 = vmax.f32 %v6149_v9, 0.0 }
 0x944   : > { %v6226_v60 = vmax.f32 %v6151_v13, 0.0 }
 0x945   : > { %v6255_v47 = vpack.c.bf16 %v6225_v30, %v6223_v52 }
 0x946   : > { %v6256_v27 = vpack.c.bf16 %v6226_v60, %v6224_v45  ;;  %v6154_v58 = vpop.f32.mrb[156].mxu1 }
 0x947   : > { %v6155_v39 = vadd.f32 %v6154_v58, %v11408_v37  ;;  %v6156_v18 = vpop.f32.mrb[157].mxu1 }
 0x948   : > { %v6157_v46 = vadd.f32 %v6156_v18, %v11412_v34  ;;  %v6158_v8 = vpop.f32.mrb[158].mxu1  ;;  %6438 = vmatprep.mubr.bf16.mxu0 %v6256_v27 }
 0x949   : > { %v6159_v36 = vadd.f32 %v6158_v8, %v11408_v37  ;;  %v6160_v38 = vpop.f32.mrb[159].mxu1  ;;  %6439 = vmatmul.mubr.bf16.vlgmr.msra.gmra.mrb[168].mxu0 %v6255_v47  ;;  %v6227_v54 = vmax.f32 %v6155_v39, 0.0 }
 0x94a   : > { %v6161_v1 = vadd.f32 %v6160_v38, %v11412_v34  ;;  %v6228_v7 = vmax.f32 %v6157_v46, 0.0 }
 0x94b   : > { %v6229_v50 = vmax.f32 %v6159_v36, 0.0 }
 0x94c   : > { %v6230_v29 = vmax.f32 %v6161_v1, 0.0 }
 0x94d   : > { %v6257_v59 = vpack.c.bf16 %v6229_v50, %v6227_v54 }
 0x94e   : > { %v6258_v25 = vpack.c.bf16 %v6230_v29, %v6228_v7  ;;  %v6164_v11 = vpop.f32.mrb[160].mxu1 }
 0x94f   : > { %v6165_v3 = vadd.f32 %v6164_v11, %v11408_v37  ;;  %v6166_v24 = vpop.f32.mrb[161].mxu1 }
 0x950   : > { %v6167_v26 = vadd.f32 %v6166_v24, %v11412_v34  ;;  %v6168_v57 = vpop.f32.mrb[162].mxu1  ;;  %6446 = vmatprep.mubr.bf16.mxu0 %v6258_v25 }
 0x951   : > { %v6169_v20 = vadd.f32 %v6168_v57, %v11408_v37  ;;  %v6170_v41 = vpop.f32.mrb[163].mxu1  ;;  %6447 = vmatmul.mubr.bf16.gmra.mrb[172].mxu0 %v6257_v59  ;;  %v6231_v4 = vmax.f32 %v6165_v3, 0.0 }
 0x952   : > { %v6171_v62 = vadd.f32 %v6170_v41, %v11412_v34  ;;  %v6232_v16 = vmax.f32 %v6167_v26, 0.0 }
 0x953   : > { %v6233_v19 = vmax.f32 %v6169_v20, 0.0 }
 0x954   : > { %v6234_v53 = vmax.f32 %v6171_v62, 0.0 }
 0x955   : > { %v6259_v35 = vpack.c.bf16 %v6233_v19, %v6231_v4 }
 0x956   : > { %v6260_v0 = vpack.c.bf16 %v6234_v53, %v6232_v16  ;;  %v6174_v28 = vpop.f32.mrb[164].mxu1 }
 0x957   : > { %v6175_v21 = vadd.f32 %v6174_v28, %v11408_v37  ;;  %v6176_v48 = vpop.f32.mrb[165].mxu1 }
 0x958   : > { %v6177_v44 = vadd.f32 %v6176_v48, %v11412_v34  ;;  %v6178_v10 = vpop.f32.mrb[166].mxu1  ;;  %6454 = vmatprep.mubr.bf16.mxu0 %v6260_v0 }
 0x959   : > { %v6179_v40 = vadd.f32 %v6178_v10, %v11408_v37  ;;  %v6180_v42 = vpop.f32.mrb[167].mxu1  ;;  %6455 = vmatmul.mubr.bf16.gmra.mrb[176].mxu0 %v6259_v35  ;;  %v6235_v12 = vmax.f32 %v6175_v21, 0.0 }
 0x95a   : > { %v6181_v43 = vadd.f32 %v6180_v42, %v11412_v34  ;;  %v6236_v55 = vmax.f32 %v6177_v44, 0.0 }
 0x95b   : > { %v6237_v9 = vmax.f32 %v6179_v40, 0.0 }
 0x95c   : > { %v6238_v13 = vmax.f32 %v6181_v43, 0.0 }
 0x95d   : > { %v6261_v52 = vpack.c.bf16 %v6237_v9, %v6235_v12 }
 0x95e   : > { %v6262_v30 = vpack.c.bf16 %v6238_v13, %v6236_v55  ;;  %v6184_v45 = vpop.f32.mrb[168].mxu1 }
 0x95f   : > { %v6185_v60 = vadd.f32 %v6184_v45, %v11408_v37  ;;  %v6186_v47 = vpop.f32.mrb[169].mxu1 }
 0x960   : > { %v6187_v27 = vadd.f32 %v6186_v47, %v11412_v34  ;;  %v6188_v58 = vpop.f32.mrb[170].mxu1  ;;  %6462 = vmatprep.mubr.bf16.mxu0 %v6262_v30 }
 0x961   : > { %v6189_v39 = vadd.f32 %v6188_v58, %v11408_v37  ;;  %v6190_v18 = vpop.f32.mrb[171].mxu1  ;;  %6463 = vmatmul.mubr.bf16.gmra.mrb[180].mxu0 %v6261_v52  ;;  %v6239_v8 = vmax.f32 %v6185_v60, 0.0 }
 0x962   : > { %v6191_v46 = vadd.f32 %v6190_v18, %v11412_v34  ;;  %v6240_v38 = vmax.f32 %v6187_v27, 0.0 }
 0x963   : > { %v6241_v36 = vmax.f32 %v6189_v39, 0.0 }
 0x964   : > { %v6242_v1 = vmax.f32 %v6191_v46, 0.0 }
 0x965   : > { %v6263_v54 = vpack.c.bf16 %v6241_v36, %v6239_v8 }
 0x966   : > { %v6264_v50 = vpack.c.bf16 %v6242_v1, %v6240_v38  ;;  %v6194_v7 = vpop.f32.mrb[172].mxu1  ;;  %v11449_v1 = vld [vmem:[%s11981_s15] ss:$0 sm:$0xff] }
 0x967   : > { %v6195_v29 = vadd.f32 %v6194_v7, %v11408_v37  ;;  %v6196_v59 = vpop.f32.mrb[173].mxu1 }
 0x968   : > { %v6197_v25 = vadd.f32 %v6196_v59, %v11412_v34  ;;  %v6198_v11 = vpop.f32.mrb[174].mxu1  ;;  %6470 = vmatprep.mubr.bf16.mxu0 %v6264_v50 }
 0x969   : > { %v6199_v3 = vadd.f32 %v6198_v11, %v11408_v37  ;;  %v6200_v24 = vpop.f32.mrb[175].mxu1  ;;  %6471 = vmatmul.mubr.bf16.gmra.mrb[184].mxu0 %v6263_v54  ;;  %v6243_v57 = vmax.f32 %v6195_v29, 0.0 }
 0x96a   : > { %v6201_v26 = vadd.f32 %v6200_v24, %v11412_v34  ;;  %v6244_v41 = vmax.f32 %v6197_v25, 0.0 }
 0x96b   : > { %v6245_v20 = vmax.f32 %v6199_v3, 0.0 }
 0x96c   : > { %v6246_v62 = vmax.f32 %v6201_v26, 0.0 }
 0x96d   : > { %v6265_v4 = vpack.c.bf16 %v6245_v20, %v6243_v57 }
 0x96e   : > { %v6266_v19 = vpack.c.bf16 %v6246_v62, %v6244_v41 }
 0x970   : > { %6478 = vmatprep.mubr.bf16.mxu0 %v6266_v19 }
 0x971   : > { %6479 = vmatmul.mubr.bf16.gmra.mrb[188].mxu0 %v6265_v4 }
 0x993   : > { %v6204_v16 = vpop.f32.mrb[176].mxu1 }
 0x994   : > { %v6205_v53 = vadd.f32 %v6204_v16, %v11408_v37  ;;  %v6206_v35 = vpop.f32.mrb[177].mxu1 }
 0x995   : > { %v6207_v0 = vadd.f32 %v6206_v35, %v11412_v34  ;;  %v6208_v28 = vpop.f32.mrb[178].mxu1 }
 0x996   : > { %v6209_v21 = vadd.f32 %v6208_v28, %v11408_v37  ;;  %v6210_v48 = vpop.f32.mrb[179].mxu1  ;;  %v6247_v10 = vmax.f32 %v6205_v53, 0.0 }
 0x997   : > { %v6211_v44 = vadd.f32 %v6210_v48, %v11412_v34  ;;  %v6248_v42 = vmax.f32 %v6207_v0, 0.0 }
 0x998   : > { %v6249_v40 = vmax.f32 %v6209_v21, 0.0 }
 0x999   : > { %v6250_v43 = vmax.f32 %v6211_v44, 0.0 }
 0x99a   : > { %v6267_v12 = vpack.c.bf16 %v6249_v40, %v6247_v10 }
 0x99b   : > { %v6268_v9 = vpack.c.bf16 %v6250_v43, %v6248_v42  ;;  %v6214_v55 = vpop.f32.mrb[180].mxu1 }
 0x99c   : > { %v6215_v13 = vadd.f32 %v6214_v55, %v11408_v37  ;;  %v6216_v52 = vpop.f32.mrb[181].mxu1 }
 0x99d   : > { %v6217_v30 = vadd.f32 %v6216_v52, %v11412_v34  ;;  %v6218_v45 = vpop.f32.mrb[182].mxu1  ;;  %6486 = vmatprep.mubr.bf16.mxu1 %v6268_v9 }
 0x99e   : > { %v6219_v60 = vadd.f32 %v6218_v45, %v11408_v37  ;;  %v6220_v47 = vpop.f32.mrb[183].mxu1  ;;  %6487 = vmatmul.mubr.bf16.vlgmr.msra.gmra.mrb[184].mxu1 %v6267_v12  ;;  %v6251_v58 = vmax.f32 %v6215_v13, 0.0 }
 0x99f   : > { %v6221_v27 = vadd.f32 %v6220_v47, %v11412_v34  ;;  %v6252_v18 = vmax.f32 %v6217_v30, 0.0 }
 0x9a0   : > { %v6253_v39 = vmax.f32 %v6219_v60, 0.0 }
 0x9a1   : > { %v6254_v46 = vmax.f32 %v6221_v27, 0.0 }
 0x9a2   : > { %v6269_v8 = vpack.c.bf16 %v6253_v39, %v6251_v58 }
 0x9a3   : > { %v6270_v36 = vpack.c.bf16 %v6254_v46, %v6252_v18 }
 0x9a5   : > { %6494 = vmatprep.mubr.bf16.mxu1 %v6270_v36 }
 0x9a6   : > { %6495 = vmatmul.mubr.bf16.gmra.mrb[188].mxu1 %v6269_v8 }
 0xa1c   : > { %v7263_v38 = vpop.f32.mrb[168].mxu0 }
 0xa1d   : > { %v7264_v54 = vpop.f32.mrb[169].mxu0 }
 0xa1e   : > { %v7265_v37 = vadd.f32 %v7264_v54, %v7263_v38  ;;  %v7266_v50 = vpop.f32.mrb[170].mxu0 }
 0xa1f   : > { %v7267_v7 = vpop.f32.mrb[171].mxu0 }
 0xa20   : > { %v6441_v34 = vadd.f32 %v7265_v37, %v11449_v1  ;;  %v7268_v29 = vadd.f32 %v7267_v7, %v7266_v50 }
 0xa22   : > { %v6444_v59 = vadd.f32 %v7268_v29, %v11449_v1  ;;  %v11454_v25 = vadd.f32 %v6441_v34, %v11295_v32 }
 0xa24   : > { %v7269_v11 = vpop.f32.mrb[172].mxu0  ;;  %6519 = vadd.xlane.f32.xlu0 %v11454_v25  ;;  %v11458_v3 = vadd.f32 %v6444_v59, %v11298_v6 }
 0xa25   : > { %v7270_v24 = vpop.f32.mrb[173].mxu0 }
 0xa26   : > { %v7271_v26 = vadd.f32 %v7270_v24, %v7269_v11  ;;  %v7272_v57 = vpop.f32.mrb[174].mxu0  ;;  %6521 = vadd.xlane.f32.xlu1 %v11458_v3 }
 0xa27   : > { %v7273_v20 = vpop.f32.mrb[175].mxu0 }
 0xa28   : > { %v6449_v41 = vadd.f32 %v7271_v26, %v11449_v1  ;;  %v7274_v62 = vadd.f32 %v7273_v20, %v7272_v57 }
 0xa2a   : > { %v6452_v4 = vadd.f32 %v7274_v62, %v11449_v1  ;;  %v11464_v32 = vadd.f32 %v6449_v41, %v11309_v17 }
 0xa2c   : > { %v7275_v19 = vpop.f32.mrb[176].mxu0  ;;  %6523 = vadd.xlane.f32.xlu0 %v11464_v32  ;;  %v11468_v6 = vadd.f32 %v6452_v4, %v11312_v31 }
 0xa2d   : > { %v7276_v16 = vpop.f32.mrb[177].mxu0 }
 0xa2e   : > { %v7277_v53 = vadd.f32 %v7276_v16, %v7275_v19  ;;  %v7278_v35 = vpop.f32.mrb[178].mxu0  ;;  %6525 = vadd.xlane.f32.xlu1 %v11468_v6 }
 0xa2f   : > { %v7279_v0 = vpop.f32.mrb[179].mxu0 }
 0xa30   : > { %v6457_v28 = vadd.f32 %v7277_v53, %v11449_v1  ;;  %v7280_v21 = vadd.f32 %v7279_v0, %v7278_v35 }
 0xa32   : > { %v6460_v48 = vadd.f32 %v7280_v21, %v11449_v1  ;;  %v11474_v17 = vadd.f32 %v6457_v28, %v11327_v51 }
 0xa34   : > { %v7281_v44 = vpop.f32.mrb[180].mxu0  ;;  %6527 = vadd.xlane.f32.xlu0 %v11474_v17  ;;  %v11478_v31 = vadd.f32 %v6460_v48, %v11330_v63 }
 0xa35   : > { %v7282_v10 = vpop.f32.mrb[181].mxu0 }
 0xa36   : > { %v7283_v40 = vadd.f32 %v7282_v10, %v7281_v44  ;;  %v7284_v42 = vpop.f32.mrb[182].mxu0  ;;  %6529 = vadd.xlane.f32.xlu1 %v11478_v31 }
 0xa37   : > { %v7285_v43 = vpop.f32.mrb[183].mxu0 }
 0xa38   : > { %v6465_v12 = vadd.f32 %v7283_v40, %v11449_v1  ;;  %v7286_v9 = vadd.f32 %v7285_v43, %v7284_v42 }
 0xa3a   : > { %v6468_v55 = vadd.f32 %v7286_v9, %v11449_v1  ;;  %v11484_v51 = vadd.f32 %v6465_v12, %v11347_v49 }
 0xa3c   : > { %v7287_v13 = vpop.f32.mrb[184].mxu0  ;;  %6531 = vadd.xlane.f32.xlu0 %v11484_v51  ;;  %v11488_v63 = vadd.f32 %v6468_v55, %v11343_v61 }
 0xa3d   : > { %v7288_v52 = vpop.f32.mrb[185].mxu0 }
 0xa3e   : > { %v7289_v30 = vadd.f32 %v7288_v52, %v7287_v13  ;;  %v7290_v45 = vpop.f32.mrb[186].mxu0  ;;  %6533 = vadd.xlane.f32.xlu1 %v11488_v63 }
 0xa3f   : > { %v7291_v60 = vpop.f32.mrb[187].mxu0 }
 0xa40   : > { %v6473_v47 = vadd.f32 %v7289_v30, %v11449_v1  ;;  %v7292_v27 = vadd.f32 %v7291_v60, %v7290_v45 }
 0xa42   : > { %v6476_v58 = vadd.f32 %v7292_v27, %v11449_v1  ;;  %v11494_v49 = vadd.f32 %v6473_v47, %v11361_v56 }
 0xa44   : > { %v7293_v39 = vpop.f32.mrb[188].mxu0  ;;  %6535 = vadd.xlane.f32.xlu0 %v11494_v49  ;;  %v11498_v61 = vadd.f32 %v6476_v58, %v11357_v33 }
 0xa45   : > { %v7294_v18 = vpop.f32.mrb[189].mxu0 }
 0xa46   : > { %v7295_v46 = vadd.f32 %v7294_v18, %v7293_v39  ;;  %v7296_v8 = vpop.f32.mrb[190].mxu0  ;;  %6537 = vadd.xlane.f32.xlu1 %v11498_v61 }
 0xa47   : > { %v7297_v36 = vpop.f32.mrb[191].mxu0 }
 0xa48   : > { %v6481_v38 = vadd.f32 %v7295_v46, %v11449_v1  ;;  %v7298_v54 = vadd.f32 %v7297_v36, %v7296_v8 }
 0xa4a   : > { %v6484_v37 = vadd.f32 %v7298_v54, %v11449_v1  ;;  %v11504_v56 = vadd.f32 %v6481_v38, %v11373_v15 }
 0xa4c   : > { %6539 = vadd.xlane.f32.xlu0 %v11504_v56  ;;  %v11508_v50 = vadd.f32 %v6484_v37, %v11370_v2 }
 0xa4e   : > { %6541 = vadd.xlane.f32.xlu1 %v11508_v50 }
 0xa71   : > { %v7299_v33 = vpop.f32.mrb[184].mxu1 }
 0xa72   : > { %v7300_v7 = vpop.f32.mrb[185].mxu1 }
 0xa73   : > { %v7301_v34 = vadd.f32 %v7300_v7, %v7299_v33  ;;  %v7302_v29 = vpop.f32.mrb[186].mxu1 }
 0xa74   : > { %v7303_v59 = vpop.f32.mrb[187].mxu1 }
 0xa75   : > { %v6489_v11 = vadd.f32 %v7301_v34, %v11449_v1  ;;  %v7304_v24 = vadd.f32 %v7303_v59, %v7302_v29 }
 0xa77   : > { %v6492_v26 = vadd.f32 %v7304_v24, %v11449_v1  ;;  %v11514_v15 = vadd.f32 %v6489_v11, %v11383_v23 }
 0xa79   : > { %v7305_v57 = vpop.f32.mrb[188].mxu1  ;;  %6543 = vadd.xlane.f32.xlu0 %v11514_v15  ;;  %v11518_v2 = vadd.f32 %v6492_v26, %v11386_v22 }
 0xa7a   : > { %v7306_v20 = vpop.f32.mrb[189].mxu1 }
 0xa7b   : > { %v7307_v41 = vadd.f32 %v7306_v20, %v7305_v57  ;;  %v7308_v62 = vpop.f32.mrb[190].mxu1  ;;  %6545 = vadd.xlane.f32.xlu1 %v11518_v2 }
 0xa7c   : > { %v7309_v4 = vpop.f32.mrb[191].mxu1 }
 0xa7d   : > { %v6497_v19 = vadd.f32 %v7307_v41, %v11449_v1  ;;  %v7310_v16 = vadd.f32 %v7309_v4, %v7308_v62 }
 0xa7f   : > { %v6500_v53 = vadd.f32 %v7310_v16, %v11449_v1  ;;  %v11524_v23 = vadd.f32 %v6497_v19, %v11399_v14 }
 0xa81   : > { %6547 = vadd.xlane.f32.xlu0 %v11524_v23  ;;  %v11528_v35 = vadd.f32 %v6500_v53, %v11396_v5 }
 0xa83   : > { %6549 = vadd.xlane.f32.xlu1 %v11528_v35 }
 0xab1   : > { %v6520_v22 = vpop.xlane.xlu0 %6519 }
 0xab2   : > { %v6551_v0 = vmul.f32 0.0078125, %v6520_v22 }
 0xab3   : > { %v6522_v28 = vpop.xlane.xlu1 %6521 }
 0xab4   : > { %v11532_v21 = vsub.f32 %v11454_v25, %v6551_v0  ;;  %v6552_v48 = vmul.f32 0.0078125, %v6522_v28 }
 0xab6   : > { %v11535_v44 = vsub.f32 %v11458_v3, %v6552_v48  ;;  %v6583_v14 = vmul.f32 %v11532_v21, %v11532_v21 }
 0xab8   : > { %6599 = vadd.xlane.f32.xlu0 %v6583_v14  ;;  %v6584_v5 = vmul.f32 %v11535_v44, %v11535_v44 }
 0xab9   : > { %v6524_v1 = vpop.xlane.xlu0 %6523 }
 0xaba   : > { %v6553_v10 = vmul.f32 0.0078125, %v6524_v1  ;;  %6601 = vadd.xlane.f32.xlu1 %v6584_v5 }
 0xabb   : > { %v6526_v40 = vpop.xlane.xlu1 %6525 }
 0xabc   : > { %v11542_v42 = vsub.f32 %v11464_v32, %v6553_v10  ;;  %v6554_v25 = vmul.f32 0.0078125, %v6526_v40 }
 0xabe   : > { %v11545_v43 = vsub.f32 %v11468_v6, %v6554_v25  ;;  %v6585_v3 = vmul.f32 %v11542_v42, %v11542_v42 }
 0xac0   : > { %6603 = vadd.xlane.f32.xlu0 %v6585_v3  ;;  %v6586_v12 = vmul.f32 %v11545_v43, %v11545_v43 }
 0xac1   : > { %v6528_v9 = vpop.xlane.xlu0 %6527 }
 0xac2   : > { %v6555_v55 = vmul.f32 0.0078125, %v6528_v9  ;;  %6605 = vadd.xlane.f32.xlu1 %v6586_v12 }
 0xac3   : > { %v6530_v13 = vpop.xlane.xlu1 %6529 }
 0xac4   : > { %v11552_v52 = vsub.f32 %v11474_v17, %v6555_v55  ;;  %v6556_v32 = vmul.f32 0.0078125, %v6530_v13  ;;  %v11614_v55 = vld [vmem:[%s11982_s4] ss:$0 sm:$0xff] }
 0xac6   : > { %v11555_v30 = vsub.f32 %v11478_v31, %v6556_v32  ;;  %v6587_v6 = vmul.f32 %v11552_v52, %v11552_v52 }
 0xac8   : > { %6607 = vadd.xlane.f32.xlu0 %v6587_v6  ;;  %v6588_v45 = vmul.f32 %v11555_v30, %v11555_v30 }
 0xac9   : > { %v6532_v60 = vpop.xlane.xlu0 %6531 }
 0xaca   : > { %v6557_v47 = vmul.f32 0.0078125, %v6532_v60  ;;  %6609 = vadd.xlane.f32.xlu1 %v6588_v45  ;;  %v11620_v45 = vld [vmem:[%s11983_s23] ss:$0 sm:$0xff] }
 0xacb   : > { %v6534_v27 = vpop.xlane.xlu1 %6533 }
 0xacc   : > { %v11562_v58 = vsub.f32 %v11484_v51, %v6557_v47  ;;  %v6558_v17 = vmul.f32 0.0078125, %v6534_v27 }
 0xace   : > { %v11565_v39 = vsub.f32 %v11488_v63, %v6558_v17  ;;  %v6589_v31 = vmul.f32 %v11562_v58, %v11562_v58 }
 0xad0   : > { %6611 = vadd.xlane.f32.xlu0 %v6589_v31  ;;  %v6590_v18 = vmul.f32 %v11565_v39, %v11565_v39 }
 0xad1   : > { %v6536_v46 = vpop.xlane.xlu0 %6535 }
 0xad2   : > { %v6559_v8 = vmul.f32 0.0078125, %v6536_v46  ;;  %6613 = vadd.xlane.f32.xlu1 %v6590_v18 }
 0xad3   : > { %v6538_v36 = vpop.xlane.xlu1 %6537 }
 0xad4   : > { %v11572_v38 = vsub.f32 %v11494_v49, %v6559_v8  ;;  %v6560_v51 = vmul.f32 0.0078125, %v6538_v36 }
 0xad6   : > { %v11575_v54 = vsub.f32 %v11498_v61, %v6560_v51  ;;  %v6591_v63 = vmul.f32 %v11572_v38, %v11572_v38 }
 0xad8   : > { %6615 = vadd.xlane.f32.xlu0 %v6591_v63  ;;  %v6592_v37 = vmul.f32 %v11575_v54, %v11575_v54 }
 0xad9   : > { %v6540_v33 = vpop.xlane.xlu0 %6539 }
 0xada   : > { %v6561_v7 = vmul.f32 0.0078125, %v6540_v33  ;;  %6617 = vadd.xlane.f32.xlu1 %v6592_v37 }
 0xadb   : > { %v6542_v34 = vpop.xlane.xlu1 %6541 }
 0xadc   : > { %v11582_v29 = vsub.f32 %v11504_v56, %v6561_v7  ;;  %v6562_v49 = vmul.f32 0.0078125, %v6542_v34 }
 0xade   : > { %v11585_v59 = vsub.f32 %v11508_v50, %v6562_v49  ;;  %v6593_v61 = vmul.f32 %v11582_v29, %v11582_v29 }
 0xae0   : > { %6619 = vadd.xlane.f32.xlu0 %v6593_v61  ;;  %v6594_v11 = vmul.f32 %v11585_v59, %v11585_v59 }
 0xae2   : > { %6621 = vadd.xlane.f32.xlu1 %v6594_v11 }
 0xb06   : > { %v6544_v24 = vpop.xlane.xlu0 %6543 }
 0xb07   : > { %v6563_v26 = vmul.f32 0.0078125, %v6544_v24 }
 0xb08   : > { %v6546_v57 = vpop.xlane.xlu1 %6545 }
 0xb09   : > { %v11592_v20 = vsub.f32 %v11514_v15, %v6563_v26  ;;  %v6564_v56 = vmul.f32 0.0078125, %v6546_v57 }
 0xb0b   : > { %v11595_v41 = vsub.f32 %v11518_v2, %v6564_v56  ;;  %v6595_v50 = vmul.f32 %v11592_v20, %v11592_v20 }
 0xb0d   : > { %6623 = vadd.xlane.f32.xlu0 %v6595_v50  ;;  %v6596_v62 = vmul.f32 %v11595_v41, %v11595_v41 }
 0xb0e   : > { %v6548_v4 = vpop.xlane.xlu0 %6547 }
 0xb0f   : > { %v6565_v19 = vmul.f32 0.0078125, %v6548_v4  ;;  %6625 = vadd.xlane.f32.xlu1 %v6596_v62 }
 0xb10   : > { %v6550_v16 = vpop.xlane.xlu1 %6549 }
 0xb11   : > { %v11602_v53 = vsub.f32 %v11524_v23, %v6565_v19  ;;  %v6566_v15 = vmul.f32 0.0078125, %v6550_v16 }
 0xb13   : > { %v11605_v22 = vsub.f32 %v11528_v35, %v6566_v15  ;;  %v6597_v2 = vmul.f32 %v11602_v53, %v11602_v53 }
 0xb15   : > { %6627 = vadd.xlane.f32.xlu0 %v6597_v2  ;;  %v6598_v0 = vmul.f32 %v11605_v22, %v11605_v22 }
 0xb17   : > { %6629 = vadd.xlane.f32.xlu1 %v6598_v0 }
 0xb45   : > { %v6600_v28 = vpop.xlane.xlu0 %6599 }
 0xb46   : > { %v6631_v48 = vmul.f32 0.0078125, %v6600_v28 }
 0xb47   : > { %v6602_v14 = vpop.xlane.xlu1 %6601 }
 0xb48   : > { %v6647_v5 = vadd.f32 1e-05, %v6631_v48  ;;  %v6632_v1 = vmul.f32 0.0078125, %v6602_v14 }
 0xb4a   : > { %8737 = vrsqrt.f32 %v6647_v5  ;;  %v6648_v23 = vadd.f32 1e-05, %v6632_v1 }
 0xb4c   : > { %8739 = vrsqrt.f32 %v6648_v23 }
 0xb4d   : > { %v6604_v10 = vpop.xlane.xlu0 %6603 }
 0xb4e   : > { %v6633_v40 = vmul.f32 0.0078125, %v6604_v10 }
 0xb4f   : > { %v6606_v35 = vpop.xlane.xlu1 %6605 }
 0xb50   : > { %v6649_v25 = vadd.f32 1e-05, %v6633_v40  ;;  %v6634_v3 = vmul.f32 0.0078125, %v6606_v35 }
 0xb52   : > { %8741 = vrsqrt.f32 %v6649_v25  ;;  %v6650_v12 = vadd.f32 1e-05, %v6634_v3 }
 0xb54   : > { %v8738_v9 = vpop.eup %8737  ;;  %8743 = vrsqrt.f32 %v6650_v12 }
 0xb55   : > { %v6679_v13 = vmul.f32 %v8738_v9, %v11532_v21  ;;  %v6608_v32 = vpop.xlane.xlu0 %6607 }
 0xb56   : > { %v8740_v6 = vpop.eup %8739  ;;  %v6635_v60 = vmul.f32 0.0078125, %v6608_v32 }
 0xb57   : > { %v6702_v47 = vmul.f32 %v11614_v55, %v6679_v13  ;;  %v6680_v27 = vmul.f32 %v8740_v6, %v11535_v44  ;;  %v6610_v17 = vpop.xlane.xlu1 %6609 }
 0xb58   : > { %v6651_v31 = vadd.f32 1e-05, %v6635_v60  ;;  %v6636_v18 = vmul.f32 0.0078125, %v6610_v17 }
 0xb59   : > { %v6725_v46 = vadd.f32 %v11620_v45, %v6702_v47  ;;  %v6703_v8 = vmul.f32 %v11614_v55, %v6680_v27 }
 0xb5a   : > { %8745 = vrsqrt.f32 %v6651_v31  ;;  %v6652_v21 = vadd.f32 1e-05, %v6636_v18 }
 0xb5b   : > { %6741 = vst [vmem:[%s11627_s12] sm:$0xff] %v6725_v46  ;;  %v6726_v36 = vadd.f32 %v11620_v45, %v6703_v8 }
 0xb5c   : > { %v8742_v51 = vpop.eup %8741  ;;  %8747 = vrsqrt.f32 %v6652_v21 }
 0xb5d   : > { %6742 = vst [vmem:[%s11627_s12 + $0x8] sm:$0xff] %v6726_v36  ;;  %v6681_v44 = vmul.f32 %v8742_v51, %v11542_v42  ;;  %v6612_v63 = vpop.xlane.xlu0 %6611 }
 0xb5e   : > { %v8744_v37 = vpop.eup %8743  ;;  %v6637_v33 = vmul.f32 0.0078125, %v6612_v63 }
 0xb5f   : > { %v6704_v7 = vmul.f32 %v11614_v55, %v6681_v44  ;;  %v6682_v34 = vmul.f32 %v8744_v37, %v11545_v43  ;;  %v6614_v49 = vpop.xlane.xlu1 %6613 }
 0xb60   : > { %v6653_v61 = vadd.f32 1e-05, %v6637_v33  ;;  %v6638_v11 = vmul.f32 0.0078125, %v6614_v49 }
 0xb61   : > { %v6727_v24 = vadd.f32 %v11620_v45, %v6704_v7  ;;  %v6705_v26 = vmul.f32 %v11614_v55, %v6682_v34 }
 0xb62   : > { %8749 = vrsqrt.f32 %v6653_v61  ;;  %v6654_v57 = vadd.f32 1e-05, %v6638_v11 }
 0xb63   : > { %6743 = vst [vmem:[%s11627_s12 + $0x10] sm:$0xff] %v6727_v24  ;;  %v6728_v42 = vadd.f32 %v11620_v45, %v6705_v26 }
 0xb64   : > { %v8746_v56 = vpop.eup %8745  ;;  %8751 = vrsqrt.f32 %v6654_v57 }
 0xb65   : > { %6744 = vst [vmem:[%s11627_s12 + $0x18] sm:$0xff] %v6728_v42  ;;  %v6683_v50 = vmul.f32 %v8746_v56, %v11552_v52  ;;  %v6616_v62 = vpop.xlane.xlu0 %6615 }
 0xb66   : > { %v8748_v43 = vpop.eup %8747  ;;  %v6639_v4 = vmul.f32 0.0078125, %v6616_v62 }
 0xb67   : > { %v6706_v19 = vmul.f32 %v11614_v55, %v6683_v50  ;;  %v6684_v16 = vmul.f32 %v8748_v43, %v11555_v30  ;;  %v6618_v15 = vpop.xlane.xlu1 %6617 }
 0xb68   : > { %v6655_v2 = vadd.f32 1e-05, %v6639_v4  ;;  %v6640_v0 = vmul.f32 0.0078125, %v6618_v15 }
 0xb69   : > { %v6729_v28 = vadd.f32 %v11620_v45, %v6706_v19  ;;  %v6707_v48 = vmul.f32 %v11614_v55, %v6684_v16 }
 0xb6a   : > { %8753 = vrsqrt.f32 %v6655_v2  ;;  %v6656_v14 = vadd.f32 1e-05, %v6640_v0 }
 0xb6b   : > { %6745 = vst [vmem:[%s11627_s12 + $0x20] sm:$0xff] %v6729_v28  ;;  %v6730_v52 = vadd.f32 %v11620_v45, %v6707_v48 }
 0xb6c   : > { %v8750_v5 = vpop.eup %8749  ;;  %8755 = vrsqrt.f32 %v6656_v14 }
 0xb6d   : > { %6746 = vst [vmem:[%s11627_s12 + $0x28] sm:$0xff] %v6730_v52  ;;  %v6685_v1 = vmul.f32 %v8750_v5, %v11562_v58  ;;  %v6620_v23 = vpop.xlane.xlu0 %6619 }
 0xb6e   : > { %v8752_v30 = vpop.eup %8751  ;;  %v6641_v10 = vmul.f32 0.0078125, %v6620_v23 }
 0xb6f   : > { %v6708_v40 = vmul.f32 %v11614_v55, %v6685_v1  ;;  %v6686_v35 = vmul.f32 %v8752_v30, %v11565_v39  ;;  %v6622_v25 = vpop.xlane.xlu1 %6621 }
 0xb70   : > { %v6657_v3 = vadd.f32 1e-05, %v6641_v10  ;;  %v6642_v12 = vmul.f32 0.0078125, %v6622_v25 }
 0xb71   : > { %v6731_v9 = vadd.f32 %v11620_v45, %v6708_v40  ;;  %v6709_v13 = vmul.f32 %v11614_v55, %v6686_v35 }
 0xb72   : > { %8757 = vrsqrt.f32 %v6657_v3  ;;  %v6658_v32 = vadd.f32 1e-05, %v6642_v12 }
 0xb73   : > { %6747 = vst [vmem:[%s11627_s12 + $0x30] sm:$0xff] %v6731_v9  ;;  %v6732_v58 = vadd.f32 %v11620_v45, %v6709_v13 }
 0xb74   : > { %v8754_v6 = vpop.eup %8753  ;;  %8759 = vrsqrt.f32 %v6658_v32 }
 0xb75   : > { %6748 = vst [vmem:[%s11627_s12 + $0x38] sm:$0xff] %v6732_v58  ;;  %v6687_v60 = vmul.f32 %v8754_v6, %v11572_v38 }
 0xb76   : > { %v8756_v39 = vpop.eup %8755 }
 0xb77   : > { %v6710_v47 = vmul.f32 %v11614_v55, %v6687_v60  ;;  %v6688_v27 = vmul.f32 %v8756_v39, %v11575_v54 }
 0xb79   : > { %v6733_v17 = vadd.f32 %v11620_v45, %v6710_v47  ;;  %v6711_v31 = vmul.f32 %v11614_v55, %v6688_v27 }
 0xb7b   : > { %6749 = vst [vmem:[%s11627_s12 + $0x40] sm:$0xff] %v6733_v17  ;;  %v6734_v18 = vadd.f32 %v11620_v45, %v6711_v31 }
 0xb7c   : > { %v8758_v46 = vpop.eup %8757 }
 0xb7d   : > { %6750 = vst [vmem:[%s11627_s12 + $0x48] sm:$0xff] %v6734_v18  ;;  %v6689_v8 = vmul.f32 %v8758_v46, %v11582_v29 }
 0xb7e   : > { %v8760_v21 = vpop.eup %8759 }
 0xb7f   : > { %v6712_v38 = vmul.f32 %v11614_v55, %v6689_v8  ;;  %v6690_v36 = vmul.f32 %v8760_v21, %v11585_v59 }
 0xb81   : > { %v6735_v51 = vadd.f32 %v11620_v45, %v6712_v38  ;;  %v6713_v54 = vmul.f32 %v11614_v55, %v6690_v36 }
 0xb83   : > { %6751 = vst [vmem:[%s11627_s12 + $0x50] sm:$0xff] %v6735_v51  ;;  %v6736_v44 = vadd.f32 %v11620_v45, %v6713_v54 }
 0xb85   : > { %6752 = vst [vmem:[%s11627_s12 + $0x58] sm:$0xff] %v6736_v44 }
 0xb9a   : > { %v6624_v63 = vpop.xlane.xlu0 %6623 }
 0xb9b   : > { %v6643_v37 = vmul.f32 0.0078125, %v6624_v63 }
 0xb9c   : > { %v6626_v33 = vpop.xlane.xlu1 %6625 }
 0xb9d   : > { %v6659_v7 = vadd.f32 1e-05, %v6643_v37  ;;  %v6644_v34 = vmul.f32 0.0078125, %v6626_v33 }
 0xb9f   : > { %8761 = vrsqrt.f32 %v6659_v7  ;;  %v6660_v29 = vadd.f32 1e-05, %v6644_v34 }
 0xba1   : > { %8763 = vrsqrt.f32 %v6660_v29 }
 0xba2   : > { %v6628_v49 = vpop.xlane.xlu0 %6627 }
 0xba3   : > { %v6645_v61 = vmul.f32 0.0078125, %v6628_v49 }
 0xba4   : > { %v6630_v59 = vpop.xlane.xlu1 %6629 }
 0xba5   : > { %v6661_v11 = vadd.f32 1e-05, %v6645_v61  ;;  %v6646_v24 = vmul.f32 0.0078125, %v6630_v59 }
 0xba7   : > { %8765 = vrsqrt.f32 %v6661_v11  ;;  %v6662_v26 = vadd.f32 1e-05, %v6646_v24 }
 0xba9   : > { %v8762_v57 = vpop.eup %8761  ;;  %8767 = vrsqrt.f32 %v6662_v26 }
 0xbaa   : > { %v6691_v42 = vmul.f32 %v8762_v57, %v11592_v20 }
 0xbab   : > { %v8764_v56 = vpop.eup %8763 }
 0xbac   : > { %v6714_v50 = vmul.f32 %v11614_v55, %v6691_v42  ;;  %v6692_v62 = vmul.f32 %v8764_v56, %v11595_v41 }
 0xbae   : > { %v6737_v43 = vadd.f32 %v11620_v45, %v6714_v50  ;;  %v6715_v4 = vmul.f32 %v11614_v55, %v6692_v62 }
 0xbb0   : > { %6753 = vst [vmem:[%s11627_s12 + $0x60] sm:$0xff] %v6737_v43  ;;  %v6738_v19 = vadd.f32 %v11620_v45, %v6715_v4 }
 0xbb1   : > { %v8766_v16 = vpop.eup %8765 }
 0xbb2   : > { %6754 = vst [vmem:[%s11627_s12 + $0x68] sm:$0xff] %v6738_v19  ;;  %v6693_v15 = vmul.f32 %v8766_v16, %v11602_v53 }
 0xbb3   : > { %v8768_v20 = vpop.eup %8767 }
 0xbb4   : > { %v6716_v2 = vmul.f32 %v11614_v55, %v6693_v15  ;;  %v6694_v41 = vmul.f32 %v8768_v20, %v11605_v22 }
 0xbb6   : > { %v6739_v0 = vadd.f32 %v11620_v45, %v6716_v2  ;;  %v6717_v28 = vmul.f32 %v11614_v55, %v6694_v41 }
 0xbb8   : > { %6755 = vst [vmem:[%s11627_s12 + $0x70] sm:$0xff] %v6739_v0  ;;  %v6740_v53 = vadd.f32 %v11620_v45, %v6717_v28 }
 0xbba   : > { %6756 = vst [vmem:[%s11627_s12 + $0x78] sm:$0xff] %v6740_v53 }
 0xbbb   : > { %8998 = shalt.err (!%p8995_p8)
}
 0xbbc   : > { %s8999_s6 = scalar_lea.hbm %s11690_s9, 2048  ;;  %s9003_s0 = scalar_lea.hbm %s11984_s25, 4096 }
 0xbbd   : > { %p9000_p4 = scmp.ne.s32.totalorder %s11690_s9, %s8999_s6  ;;  %p9004_p1 = scmp.lt.u32.totalorder %s11690_s9, %s11984_s25 }
 0xbbe   : > { %p9005_p11 = scmp.lt.u32.totalorder %s9003_s0, %s8999_s6  ;;  %p9007_p2 = scmp.lt.u32.totalorder %s8999_s6, %s11690_s9 }
 0xbbf   : > { %p9001_p3 = pnand %p9000_p4, %p11985_p13 }
 0xbc0   : > { %p9006_p12 = por %p9005_p11, %p9004_p1 }
 0xbc1   : > { %p9002_p10 = pneg %p9001_p3 }
 0xbc2   : > { %p9008_p6 = por %p9007_p2, %p9006_p12 }
 0xbc4   : > { %p9009_p9 = pnand %p9008_p6, %p9002_p10 }
 0xbc6   : > { %9012 = shalt.err (!%p9009_p9)
}
 0xbc7   : > { %s9087_s14 = smov 128   ;;  %s9088_s23 = smov 8  }
 0xbc8   : > { %7799 = dma.vmem_to_hbm [thread:$0]  (%p11985_p13), %s11692_s13, 2048, %s11690_s9, %s6758_s27, %s9087_s14, %s9087_s14, %s9088_s23  }
 0xbc9 PF: > { %s6787_s12 = sand.u32 1, %s9055_s21   ;;  %p11986_p0 = scmp.ne.s32.totalorder %s11857_s11, 0 }
 0xbca   : > { %p11987_p5 = scmp.ge.s32.totalorder %s9067_s24, 2  ;;  %s6788_s10 = scalar_lea.sflag [#allocation4], %s6787_s12 }
 0xbcc   : > { %p7825_p7 = pnand %p11987_p5, %p11986_p0 }
 0xbce   : > { %9050 = dma.done.wait (!%p7825_p7), %s6788_s10, 2048  }
 0xbcf   : > { %9052 = vsyncadd (!%p7825_p7), %s6788_s10, 4294965248  ;;  %s11988_s19 = sld [smem:[#allocation21_spill]]  ;;  %s11989_s23 = sld [smem:[#allocation22_spill]] }
 0xbd0   : > { %p34_p8 = scmp.ge.s32.totalorder %s9343_s29, 4   ;;  %s11990_s21 = smov %s9059_s22 }
 0xbd1   : > { %s11992_s24 = smov %s9343_s29 }
 0xbd2   :  { %36 = sbr.rel (!%p34_p8) target bundleno = 23 (0x17), region = 162 }
 0xbd5   : > { %s11991_s22 = smov %s11988_s19 }
 0xbd9   :  { %6793 = vsyncpa [#allocation3], 1 }
 0xbda   :  { %6795 = vsyncpa [#allocation3 + $0x1], 1 }
 0xbdb   :  { %6796 = vsyncpa [#allocation6], 1 }
 0xbdc   :  { %6798 = vsyncpa [#allocation6 + $0x1], 1 }
 0xbdd   :  { %6799 = vsyncpa [#allocation9], 1 }
 0xbde   :  { %6800 = vsyncpa [#allocation12], 1 }
 0xbdf   :  { %6801 = vsyncpa [#allocation4], 1 }
 0xbe0   :  { %6803 = vsyncpa [#allocation4 + $0x1], 1 }

// kernel: tpu_custom_call.1
= control target key start
LH: loop header
LB: loop body
LE: loop exit
PB: predicated region body
PF: predicated region fallthrough
CT: control target
= control target key end

     0   :  { %s11739_s0 = inlined_call_operand.hbm [shape: f32[16,16,128], index: 0, kind: input, shape index: {}]   ;;  %s11740_s1 = inlined_call_operand.hbm [shape: f32[16,16,128], index: 1, kind: input, shape index: {}]   ;;  %s11741_s2 = inlined_call_operand.hbm [shape: bf16[128,256], index: 2, kind: input, shape index: {}]   ;;  %s11742_s3 = inlined_call_operand.vmem [shape: f32[1,256], index: 3, kind: input, shape index: {}]   ;;  %s11743_s4 = inlined_call_operand.hbm [shape: bf16[128,128], index: 4, kind: input, shape index: {}]   ;;  %s11744_s5 = inlined_call_operand.vmem [shape: f32[1,128], index: 5, kind: input, shape index: {}]   ;;  %s11745_s6 = inlined_call_operand.hbm [shape: bf16[128,128], index: 6, kind: input, shape index: {}]   ;;  %s11746_s7 = inlined_call_operand.vmem [shape: f32[1,128], index: 7, kind: input, shape index: {}]   ;;  %s11747_s8 = inlined_call_operand.hbm [shape: bf16[128,256], index: 8, kind: input, shape index: {}]   ;;  %s11748_s9 = inlined_call_operand.vmem [shape: f32[1,256], index: 9, kind: input, shape index: {}]   ;;  %s11749_s10 = inlined_call_operand.hbm [shape: bf16[256,128], index: 10, kind: input, shape index: {}]   ;;  %s11750_s11 = inlined_call_operand.vmem [shape: f32[1,128], index: 11, kind: input, shape index: {}]   ;;  %s11751_s12 = inlined_call_operand.vmem [shape: f32[1,128], index: 12, kind: input, shape index: {}]   ;;  %s11752_s13 = inlined_call_operand.vmem [shape: f32[1,128], index: 13, kind: input, shape index: {}]   ;;  %s11753_s14 = inlined_call_operand.vmem [shape: f32[1,128], index: 14, kind: input, shape index: {}]   ;;  %s11754_s15 = inlined_call_operand.vmem [shape: f32[1,128], index: 15, kind: input, shape index: {}]   ;;  %s11755_s16 = inlined_call_operand.hbm [shape: f32[16,16,128], index: 16, kind: output, shape index: {}]  }
   0x1   :  { %11828 = sst [smem:[#allocation73_spill]] %s11739_s0 }
   0x2   :  { %11829 = sst [smem:[#allocation74_spill]] %s11741_s2 }
   0x3   :  { %11830 = sst [smem:[#allocation75_spill]] %s11743_s4 }
   0x4   :  { %11831 = sst [smem:[#allocation76_spill]] %s11745_s6 }
   0x5   :  { %11832 = sst [smem:[#allocation77_spill]] %s11747_s8 }
   0x6   :  { %11833 = sst [smem:[#allocation78_spill]] %s11748_s9 }
   0x7   :  { %11834 = sst [smem:[#allocation79_spill]] %s11749_s10 }
   0x8   :  { %11835 = sst [smem:[#allocation80_spill]] %s11750_s11 }
   0x9   :  { %11836 = sst [smem:[#allocation81_spill]] %s11751_s12 }
   0xa   :  { %11837 = sst [smem:[#allocation82_spill]] %s11752_s13 }
   0xb   :  { %11838 = sst [smem:[#allocation83_spill]] %s11753_s14 }
   0xc   :  { %11839 = sst [smem:[#allocation84_spill]] %s11754_s15 }
   0xd   :  { %11840 = sst [smem:[#allocation85_spill]] %s11755_s16 }
   0xe   :  { %21 = vsyncpa [#allocation3], 0 }
   0xf   :  { %23 = vsyncpa [#allocation3 + $0x1], 0 }
  0x10   :  { %24 = vsyncpa [#allocation6], 0 }
  0x11   :  { %26 = vsyncpa [#allocation6 + $0x1], 0 }
  0x12   :  { %27 = vsyncpa [#allocation9], 0 }
  0x13   :  { %28 = vsyncpa [#allocation12], 0 }
  0x14   :  { %29 = vsyncpa [#allocation4], 0 }
  0x15   :  { %31 = vsyncpa [#allocation4 + $0x1], 0  ;;  %s9174_s21 = smov 0   ;;  %s9176_s22 = smov 0  }
  0x16   :  { %s9178_s23 = smov 0   ;;  %s9180_s24 = smov 0  }
  0x17 LB: > { %11841 = sst [smem:[#allocation21_spill]] %s9063_s23  ;;  %s9069_s25 = smov [#allocation7]   ;;  %s9067_s24 = sphi %s9180_s24, %s11992_s24   ;;  %s9063_s23 = sphi %s9178_s23, %s11989_s23   ;;  %s9059_s22 = sphi %s9176_s22, %s11991_s22   ;;  %s9055_s21 = sphi %s9174_s21, %s11990_s21  }
  0x18   : > { %s426_s26 = sshll.u32 %s9069_s25, 4  ;;  %s9195_s27 = sadd.s32 4294967295, %s9067_s24   ;;  %s9200_s26 = int_to_ptr.vmem [resolvable:$true] %s426_s26 }
  0x19   : > { %p6916_p0 = scmp.ge.s32.totalorder %s9067_s24, 1  ;;  %p11760_p1 = scmp.eq.s32.totalorder %s9195_s27, 0 }
  0x1a   : > { %p414_p2 = scmp.lt.s32.totalorder %s9067_s24, 3  ;;  %s9070_s29 = smov [#allocation8]  }
  0x1b   : > { %s442_s30 = sshll.u32 %s9070_s29, 4  ;;  %s9071_s17 = smov [#allocation11]   ;;  %s9215_s30 = int_to_ptr.vmem [resolvable:$true] %s442_s30 }
  0x1c   : > { %p9202_p3 = pnand %p6916_p0, %p414_p2  ;;  %s9217_s18 = sshll.u32 %s9071_s17, 4  ;;  %s475_s18 = int_to_ptr.vmem [resolvable:$true] %s9217_s18 }
  0x1d   : > { %s11844_s2 = sld [smem:[#allocation74_spill]] }
  0x1e   : > { %s11842_s28 = scalar_select %p9202_p3, 1, 0 }
  0x1f   : > { %p7801_p5 = pneg %p9202_p3 }
  0x21   : > { %p9211_p6 = pnand %p7801_p5, %p11760_p1 }
  0x23   : > { %s8785_s25 = scalar_lea.hbm %s11844_s2, 2048  ;;  %p9227_p8 = pneg %p9211_p6 }
  0x24   : > { %p8786_p7 = scmp.ne.s32.totalorder %s11844_s2, %s8785_s25  ;;  %p8792_p11 = scmp.lt.u32.totalorder %s8785_s25, %s11844_s2 }
  0x26   : > { %p8788_p9 = pnand %p9227_p8, %p8786_p7 }
  0x28   : > { %p8789_p10 = pneg %p8788_p9 }
  0x2a   : > { %p8794_p12 = pnand %p8792_p11, %p8789_p10 }
  0x2c   : > { %8797 = shalt.err (!%p8794_p12)
}
  0x2d   : > { %s8798_s15 = scalar_lea.vmem %s9200_s26, 2048  ;;  %p8806_p5 = scmp.lt.s32.totalorder %s9200_s26, %s9200_s26 }
  0x2e   : > { %p8799_p13 = scmp.ne.s32.totalorder %s9200_s26, %s8798_s15  ;;  %p8807_p4 = scmp.lt.s32.totalorder %s8798_s15, %s8798_s15 }
  0x30   : > { %p8801_p0 = pnand %p8799_p13, %p9227_p8  ;;  %p8808_p7 = por %p8807_p4, %p8806_p5 }
  0x32   : > { %p8802_p2 = pneg %p8801_p0 }
  0x34   : > { %p8809_p9 = pnand %p8808_p7, %p8802_p2 }
  0x36   : > { %8812 = shalt.err (!%p8809_p9)
}
  0x37   : > { %s11758_s16 = smov 128   ;;  %s11766_s14 = smov 8  }
  0x38   : > { %7804 = dma.hbm_to_vmem [thread:$0]  (!%p9211_p6), %s11844_s2, 2048, %s9200_s26, [#allocation6], %s11758_s16, %s11758_s16, %s11766_s14  }
  0x39   : > { %s11846_s4 = sld [smem:[#allocation75_spill]] }
  0x3f   : > { %s8813_s15 = scalar_lea.hbm %s11846_s4, 1024 }
  0x40   : > { %p8814_p4 = scmp.ne.s32.totalorder %s11846_s4, %s8813_s15  ;;  %p8820_p12 = scmp.lt.u32.totalorder %s8813_s15, %s11846_s4 }
  0x42   : > { %p8816_p10 = pnand %p8814_p4, %p9227_p8 }
  0x44   : > { %p8817_p11 = pneg %p8816_p10 }
  0x46   : > { %p8822_p13 = pnand %p8820_p12, %p8817_p11 }
  0x48   : > { %8825 = shalt.err (!%p8822_p13)
}
  0x49   : > { %s8826_s26 = scalar_lea.vmem %s9215_s30, 1024  ;;  %p8834_p7 = scmp.lt.s32.totalorder %s9215_s30, %s9215_s30 }
  0x4a   : > { %p8827_p0 = scmp.ne.s32.totalorder %s9215_s30, %s8826_s26  ;;  %p8835_p9 = scmp.lt.s32.totalorder %s8826_s26, %s8826_s26 }
  0x4c   : > { %p8829_p2 = pnand %p8827_p0, %p9227_p8  ;;  %p8836_p4 = por %p8835_p9, %p8834_p7 }
  0x4e   : > { %p8830_p5 = pneg %p8829_p2 }
  0x50   : > { %p8837_p10 = pnand %p8836_p4, %p8830_p5 }
  0x52   : > { %8840 = shalt.err (!%p8837_p10)
}
  0x53   : > { %s11762_s9 = smov 64   ;;  %s11764_s11 = smov 4  }
  0x54   : > { %7807 = dma.hbm_to_vmem [thread:$0]  (!%p9211_p6), %s11846_s4, 1024, %s9215_s30, [#allocation9], %s11762_s9, %s11762_s9, %s11764_s11  }
  0x55   : > { %s11847_s8 = sld [smem:[#allocation77_spill]] }
  0x5b   : > { %s8841_s25 = scalar_lea.hbm %s11847_s8, 2048 }
  0x5c   : > { %p8842_p11 = scmp.ne.s32.totalorder %s11847_s8, %s8841_s25  ;;  %p8848_p0 = scmp.lt.u32.totalorder %s8841_s25, %s11847_s8 }
  0x5e   : > { %p8844_p12 = pnand %p8842_p11, %p9227_p8 }
  0x60   : > { %p8845_p13 = pneg %p8844_p12 }
  0x62   : > { %p8850_p2 = pnand %p8848_p0, %p8845_p13 }
  0x64   : > { %8853 = shalt.err (!%p8850_p2)
}
  0x65   : > { %s8854_s12 = scalar_lea.vmem %s475_s18, 2048  ;;  %p8862_p4 = scmp.lt.s32.totalorder %s475_s18, %s475_s18 }
  0x66   : > { %p8855_p5 = scmp.ne.s32.totalorder %s475_s18, %s8854_s12  ;;  %p8863_p10 = scmp.lt.s32.totalorder %s8854_s12, %s8854_s12 }
  0x68   : > { %p8857_p7 = pnand %p8855_p5, %p9227_p8  ;;  %p8864_p1 = por %p8863_p10, %p8862_p4 }
  0x6a   : > { %p8858_p9 = pneg %p8857_p7 }
  0x6c   : > { %p8865_p3 = pnand %p8864_p1, %p8858_p9 }
  0x6e   : > { %8868 = shalt.err (!%p8865_p3)
}
  0x6f   : > { %s11848_s30 = smov 128   ;;  %s9076_s19 = smov [#allocation10]  }
  0x70   : > { %7813 = dma.hbm_to_vmem [thread:$0]  (!%p9211_p6), %s11847_s8, 2048, %s475_s18, [#allocation12], %s11848_s30, %s11848_s30, %s11766_s14  }
  0x71   : > { %s458_s20 = sshll.u32 %s9076_s19, 4  ;;  %s9077_s25 = smov [#allocation13]   ;;  %s459_s20 = int_to_ptr.vmem [resolvable:$true] %s458_s20 }
  0x72   : > { %s490_s17 = sshll.u32 %s9077_s25, 4  ;;  %s11849_s6 = sld [smem:[#allocation76_spill]]  ;;  %s491_s17 = int_to_ptr.vmem [resolvable:$true] %s490_s17 }
  0x78   : > { %s8869_s12 = scalar_lea.hbm %s11849_s6, 1024 }
  0x79   : > { %p8870_p1 = scmp.ne.s32.totalorder %s11849_s6, %s8869_s12  ;;  %p8876_p12 = scmp.lt.u32.totalorder %s8869_s12, %s11849_s6 }
  0x7b   : > { %p8872_p3 = pnand %p8870_p1, %p9227_p8 }
  0x7d   : > { %p8873_p11 = pneg %p8872_p3 }
  0x7f   : > { %p8878_p13 = pnand %p8876_p12, %p8873_p11 }
  0x81   : > { %8881 = shalt.err (!%p8878_p13)
}
  0x82   : > { %s8882_s18 = scalar_lea.vmem %s459_s20, 1024  ;;  %p8890_p7 = scmp.lt.s32.totalorder %s459_s20, %s459_s20 }
  0x83   : > { %p8883_p0 = scmp.ne.s32.totalorder %s459_s20, %s8882_s18  ;;  %p8891_p9 = scmp.lt.s32.totalorder %s8882_s18, %s8882_s18 }
  0x85   : > { %p8885_p2 = pnand %p8883_p0, %p9227_p8  ;;  %p8892_p4 = por %p8891_p9, %p8890_p7 }
  0x87   : > { %p8886_p5 = pneg %p8885_p2 }
  0x89   : > { %p8893_p10 = pnand %p8892_p4, %p8886_p5 }
  0x8b   : > { %8896 = shalt.err (!%p8893_p10)
}
  0x8c   : > { %s11850_s9 = smov 4   ;;  %s11851_s11 = smov 64  }
  0x8d   : > { %7810 = dma.hbm_to_vmem [thread:$0]  (!%p9211_p6), %s11849_s6, 1024, %s459_s20, [#allocation9], %s11851_s11, %s11851_s11, %s11850_s9  }
  0x8e   : > { %s11852_s10 = sld [smem:[#allocation79_spill]] }
  0x94   : > { %s8897_s15 = scalar_lea.hbm %s11852_s10, 2048 }
  0x95   : > { %p8898_p1 = scmp.ne.s32.totalorder %s11852_s10, %s8897_s15  ;;  %p8904_p12 = scmp.lt.u32.totalorder %s8897_s15, %s11852_s10 }
  0x97   : > { %p8900_p3 = pnand %p8898_p1, %p9227_p8 }
  0x99   : > { %p8901_p11 = pneg %p8900_p3 }
  0x9b   : > { %p8906_p13 = pnand %p8904_p12, %p8901_p11 }
  0x9d   : > { %8909 = shalt.err (!%p8906_p13)
}
  0x9e   : > { %s8910_s2 = scalar_lea.vmem %s491_s17, 2048  ;;  %p8918_p7 = scmp.lt.s32.totalorder %s491_s17, %s491_s17 }
  0x9f   : > { %p8911_p0 = scmp.ne.s32.totalorder %s491_s17, %s8910_s2  ;;  %p8919_p9 = scmp.lt.s32.totalorder %s8910_s2, %s8910_s2 }
  0xa1   : > { %p8913_p2 = pnand %p8911_p0, %p9227_p8  ;;  %p8920_p4 = por %p8919_p9, %p8918_p7 }
  0xa3   : > { %p8914_p5 = pneg %p8913_p2 }
  0xa5   : > { %p8921_p10 = pnand %p8920_p4, %p8914_p5 }
  0xa7   : > { %8924 = shalt.err (!%p8921_p10)
}
  0xa8   : > { %7816 = dma.hbm_to_vmem [thread:$0]  (!%p9211_p6), %s11852_s10, 2048, %s491_s17, [#allocation12], %s11851_s11, %s11851_s11, %s11850_s9  }
  0xa9   : > { %s6915_s0 = sadd.s32 4294967294, %s9067_s24   ;;  %s9343_s29 = sadd.s32 1, %s9067_s24  }
  0xaa   : > { %s44_s19 = sadd.s32 1, %s9063_s23  ;;  %s41_s25 = ssub.s32 %s9067_s24, %s9343_s29 }
  0xab   : > { %p51_p8 = scmp.ne.s32.totalorder %s9063_s23, %s9059_s22  ;;  %p42_p1 = scmp.eq.s32.totalorder %s41_s25, 0 }
  0xac   : > { %p52_p3 = scmp.eq.s32.totalorder %s9067_s24, 0  ;;  %p57_p11 = scmp.ne.s32.totalorder %s9059_s22, %s9055_s21 }
  0xad   : > { %p401_p12 = scmp.eq.s32.totalorder %s9195_s27, 1  ;;  %p11854_p0 = scmp.eq.s32.totalorder %s9195_s27, 0 }
  0xae   : > { %s9355_s15 = scalar_select %p42_p1, %s9063_s23, %s44_s19  }
  0xaf   : > { %p53_p13 = por %p52_p3, %p51_p8  ;;  %p9359_p2 = por %p11854_p0, %p57_p11 }
  0xb0   : > { %11853 = sst [smem:[#allocation22_spill]] %s9355_s15  ;;  %p9363_p6 = por %p401_p12, %p51_p8 }
  0xb1   : > { %p407_p5 = scmp.eq.s32.totalorder %s6915_s0, 1  ;;  %p7833_p7 = scmp.lt.s32.totalorder %s9067_s24, 2 }
  0xb2   : > { %s11856_s17 = scalar_select %p9363_p6, 1, 0 }
  0xb3   : > { %s519_s9 = sand.u32 1, %s9063_s23   ;;  %p9369_p9 = por %p407_p5, %p57_p11 }
  0xb4   : > { %s9373_s12 = sshll.u32 %s519_s9, 7  ;;  %s7082_s16 = sshll.u32 %s9067_s24, 11 }
  0xb5   : > { %s11857_s11 = scalar_select %p9369_p9, 1, 0 }
  0xb6   : > { %s11858_s20 = sld [smem:[#allocation73_spill]]  ;;  %s523_s0 = scalar_lea.vmem [#allocation2], %s9373_s12 }
  0xb7   : > { %s531_s19 = sshll.u32 %s523_s0, 4  ;;  %p9382_p4 = pnand %p7833_p7, %p53_p13  ;;  %s9386_s19 = int_to_ptr.vmem [resolvable:$true] %s531_s19 }
  0xb8   : > { %s9391_s18 = scalar_lea.hbm %s11740_s1, %s7082_s16  ;;  %s9393_s2 = scalar_lea.sflag [#allocation3], %s519_s9 }
  0xb9   : > { %p8927_p8 = pneg %p9382_p4 }
  0xbc   : > { %s9379_s13 = scalar_lea.hbm %s11858_s20, %s7082_s16  ;;  %s8930_s10 = scalar_lea.hbm %s11858_s20, 4096 }
  0xbd   : > { %s8925_s6 = scalar_lea.hbm %s9379_s13, 2048  ;;  %p8931_p11 = scmp.lt.u32.totalorder %s9379_s13, %s11858_s20 }
  0xbe   : > { %p8926_p10 = scmp.ne.s32.totalorder %s9379_s13, %s8925_s6  ;;  %p8932_p12 = scmp.lt.u32.totalorder %s8930_s10, %s8925_s6 }
  0xbf   : > { %p8934_p0 = scmp.lt.u32.totalorder %s8925_s6, %s9379_s13 }
  0xc0   : > { %p8928_p1 = pnand %p8927_p8, %p8926_p10  ;;  %p8933_p13 = por %p8932_p12, %p8931_p11 }
  0xc2   : > { %p8929_p3 = pneg %p8928_p1  ;;  %p8935_p5 = por %p8934_p0, %p8933_p13 }
  0xc4   : > { %p8936_p7 = pnand %p8935_p5, %p8929_p3 }
  0xc6   : > { %8939 = shalt.err (!%p8936_p7)
}
  0xc7   : > { %s8940_s4 = scalar_lea.vmem %s9386_s19, 2048  ;;  %s9078_s8 = smov [#allocation2]  }
  0xc8   : > { %p8941_p10 = scmp.ne.s32.totalorder %s9386_s19, %s8940_s4  ;;  %s8945_s14 = sshll.u32 %s9078_s8, 4  ;;  %s8946_s14 = int_to_ptr.vmem [resolvable:$false] %s8945_s14 }
  0xc9   : > { %s8947_s23 = scalar_lea.vmem %s8946_s14, 4096  ;;  %p8948_p6 = scmp.lt.s32.totalorder %s9386_s19, %s8946_s14 }
  0xca   : > { %p8943_p1 = pnand %p8941_p10, %p8927_p8  ;;  %p8949_p11 = scmp.lt.s32.totalorder %s8947_s23, %s8940_s4 }
  0xcc   : > { %p8944_p9 = pneg %p8943_p1  ;;  %p8950_p12 = por %p8949_p11, %p8948_p6 }
  0xce   : > { %p8951_p13 = pnand %p8950_p12, %p8944_p9 }
  0xd0   : > { %8954 = shalt.err (!%p8951_p13)
}
  0xd1   : > { %s11860_s6 = smov 8   ;;  %s545_s10 = scalar_lea.vmem [#allocation5], %s9373_s12 }
  0xd2   : > { %7820 = dma.hbm_to_vmem [thread:$0]  (!%p9382_p4), %s9379_s13, 2048, %s9386_s19, %s9393_s2, %s11848_s30, %s11848_s30, %s11860_s6  }
  0xd3   : > { %s553_s15 = sshll.u32 %s545_s10, 4  ;;  %s541_s9 = sand.u32 1, %s9067_s24   ;;  %s9426_s15 = int_to_ptr.vmem [resolvable:$true] %s553_s15 }
  0xd4   : > { %s9428_s16 = scalar_lea.sflag [#allocation6], %s541_s9  ;;  %s8955_s0 = scalar_lea.hbm %s9391_s18, 2048 }
  0xd5   : > { %p8956_p6 = scmp.ne.s32.totalorder %s9391_s18, %s8955_s0  ;;  %s8960_s14 = scalar_lea.hbm %s11740_s1, 4096 }
  0xd6   : > { %p8961_p0 = scmp.lt.u32.totalorder %s9391_s18, %s11740_s1  ;;  %p8962_p5 = scmp.lt.u32.totalorder %s8960_s14, %s8955_s0 }
  0xd7   : > { %p8958_p9 = pnand %p8956_p6, %p8927_p8  ;;  %p8964_p10 = scmp.lt.u32.totalorder %s8955_s0, %s9391_s18 }
  0xd8   : > { %p8963_p7 = por %p8962_p5, %p8961_p0 }
  0xd9   : > { %p8959_p3 = pneg %p8958_p9 }
  0xda   : > { %p8965_p1 = por %p8964_p10, %p8963_p7 }
  0xdc   : > { %p8966_p11 = pnand %p8965_p1, %p8959_p3 }
  0xde   : > { %8969 = shalt.err (!%p8966_p11)
}
  0xdf   : > { %s8970_s12 = scalar_lea.vmem %s9426_s15, 2048  ;;  %s9079_s13 = smov [#allocation5]  }
  0xe0   : > { %p8971_p12 = scmp.ne.s32.totalorder %s9426_s15, %s8970_s12  ;;  %s8975_s19 = sshll.u32 %s9079_s13, 4  ;;  %s8976_s19 = int_to_ptr.vmem [resolvable:$false] %s8975_s19 }
  0xe1   : > { %s8977_s20 = scalar_lea.vmem %s8976_s19, 4096  ;;  %p8978_p9 = scmp.lt.s32.totalorder %s9426_s15, %s8976_s19 }
  0xe2   : > { %p8973_p13 = pnand %p8971_p12, %p8927_p8  ;;  %p8979_p0 = scmp.lt.s32.totalorder %s8977_s20, %s8970_s12 }
  0xe4   : > { %p8974_p6 = pneg %p8973_p13  ;;  %p8980_p5 = por %p8979_p0, %p8978_p9 }
  0xe6   : > { %p8981_p7 = pnand %p8980_p5, %p8974_p6 }
  0xe8   : > { %8984 = shalt.err (!%p8981_p7)
}
  0xe9   : > { %7823 = dma.hbm_to_vmem [thread:$0]  (!%p9382_p4), %s9391_s18, 2048, %s9426_s15, %s9428_s16, %s11848_s30, %s11848_s30, %s11860_s6  }
  0xea   : > { %p11861_p8 = scmp.ne.s32.totalorder %s11842_s28, 0 }
  0xec   : > { %565 = sbr.rel (%p11861_p8) target bundleno = 3017 (0xbc9), region = 84 }
  0xf3   : > { %s9460_s2 = sand.u32 1, %s9059_s22  }
  0xf4   : > { %s9463_s10 = sshll.u32 %s9460_s2, 7  ;;  %s568_s25 = scalar_lea.sflag [#allocation3], %s9460_s2 }
  0xf5   : > { %s9467_s9 = scalar_lea.vmem [#allocation2], %s9463_s10 }
  0xf6   : > { %9030 = dma.done.wait (%p9359_p2), %s568_s25, 2048  }
  0xf7   : > { %9032 = vsyncadd (%p9359_p2), %s568_s25, 4294965248  ;;  %s576_s28 = sand.u32 1, %s9195_s27   ;;  %s9475_s18 = scalar_lea.vmem [#allocation5], %s9463_s10 }
  0xf8   : > { %s577_s30 = scalar_lea.sflag [#allocation6], %s576_s28 }
  0xf9   : > { %9034 = dma.done.wait (%p9359_p2), %s577_s30, 2048  }
  0xfa   : > { %9036 = vsyncadd (%p9359_p2), %s577_s30, 4294965248  ;;  %p11862_p4 = scmp.eq.s32.totalorder %s9195_s27, 0 }
  0xfc   : > { %9038 = dma.done.wait (%p11862_p4), [#allocation6], 2048   ;;  %p11863_p3 = pmov %p11862_p4 }
  0xfe   : > { %9040 = vsyncadd (%p11863_p3), [#allocation6], 4294965248  ;;  %p11864_p10 = pmov %p11863_p3 }
  0xff   : > { %p11865_p1 = pmov %p11863_p3 }
 0x100   : > { %9042 = dma.done.wait (%p11864_p10), [#allocation9], 2048  }
 0x101   : > { %9044 = vsyncadd (%p11865_p1), [#allocation9], 4294965248  ;;  %p11866_p11 = pmov %p11865_p1 }
 0x102   : > { %p11867_p12 = pmov %p11865_p1 }
 0x103   : > { %9046 = dma.done.wait (%p11866_p11), [#allocation12], 4096  }
 0x104   : > { %9048 = vsyncadd (%p11867_p12), [#allocation12], 4294963200  ;;  %v11773_v0 = vmov 0   ;;  %v8369_v1 = vld [vmem:[#allocation7 + $0x4] ss:$8 sps:$4 sm:$0xff]   ;;  %v8395_v25 = vld [vmem:[#allocation8 + $0x10] sm:$0xff]  }
 0x105   : > { %854 = vmatprep.mubr.bf16.mxu0 %v11773_v0  ;;  %v8371_v2 = vld [vmem:[#allocation7] ss:$8 sps:$4 sm:$0xff]   ;;  %822 = vmatprep.subr.bf16.mxu0 %v8369_v1  ;;  %v8372_v3 = vld [vmem:[#allocation7 + $0x14] ss:$8 sps:$4 sm:$0xff]   ;;  %v8374_v4 = vld [vmem:[#allocation7 + $0x10] ss:$8 sps:$4 sm:$0xff]  }
 0x106   : > { %823 = vmatpush1.bf16.msra.mxu0 %v8371_v2  ;;  %v8375_v5 = vld [vmem:[#allocation7 + $0x24] ss:$8 sps:$4 sm:$0xff]   ;;  %v8377_v6 = vld [vmem:[#allocation7 + $0x20] ss:$8 sps:$4 sm:$0xff]   ;;  %v8378_v7 = vld [vmem:[#allocation7 + $0x34] ss:$8 sps:$4 sm:$0xff]  }
 0x107   : > { %824 = vmatprep.subr.bf16.mxu0 %v8372_v3  ;;  %v8380_v8 = vld [vmem:[#allocation7 + $0x30] ss:$8 sps:$4 sm:$0xff]   ;;  %v658_v9 = vld [vmem:[%s9467_s9] sm:$0xff]  ;;  %v659_v10 = vld [vmem:[%s9467_s9 + $0x8] sm:$0xff]  ;;  %vm9082_vm0 = vmmov 0   ;;  %vm1687_vm1 = vcmask 261120  }
 0x108   : > { %v8381_v11 = vld [vmem:[#allocation7 + $0x44] ss:$8 sps:$4 sm:$0xff]   ;;  %v935_v12 = vpack.c.bf16 %v659_v10, %v658_v9  ;;  %v8383_v13 = vld [vmem:[#allocation7 + $0x40] ss:$8 sps:$4 sm:$0xff]   ;;  %v8384_v14 = vld [vmem:[#allocation7 + $0x54] ss:$8 sps:$4 sm:$0xff]  }
 0x109   : > { %v8386_v15 = vld [vmem:[#allocation7 + $0x50] ss:$8 sps:$4 sm:$0xff]   ;;  %v8387_v16 = vld [vmem:[#allocation7 + $0x64] ss:$8 sps:$4 sm:$0xff]   ;;  %v8389_v17 = vld [vmem:[#allocation7 + $0x60] ss:$8 sps:$4 sm:$0xff]  }
 0x10a   : > { %825 = vmatpush1.bf16.msra.mxu0 %v8374_v4  ;;  %7327 = vmatprep.mubr.bf16.mxu1 %v935_v12  ;;  %v674_v18 = vld [vmem:[%s9475_s18] sm:$0xff]  ;;  %v675_v19 = vld [vmem:[%s9475_s18 + $0x8] sm:$0xff]  ;;  %v8390_v22 = vld [vmem:[#allocation7 + $0x74] ss:$8 sps:$4 sm:$0xff]   ;;  %s9083_s15 = smov 96   ;;  %s9084_s4 = smov 64  }
 0x10b   : > { %826 = vmatprep.subr.bf16.mxu0 %v8375_v5  ;;  %v8393_v20 = vld [vmem:[#allocation8] sm:$0xff]   ;;  %v8394_v21 = vld [vmem:[#allocation8 + $0x8] sm:$0xff]   ;;  %v690_v23 = vadd.f32 %v674_v18, %v658_v9  ;;  %v691_v24 = vadd.f32 %v675_v19, %v659_v10  ;;  %v8392_v26 = vld [vmem:[#allocation7 + $0x70] ss:$8 sps:$4 sm:$0xff]   ;;  %s9085_s8 = smov 32   ;;  %vm3192_vm2 = vcmask 130048  }
 0x10c   : > { %7311 = vmatprep.subr.bf16.mxu1 %v8393_v20  ;;  %v660_v27 = vld [vmem:[%s9467_s9 + $0x10] sm:$0xff]  ;;  %v661_v28 = vld [vmem:[%s9467_s9 + $0x18] sm:$0xff]  ;;  %v8397_v33 = vld [vmem:[#allocation8 + $0x20] sm:$0xff]   ;;  %vm5545_vm3 = vcmask 523264   ;;  %vm5562_vm4 = vcmask 785408   ;;  %s11975_s19 = sld [smem:[#allocation81_spill]] }
 0x10d   : > { %7312 = vmatpush3.bf16.msra.mxu1 %v8393_v20  ;;  %v676_v29 = vld [vmem:[%s9475_s18 + $0x10] sm:$0xff]  ;;  %v677_v30 = vld [vmem:[%s9475_s18 + $0x18] sm:$0xff]  ;;  %v706_v32 = vpack.c.bf16 %v691_v24, %v690_v23  ;;  %v8398_v36 = vld [vmem:[#allocation8 + $0x28] sm:$0xff]   ;;  %v936_v53 = vpack.c.bf16 %v661_v28, %v660_v27  ;;  %s11983_s23 = sld [smem:[#allocation84_spill]]  ;;  %s11627_s12 = scalar_lea.vmem [#allocation14], %s9463_s10 }
 0x10e   : > { %827 = vmatpush1.bf16.msra.mxu0 %v8377_v6  ;;  %7313 = vmatprep.subr.bf16.mxu1 %v8394_v21  ;;  %v8396_v31 = vld [vmem:[#allocation8 + $0x18] sm:$0xff]   ;;  %v692_v34 = vadd.f32 %v676_v29, %v660_v27  ;;  %v693_v35 = vadd.f32 %v677_v30, %v661_v28  ;;  %v662_v37 = vld [vmem:[%s9467_s9 + $0x20] sm:$0xff]  ;;  %v663_v38 = vld [vmem:[%s9467_s9 + $0x28] sm:$0xff]  ;;  %v732_v27 = vlaneseq  ;;  %s7086_s10 = sshll.u32 %s9195_s27, 11  ;;  %s6772_s13 = sshll.u32 %s11627_s12, 4  ;;  %s11692_s13 = int_to_ptr.vmem [resolvable:$true] %s6772_s13 }
 0x10f   : > { %828 = vmatprep.subr.bf16.mxu0 %v8378_v7  ;;  %v678_v39 = vld [vmem:[%s9475_s18 + $0x20] sm:$0xff]  ;;  %v679_v40 = vld [vmem:[%s9475_s18 + $0x28] sm:$0xff]  ;;  %v8399_v42 = vld [vmem:[#allocation8 + $0x30] sm:$0xff]   ;;  %v937_v54 = vpack.c.bf16 %v663_v38, %v662_v37  ;;  %s11984_s25 = sld [smem:[#allocation85_spill]]  ;;  %s6758_s27 = scalar_lea.sflag [#allocation4], %s9460_s2 }
 0x110   : > { %v707_v41 = vpack.c.bf16 %v693_v35, %v692_v34  ;;  %v694_v43 = vadd.f32 %v678_v39, %v662_v37  ;;  %v695_v44 = vadd.f32 %v679_v40, %v663_v38  ;;  %v8400_v45 = vld [vmem:[#allocation8 + $0x38] sm:$0xff]   ;;  %v664_v46 = vld [vmem:[%s9467_s9 + $0x30] sm:$0xff]  ;;  %v666_v56 = vld [vmem:[%s9467_s9 + $0x40] sm:$0xff]  ;;  %v9539_v28 = vshrl.u32 %v732_v27, 7  ;;  %s8985_s28 = scalar_lea.vmem %s11692_s13, 2048  ;;  %p11985_p13 = scmp.ne.s32.totalorder %s11856_s17, 0 }
 0x111   : > { %7314 = vmatpush3.bf16.msra.mxu1 %v8394_v21  ;;  %v665_v47 = vld [vmem:[%s9467_s9 + $0x38] sm:$0xff]  ;;  %v680_v48 = vld [vmem:[%s9475_s18 + $0x30] sm:$0xff]  ;;  %v667_v57 = vld [vmem:[%s9467_s9 + $0x48] sm:$0xff]  ;;  %p8986_p2 = scmp.ne.s32.totalorder %s11692_s13, %s8985_s28  ;;  %s9086_s30 = smov [#allocation14]  }
 0x112   : > { %829 = vmatpush1.bf16.msra.mxu0 %v8380_v8  ;;  %7315 = vmatprep.subr.bf16.mxu1 %v8395_v25  ;;  %v681_v49 = vld [vmem:[%s9475_s18 + $0x38] sm:$0xff]  ;;  %v708_v50 = vpack.c.bf16 %v695_v44, %v694_v43  ;;  %v696_v51 = vadd.f32 %v680_v48, %v664_v46  ;;  %v682_v58 = vld [vmem:[%s9475_s18 + $0x40] sm:$0xff]  ;;  %v683_v59 = vld [vmem:[%s9475_s18 + $0x48] sm:$0xff]  ;;  %v938_v62 = vpack.c.bf16 %v665_v47, %v664_v46  ;;  %v11772_v29 = vsub.s32 0, %v9539_v28 }
 0x113   : > { %830 = vmatprep.subr.bf16.mxu0 %v8381_v11  ;;  %v697_v52 = vadd.f32 %v681_v49, %v665_v47  ;;  %v698_v60 = vadd.f32 %v682_v58, %v666_v56  ;;  %v699_v61 = vadd.f32 %v683_v59, %v667_v57  ;;  %v939_v63 = vpack.c.bf16 %v667_v57, %v666_v56  ;;  %v668_v2 = vld [vmem:[%s9467_s9 + $0x50] sm:$0xff]  ;;  %v669_v3 = vld [vmem:[%s9467_s9 + $0x58] sm:$0xff]  ;;  %v670_v8 = vld [vmem:[%s9467_s9 + $0x60] sm:$0xff]  ;;  %p8987_p6 = pnand %p8986_p2, %p11985_p13 }
 0x114   : > { %v684_v4 = vld [vmem:[%s9475_s18 + $0x50] sm:$0xff]  ;;  %v685_v5 = vld [vmem:[%s9475_s18 + $0x58] sm:$0xff]  ;;  %v671_v9 = vld [vmem:[%s9467_s9 + $0x68] sm:$0xff]  ;;  %v940_v10 = vpack.c.bf16 %v669_v3, %v668_v2  ;;  %11868 = vst [vmem:[#allocation23_spill] sm:$0xff] %v9539_v28 }
 0x115   : > { %7316 = vmatpush3.bf16.msra.mxu1 %v8395_v25  ;;  %v709_v55 = vpack.c.bf16 %v697_v52, %v696_v51  ;;  %v710_v1 = vpack.c.bf16 %v699_v61, %v698_v60  ;;  %v700_v6 = vadd.f32 %v684_v4, %v668_v2  ;;  %v701_v7 = vadd.f32 %v685_v5, %v669_v3  ;;  %v673_v18 = vld [vmem:[%s9467_s9 + $0x78] sm:$0xff]  ;;  %v688_v21 = vld [vmem:[%s9475_s18 + $0x70] sm:$0xff]  ;;  %v730_v30 = vld [vmem:[%s11742_s3] sm:$0x3]  ;;  %p8988_p9 = pneg %p8987_p6 }
 0x116   : > { %831 = vmatpush1.bf16.msra.mxu0 %v8383_v13  ;;  %7317 = vmatprep.subr.bf16.mxu1 %v8396_v31  ;;  %v941_v11 = vpack.c.bf16 %v671_v9, %v670_v8  ;;  %v686_v13 = vld [vmem:[%s9475_s18 + $0x60] sm:$0xff] }
 0x117   : > { %832 = vmatprep.subr.bf16.mxu0 %v8384_v14  ;;  %v711_v12 = vpack.c.bf16 %v701_v7, %v700_v6  ;;  %v687_v14 = vld [vmem:[%s9475_s18 + $0x68] sm:$0xff] }
 0x119   : > { %7318 = vmatpush3.bf16.msra.mxu1 %v8396_v31  ;;  %v11771_v31 = vsub.s32 1, %v9539_v28 }
 0x11a   : > { %833 = vmatpush1.bf16.msra.mxu0 %v8386_v15  ;;  %7319 = vmatprep.subr.bf16.mxu1 %v8397_v33  ;;  %v702_v15 = vadd.f32 %v686_v13, %v670_v8 }
 0x11b   : > { %834 = vmatprep.subr.bf16.mxu0 %v8387_v16  ;;  %v703_v16 = vadd.f32 %v687_v14, %v671_v9  ;;  %v9552_v34 = vrot.slane %v730_v30, %v11771_v31 }
 0x11d   : > { %7320 = vmatpush3.bf16.msra.mxu1 %v8397_v33  ;;  %v712_v20 = vpack.c.bf16 %v703_v16, %v702_v15 }
 0x11e   : > { %835 = vmatpush1.bf16.msra.mxu0 %v8389_v17  ;;  %7321 = vmatprep.subr.bf16.mxu1 %v8398_v36  ;;  %v672_v17 = vld [vmem:[%s9467_s9 + $0x70] sm:$0xff] }
 0x11f   : > { %836 = vmatprep.subr.bf16.mxu0 %v8390_v22  ;;  %v942_v19 = vpack.c.bf16 %v673_v18, %v672_v17  ;;  %v689_v22 = vld [vmem:[%s9475_s18 + $0x78] sm:$0xff]  ;;  %v704_v23 = vadd.f32 %v688_v21, %v672_v17  ;;  %s11977_s18 = sld [smem:[#allocation78_spill]] }
 0x120   : > { %v705_v24 = vadd.f32 %v689_v22, %v673_v18 }
 0x121   : > { %7322 = vmatpush3.bf16.msra.mxu1 %v8398_v36 }
 0x122   : > { %837 = vmatpush1.bf16.msra.mxu0 %v8392_v26  ;;  %7323 = vmatprep.subr.bf16.mxu1 %v8399_v42  ;;  %v713_v25 = vpack.c.bf16 %v705_v24, %v704_v23  ;;  %v11775_v26 = vmov 0.0  }
 0x123   : > { %7367 = vmatprep.subr.bf16.mxu0 %v11775_v26 }
 0x125   : > { %855 = vmatmul.mubr.bf16.vlgmr.msra.gmra.mrb[0].mxu0 %v706_v32  ;;  %7324 = vmatpush3.bf16.msra.mxu1 %v8399_v42  ;;  %v9548_v32 = vrot.slane %v730_v30, %v11772_v29 }
 0x126   : > { %864 = vmatprep.mubr.bf16.mxu0 %v11773_v0  ;;  %7325 = vmatprep.subr.bf16.mxu1 %v8400_v45 }
 0x129   : > { %7326 = vmatpush3.bf16.msra.mxu1 %v8400_v45 }
 0x12a   : > { %7343 = vmatprep.subr.bf16.mxu1 %v11775_v26 }
 0x12c   : > { %7328 = vmatmul.mubr.bf16.vlgmr.msra.gmra.mrb[0].mxu1 %v936_v53 }
 0x12d   : > { %865 = vmatmul.mubr.bf16.gmra.mrb[4].mxu0 %v707_v41  ;;  %7331 = vmatprep.mubr.bf16.mxu1 %v937_v54 }
 0x12e   : > { %874 = vmatprep.mubr.bf16.mxu0 %v11773_v0 }
 0x134   : > { %7332 = vmatmul.mubr.bf16.gmra.mrb[4].mxu1 %v938_v62 }
 0x135   : > { %875 = vmatmul.mubr.bf16.gmra.mrb[8].mxu0 %v708_v50  ;;  %7335 = vmatprep.mubr.bf16.mxu1 %v939_v63 }
 0x136   : > { %884 = vmatprep.mubr.bf16.mxu0 %v11773_v0 }
 0x13c   : > { %7336 = vmatmul.mubr.bf16.gmra.mrb[8].mxu1 %v940_v10  ;;  %v9596_v10 = vld [vmem:[%s11744_s5] ss:$0 sm:$0xff] }
 0x13d   : > { %885 = vmatmul.mubr.bf16.gmra.mrb[12].mxu0 %v709_v55  ;;  %7339 = vmatprep.mubr.bf16.mxu1 %v941_v11 }
 0x13e   : > { %894 = vmatprep.mubr.bf16.mxu0 %v11773_v0 }
 0x144   : > { %7340 = vmatmul.mubr.bf16.gmra.mrb[12].mxu1 %v942_v19 }
 0x145   : > { %895 = vmatmul.mubr.bf16.gmra.mrb[16].mxu0 %v710_v1  ;;  %7345 = vmatprep.mubr.msk.bf16.mxu1 %vm9082_vm0, %v11775_v26 }
 0x146   : > { %904 = vmatprep.mubr.bf16.mxu0 %v11773_v0 }
 0x14d   : > { %905 = vmatmul.mubr.bf16.gmra.mrb[20].mxu0 %v711_v12 }
 0x14e   : > { %914 = vmatprep.mubr.bf16.mxu0 %v11773_v0 }
 0x155   : > { %915 = vmatmul.mubr.bf16.gmra.mrb[24].mxu0 %v712_v20 }
 0x156   : > { %924 = vmatprep.mubr.bf16.mxu0 %v11773_v0 }
 0x15d   : > { %925 = vmatmul.mubr.bf16.gmra.mrb[28].mxu0 %v713_v25 }
 0x15e   : > { %7369 = vmatprep.mubr.msk.bf16.mxu0 %vm9082_vm0, %v11775_v26 }
 0x1f8   : > { %v856_v33 = vpop.f32.mrb[0].mxu0 }
 0x1f9   : > { %v858_v35 = vpop.f32.mrb[1].mxu0  ;;  %v857_v37 = vadd.f32 %v856_v33, %v9548_v32 }
 0x1fa   : > { %v860_v36 = vpop.f32.mrb[2].mxu0  ;;  %v859_v40 = vadd.f32 %v858_v35, %v9552_v34 }
 0x1fb   : > { %v861_v38 = vadd.f32 %v860_v36, %v9548_v32  ;;  %v862_v39 = vpop.f32.mrb[3].mxu0 }
 0x1fc   : > { %v863_v41 = vadd.f32 %v862_v39, %v9552_v34 }
 0x1fd   : > { %v1271_v42 = vpack.c.bf16 %v861_v38, %v857_v37  ;;  %v9558_v43 = vpack.i.bf16 %v861_v38, %v857_v37 }
 0x1fe   : > { %v9560_v44 = vpack.i.bf16 %v863_v41, %v859_v40  ;;  %v1463_v45 = vpack.c.bf16 %v863_v41, %v859_v40 }
 0x1ff   : > { %7900 = vrot.lane.b32.xlu1 %v9558_v43, %s9083_s15  ;;  %v7329_v9 = vpop.f32.mrb[0].mxu1 }
 0x200   : > { %v866_v46 = vpop.f32.mrb[4].mxu0  ;;  %7890 = vrot.lane.b32.xlu0 %v9560_v44, %s9083_s15  ;;  %v1692_v47 = vsel %vm1687_vm1, %v1463_v45, 0  ;;  %v9599_v11 = vadd.f32 %v7329_v9, %v9596_v10  ;;  %v1048_v12 = vpop.f32.mrb[1].mxu1 }
 0x201   : > { %v868_v48 = vpop.f32.mrb[5].mxu0  ;;  %7344 = vmatpush3.bf16.xpose.msra.mxu1 %v1692_v47  ;;  %v867_v50 = vadd.f32 %v866_v46, %v9548_v32  ;;  %v9607_v15 = vadd.f32 %v9596_v10, %v1048_v12  ;;  %v7330_v16 = vpop.f32.mrb[2].mxu1 }
 0x202   : > { %v870_v49 = vpop.f32.mrb[6].mxu0  ;;  %7349 = vmatprep.subr.bf16.mxu1 %v11775_v26  ;;  %v869_v53 = vadd.f32 %v868_v48, %v9552_v34  ;;  %v9611_v18 = vadd.f32 %v7330_v16, %v9596_v10  ;;  %v1051_v19 = vpop.f32.mrb[3].mxu1 }
 0x203   : > { %v871_v51 = vadd.f32 %v870_v49, %v9548_v32  ;;  %v872_v52 = vpop.f32.mrb[7].mxu0  ;;  %v9618_v23 = vadd.f32 %v9596_v10, %v1051_v19 }
 0x204   : > { %v873_v54 = vadd.f32 %v872_v52, %v9552_v34  ;;  %v9624_v27 = vpack.i.bf16 %v9611_v18, %v9599_v11  ;;  %v1656_v45 = vpack.c.bf16 %v9611_v18, %v9599_v11 }
 0x205   : > { %v1272_v55 = vpack.c.bf16 %v871_v51, %v867_v50  ;;  %v9572_v56 = vpack.i.bf16 %v871_v51, %v867_v50  ;;  %v9629_v33 = vpack.i.bf16 %v9618_v23, %v9607_v15 }
 0x206   : > { %v9574_v57 = vpack.i.bf16 %v873_v54, %v869_v53  ;;  %v1464_v58 = vpack.c.bf16 %v873_v54, %v869_v53 }
 0x207   : > { %v7333_v39 = vpop.f32.mrb[4].mxu1 }
 0x208   : > { %v876_v59 = vpop.f32.mrb[8].mxu0  ;;  %7895 = vrot.lane.b32.xlu0 %v9574_v57, %s9083_s15  ;;  %7346 = vmatmul.mubr.msk.bf16.vlgmr.msra.gmra.mrb[16].mxu1 %vm1687_vm1, %v1271_v42  ;;  %v1739_v60 = vsel %vm1687_vm1, %v1464_v58, 0  ;;  %v9638_v40 = vadd.f32 %v7333_v39, %v9596_v10  ;;  %v1064_v41 = vpop.f32.mrb[5].mxu1  ;;  %v1655_v42 = vpack.c.bf16 %v9618_v23, %v9607_v15 }
 0x209   : > { %v878_v61 = vpop.f32.mrb[9].mxu0  ;;  %7350 = vmatpush3.bf16.xpose.msra.mxu1 %v1739_v60  ;;  %7351 = vmatprep.mubr.msk.bf16.mxu1 %vm9082_vm0, %v11775_v26  ;;  %v877_v63 = vadd.f32 %v876_v59, %v9548_v32  ;;  %v9648_v48 = vadd.f32 %v9596_v10, %v1064_v41  ;;  %v7334_v49 = vpop.f32.mrb[6].mxu1 }
 0x20a   : > { %v880_v62 = vpop.f32.mrb[10].mxu0  ;;  %7355 = vmatprep.subr.bf16.mxu1 %v11775_v26  ;;  %v879_v3 = vadd.f32 %v878_v61, %v9552_v34  ;;  %v9652_v51 = vadd.f32 %v7334_v49, %v9596_v10  ;;  %v1067_v52 = vpop.f32.mrb[7].mxu1 }
 0x20b   : > { %v881_v1 = vadd.f32 %v880_v62, %v9548_v32  ;;  %v882_v2 = vpop.f32.mrb[11].mxu0  ;;  %v9659_v58 = vadd.f32 %v9596_v10, %v1067_v52 }
 0x20c   : > { %v883_v4 = vadd.f32 %v882_v2, %v9552_v34  ;;  %7905 = vrot.lane.b32.xlu0 %v9572_v56, %s9083_s15  ;;  %v9665_v61 = vpack.i.bf16 %v9652_v51, %v9638_v40 }
 0x20d   : > { %v1273_v5 = vpack.c.bf16 %v881_v1, %v877_v63  ;;  %v9589_v6 = vpack.i.bf16 %v881_v1, %v877_v63  ;;  %v9670_v63 = vpack.i.bf16 %v9659_v58, %v9648_v48 }
 0x20e   : > { %v9591_v7 = vpack.i.bf16 %v883_v4, %v879_v3  ;;  %v1465_v8 = vpack.c.bf16 %v883_v4, %v879_v3 }
 0x210   : > { %v886_v13 = vpop.f32.mrb[12].mxu0  ;;  %7910 = vrot.lane.b32.xlu0 %v9589_v6, %s9083_s15  ;;  %7915 = vrot.lane.b32.xlu1 %v9591_v7, %s9083_s15  ;;  %v1786_v14 = vsel %vm1687_vm1, %v1465_v8, 0 }
 0x211   : > { %7352 = vmatmul.mubr.msk.bf16.vlgmr.msra.gmra.mrb[20].mxu1 %vm1687_vm1, %v1272_v55  ;;  %v888_v17 = vpop.f32.mrb[13].mxu0  ;;  %v887_v20 = vadd.f32 %v886_v13, %v9548_v32 }
 0x212   : > { %v889_v21 = vadd.f32 %v888_v17, %v9552_v34  ;;  %7356 = vmatpush3.bf16.xpose.msra.mxu1 %v1786_v14  ;;  %v890_v22 = vpop.f32.mrb[14].mxu0  ;;  %7357 = vmatprep.mubr.msk.bf16.mxu1 %vm9082_vm0, %v11775_v26 }
 0x213   : > { %v891_v24 = vadd.f32 %v890_v22, %v9548_v32  ;;  %v892_v25 = vpop.f32.mrb[15].mxu0  ;;  %7361 = vmatprep.subr.bf16.mxu1 %v11775_v26 }
 0x214   : > { %v893_v30 = vadd.f32 %v892_v25, %v9552_v34 }
 0x215   : > { %v1274_v35 = vpack.c.bf16 %v891_v24, %v887_v20  ;;  %v9631_v36 = vpack.i.bf16 %v891_v24, %v887_v20 }
 0x216   : > { %v9633_v37 = vpack.i.bf16 %v893_v30, %v889_v21  ;;  %v1466_v38 = vpack.c.bf16 %v893_v30, %v889_v21 }
 0x217   : > { %7920 = vrot.lane.b32.xlu0 %v9631_v36, %s9083_s15 }
 0x218   : > { %v896_v46 = vpop.f32.mrb[16].mxu0  ;;  %7925 = vrot.lane.b32.xlu1 %v9633_v37, %s9083_s15  ;;  %v1833_v47 = vsel %vm1687_vm1, %v1466_v38, 0 }
 0x219   : > { %7358 = vmatmul.mubr.msk.bf16.vlgmr.msra.gmra.mrb[24].mxu1 %vm1687_vm1, %v1273_v5  ;;  %v898_v50 = vpop.f32.mrb[17].mxu0  ;;  %v897_v53 = vadd.f32 %v896_v46, %v9548_v32  ;;  %v7337_v5 = vpop.f32.mrb[8].mxu1 }
 0x21a   : > { %v899_v54 = vadd.f32 %v898_v50, %v9552_v34  ;;  %7362 = vmatpush3.bf16.xpose.msra.mxu1 %v1833_v47  ;;  %v900_v55 = vpop.f32.mrb[18].mxu0  ;;  %7363 = vmatprep.mubr.msk.bf16.mxu1 %vm9082_vm0, %v11775_v26  ;;  %v9679_v8 = vadd.f32 %v7337_v5, %v9596_v10  ;;  %v1080_v9 = vpop.f32.mrb[9].mxu1 }
 0x21b   : > { %v901_v59 = vadd.f32 %v900_v55, %v9548_v32  ;;  %v902_v60 = vpop.f32.mrb[19].mxu0  ;;  %7373 = vmatprep.subr.bf16.mxu1 %v11775_v26  ;;  %v9689_v17 = vadd.f32 %v9596_v10, %v1080_v9  ;;  %v7338_v19 = vpop.f32.mrb[10].mxu1 }
 0x21c   : > { %v903_v62 = vadd.f32 %v902_v60, %v9552_v34  ;;  %11869 = vst [vmem:[#allocation24_spill] sm:$0xff] %v9679_v8  ;;  %v9693_v21 = vadd.f32 %v7338_v19, %v9596_v10  ;;  %v1083_v22 = vpop.f32.mrb[11].mxu1 }
 0x21d   : > { %v1275_v1 = vpack.c.bf16 %v901_v59, %v897_v53  ;;  %v9672_v2 = vpack.i.bf16 %v901_v59, %v897_v53  ;;  %v9701_v38 = vadd.f32 %v9596_v10, %v1083_v22  ;;  %v7341_v59 = vpop.f32.mrb[12].mxu1 }
 0x21e   : > { %v9674_v3 = vpack.i.bf16 %v903_v62, %v899_v54  ;;  %v1467_v4 = vpack.c.bf16 %v903_v62, %v899_v54  ;;  %11870 = vst [vmem:[#allocation25_spill] sm:$0xff] %v9693_v21  ;;  %v9706_v41 = vpack.i.bf16 %v9693_v21, %v9679_v8  ;;  %v9724_v60 = vadd.f32 %v7341_v59, %v9596_v10  ;;  %v1096_v62 = vpop.f32.mrb[13].mxu1 }
 0x21f   : > { %7930 = vrot.lane.b32.xlu0 %v9672_v2, %s9083_s15  ;;  %v9713_v49 = vpack.i.bf16 %v9701_v38, %v9689_v17  ;;  %v9731_v9 = vadd.f32 %v9596_v10, %v1096_v62 }
 0x220   : > { %v906_v14 = vpop.f32.mrb[20].mxu0  ;;  %7935 = vrot.lane.b32.xlu1 %v9674_v3, %s9083_s15  ;;  %v1880_v16 = vsel %vm1687_vm1, %v1467_v4, 0  ;;  %11871 = vst [vmem:[#allocation26_spill] sm:$0xff] %v9706_v41  ;;  %11873 = vst [vmem:[#allocation28_spill] sm:$0xff] %v9724_v60 }
 0x221   : > { %7364 = vmatmul.mubr.msk.bf16.vlgmr.msra.gmra.mrb[28].mxu1 %vm1687_vm1, %v1274_v35  ;;  %v908_v20 = vpop.f32.mrb[21].mxu0  ;;  %7368 = vmatpush3.bf16.xpose.msra.mxu0 %v1880_v16  ;;  %v907_v24 = vadd.f32 %v906_v14, %v9548_v32  ;;  %11872 = vst [vmem:[#allocation27_spill] sm:$0xff] %v9713_v49  ;;  %11874 = vst [vmem:[#allocation29_spill] sm:$0xff] %v9731_v9  ;;  %v7342_v14 = vpop.f32.mrb[14].mxu1 }
 0x222   : > { %v909_v25 = vadd.f32 %v908_v20, %v9552_v34  ;;  %v910_v30 = vpop.f32.mrb[22].mxu0  ;;  %7375 = vmatprep.mubr.msk.bf16.mxu1 %vm9082_vm0, %v11775_v26  ;;  %7379 = vmatprep.subr.bf16.mxu0 %v11775_v26  ;;  %v9736_v19 = vadd.f32 %v7342_v14, %v9596_v10  ;;  %v1099_v20 = vpop.f32.mrb[15].mxu1 }
 0x223   : > { %v911_v35 = vadd.f32 %v910_v30, %v9548_v32  ;;  %v912_v39 = vpop.f32.mrb[23].mxu0 }
 0x224   : > { %v913_v47 = vadd.f32 %v912_v39, %v9552_v34  ;;  %11875 = vst [vmem:[#allocation30_spill] sm:$0xff] %v9736_v19  ;;  %v9747_v39 = vpack.i.bf16 %v9736_v19, %v9724_v60 }
 0x225   : > { %v1276_v52 = vpack.c.bf16 %v911_v35, %v907_v24  ;;  %v9717_v53 = vpack.i.bf16 %v911_v35, %v907_v24 }
 0x226   : > { %v9719_v54 = vpack.i.bf16 %v913_v47, %v909_v25  ;;  %v1468_v55 = vpack.c.bf16 %v913_v47, %v909_v25  ;;  %v9742_v25 = vadd.f32 %v9596_v10, %v1099_v20  ;;  %11877 = vst [vmem:[#allocation32_spill] sm:$0xff] %v9747_v39 }
 0x227   : > { %7940 = vrot.lane.b32.xlu0 %v9717_v53, %s9083_s15 }
 0x228   : > { %v916_v4 = vpop.f32.mrb[24].mxu0  ;;  %7370 = vmatmul.mubr.msk.bf16.vlgmr.msra.gmra.mrb[32].mxu0 %vm1687_vm1, %v1275_v1  ;;  %7945 = vrot.lane.b32.xlu1 %v9719_v54, %s9083_s15  ;;  %v1927_v5 = vsel %vm1687_vm1, %v1468_v55, 0  ;;  %11876 = vst [vmem:[#allocation31_spill] sm:$0xff] %v9742_v25  ;;  %v9754_v59 = vpack.i.bf16 %v9742_v25, %v9731_v9 }
 0x229   : > { %v918_v16 = vpop.f32.mrb[25].mxu0  ;;  %7374 = vmatpush3.bf16.xpose.msra.mxu1 %v1927_v5  ;;  %7381 = vmatprep.mubr.msk.bf16.mxu0 %vm9082_vm0, %v11775_v26  ;;  %v917_v1 = vadd.f32 %v916_v4, %v9548_v32 }
 0x22a   : > { %v919_v22 = vadd.f32 %v918_v16, %v9552_v34  ;;  %v920_v24 = vpop.f32.mrb[26].mxu0  ;;  %7385 = vmatprep.subr.bf16.mxu1 %v11775_v26  ;;  %11878 = vst [vmem:[#allocation33_spill] sm:$0xff] %v9754_v59 }
 0x22b   : > { %v921_v30 = vadd.f32 %v920_v24, %v9548_v32  ;;  %v922_v35 = vpop.f32.mrb[27].mxu0 }
 0x22c   : > { %v923_v55 = vadd.f32 %v922_v35, %v9552_v34 }
 0x22d   : > { %v1277_v62 = vpack.c.bf16 %v921_v30, %v917_v1  ;;  %v9758_v4 = vpack.i.bf16 %v921_v30, %v917_v1 }
 0x22e   : > { %v7954_v5 = vpack.i.bf16 %v923_v55, %v919_v22  ;;  %v1469_v14 = vpack.c.bf16 %v923_v55, %v919_v22 }
 0x22f   : > { %7950 = vrot.lane.b32.xlu0 %v9758_v4, %s9083_s15 }
 0x230   : > { %v926_v16 = vpop.f32.mrb[28].mxu0  ;;  %7955 = vrot.lane.b32.xlu1 %v7954_v5, %s9083_s15  ;;  %7376 = vmatmul.mubr.msk.bf16.vlgmr.msra.gmra.mrb[32].mxu1 %vm1687_vm1, %v1276_v52  ;;  %v1974_v20 = vsel %vm1687_vm1, %v1469_v14, 0 }
 0x231   : > { %v928_v24 = vpop.f32.mrb[29].mxu0  ;;  %7380 = vmatpush3.bf16.xpose.msra.mxu0 %v1974_v20  ;;  %7387 = vmatprep.mubr.msk.bf16.mxu1 %vm9082_vm0, %v11775_v26  ;;  %v927_v1 = vadd.f32 %v926_v16, %v9548_v32 }
 0x232   : > { %v930_v35 = vpop.f32.mrb[30].mxu0  ;;  %7391 = vmatprep.subr.bf16.mxu0 %v11775_v26  ;;  %v929_v55 = vadd.f32 %v928_v24, %v9552_v34 }
 0x233   : > { %v931_v22 = vadd.f32 %v930_v35, %v9548_v32  ;;  %v932_v30 = vpop.f32.mrb[31].mxu0 }
 0x234   : > { %v933_v31 = vadd.f32 %v932_v30, %v9552_v34 }
 0x235   : > { %v1278_v52 = vpack.c.bf16 %v931_v22, %v927_v1  ;;  %v7969_v29 = vpack.i.bf16 %v931_v22, %v927_v1 }
 0x236   : > { %v7959_v14 = vpack.i.bf16 %v933_v31, %v929_v55  ;;  %v1470_v0 = vpack.c.bf16 %v933_v31, %v929_v55 }
 0x237   : > { %7970 = vrot.lane.b32.xlu0 %v7969_v29, %s9083_s15 }
 0x238   : > { %7382 = vmatmul.mubr.msk.bf16.vlgmr.msra.gmra.mrb[36].mxu0 %vm1687_vm1, %v1277_v62  ;;  %7960 = vrot.lane.b32.xlu1 %v7959_v14, %s9083_s15  ;;  %v2021_v20 = vsel %vm1687_vm1, %v1470_v0, 0 }
 0x239   : > { %7386 = vmatpush3.bf16.xpose.msra.mxu1 %v2021_v20  ;;  %7393 = vmatprep.mubr.msk.bf16.mxu0 %vm9082_vm0, %v11775_v26 }
 0x23a   : > { %7397 = vmatprep.subr.bf16.mxu1 %v11775_v26 }
 0x23b   : > { %7980 = vrot.lane.b32.xlu0 %v9558_v43, %s9084_s4 }
 0x23c   : > { %7965 = vrot.lane.b32.xlu1 %v9560_v44, %s9084_s4 }
 0x23f   : > { %7990 = vrot.lane.b32.xlu0 %v9572_v56, %s9084_s4 }
 0x240   : > { %7975 = vrot.lane.b32.xlu1 %v9574_v57, %s9084_s4  ;;  %7388 = vmatmul.mubr.msk.bf16.vlgmr.msra.gmra.mrb[36].mxu1 %vm1687_vm1, %v1278_v52 }
 0x241   : > { %7399 = vmatprep.mubr.msk.bf16.mxu1 %vm9082_vm0, %v11775_v26 }
 0x243   : > { %8000 = vrot.lane.b32.xlu0 %v9589_v6, %s9084_s4 }
 0x244   : > { %7985 = vrot.lane.b32.xlu1 %v9591_v7, %s9084_s4 }
 0x247   : > { %8010 = vrot.lane.b32.xlu0 %v9631_v36, %s9084_s4 }
 0x248   : > { %7995 = vrot.lane.b32.xlu1 %v9633_v37, %s9084_s4 }
 0x24b   : > { %8020 = vrot.lane.b32.xlu0 %v9672_v2, %s9084_s4 }
 0x24c   : > { %8005 = vrot.lane.b32.xlu1 %v9674_v3, %s9084_s4 }
 0x24f   : > { %8030 = vrot.lane.b32.xlu0 %v9717_v53, %s9084_s4 }
 0x250   : > { %8015 = vrot.lane.b32.xlu1 %v9719_v54, %s9084_s4 }
 0x253   : > { %8035 = vrot.lane.b32.xlu0 %v9758_v4, %s9084_s4 }
 0x254   : > { %8025 = vrot.lane.b32.xlu1 %v7954_v5, %s9084_s4 }
 0x257   : > { %8050 = vrot.lane.b32.xlu0 %v7969_v29, %s9084_s4 }
 0x258   : > { %8040 = vrot.lane.b32.xlu1 %v7959_v14, %s9084_s4 }
 0x25b   : > { %8060 = vrot.lane.b32.xlu0 %v9558_v43, %s9085_s8 }
 0x25c   : > { %8045 = vrot.lane.b32.xlu1 %v9560_v44, %s9085_s8 }
 0x25f   : > { %8070 = vrot.lane.b32.xlu0 %v9591_v7, %s9085_s8 }
 0x260   : > { %8055 = vrot.lane.b32.xlu1 %v9574_v57, %s9085_s8 }
 0x263   : > { %8080 = vrot.lane.b32.xlu0 %v9589_v6, %s9085_s8 }
 0x264   : > { %8065 = vrot.lane.b32.xlu1 %v9572_v56, %s9085_s8 }
 0x267   : > { %8090 = vrot.lane.b32.xlu0 %v9674_v3, %s9085_s8 }
 0x268   : > { %8075 = vrot.lane.b32.xlu1 %v9633_v37, %s9085_s8 }
 0x26b   : > { %8100 = vrot.lane.b32.xlu0 %v9672_v2, %s9085_s8 }
 0x26c   : > { %8085 = vrot.lane.b32.xlu1 %v9631_v36, %s9085_s8 }
 0x26f   : > { %8110 = vrot.lane.b32.xlu0 %v7954_v5, %s9085_s8 }
 0x270   : > { %8095 = vrot.lane.b32.xlu1 %v9719_v54, %s9085_s8 }
 0x271   : > { %v7901_v43 = vpop.permute.xlu1 %7900 }
 0x272   : > { %v7891_v0 = vpop.permute.xlu0 %7890  ;;  %v7903_v56 = vunpack.i.h.bf16 %v7901_v43  ;;  %v7902_v57 = vunpack.i.l.bf16 %v7901_v43 }
 0x273   : > { %v7893_v31 = vunpack.i.h.bf16 %v7891_v0  ;;  %v7892_v32 = vunpack.i.l.bf16 %v7891_v0  ;;  %8120 = vrot.lane.b32.xlu0 %v9758_v4, %s9085_s8 }
 0x274   : > { %8105 = vrot.lane.b32.xlu1 %v9717_v53, %s9085_s8  ;;  %v1279_v37 = vpack.c.bf16 %v7903_v56, %v7902_v57 }
 0x275   : > { %v1471_v34 = vpack.c.bf16 %v7893_v31, %v7892_v32 }
 0x277   : > { %v2068_v44 = vsel %vm1687_vm1, %v1471_v34, 0  ;;  %8140 = vrot.lane.b32.xlu0 %v9670_v63, %s9083_s15 }
 0x278   : > { %7392 = vmatpush3.bf16.xpose.msra.mxu0 %v2068_v44  ;;  %8115 = vrot.lane.b32.xlu1 %v7959_v14, %s9085_s8 }
 0x279   : > { %7403 = vmatprep.subr.bf16.mxu0 %v11775_v26 }
 0x27a   : > { %v7896_v6 = vpop.permute.xlu0 %7895 }
 0x27b   : > { %v7898_v7 = vunpack.i.h.bf16 %v7896_v6  ;;  %v7897_v36 = vunpack.i.l.bf16 %v7896_v6  ;;  %8150 = vrot.lane.b32.xlu0 %v9713_v49, %s9083_s15 }
 0x27c   : > { %8125 = vrot.lane.b32.xlu1 %v7969_v29, %s9085_s8 }
 0x27d   : > { %v1472_v2 = vpack.c.bf16 %v7898_v7, %v7897_v36 }
 0x27e   : > { %v7906_v3 = vpop.permute.xlu0 %7905 }
 0x27f   : > { %7394 = vmatmul.mubr.msk.bf16.vlgmr.msra.gmra.mrb[40].mxu0 %vm1687_vm1, %v1279_v37  ;;  %v2115_v53 = vsel %vm1687_vm1, %v1472_v2, 0  ;;  %8160 = vrot.lane.b32.xlu0 %v9754_v59, %s9083_s15  ;;  %v7908_v54 = vunpack.i.h.bf16 %v7906_v3  ;;  %v7907_v62 = vunpack.i.l.bf16 %v7906_v3 }
 0x280   : > { %7398 = vmatpush3.bf16.xpose.msra.mxu1 %v2115_v53  ;;  %7405 = vmatprep.mubr.msk.bf16.mxu0 %vm9082_vm0, %v11775_v26 }
 0x281   : > { %7409 = vmatprep.subr.bf16.mxu1 %v11775_v26  ;;  %8130 = vrot.lane.b32.xlu1 %v9629_v33, %s9083_s15  ;;  %v1280_v16 = vpack.c.bf16 %v7908_v54, %v7907_v62 }
 0x282   : > { %v7916_v29 = vpop.permute.xlu1 %7915  ;;  %v7911_v35 = vpop.permute.xlu0 %7910 }
 0x283   : > { %v7918_v4 = vunpack.i.h.bf16 %v7916_v29  ;;  %v7917_v5 = vunpack.i.l.bf16 %v7916_v29  ;;  %8170 = vrot.lane.b32.xlu0 %v9629_v33, %s9084_s4  ;;  %v7913_v22 = vunpack.i.h.bf16 %v7911_v35  ;;  %v7912_v30 = vunpack.i.l.bf16 %v7911_v35 }
 0x285   : > { %v1473_v24 = vpack.c.bf16 %v7918_v4, %v7917_v5  ;;  %8135 = vrot.lane.b32.xlu1 %v9624_v27, %s9083_s15  ;;  %v1281_v20 = vpack.c.bf16 %v7913_v22, %v7912_v30 }
 0x287   : > { %7400 = vmatmul.mubr.msk.bf16.vlgmr.msra.gmra.mrb[40].mxu1 %vm1687_vm1, %v1280_v16  ;;  %v2162_v1 = vsel %vm1687_vm1, %v1473_v24, 0  ;;  %8180 = vrot.lane.b32.xlu0 %v9670_v63, %s9084_s4 }
 0x288   : > { %7404 = vmatpush3.bf16.xpose.msra.mxu0 %v2162_v1  ;;  %7411 = vmatprep.mubr.msk.bf16.mxu1 %vm9082_vm0, %v11775_v26 }
 0x289   : > { %7415 = vmatprep.subr.bf16.mxu0 %v11775_v26  ;;  %8145 = vrot.lane.b32.xlu1 %v9665_v61, %s9083_s15  ;;  %v7921_v31 = vpop.permute.xlu0 %7920 }
 0x28a   : > { %v7926_v55 = vpop.permute.xlu1 %7925  ;;  %v7923_v34 = vunpack.i.h.bf16 %v7921_v31  ;;  %v7922_v43 = vunpack.i.l.bf16 %v7921_v31 }
 0x28b   : > { %v7928_v52 = vunpack.i.h.bf16 %v7926_v55  ;;  %v7927_v14 = vunpack.i.l.bf16 %v7926_v55  ;;  %8190 = vrot.lane.b32.xlu0 %v9713_v49, %s9084_s4 }
 0x28c   : > { %v1282_v6 = vpack.c.bf16 %v7923_v34, %v7922_v43 }
 0x28d   : > { %v1474_v0 = vpack.c.bf16 %v7928_v52, %v7927_v14  ;;  %8155 = vrot.lane.b32.xlu1 %v9706_v41, %s9083_s15 }
 0x28f   : > { %7406 = vmatmul.mubr.msk.bf16.vlgmr.msra.gmra.mrb[44].mxu0 %vm1687_vm1, %v1281_v20  ;;  %v2209_v32 = vsel %vm1687_vm1, %v1474_v0, 0  ;;  %8195 = vrot.lane.b32.xlu0 %v9706_v41, %s9084_s4 }
 0x290   : > { %7410 = vmatpush3.bf16.xpose.msra.mxu1 %v2209_v32  ;;  %7417 = vmatprep.mubr.msk.bf16.mxu0 %vm9082_vm0, %v11775_v26 }
 0x291   : > { %7421 = vmatprep.subr.bf16.mxu1 %v11775_v26  ;;  %8165 = vrot.lane.b32.xlu1 %v9747_v39, %s9083_s15  ;;  %v7931_v36 = vpop.permute.xlu0 %7930 }
 0x292   : > { %v7936_v44 = vpop.permute.xlu1 %7935  ;;  %v7933_v2 = vunpack.i.h.bf16 %v7931_v36  ;;  %v7932_v3 = vunpack.i.l.bf16 %v7931_v36 }
 0x293   : > { %v7938_v56 = vunpack.i.h.bf16 %v7936_v44  ;;  %v7937_v57 = vunpack.i.l.bf16 %v7936_v44  ;;  %8200 = vrot.lane.b32.xlu0 %v9754_v59, %s9084_s4 }
 0x294   : > { %v1283_v29 = vpack.c.bf16 %v7933_v2, %v7932_v3 }
 0x295   : > { %v1475_v7 = vpack.c.bf16 %v7938_v56, %v7937_v57  ;;  %8175 = vrot.lane.b32.xlu1 %v9624_v27, %s9084_s4 }
 0x297   : > { %7412 = vmatmul.mubr.msk.bf16.vlgmr.msra.gmra.mrb[44].mxu1 %vm1687_vm1, %v1282_v6  ;;  %v2256_v37 = vsel %vm1687_vm1, %v1475_v7, 0  ;;  %8210 = vrot.lane.b32.xlu0 %v9629_v33, %s9085_s8 }
 0x298   : > { %7416 = vmatpush3.bf16.xpose.msra.mxu0 %v2256_v37  ;;  %7423 = vmatprep.mubr.msk.bf16.mxu1 %vm9082_vm0, %v11775_v26 }
 0x299   : > { %7427 = vmatprep.subr.bf16.mxu0 %v11775_v26  ;;  %8185 = vrot.lane.b32.xlu1 %v9665_v61, %s9084_s4  ;;  %v7941_v33 = vpop.permute.xlu0 %7940 }
 0x29a   : > { %v7946_v53 = vpop.permute.xlu1 %7945  ;;  %v7943_v16 = vunpack.i.h.bf16 %v7941_v33  ;;  %v7942_v24 = vunpack.i.l.bf16 %v7941_v33 }
 0x29b   : > { %v7948_v54 = vunpack.i.h.bf16 %v7946_v53  ;;  %v7947_v62 = vunpack.i.l.bf16 %v7946_v53  ;;  %8220 = vrot.lane.b32.xlu0 %v9670_v63, %s9085_s8 }
 0x29c   : > { %v1284_v22 = vpack.c.bf16 %v7943_v16, %v7942_v24 }
 0x29d   : > { %v1476_v4 = vpack.c.bf16 %v7948_v54, %v7947_v62  ;;  %8205 = vrot.lane.b32.xlu1 %v9747_v39, %s9084_s4 }
 0x29f   : > { %7418 = vmatmul.mubr.msk.bf16.vlgmr.msra.gmra.mrb[48].mxu0 %vm1687_vm1, %v1283_v29  ;;  %v2303_v5 = vsel %vm1687_vm1, %v1476_v4, 0 }
 0x2a0   : > { %7422 = vmatpush3.bf16.xpose.msra.mxu1 %v2303_v5  ;;  %7429 = vmatprep.mubr.msk.bf16.mxu0 %vm9082_vm0, %v11775_v26 }
 0x2a1   : > { %7433 = vmatprep.subr.bf16.mxu1 %v11775_v26  ;;  %8215 = vrot.lane.b32.xlu1 %v9624_v27, %s9085_s8  ;;  %v7951_v30 = vpop.permute.xlu0 %7950 }
 0x2a2   : > { %v7956_v63 = vpop.permute.xlu1 %7955  ;;  %v7953_v14 = vunpack.i.h.bf16 %v7951_v30  ;;  %v7952_v20 = vunpack.i.l.bf16 %v7951_v30 }
 0x2a3   : > { %v7958_v35 = vunpack.i.h.bf16 %v7956_v63  ;;  %v7957_v1 = vunpack.i.l.bf16 %v7956_v63 }
 0x2a4   : > { %v1285_v34 = vpack.c.bf16 %v7953_v14, %v7952_v20 }
 0x2a5   : > { %v1477_v55 = vpack.c.bf16 %v7958_v35, %v7957_v1  ;;  %8225 = vrot.lane.b32.xlu1 %v9665_v61, %s9085_s8 }
 0x2a7   : > { %7424 = vmatmul.mubr.msk.bf16.vlgmr.msra.gmra.mrb[48].mxu1 %vm1687_vm1, %v1284_v22  ;;  %v2350_v52 = vsel %vm1687_vm1, %v1477_v55, 0 }
 0x2a8   : > { %7428 = vmatpush3.bf16.xpose.msra.mxu0 %v2350_v52  ;;  %7435 = vmatprep.mubr.msk.bf16.mxu1 %vm9082_vm0, %v11775_v26 }
 0x2a9   : > { %v7971_v27 = vpop.permute.xlu0 %7970  ;;  %7439 = vmatprep.subr.bf16.mxu0 %v11775_v26 }
 0x2aa   : > { %v7961_v0 = vpop.permute.xlu1 %7960  ;;  %v7973_v7 = vunpack.i.h.bf16 %v7971_v27  ;;  %v7972_v36 = vunpack.i.l.bf16 %v7971_v27 }
 0x2ab   : > { %v7963_v31 = vunpack.i.h.bf16 %v7961_v0  ;;  %v7962_v32 = vunpack.i.l.bf16 %v7961_v0 }
 0x2ac   : > { %v1286_v29 = vpack.c.bf16 %v7973_v7, %v7972_v36 }
 0x2ad   : > { %v7981_v43 = vpop.permute.xlu0 %7980  ;;  %v1478_v44 = vpack.c.bf16 %v7963_v31, %v7962_v32 }
 0x2ae   : > { %v7966_v61 = vpop.permute.xlu1 %7965  ;;  %v7983_v4 = vunpack.i.h.bf16 %v7981_v43  ;;  %v7982_v33 = vunpack.i.l.bf16 %v7981_v43 }
 0x2af   : > { %v7968_v56 = vunpack.i.h.bf16 %v7966_v61  ;;  %v7967_v57 = vunpack.i.l.bf16 %v7966_v61  ;;  %7430 = vmatmul.mubr.msk.bf16.vlgmr.msra.gmra.mrb[52].mxu0 %vm1687_vm1, %v1285_v34  ;;  %v2397_v6 = vsel %vm1687_vm1, %v1478_v44, 0 }
 0x2b0   : > { %7434 = vmatpush3.bf16.xpose.msra.mxu1 %v2397_v6  ;;  %7441 = vmatprep.mubr.msk.bf16.mxu0 %vm9082_vm0, %v11775_v26  ;;  %v1287_v22 = vpack.c.bf16 %v7983_v4, %v7982_v33 }
 0x2b1   : > { %v7991_v37 = vpop.permute.xlu0 %7990  ;;  %v1479_v2 = vpack.c.bf16 %v7968_v56, %v7967_v57  ;;  %7445 = vmatprep.subr.bf16.mxu1 %v11775_v26 }
 0x2b2   : > { %v7976_v3 = vpop.permute.xlu1 %7975  ;;  %v7993_v30 = vunpack.i.h.bf16 %v7991_v37  ;;  %v7992_v55 = vunpack.i.l.bf16 %v7991_v37 }
 0x2b3   : > { %v7978_v53 = vunpack.i.h.bf16 %v7976_v3  ;;  %v7977_v54 = vunpack.i.l.bf16 %v7976_v3  ;;  %v2444_v62 = vsel %vm1687_vm1, %v1479_v2, 0 }
 0x2b4   : > { %7440 = vmatpush3.bf16.xpose.msra.mxu0 %v2444_v62  ;;  %v1288_v32 = vpack.c.bf16 %v7993_v30, %v7992_v55 }
 0x2b5   : > { %v8001_v5 = vpop.permute.xlu0 %8000  ;;  %v1480_v16 = vpack.c.bf16 %v7978_v53, %v7977_v54  ;;  %7451 = vmatprep.subr.bf16.mxu0 %v11775_v26 }
 0x2b6   : > { %v7986_v24 = vpop.permute.xlu1 %7985  ;;  %v8003_v34 = vunpack.i.h.bf16 %v8001_v5  ;;  %v8002_v43 = vunpack.i.l.bf16 %v8001_v5 }
 0x2b7   : > { %v7988_v63 = vunpack.i.h.bf16 %v7986_v24  ;;  %v7987_v35 = vunpack.i.l.bf16 %v7986_v24  ;;  %7436 = vmatmul.mubr.msk.bf16.vlgmr.msra.gmra.mrb[52].mxu1 %vm1687_vm1, %v1286_v29  ;;  %v2491_v1 = vsel %vm1687_vm1, %v1480_v16, 0 }
 0x2b8   : > { %7446 = vmatpush3.bf16.xpose.msra.mxu1 %v2491_v1  ;;  %7447 = vmatprep.mubr.msk.bf16.mxu1 %vm9082_vm0, %v11775_v26  ;;  %v1289_v36 = vpack.c.bf16 %v8003_v34, %v8002_v43 }
 0x2b9   : > { %v8011_v52 = vpop.permute.xlu0 %8010  ;;  %v1481_v14 = vpack.c.bf16 %v7988_v63, %v7987_v35  ;;  %7457 = vmatprep.subr.bf16.mxu1 %v11775_v26 }
 0x2ba   : > { %v7996_v20 = vpop.permute.xlu1 %7995  ;;  %v8013_v37 = vunpack.i.h.bf16 %v8011_v52  ;;  %v8012_v2 = vunpack.i.l.bf16 %v8011_v52 }
 0x2bb   : > { %v7998_v27 = vunpack.i.h.bf16 %v7996_v20  ;;  %v7997_v0 = vunpack.i.l.bf16 %v7996_v20  ;;  %7442 = vmatmul.mubr.msk.bf16.vlgmr.msra.gmra.mrb[56].mxu0 %vm1687_vm1, %v1287_v22  ;;  %v2538_v31 = vsel %vm1687_vm1, %v1481_v14, 0 }
 0x2bc   : > { %7452 = vmatpush3.bf16.xpose.msra.mxu0 %v2538_v31  ;;  %7453 = vmatprep.mubr.msk.bf16.mxu0 %vm9082_vm0, %v11775_v26  ;;  %v1290_v33 = vpack.c.bf16 %v8013_v37, %v8012_v2 }
 0x2bd   : > { %v8021_v44 = vpop.permute.xlu0 %8020  ;;  %v1482_v61 = vpack.c.bf16 %v7998_v27, %v7997_v0  ;;  %7463 = vmatprep.subr.bf16.mxu0 %v11775_v26 }
 0x2be   : > { %v8006_v56 = vpop.permute.xlu1 %8005  ;;  %v8023_v5 = vunpack.i.h.bf16 %v8021_v44  ;;  %v8022_v16 = vunpack.i.l.bf16 %v8021_v44 }
 0x2bf   : > { %v8008_v57 = vunpack.i.h.bf16 %v8006_v56  ;;  %v8007_v6 = vunpack.i.l.bf16 %v8006_v56  ;;  %7448 = vmatmul.mubr.msk.bf16.vlgmr.msra.gmra.mrb[56].mxu1 %vm1687_vm1, %v1288_v32  ;;  %v2585_v7 = vsel %vm1687_vm1, %v1482_v61, 0 }
 0x2c0   : > { %7458 = vmatpush3.bf16.xpose.msra.mxu1 %v2585_v7  ;;  %7459 = vmatprep.mubr.msk.bf16.mxu1 %vm9082_vm0, %v11775_v26  ;;  %v1291_v55 = vpack.c.bf16 %v8023_v5, %v8022_v16 }
 0x2c1   : > { %v8031_v3 = vpop.permute.xlu0 %8030  ;;  %v1483_v53 = vpack.c.bf16 %v8008_v57, %v8007_v6  ;;  %7469 = vmatprep.subr.bf16.mxu1 %v11775_v26 }
 0x2c2   : > { %v8016_v54 = vpop.permute.xlu1 %8015  ;;  %v8033_v52 = vunpack.i.h.bf16 %v8031_v3  ;;  %v8032_v14 = vunpack.i.l.bf16 %v8031_v3 }
 0x2c3   : > { %v8018_v62 = vunpack.i.h.bf16 %v8016_v54  ;;  %v8017_v29 = vunpack.i.l.bf16 %v8016_v54  ;;  %7454 = vmatmul.mubr.msk.bf16.vlgmr.msra.gmra.mrb[60].mxu0 %vm1687_vm1, %v1289_v36  ;;  %v2632_v4 = vsel %vm1687_vm1, %v1483_v53, 0 }
 0x2c4   : > { %7464 = vmatpush3.bf16.xpose.msra.mxu0 %v2632_v4  ;;  %7465 = vmatprep.mubr.msk.bf16.mxu0 %vm9082_vm0, %v11775_v26  ;;  %v1292_v43 = vpack.c.bf16 %v8033_v52, %v8032_v14 }
 0x2c5   : > { %v8036_v24 = vpop.permute.xlu0 %8035  ;;  %v1484_v63 = vpack.c.bf16 %v8018_v62, %v8017_v29  ;;  %7475 = vmatprep.subr.bf16.mxu0 %v11775_v26 }
 0x2c6   : > { %v8026_v35 = vpop.permute.xlu1 %8025  ;;  %v8038_v44 = vunpack.i.h.bf16 %v8036_v24  ;;  %v8037_v61 = vunpack.i.l.bf16 %v8036_v24 }
 0x2c7   : > { %v8028_v1 = vunpack.i.h.bf16 %v8026_v35  ;;  %v8027_v22 = vunpack.i.l.bf16 %v8026_v35  ;;  %7460 = vmatmul.mubr.msk.bf16.vlgmr.msra.gmra.mrb[60].mxu1 %vm1687_vm1, %v1290_v33  ;;  %v2679_v30 = vsel %vm1687_vm1, %v1484_v63, 0 }
 0x2c8   : > { %7470 = vmatpush3.bf16.xpose.msra.mxu1 %v2679_v30  ;;  %7471 = vmatprep.mubr.msk.bf16.mxu1 %vm9082_vm0, %v11775_v26  ;;  %v1293_v2 = vpack.c.bf16 %v8038_v44, %v8037_v61 }
 0x2c9   : > { %v8051_v20 = vpop.permute.xlu0 %8050  ;;  %v1485_v27 = vpack.c.bf16 %v8028_v1, %v8027_v22  ;;  %7481 = vmatprep.subr.bf16.mxu1 %v11775_v26 }
 0x2ca   : > { %v8041_v0 = vpop.permute.xlu1 %8040  ;;  %v8053_v3 = vunpack.i.h.bf16 %v8051_v20  ;;  %v8052_v53 = vunpack.i.l.bf16 %v8051_v20 }
 0x2cb   : > { %v8043_v31 = vunpack.i.h.bf16 %v8041_v0  ;;  %v8042_v32 = vunpack.i.l.bf16 %v8041_v0  ;;  %7466 = vmatmul.mubr.msk.bf16.vlgmr.msra.gmra.mrb[64].mxu0 %vm1687_vm1, %v1291_v55  ;;  %v2726_v34 = vsel %vm1687_vm1, %v1485_v27, 0 }
 0x2cc   : > { %7476 = vmatpush3.bf16.xpose.msra.mxu0 %v2726_v34  ;;  %7477 = vmatprep.mubr.msk.bf16.mxu0 %vm9082_vm0, %v11775_v26  ;;  %v1294_v63 = vpack.c.bf16 %v8053_v3, %v8052_v53 }
 0x2cd   : > { %v8061_v56 = vpop.permute.xlu0 %8060  ;;  %v1486_v57 = vpack.c.bf16 %v8043_v31, %v8042_v32  ;;  %7487 = vmatprep.subr.bf16.mxu0 %v11775_v26 }
 0x2ce   : > { %v8046_v6 = vpop.permute.xlu1 %8045  ;;  %v8063_v35 = vunpack.i.h.bf16 %v8061_v56  ;;  %v8062_v1 = vunpack.i.l.bf16 %v8061_v56 }
 0x2cf   : > { %v8048_v7 = vunpack.i.h.bf16 %v8046_v6  ;;  %v8047_v36 = vunpack.i.l.bf16 %v8046_v6  ;;  %7472 = vmatmul.mubr.msk.bf16.vlgmr.msra.gmra.mrb[64].mxu1 %vm1687_vm1, %v1292_v43  ;;  %v2773_v37 = vsel %vm1687_vm1, %v1486_v57, 0 }
 0x2d0   : > { %7482 = vmatpush3.bf16.xpose.msra.mxu1 %v2773_v37  ;;  %7483 = vmatprep.mubr.msk.bf16.mxu1 %vm9082_vm0, %v11775_v26  ;;  %v1295_v20 = vpack.c.bf16 %v8063_v35, %v8062_v1 }
 0x2d1   : > { %v8071_v54 = vpop.permute.xlu0 %8070  ;;  %v1487_v62 = vpack.c.bf16 %v8048_v7, %v8047_v36  ;;  %7493 = vmatprep.subr.bf16.mxu1 %v11775_v26 }
 0x2d2   : > { %v8073_v29 = vunpack.i.h.bf16 %v8071_v54  ;;  %v8056_v4 = vpop.permute.xlu1 %8055  ;;  %v8072_v33 = vunpack.i.l.bf16 %v8071_v54 }
 0x2d3   : > { %v8058_v5 = vunpack.i.h.bf16 %v8056_v4  ;;  %v8057_v16 = vunpack.i.l.bf16 %v8056_v4  ;;  %7478 = vmatmul.mubr.msk.bf16.vlgmr.msra.gmra.mrb[68].mxu0 %vm1687_vm1, %v1293_v2  ;;  %v2820_v24 = vsel %vm1687_vm1, %v1487_v62, 0 }
 0x2d4   : > { %7488 = vmatpush3.bf16.xpose.msra.mxu0 %v2820_v24  ;;  %7489 = vmatprep.mubr.msk.bf16.mxu0 %vm9082_vm0, %v11775_v26  ;;  %v1489_v14 = vpack.c.bf16 %v8073_v29, %v8072_v33 }
 0x2d5   : > { %v8081_v22 = vpop.permute.xlu0 %8080  ;;  %v1488_v30 = vpack.c.bf16 %v8058_v5, %v8057_v16  ;;  %7499 = vmatprep.subr.bf16.mxu0 %v11775_v26 }
 0x2d6   : > { %v8066_v55 = vpop.permute.xlu1 %8065  ;;  %v2914_v57 = vsel %vm1687_vm1, %v1489_v14, 0  ;;  %v8083_v36 = vunpack.i.h.bf16 %v8081_v22  ;;  %v8082_v37 = vunpack.i.l.bf16 %v8081_v22 }
 0x2d7   : > { %7484 = vmatmul.mubr.msk.bf16.vlgmr.msra.gmra.mrb[68].mxu1 %vm1687_vm1, %v1294_v63  ;;  %v2867_v52 = vsel %vm1687_vm1, %v1488_v30, 0  ;;  %v8068_v27 = vunpack.i.h.bf16 %v8066_v55  ;;  %v8067_v0 = vunpack.i.l.bf16 %v8066_v55 }
 0x2d8   : > { %7494 = vmatpush3.bf16.xpose.msra.mxu1 %v2867_v52  ;;  %7495 = vmatprep.mubr.msk.bf16.mxu1 %vm9082_vm0, %v11775_v26  ;;  %v1297_v16 = vpack.c.bf16 %v8083_v36, %v8082_v37 }
 0x2d9   : > { %v8091_v31 = vpop.permute.xlu0 %8090  ;;  %7505 = vmatprep.subr.bf16.mxu1 %v11775_v26  ;;  %v1296_v2 = vpack.c.bf16 %v8068_v27, %v8067_v0 }
 0x2da   : > { %v8093_v32 = vunpack.i.h.bf16 %v8091_v31  ;;  %v8092_v34 = vunpack.i.l.bf16 %v8091_v31  ;;  %v8076_v43 = vpop.permute.xlu1 %8075 }
 0x2db   : > { %v8078_v44 = vunpack.i.h.bf16 %v8076_v43  ;;  %v8077_v61 = vunpack.i.l.bf16 %v8076_v43  ;;  %v9964_v56 = vpop.f32.mrb[16].mxu1  ;;  %7490 = vmatmul.mubr.msk.bf16.vlgmr.msra.gmra.mrb[72].mxu0 %vm1687_vm1, %v1295_v20 }
 0x2dc   : > { %v7347_v6 = vpop.f32.mrb[17].mxu1  ;;  %7500 = vmatpush3.bf16.xpose.msra.mxu0 %v2914_v57  ;;  %v3193_v7 = vsel %vm3192_vm2, %v9964_v56, -inf  ;;  %7501 = vmatprep.mubr.msk.bf16.mxu0 %vm9082_vm0, %v11775_v26  ;;  %v1491_v33 = vpack.c.bf16 %v8093_v32, %v8092_v34 }
 0x2dd   : > { %v8101_v3 = vpop.permute.xlu0 %8100  ;;  %3194 = vmax.xlane.f32.xlu0 %v3193_v7  ;;  %v9972_v53 = vpop.f32.mrb[18].mxu1  ;;  %v1490_v54 = vpack.c.bf16 %v8078_v44, %v8077_v61  ;;  %7511 = vmatprep.subr.bf16.mxu0 %v11775_v26 }
 0x2de   : > { %v8086_v62 = vpop.permute.xlu1 %8085  ;;  %v7348_v29 = vpop.f32.mrb[19].mxu1  ;;  %v3196_v4 = vsel %vm3192_vm2, %v9972_v53, -inf  ;;  %v3008_v22 = vsel %vm1687_vm1, %v1491_v33, 0  ;;  %v8103_v20 = vunpack.i.h.bf16 %v8101_v3  ;;  %v8102_v0 = vunpack.i.l.bf16 %v8101_v3 }
 0x2df   : > { %7496 = vmatmul.mubr.msk.bf16.vlgmr.msra.gmra.mrb[72].mxu1 %vm1687_vm1, %v1296_v2  ;;  %3197 = vmax.xlane.f32.xlu1 %v3196_v4  ;;  %v2961_v5 = vsel %vm1687_vm1, %v1490_v54, 0  ;;  %v8088_v24 = vunpack.i.h.bf16 %v8086_v62  ;;  %v8087_v63 = vunpack.i.l.bf16 %v8086_v62 }
 0x2e0   : > { %7506 = vmatpush3.bf16.xpose.msra.mxu1 %v2961_v5  ;;  %7507 = vmatprep.mubr.msk.bf16.mxu1 %vm9082_vm0, %v11775_v26  ;;  %v1299_v36 = vpack.c.bf16 %v8103_v20, %v8102_v0 }
 0x2e1   : > { %v8111_v35 = vpop.permute.xlu0 %8110  ;;  %7517 = vmatprep.subr.bf16.mxu1 %v11775_v26  ;;  %v1298_v31 = vpack.c.bf16 %v8088_v24, %v8087_v63 }
 0x2e2   : > { %v8096_v1 = vpop.permute.xlu1 %8095  ;;  %v8113_v30 = vunpack.i.h.bf16 %v8111_v35  ;;  %v8112_v55 = vunpack.i.l.bf16 %v8111_v35 }
 0x2e3   : > { %v8098_v52 = vunpack.i.h.bf16 %v8096_v1  ;;  %v8097_v14 = vunpack.i.l.bf16 %v8096_v1  ;;  %7502 = vmatmul.mubr.msk.bf16.vlgmr.msra.gmra.mrb[76].mxu0 %vm1687_vm1, %v1297_v16 }
 0x2e4   : > { %v9984_v27 = vpop.f32.mrb[20].mxu1  ;;  %7512 = vmatpush3.bf16.xpose.msra.mxu0 %v3008_v22  ;;  %7513 = vmatprep.mubr.msk.bf16.mxu0 %vm9082_vm0, %v11775_v26  ;;  %v1493_v7 = vpack.c.bf16 %v8113_v30, %v8112_v55 }
 0x2e5   : > { %v7353_v32 = vpop.f32.mrb[21].mxu1  ;;  %v3199_v34 = vsel %vm3192_vm2, %v9984_v27, -inf  ;;  %v1492_v43 = vpack.c.bf16 %v8098_v52, %v8097_v14  ;;  %7523 = vmatprep.subr.bf16.mxu0 %v11775_v26  ;;  %v8121_v37 = vpop.permute.xlu0 %8120 }
 0x2e6   : > { %3200 = vmax.xlane.f32.xlu0 %v3199_v34  ;;  %v9991_v44 = vpop.f32.mrb[22].mxu1  ;;  %v8106_v61 = vpop.permute.xlu1 %8105  ;;  %v3102_v33 = vsel %vm1687_vm1, %v1493_v7, 0  ;;  %v8123_v5 = vunpack.i.h.bf16 %v8121_v37  ;;  %v8122_v24 = vunpack.i.l.bf16 %v8121_v37 }
 0x2e7   : > { %v7354_v57 = vpop.f32.mrb[23].mxu1  ;;  %7508 = vmatmul.mubr.msk.bf16.vlgmr.msra.gmra.mrb[76].mxu1 %vm1687_vm1, %v1298_v31  ;;  %v3055_v6 = vsel %vm1687_vm1, %v1492_v43, 0  ;;  %v8108_v2 = vunpack.i.h.bf16 %v8106_v61  ;;  %v8107_v3 = vunpack.i.l.bf16 %v8106_v61  ;;  %v3202_v54 = vsel %vm3192_vm2, %v9991_v44, -inf }
 0x2e8   : > { %7518 = vmatpush3.bf16.xpose.msra.mxu1 %v3055_v6  ;;  %7519 = vmatprep.mubr.msk.bf16.mxu1 %vm9082_vm0, %v11775_v26  ;;  %v1301_v0 = vpack.c.bf16 %v8123_v5, %v8122_v24 }
 0x2e9   : > { %7529 = vmatprep.subr.bf16.mxu1 %v11775_v26  ;;  %v1300_v63 = vpack.c.bf16 %v8108_v2, %v8107_v3 }
 0x2ea   : > { %3203 = vmax.xlane.f32.xlu0 %v3202_v54  ;;  %v8116_v62 = vpop.permute.xlu1 %8115 }
 0x2eb   : > { %v8118_v29 = vunpack.i.h.bf16 %v8116_v62  ;;  %v8117_v4 = vunpack.i.l.bf16 %v8116_v62  ;;  %7514 = vmatmul.mubr.msk.bf16.vlgmr.msra.gmra.mrb[80].mxu0 %vm1687_vm1, %v1299_v36 }
 0x2ec   : > { %v10002_v16 = vpop.f32.mrb[24].mxu1  ;;  %7524 = vmatpush3.bf16.xpose.msra.mxu0 %v3102_v33  ;;  %7525 = vmatprep.mubr.msk.bf16.mxu0 %vm9082_vm0, %v11775_v26 }
 0x2ed   : > { %v7359_v35 = vpop.f32.mrb[25].mxu1  ;;  %v3205_v1 = vsel %vm3192_vm2, %v10002_v16, -inf  ;;  %v1494_v22 = vpack.c.bf16 %v8118_v29, %v8117_v4  ;;  %7535 = vmatprep.subr.bf16.mxu0 %v11775_v26 }
 0x2ee   : > { %3206 = vmax.xlane.f32.xlu1 %v3205_v1  ;;  %v10009_v30 = vpop.f32.mrb[26].mxu1  ;;  %v8126_v55 = vpop.permute.xlu1 %8125 }
 0x2ef   : > { %v7360_v52 = vpop.f32.mrb[27].mxu1  ;;  %7520 = vmatmul.mubr.msk.bf16.vlgmr.msra.gmra.mrb[80].mxu1 %vm1687_vm1, %v1300_v63  ;;  %v3208_v14 = vsel %vm3192_vm2, %v10009_v30, -inf  ;;  %v3149_v20 = vsel %vm1687_vm1, %v1494_v22, 0  ;;  %v8128_v31 = vunpack.i.h.bf16 %v8126_v55  ;;  %v8127_v32 = vunpack.i.l.bf16 %v8126_v55 }
 0x2f0   : > { %3209 = vmax.xlane.f32.xlu0 %v3208_v14  ;;  %7530 = vmatpush3.bf16.xpose.msra.mxu1 %v3149_v20 }
 0x2f1   : > { %7531 = vmatprep.mubr.msk.bf16.mxu1 %vm9082_vm0, %v11775_v26  ;;  %7541 = vmatprep.subr.bf16.mxu1 %v11775_v26  ;;  %v1302_v43 = vpack.c.bf16 %v8128_v31, %v8127_v32 }
 0x2f3   : > { %7526 = vmatmul.mubr.msk.bf16.vlgmr.msra.gmra.mrb[84].mxu0 %vm1687_vm1, %v1301_v0  ;;  %v10072_v0 = vpop.permute.xlu0 %8140  ;;  %v10074_v31 = vpop.permute.xlu1 %8130 }
 0x2f4   : > { %v10019_v34 = vpop.f32.mrb[28].mxu1  ;;  %7536 = vmatpush3.bf16.msra.mxu0 %v1655_v42  ;;  %7537 = vmatprep.mubr.msk.bf16.mxu0 %vm9082_vm0, %v11775_v26  ;;  %11879 = vst [vmem:[#allocation34_spill] sm:$0xff] %v10072_v0  ;;  %11880 = vst [vmem:[#allocation35_spill] sm:$0xff] %v10074_v31 }
 0x2f5   : > { %v7365_v61 = vpop.f32.mrb[29].mxu1  ;;  %v3211_v57 = vsel %vm3192_vm2, %v10019_v34, -inf  ;;  %7547 = vmatprep.subr.bf16.mxu0 %v11775_v26 }
 0x2f6   : > { %3212 = vmax.xlane.f32.xlu1 %v3211_v57  ;;  %v10029_v6 = vpop.f32.mrb[30].mxu1 }
 0x2f7   : > { %v7366_v7 = vpop.f32.mrb[31].mxu1  ;;  %7532 = vmatmul.mubr.msk.bf16.vlgmr.msra.gmra.mrb[84].mxu1 %vm1687_vm1, %v1302_v43  ;;  %v3214_v15 = vsel %vm3192_vm2, %v10029_v6, -inf  ;;  %v10076_v32 = vpop.permute.xlu0 %8150 }
 0x2f8   : > { %3215 = vmax.xlane.f32.xlu0 %v3214_v15  ;;  %7542 = vmatpush3.bf16.msra.mxu1 %v1656_v45  ;;  %11881 = vst [vmem:[#allocation36_spill] sm:$0xff] %v10076_v32  ;;  %v10078_v43 = vpop.permute.xlu1 %8135 }
 0x2f9   : > { %7543 = vmatprep.mubr.msk.bf16.mxu1 %vm9082_vm0, %v11775_v26  ;;  %7553 = vmatprep.subr.bf16.mxu1 %v11775_v26  ;;  %11882 = vst [vmem:[#allocation37_spill] sm:$0xff] %v10078_v43 }
 0x2fb   : > { %v10040_v23 = vpop.f32.mrb[32].mxu0  ;;  %v10080_v61 = vpop.permute.xlu0 %8160 }
 0x2fc   : > { %v7371_v42 = vpop.f32.mrb[33].mxu0  ;;  %v3217_v36 = vsel %vm3192_vm2, %v10040_v23, -inf  ;;  %11883 = vst [vmem:[#allocation38_spill] sm:$0xff] %v10080_v61  ;;  %v10082_v57 = vpop.permute.xlu1 %8145 }
 0x2fd   : > { %v10044_v37 = vpop.f32.mrb[34].mxu0  ;;  %3218 = vmax.xlane.f32.xlu1 %v3217_v36  ;;  %11884 = vst [vmem:[#allocation39_spill] sm:$0xff] %v10082_v57 }
 0x2fe   : > { %v7372_v2 = vpop.f32.mrb[35].mxu0  ;;  %v3220_v3 = vsel %vm3192_vm2, %v10044_v37, -inf }
 0x2ff   : > { %3221 = vmax.xlane.f32.xlu0 %v3220_v3  ;;  %v10084_v7 = vpop.permute.xlu0 %8170 }
 0x300   : > { %11885 = vst [vmem:[#allocation40_spill] sm:$0xff] %v10084_v7  ;;  %v10086_v15 = vpop.permute.xlu1 %8155 }
 0x301   : > { %11886 = vst [vmem:[#allocation41_spill] sm:$0xff] %v10086_v15 }
 0x303   : > { %v10048_v11 = vpop.f32.mrb[32].mxu1  ;;  %v10088_v42 = vpop.permute.xlu0 %8180 }
 0x304   : > { %v7377_v18 = vpop.f32.mrb[33].mxu1  ;;  %v3223_v45 = vsel %vm3192_vm2, %v10048_v11, -inf  ;;  %11887 = vst [vmem:[#allocation42_spill] sm:$0xff] %v10088_v42  ;;  %v10090_v36 = vpop.permute.xlu1 %8165 }
 0x305   : > { %3224 = vmax.xlane.f32.xlu1 %v3223_v45  ;;  %v10052_v54 = vpop.f32.mrb[34].mxu1  ;;  %11888 = vst [vmem:[#allocation43_spill] sm:$0xff] %v10090_v36 }
 0x306   : > { %v3226_v62 = vsel %vm3192_vm2, %v10052_v54, -inf  ;;  %v7378_v29 = vpop.f32.mrb[35].mxu1 }
 0x307   : > { %3227 = vmax.xlane.f32.xlu0 %v3226_v62  ;;  %v10092_v2 = vpop.permute.xlu0 %8190 }
 0x308   : > { %11889 = vst [vmem:[#allocation44_spill] sm:$0xff] %v10092_v2  ;;  %v10094_v3 = vpop.permute.xlu1 %8175 }
 0x309   : > { %11890 = vst [vmem:[#allocation45_spill] sm:$0xff] %v10094_v3 }
 0x30b   : > { %v10056_v4 = vpop.f32.mrb[36].mxu0  ;;  %v10100_v29 = vpop.permute.xlu0 %8195 }
 0x30c   : > { %v7383_v33 = vpop.f32.mrb[37].mxu0  ;;  %v3229_v5 = vsel %vm3192_vm2, %v10056_v4, -inf  ;;  %11891 = vst [vmem:[#allocation46_spill] sm:$0xff] %v10100_v29 }
 0x30d   : > { %v10060_v24 = vpop.f32.mrb[38].mxu0  ;;  %3230 = vmax.xlane.f32.xlu1 %v3229_v5 }
 0x30e   : > { %v3232_v63 = vsel %vm3192_vm2, %v10060_v24, -inf  ;;  %v7384_v35 = vpop.f32.mrb[39].mxu0 }
 0x30f   : > { %3233 = vmax.xlane.f32.xlu0 %v3232_v63  ;;  %v10106_v35 = vpop.permute.xlu1 %8185 }
 0x310   : > { %11892 = vst [vmem:[#allocation47_spill] sm:$0xff] %v10106_v35 }
 0x313   : > { %v10064_v1 = vpop.f32.mrb[36].mxu1 }
 0x314   : > { %v7389_v22 = vpop.f32.mrb[37].mxu1  ;;  %v3235_v55 = vsel %vm3192_vm2, %v10064_v1, -inf }
 0x315   : > { %3236 = vmax.xlane.f32.xlu1 %v3235_v55  ;;  %v10068_v52 = vpop.f32.mrb[38].mxu1  ;;  %v10108_v22 = vpop.permute.xlu0 %8200 }
 0x316   : > { %v3238_v14 = vsel %vm3192_vm2, %v10068_v52, -inf  ;;  %v7390_v20 = vpop.f32.mrb[39].mxu1  ;;  %11893 = vst [vmem:[#allocation48_spill] sm:$0xff] %v10108_v22 }
 0x317   : > { %3239 = vmax.xlane.f32.xlu0 %v3238_v14 }
 0x319   : > { %v10120_v10 = vpop.permute.xlu0 %8210 }
 0x31a   : > { %11895 = vst [vmem:[#allocation50_spill] sm:$0xff] %v10120_v10 }
 0x31d   : > { %v10132_v26 = vpop.permute.xlu0 %8220 }
 0x31e   : > { %11897 = vst [vmem:[#allocation52_spill] sm:$0xff] %v10132_v26 }
 0x352   : > { %v10096_v18 = vpop.f32.mrb[40].mxu0 }
 0x353   : > { %v7395_v45 = vpop.f32.mrb[41].mxu0  ;;  %v3241_v62 = vsel %vm3192_vm2, %v10096_v18, -inf }
 0x354   : > { %v10102_v33 = vpop.f32.mrb[42].mxu0  ;;  %3242 = vmax.xlane.f32.xlu1 %v3241_v62  ;;  %v10114_v45 = vpop.permute.xlu1 %8205 }
 0x355   : > { %v7396_v5 = vpop.f32.mrb[43].mxu0  ;;  %v3244_v63 = vsel %vm3192_vm2, %v10102_v33, -inf  ;;  %11894 = vst [vmem:[#allocation49_spill] sm:$0xff] %v10114_v45 }
 0x356   : > { %3245 = vmax.xlane.f32.xlu0 %v3244_v63 }
 0x358   : > { %v10122_v63 = vpop.permute.xlu1 %8215 }
 0x359   : > { %11896 = vst [vmem:[#allocation51_spill] sm:$0xff] %v10122_v63 }
 0x35a   : > { %v10110_v55 = vpop.f32.mrb[40].mxu1 }
 0x35b   : > { %v7401_v14 = vpop.f32.mrb[41].mxu1  ;;  %v3247_v20 = vsel %vm3192_vm2, %v10110_v55, -inf }
 0x35c   : > { %3248 = vmax.xlane.f32.xlu1 %v3247_v20  ;;  %v10116_v47 = vpop.f32.mrb[42].mxu1 }
 0x35d   : > { %v7402_v62 = vpop.f32.mrb[43].mxu1  ;;  %v3250_v5 = vsel %vm3192_vm2, %v10116_v47, -inf }
 0x35e   : > { %3251 = vmax.xlane.f32.xlu0 %v3250_v5  ;;  %v10134_v5 = vpop.permute.xlu1 %8225 }
 0x35f   : > { %11898 = vst [vmem:[#allocation53_spill] sm:$0xff] %v10134_v5 }
 0x362   : > { %v10124_v46 = vpop.f32.mrb[44].mxu0 }
 0x363   : > { %v7407_v14 = vpop.f32.mrb[45].mxu0  ;;  %v3253_v50 = vsel %vm3192_vm2, %v10124_v46, -inf }
 0x364   : > { %v10128_v13 = vpop.f32.mrb[46].mxu0  ;;  %3254 = vmax.xlane.f32.xlu1 %v3253_v50 }
 0x365   : > { %v7408_v20 = vpop.f32.mrb[47].mxu0  ;;  %v3256_v62 = vsel %vm3192_vm2, %v10128_v13, -inf }
 0x366   : > { %3257 = vmax.xlane.f32.xlu0 %v3256_v62 }
 0x36a   : > { %v3195_v12 = vpop.xlane.xlu0 %3194  ;;  %v10136_v28 = vpop.f32.mrb[44].mxu1 }
 0x36b   : > { %v3385_v14 = vsub.f32 %v9964_v56, %v3195_v12  ;;  %v7413_v63 = vpop.f32.mrb[45].mxu1  ;;  %v3259_v45 = vsel %vm3192_vm2, %v10136_v28, -inf }
 0x36c   : > { %v3198_v10 = vpop.xlane.xlu1 %3197  ;;  %3260 = vmax.xlane.f32.xlu1 %v3259_v45  ;;  %v10141_v50 = vpop.f32.mrb[46].mxu1 }
 0x36d   : > { %v3386_v20 = vsub.f32 %v9972_v53, %v3198_v10  ;;  %v7414_v29 = vpop.f32.mrb[47].mxu1  ;;  %v3262_v62 = vsel %vm3192_vm2, %v10141_v50, -inf  ;;  %v3449_v5 = vmul.f32 1.442695, %v3385_v14 }
 0x36e   : > { %3263 = vmax.xlane.f32.xlu0 %v3262_v62 }
 0x36f   : > { %v3451_v26 = vmul.f32 1.442695, %v3386_v20  ;;  %8449 = vpow2.f32 %v3449_v5 }
 0x371   : > { %8451 = vpow2.f32 %v3451_v26 }
 0x372   : > { %v10146_v22 = vpop.f32.mrb[48].mxu0 }
 0x373   : > { %v3201_v12 = vpop.xlane.xlu0 %3200  ;;  %v7419_v56 = vpop.f32.mrb[49].mxu0  ;;  %v3265_v63 = vsel %vm3192_vm2, %v10146_v22, -inf }
 0x374   : > { %v3387_v45 = vsub.f32 %v9984_v27, %v3201_v12  ;;  %v10151_v35 = vpop.f32.mrb[50].mxu0  ;;  %3266 = vmax.xlane.f32.xlu1 %v3265_v63 }
 0x375   : > { %v7420_v10 = vpop.f32.mrb[51].mxu0  ;;  %v3268_v53 = vsel %vm3192_vm2, %v10151_v35, -inf }
 0x376   : > { %v3453_v29 = vmul.f32 1.442695, %v3387_v45  ;;  %3269 = vmax.xlane.f32.xlu0 %v3268_v53 }
 0x377   : > { %v3204_v5 = vpop.xlane.xlu0 %3203 }
 0x378   : > { %v3388_v14 = vsub.f32 %v9991_v44, %v3204_v5  ;;  %8453 = vpow2.f32 %v3453_v29 }
 0x379   : > { %v10160_v12 = vpop.eup %8449 }
 0x37a   : > { %v3455_v20 = vmul.f32 1.442695, %v3388_v14  ;;  %v10156_v62 = vpop.f32.mrb[48].mxu1  ;;  %v3577_v5 = vsel %vm3192_vm2, %v10160_v12, 0.0 }
 0x37b   : > { %v3207_v56 = vpop.xlane.xlu1 %3206  ;;  %v7425_v26 = vpop.f32.mrb[49].mxu1  ;;  %v3271_v27 = vsel %vm3192_vm2, %v10156_v62, -inf }
 0x37c   : > { %8455 = vpow2.f32 %v3455_v20  ;;  %3272 = vmax.xlane.f32.xlu1 %v3271_v27  ;;  %v10162_v63 = vpop.f32.mrb[50].mxu1  ;;  %v10166_v53 = vpop.eup %8451  ;;  %v3389_v29 = vsub.f32 %v10002_v16, %v3207_v56 }
 0x37d   : > { %v3210_v45 = vpop.xlane.xlu0 %3209  ;;  %v3274_v10 = vsel %vm3192_vm2, %v10162_v63, -inf  ;;  %v7426_v44 = vpop.f32.mrb[51].mxu1  ;;  %v3580_v20 = vsel %vm3192_vm2, %v10166_v53, 0.0 }
 0x37e   : > { %3275 = vmax.xlane.f32.xlu0 %v3274_v10  ;;  %v3390_v14 = vsub.f32 %v10009_v30, %v3210_v45  ;;  %v3457_v26 = vmul.f32 1.442695, %v3389_v29 }
 0x380   : > { %3578 = vadd.xlane.f32.xlu1 %v3577_v5  ;;  %v3459_v16 = vmul.f32 1.442695, %v3390_v14  ;;  %8457 = vpow2.f32 %v3457_v26 }
 0x382   : > { %v10174_v27 = vpop.f32.mrb[52].mxu0  ;;  %3581 = vadd.xlane.f32.xlu0 %v3580_v20  ;;  %v10178_v2 = vpop.eup %8453  ;;  %8459 = vpow2.f32 %v3459_v16 }
 0x383   : > { %v7431_v39 = vpop.f32.mrb[53].mxu0  ;;  %v3277_v44 = vsel %vm3192_vm2, %v10174_v27, -inf  ;;  %v3213_v29 = vpop.xlane.xlu1 %3212 }
 0x384   : > { %v10180_v56 = vpop.f32.mrb[54].mxu0  ;;  %3278 = vmax.xlane.f32.xlu1 %v3277_v44  ;;  %v3583_v39 = vsel %vm3192_vm2, %v10178_v2, 0.0  ;;  %v3391_v20 = vsub.f32 %v10019_v34, %v3213_v29 }
 0x385   : > { %v3280_v30 = vsel %vm3192_vm2, %v10180_v56, -inf  ;;  %v7432_v45 = vpop.f32.mrb[55].mxu0  ;;  %v3216_v5 = vpop.xlane.xlu0 %3215 }
 0x386   : > { %v10184_v10 = vpop.eup %8455  ;;  %3281 = vmax.xlane.f32.xlu0 %v3280_v30  ;;  %v3392_v30 = vsub.f32 %v10029_v6, %v3216_v5  ;;  %v3461_v42 = vmul.f32 1.442695, %v3391_v20 }
 0x387   : > { %v3586_v14 = vsel %vm3192_vm2, %v10184_v10, 0.0 }
 0x388   : > { %3584 = vadd.xlane.f32.xlu1 %v3583_v39  ;;  %8461 = vpow2.f32 %v3461_v42 }
 0x38a   : > { %3587 = vadd.xlane.f32.xlu0 %v3586_v14  ;;  %v10191_v44 = vpop.f32.mrb[52].mxu1  ;;  %v10204_v14 = vpop.eup %8457 }
 0x38b   : > { %v7437_v45 = vpop.f32.mrb[53].mxu1  ;;  %v3283_v26 = vsel %vm3192_vm2, %v10191_v44, -inf }
 0x38c   : > { %3284 = vmax.xlane.f32.xlu1 %v3283_v26  ;;  %v10196_v3 = vpop.f32.mrb[54].mxu1  ;;  %v3463_v45 = vmul.f32 1.442695, %v3392_v30  ;;  %v10210_v26 = vpop.eup %8459 }
 0x38d   : > { %v3286_v16 = vsel %vm3192_vm2, %v10196_v3, -inf  ;;  %v7438_v39 = vpop.f32.mrb[55].mxu1  ;;  %v3592_v36 = vsel %vm3192_vm2, %v10210_v26, 0.0 }
 0x38e   : > { %v10200_v59 = vpop.f32.mrb[56].mxu0  ;;  %3287 = vmax.xlane.f32.xlu0 %v3286_v16  ;;  %v3219_v16 = vpop.xlane.xlu1 %3218  ;;  %8463 = vpow2.f32 %v3463_v45 }
 0x38f   : > { %v7443_v34 = vpop.f32.mrb[57].mxu0  ;;  %v3289_v29 = vsel %vm3192_vm2, %v10200_v59, -inf  ;;  %v3393_v61 = vsub.f32 %v10040_v23, %v3219_v16 }
 0x390   : > { %v10206_v7 = vpop.f32.mrb[58].mxu0  ;;  %3290 = vmax.xlane.f32.xlu1 %v3289_v29  ;;  %v3589_v34 = vsel %vm3192_vm2, %v10204_v14, 0.0  ;;  %v3222_v29 = vpop.xlane.xlu0 %3221 }
 0x391   : > { %v7444_v6 = vpop.f32.mrb[59].mxu0  ;;  %v3292_v5 = vsel %vm3192_vm2, %v10206_v7, -inf  ;;  %v3394_v15 = vsub.f32 %v10044_v37, %v3222_v29  ;;  %v3465_v49 = vmul.f32 1.442695, %v3393_v61 }
 0x392   : > { %3293 = vmax.xlane.f32.xlu0 %v3292_v5  ;;  %v10212_v20 = vpop.f32.mrb[56].mxu1  ;;  %v10234_v16 = vpop.eup %8461 }
 0x393   : > { %v7449_v39 = vpop.f32.mrb[57].mxu1  ;;  %8465 = vpow2.f32 %v3465_v49  ;;  %v3595_v57 = vsel %vm3192_vm2, %v10234_v16, 0.0 }
 0x394   : > { %3590 = vadd.xlane.f32.xlu1 %v3589_v34  ;;  %v10216_v30 = vpop.f32.mrb[58].mxu1  ;;  %v3295_v39 = vsel %vm3192_vm2, %v10212_v20, -inf }
 0x395   : > { %v7450_v6 = vpop.f32.mrb[59].mxu1 }
 0x396   : > { %v10221_v42 = vpop.f32.mrb[60].mxu0  ;;  %3593 = vadd.xlane.f32.xlu0 %v3592_v36  ;;  %v3298_v6 = vsel %vm3192_vm2, %v10216_v30, -inf }
 0x397   : > { %v7455_v5 = vpop.f32.mrb[61].mxu0  ;;  %v3301_v36 = vsel %vm3192_vm2, %v10221_v42, -inf }
 0x398   : > { %v10226_v45 = vpop.f32.mrb[62].mxu0  ;;  %3296 = vmax.xlane.f32.xlu1 %v3295_v39  ;;  %v3467_v5 = vmul.f32 1.442695, %v3394_v15 }
 0x399   : > { %v7456_v34 = vpop.f32.mrb[63].mxu0  ;;  %v3304_v39 = vsel %vm3192_vm2, %v10226_v45, -inf }
 0x39a   : > { %3299 = vmax.xlane.f32.xlu0 %v3298_v6  ;;  %v10230_v32 = vpop.f32.mrb[60].mxu1  ;;  %v10240_v34 = vpop.eup %8463  ;;  %8467 = vpow2.f32 %v3467_v5 }
 0x39b   : > { %v7461_v23 = vpop.f32.mrb[61].mxu1  ;;  %v3225_v6 = vpop.xlane.xlu1 %3224  ;;  %v3598_v0 = vsel %vm3192_vm2, %v10240_v34, 0.0 }
 0x39c   : > { %3302 = vmax.xlane.f32.xlu1 %v3301_v36  ;;  %v10236_v37 = vpop.f32.mrb[62].mxu1  ;;  %v3228_v36 = vpop.xlane.xlu0 %3227  ;;  %v3395_v41 = vsub.f32 %v10048_v11, %v3225_v6 }
 0x39d   : > { %v7462_v29 = vpop.f32.mrb[63].mxu1  ;;  %v3396_v43 = vsub.f32 %v10052_v54, %v3228_v36  ;;  %v10264_v6 = vpop.eup %8465 }
 0x39e   : > { %v10242_v61 = vpop.f32.mrb[64].mxu0  ;;  %3305 = vmax.xlane.f32.xlu0 %v3304_v39  ;;  %v3469_v31 = vmul.f32 1.442695, %v3395_v41  ;;  %11901 = vst [vmem:[#allocation56_spill] sm:$0xff] %v10264_v6 }
 0x39f   : > { %v7467_v23 = vpop.f32.mrb[65].mxu0 }
 0x3a0   : > { %v10246_v15 = vpop.f32.mrb[66].mxu0  ;;  %3596 = vadd.xlane.f32.xlu1 %v3595_v57  ;;  %v3307_v23 = vsel %vm3192_vm2, %v10230_v32, -inf  ;;  %8469 = vpow2.f32 %v3469_v31 }
 0x3a1   : > { %v7468_v29 = vpop.f32.mrb[67].mxu0  ;;  %v3316_v36 = vsel %vm3192_vm2, %v10246_v15, -inf }
 0x3a2   : > { %3599 = vadd.xlane.f32.xlu0 %v3598_v0  ;;  %v10251_v49 = vpop.f32.mrb[64].mxu1  ;;  %v3310_v29 = vsel %vm3192_vm2, %v10236_v37, -inf  ;;  %v3313_v0 = vsel %vm3192_vm2, %v10242_v61, -inf }
 0x3a3   : > { %v7473_v39 = vpop.f32.mrb[65].mxu1 }
 0x3a4   : > { %3308 = vmax.xlane.f32.xlu1 %v3307_v23  ;;  %v10256_v5 = vpop.f32.mrb[66].mxu1  ;;  %v3471_v39 = vmul.f32 1.442695, %v3396_v43  ;;  %v10270_v23 = vpop.eup %8467 }
 0x3a5   : > { %11899 = vst [vmem:[#allocation54_spill] sm:$0xff] %v10256_v5  ;;  %v7474_v57 = vpop.f32.mrb[67].mxu1  ;;  %11903 = vst [vmem:[#allocation58_spill] sm:$0xff] %v10270_v23  ;;  %v3604_v9 = vsel %vm3192_vm2, %v10270_v23, 0.0 }
 0x3a6   : > { %v10260_v60 = vpop.f32.mrb[68].mxu0  ;;  %3311 = vmax.xlane.f32.xlu0 %v3310_v29  ;;  %v3231_v57 = vpop.xlane.xlu1 %3230  ;;  %8471 = vpow2.f32 %v3471_v39 }
 0x3a7   : > { %11900 = vst [vmem:[#allocation55_spill] sm:$0xff] %v10260_v60  ;;  %v7479_v11 = vpop.f32.mrb[69].mxu0  ;;  %v3397_v25 = vsub.f32 %v10056_v4, %v3231_v57 }
 0x3a8   : > { %v10266_v19 = vpop.f32.mrb[70].mxu0  ;;  %3314 = vmax.xlane.f32.xlu1 %v3313_v0  ;;  %v3601_v11 = vsel %vm3192_vm2, %v10264_v6, 0.0  ;;  %v3234_v0 = vpop.xlane.xlu0 %3233 }
 0x3a9   : > { %11902 = vst [vmem:[#allocation57_spill] sm:$0xff] %v10266_v19  ;;  %v7480_v54 = vpop.f32.mrb[71].mxu0  ;;  %v3398_v6 = vsub.f32 %v10060_v24, %v3234_v0  ;;  %v3473_v8 = vmul.f32 1.442695, %v3397_v25 }
 0x3aa   : > { %3317 = vmax.xlane.f32.xlu0 %v3316_v36  ;;  %v10272_v41 = vpop.f32.mrb[68].mxu1  ;;  %v10294_v57 = vpop.eup %8469 }
 0x3ab   : > { %11904 = vst [vmem:[#allocation59_spill] sm:$0xff] %v10272_v41  ;;  %v7485_v29 = vpop.f32.mrb[69].mxu1  ;;  %11906 = vst [vmem:[#allocation61_spill] sm:$0xff] %v10294_v57  ;;  %8473 = vpow2.f32 %v3473_v8 }
 0x3ac   : > { %3602 = vadd.xlane.f32.xlu1 %v3601_v11  ;;  %v10276_v43 = vpop.f32.mrb[70].mxu1  ;;  %v3319_v29 = vsel %vm3192_vm2, %v10251_v49, -inf }
 0x3ad   : > { %v7486_v54 = vpop.f32.mrb[71].mxu1 }
 0x3ae   : > { %v10281_v31 = vpop.f32.mrb[72].mxu0  ;;  %3605 = vadd.xlane.f32.xlu0 %v3604_v9  ;;  %v3322_v54 = vsel %vm3192_vm2, %v10256_v5, -inf  ;;  %v3325_v9 = vsel %vm3192_vm2, %v10260_v60, -inf  ;;  %v3607_v60 = vsel %vm3192_vm2, %v10294_v57, 0.0 }
 0x3af   : > { %v7491_v36 = vpop.f32.mrb[73].mxu0 }
 0x3b0   : > { %v10286_v39 = vpop.f32.mrb[74].mxu0  ;;  %3320 = vmax.xlane.f32.xlu1 %v3319_v29  ;;  %v3475_v36 = vmul.f32 1.442695, %v3398_v6  ;;  %v3328_v29 = vsel %vm3192_vm2, %v10266_v19, -inf }
 0x3b1   : > { %11905 = vst [vmem:[#allocation60_spill] sm:$0xff] %v10286_v39  ;;  %v7492_v11 = vpop.f32.mrb[75].mxu0 }
 0x3b2   : > { %3323 = vmax.xlane.f32.xlu0 %v3322_v54  ;;  %v10290_v23 = vpop.f32.mrb[72].mxu1  ;;  %v10300_v11 = vpop.eup %8471  ;;  %8475 = vpow2.f32 %v3475_v36 }
 0x3b3   : > { %v7497_v4 = vpop.f32.mrb[73].mxu1  ;;  %11907 = vst [vmem:[#allocation62_spill] sm:$0xff] %v10300_v11  ;;  %v3237_v54 = vpop.xlane.xlu1 %3236  ;;  %v3610_v19 = vsel %vm3192_vm2, %v10300_v11, 0.0 }
 0x3b4   : > { %3326 = vmax.xlane.f32.xlu1 %v3325_v9  ;;  %v10296_v24 = vpop.f32.mrb[74].mxu1  ;;  %v3240_v9 = vpop.xlane.xlu0 %3239  ;;  %v3399_v21 = vsub.f32 %v10064_v1, %v3237_v54  ;;  %v3337_v1 = vsel %vm3192_vm2, %v10281_v31, -inf }
 0x3b5   : > { %v7498_v0 = vpop.f32.mrb[75].mxu1  ;;  %v3400_v57 = vsub.f32 %v10068_v52, %v3240_v9  ;;  %v10324_v54 = vpop.eup %8473  ;;  %v3340_v9 = vsel %vm3192_vm2, %v10286_v39, -inf }
 0x3b6   : > { %v10302_v25 = vpop.f32.mrb[76].mxu0  ;;  %3329 = vmax.xlane.f32.xlu0 %v3328_v29  ;;  %v3477_v5 = vmul.f32 1.442695, %v3399_v21  ;;  %11909 = vst [vmem:[#allocation64_spill] sm:$0xff] %v10324_v54 }
 0x3b7   : > { %v7503_v4 = vpop.f32.mrb[77].mxu0 }
 0x3b8   : > { %v10306_v6 = vpop.f32.mrb[78].mxu0  ;;  %3608 = vadd.xlane.f32.xlu1 %v3607_v60  ;;  %v3331_v4 = vsel %vm3192_vm2, %v10272_v41, -inf  ;;  %8477 = vpow2.f32 %v3477_v5  ;;  %v3343_v5 = vsel %vm3192_vm2, %v10290_v23, -inf }
 0x3b9   : > { %11908 = vst [vmem:[#allocation63_spill] sm:$0xff] %v10306_v6  ;;  %v7504_v0 = vpop.f32.mrb[79].mxu0 }
 0x3ba   : > { %3611 = vadd.xlane.f32.xlu0 %v3610_v19  ;;  %v10311_v8 = vpop.f32.mrb[76].mxu1  ;;  %v3334_v0 = vsel %vm3192_vm2, %v10276_v43, -inf }
 0x3bb   : > { %v7509_v29 = vpop.f32.mrb[77].mxu1 }
 0x3bc   : > { %3332 = vmax.xlane.f32.xlu1 %v3331_v4  ;;  %v10316_v36 = vpop.f32.mrb[78].mxu1  ;;  %v3479_v29 = vmul.f32 1.442695, %v3400_v57  ;;  %v10330_v4 = vpop.eup %8475 }
 0x3bd   : > { %v7510_v60 = vpop.f32.mrb[79].mxu1  ;;  %11910 = vst [vmem:[#allocation65_spill] sm:$0xff] %v10330_v4 }
 0x3be   : > { %v10320_v11 = vpop.f32.mrb[80].mxu0  ;;  %3335 = vmax.xlane.f32.xlu0 %v3334_v0  ;;  %v3613_v0 = vsel %vm3192_vm2, %v10324_v54, 0.0  ;;  %8479 = vpow2.f32 %v3479_v29  ;;  %v3346_v29 = vsel %vm3192_vm2, %v10296_v24, -inf }
 0x3bf   : > { %v7515_v19 = vpop.f32.mrb[81].mxu0 }
 0x3c0   : > { %v10326_v41 = vpop.f32.mrb[82].mxu0  ;;  %3338 = vmax.xlane.f32.xlu1 %v3337_v1  ;;  %v3616_v1 = vsel %vm3192_vm2, %v10330_v4, 0.0  ;;  %v3349_v4 = vsel %vm3192_vm2, %v10302_v25, -inf }
 0x3c1   : > { %v7516_v52 = vpop.f32.mrb[83].mxu0 }
 0x3c2   : > { %3341 = vmax.xlane.f32.xlu0 %v3340_v9  ;;  %v10332_v21 = vpop.f32.mrb[80].mxu1  ;;  %v10352_v54 = vpop.eup %8477 }
 0x3c3   : > { %11911 = vst [vmem:[#allocation66_spill] sm:$0xff] %v10332_v21  ;;  %v7521_v60 = vpop.f32.mrb[81].mxu1  ;;  %11913 = vst [vmem:[#allocation68_spill] sm:$0xff] %v10352_v54 }
 0x3c4   : > { %3614 = vadd.xlane.f32.xlu1 %v3613_v0  ;;  %v10336_v57 = vpop.f32.mrb[82].mxu1 }
 0x3c5   : > { %11912 = vst [vmem:[#allocation67_spill] sm:$0xff] %v10336_v57  ;;  %v7522_v19 = vpop.f32.mrb[83].mxu1 }
 0x3c6   : > { %v10340_v52 = vpop.f32.mrb[84].mxu0  ;;  %3617 = vadd.xlane.f32.xlu0 %v3616_v1 }
 0x3c7   : > { %v7527_v39 = vpop.f32.mrb[85].mxu0 }
 0x3c8   : > { %v10344_v9 = vpop.f32.mrb[86].mxu0  ;;  %3344 = vmax.xlane.f32.xlu1 %v3343_v5  ;;  %v3352_v5 = vsel %vm3192_vm2, %v10306_v6, -inf  ;;  %v3361_v6 = vsel %vm3192_vm2, %v10320_v11, -inf }
 0x3c9   : > { %v7528_v60 = vpop.f32.mrb[87].mxu0 }
 0x3ca   : > { %3347 = vmax.xlane.f32.xlu0 %v3346_v29  ;;  %v10348_v0 = vpop.f32.mrb[84].mxu1  ;;  %v10358_v60 = vpop.eup %8479  ;;  %v3619_v29 = vsel %vm3192_vm2, %v10352_v54, 0.0 }
 0x3cb   : > { %v7533_v19 = vpop.f32.mrb[85].mxu1  ;;  %11915 = vst [vmem:[#allocation70_spill] sm:$0xff] %v10358_v60 }
 0x3cc   : > { %3350 = vmax.xlane.f32.xlu1 %v3349_v4  ;;  %v10354_v39 = vpop.f32.mrb[86].mxu1  ;;  %v3622_v19 = vsel %vm3192_vm2, %v10358_v60, 0.0  ;;  %v3355_v4 = vsel %vm3192_vm2, %v10311_v8, -inf }
 0x3cd   : > { %11914 = vst [vmem:[#allocation69_spill] sm:$0xff] %v10354_v39  ;;  %v7534_v1 = vpop.f32.mrb[87].mxu1 }
 0x3ce   : > { %3353 = vmax.xlane.f32.xlu0 %v3352_v5  ;;  %v3358_v1 = vsel %vm3192_vm2, %v10316_v36, -inf  ;;  %v3364_v5 = vsel %vm3192_vm2, %v10326_v41, -inf }
 0x3d0   : > { %3620 = vadd.xlane.f32.xlu1 %v3619_v29  ;;  %v3367_v29 = vsel %vm3192_vm2, %v10332_v21, -inf }
 0x3d2   : > { %3623 = vadd.xlane.f32.xlu0 %v3622_v19  ;;  %v3373_v19 = vsel %vm3192_vm2, %v10340_v52, -inf }
 0x3d4   : > { %3356 = vmax.xlane.f32.xlu1 %v3355_v4  ;;  %v3382_v4 = vsel %vm3192_vm2, %v10354_v39, -inf }
 0x3d6   : > { %3359 = vmax.xlane.f32.xlu0 %v3358_v1 }
 0x3d8   : > { %3362 = vmax.xlane.f32.xlu1 %v3361_v6  ;;  %v3370_v6 = vsel %vm3192_vm2, %v10336_v57, -inf }
 0x3da   : > { %3365 = vmax.xlane.f32.xlu0 %v3364_v5 }
 0x3dc   : > { %3368 = vmax.xlane.f32.xlu1 %v3367_v29  ;;  %v3376_v29 = vsel %vm3192_vm2, %v10344_v9, -inf }
 0x3de   : > { %3374 = vmax.xlane.f32.xlu0 %v3373_v19 }
 0x3e0   : > { %3383 = vmax.xlane.f32.xlu1 %v3382_v4  ;;  %v3379_v4 = vsel %vm3192_vm2, %v10348_v0, -inf }
 0x3e1   : > { %v3243_v1 = vpop.xlane.xlu1 %3242 }
 0x3e2   : > { %v3401_v60 = vsub.f32 %v10096_v18, %v3243_v1  ;;  %3371 = vmax.xlane.f32.xlu0 %v3370_v6 }
 0x3e3   : > { %v3246_v5 = vpop.xlane.xlu0 %3245 }
 0x3e4   : > { %v3481_v54 = vmul.f32 1.442695, %v3401_v60  ;;  %v3402_v21 = vsub.f32 %v10102_v33, %v3246_v5 }
 0x3e6   : > { %8481 = vpow2.f32 %v3481_v54  ;;  %v3483_v19 = vmul.f32 1.442695, %v3402_v21  ;;  %3377 = vmax.xlane.f32.xlu0 %v3376_v29 }
 0x3e8   : > { %8483 = vpow2.f32 %v3483_v19 }
 0x3e9   : > { %v3249_v39 = vpop.xlane.xlu1 %3248 }
 0x3ea   : > { %v3403_v57 = vsub.f32 %v10110_v55, %v3249_v39  ;;  %3380 = vmax.xlane.f32.xlu0 %v3379_v4 }
 0x3eb   : > { %v3252_v18 = vpop.xlane.xlu0 %3251 }
 0x3ec   : > { %v3485_v1 = vmul.f32 1.442695, %v3403_v57  ;;  %v3404_v60 = vsub.f32 %v10116_v47, %v3252_v18 }
 0x3ee   : > { %8485 = vpow2.f32 %v3485_v1  ;;  %v3487_v33 = vmul.f32 1.442695, %v3404_v60 }
 0x3f0   : > { %v10388_v6 = vpop.eup %8481  ;;  %8487 = vpow2.f32 %v3487_v33 }
 0x3f1   : > { %v3255_v54 = vpop.xlane.xlu1 %3254  ;;  %v3625_v21 = vsel %vm3192_vm2, %v10388_v6, 0.0 }
 0x3f2   : > { %v10392_v5 = vpop.eup %8483  ;;  %v3405_v29 = vsub.f32 %v10124_v46, %v3255_v54  ;;  %3626 = vadd.xlane.f32.xlu1 %v3625_v21 }
 0x3f3   : > { %v3258_v55 = vpop.xlane.xlu0 %3257  ;;  %v3628_v57 = vsel %vm3192_vm2, %v10392_v5, 0.0 }
 0x3f4   : > { %v3489_v39 = vmul.f32 1.442695, %v3405_v29  ;;  %v3406_v47 = vsub.f32 %v10128_v13, %v3258_v55  ;;  %3629 = vadd.xlane.f32.xlu0 %v3628_v57 }
 0x3f6   : > { %8489 = vpow2.f32 %v3489_v39  ;;  %v3491_v19 = vmul.f32 1.442695, %v3406_v47 }
 0x3f8   : > { %v10398_v4 = vpop.eup %8485  ;;  %8491 = vpow2.f32 %v3491_v19 }
 0x3f9   : > { %v3261_v18 = vpop.xlane.xlu1 %3260  ;;  %v3631_v1 = vsel %vm3192_vm2, %v10398_v4, 0.0 }
 0x3fa   : > { %v10402_v60 = vpop.eup %8487  ;;  %v3407_v46 = vsub.f32 %v10136_v28, %v3261_v18  ;;  %3632 = vadd.xlane.f32.xlu1 %v3631_v1 }
 0x3fb   : > { %v3264_v33 = vpop.xlane.xlu0 %3263  ;;  %v3634_v54 = vsel %vm3192_vm2, %v10402_v60, 0.0 }
 0x3fc   : > { %v3493_v13 = vmul.f32 1.442695, %v3407_v46  ;;  %v3408_v21 = vsub.f32 %v10141_v50, %v3264_v33  ;;  %3635 = vadd.xlane.f32.xlu0 %v3634_v54 }
 0x3fe   : > { %8493 = vpow2.f32 %v3493_v13  ;;  %v3495_v29 = vmul.f32 1.442695, %v3408_v21 }
 0x400   : > { %v10408_v55 = vpop.eup %8489  ;;  %8495 = vpow2.f32 %v3495_v29 }
 0x401   : > { %v3267_v57 = vpop.xlane.xlu1 %3266  ;;  %v3637_v39 = vsel %vm3192_vm2, %v10408_v55, 0.0 }
 0x402   : > { %v10412_v47 = vpop.eup %8491  ;;  %v3409_v28 = vsub.f32 %v10146_v22, %v3267_v57  ;;  %3638 = vadd.xlane.f32.xlu1 %v3637_v39 }
 0x403   : > { %v3270_v19 = vpop.xlane.xlu0 %3269  ;;  %v3640_v18 = vsel %vm3192_vm2, %v10412_v47, 0.0 }
 0x404   : > { %v3497_v50 = vmul.f32 1.442695, %v3409_v28  ;;  %v3410_v1 = vsub.f32 %v10151_v35, %v3270_v19  ;;  %3641 = vadd.xlane.f32.xlu0 %v3640_v18 }
 0x406   : > { %8497 = vpow2.f32 %v3497_v50  ;;  %v3499_v46 = vmul.f32 1.442695, %v3410_v1 }
 0x408   : > { %v10418_v33 = vpop.eup %8493  ;;  %8499 = vpow2.f32 %v3499_v46 }
 0x409   : > { %v3273_v54 = vpop.xlane.xlu1 %3272  ;;  %v3643_v13 = vsel %vm3192_vm2, %v10418_v33, 0.0 }
 0x40a   : > { %v10422_v21 = vpop.eup %8495  ;;  %v3411_v22 = vsub.f32 %v10156_v62, %v3273_v54  ;;  %3644 = vadd.xlane.f32.xlu1 %v3643_v13 }
 0x40b   : > { %v3276_v29 = vpop.xlane.xlu0 %3275  ;;  %v3646_v57 = vsel %vm3192_vm2, %v10422_v21, 0.0 }
 0x40c   : > { %v3501_v35 = vmul.f32 1.442695, %v3411_v22  ;;  %v3412_v39 = vsub.f32 %v10162_v63, %v3276_v29  ;;  %3647 = vadd.xlane.f32.xlu0 %v3646_v57 }
 0x40d   : > { %v3579_v28 = vpop.xlane.xlu1 %3578 }
 0x40e   : > { %8501 = vpow2.f32 %v3501_v35  ;;  %v3503_v19 = vmul.f32 1.442695, %v3412_v39 }
 0x40f   : > { %8503 = vrcp.f32 %v3579_v28  ;;  %v3582_v18 = vpop.xlane.xlu0 %3581 }
 0x410   : > { %v10428_v50 = vpop.eup %8497  ;;  %8505 = vpow2.f32 %v3503_v19 }
 0x411   : > { %8507 = vrcp.f32 %v3582_v18  ;;  %v3279_v1 = vpop.xlane.xlu1 %3278  ;;  %v3649_v62 = vsel %vm3192_vm2, %v10428_v50, 0.0 }
 0x412   : > { %v10432_v46 = vpop.eup %8499  ;;  %v3413_v54 = vsub.f32 %v10174_v27, %v3279_v1  ;;  %3650 = vadd.xlane.f32.xlu1 %v3649_v62 }
 0x413   : > { %11916 = vst [vmem:[#allocation71_spill] sm:$0xff] %v10432_v46  ;;  %v3282_v63 = vpop.xlane.xlu0 %3281  ;;  %v3652_v13 = vsel %vm3192_vm2, %v10432_v46, 0.0 }
 0x414   : > { %v3505_v22 = vmul.f32 1.442695, %v3413_v54  ;;  %v3414_v29 = vsub.f32 %v10180_v56, %v3282_v63  ;;  %3653 = vadd.xlane.f32.xlu0 %v3652_v13 }
 0x415   : > { %v3585_v57 = vpop.xlane.xlu1 %3584 }
 0x416   : > { %8509 = vpow2.f32 %v3505_v22  ;;  %v3507_v35 = vmul.f32 1.442695, %v3414_v29 }
 0x417   : > { %8511 = vrcp.f32 %v3585_v57  ;;  %v3588_v39 = vpop.xlane.xlu0 %3587 }
 0x418   : > { %v10438_v28 = vpop.eup %8501  ;;  %8513 = vpow2.f32 %v3507_v35 }
 0x419   : > { %11917 = vst [vmem:[#allocation72_spill] sm:$0xff] %v10438_v28  ;;  %v8504_v19 = vpop.eup %8503  ;;  %8515 = vrcp.f32 %v3588_v39  ;;  %v3285_v27 = vpop.xlane.xlu1 %3284  ;;  %v3655_v18 = vsel %vm3192_vm2, %v10438_v28, 0.0 }
 0x41a   : > { %v10442_v1 = vpop.eup %8505  ;;  %v3415_v62 = vsub.f32 %v10191_v44, %v3285_v27  ;;  %3656 = vadd.xlane.f32.xlu1 %v3655_v18  ;;  %v3833_v13 = vmul.f32 %v8504_v19, %v10160_v12 }
 0x41b   : > { %v8508_v56 = vpop.eup %8507  ;;  %v3288_v54 = vpop.xlane.xlu0 %3287  ;;  %v3658_v63 = vsel %vm3192_vm2, %v10442_v1, 0.0 }
 0x41c   : > { %v3834_v22 = vmul.f32 %v8508_v56, %v10166_v53  ;;  %v3509_v29 = vmul.f32 1.442695, %v3415_v62  ;;  %v3416_v57 = vsub.f32 %v10196_v3, %v3288_v54  ;;  %3659 = vadd.xlane.f32.xlu0 %v3658_v63  ;;  %v11918_v3 = vpack.c.bf16 %v9659_v58, %v9648_v48 }
 0x41d   : > { %v3291_v35 = vpop.xlane.xlu1 %3290 }
 0x41e   : > { %8517 = vpow2.f32 %v3509_v29  ;;  %v3511_v39 = vmul.f32 1.442695, %v3416_v57  ;;  %v3417_v28 = vsub.f32 %v10200_v59, %v3291_v35  ;;  %v3897_v44 = vpack.c.bf16 %v3834_v22, %v3833_v13 }
 0x41f   : > { %v3294_v27 = vpop.xlane.xlu0 %3293  ;;  %v11919_v59 = vmov 0.0  }
 0x420   : > { %v10451_v18 = vpop.eup %8509  ;;  %v3513_v46 = vmul.f32 1.442695, %v3417_v28  ;;  %7538 = vmatmul.mubr.msk.bf16.vlgmr.msra.gmra.mrb[88].mxu0 %vm3192_vm2, %v3897_v44  ;;  %v3418_v12 = vsub.f32 %v10206_v7, %v3294_v27  ;;  %8519 = vpow2.f32 %v3511_v39 }
 0x421   : > { %v8512_v19 = vpop.eup %8511  ;;  %7548 = vmatpush3.bf16.msra.mxu0 %v11918_v3  ;;  %v3591_v53 = vpop.xlane.xlu1 %3590  ;;  %v3661_v62 = vsel %vm3192_vm2, %v10451_v18, 0.0  ;;  %7549 = vmatprep.mubr.msk.bf16.mxu0 %vm9082_vm0, %v11919_v59 }
 0x422   : > { %v10462_v56 = vpop.eup %8513  ;;  %8521 = vpow2.f32 %v3513_v46  ;;  %v3515_v28 = vmul.f32 1.442695, %v3418_v12  ;;  %3662 = vadd.xlane.f32.xlu0 %v3661_v62  ;;  %7559 = vmatprep.subr.bf16.mxu0 %v11919_v59  ;;  %v3835_v48 = vmul.f32 %v8512_v19, %v10178_v2 }
 0x423   : > { %v8516_v7 = vpop.eup %8515  ;;  %8523 = vrcp.f32 %v3591_v53  ;;  %v3594_v54 = vpop.xlane.xlu0 %3593  ;;  %v3664_v13 = vsel %vm3192_vm2, %v10462_v56, 0.0 }
 0x424   : > { %v3836_v58 = vmul.f32 %v8516_v7, %v10184_v10  ;;  %8525 = vpow2.f32 %v3515_v28  ;;  %v11920_v10 = vpack.c.bf16 %v9652_v51, %v9638_v40 }
 0x425   : > { %8527 = vrcp.f32 %v3594_v54  ;;  %v3297_v63 = vpop.xlane.xlu1 %3296 }
 0x426   : > { %v3419_v22 = vsub.f32 %v10212_v20, %v3297_v63  ;;  %3665 = vadd.xlane.f32.xlu0 %v3664_v13  ;;  %v3898_v46 = vpack.c.bf16 %v3836_v58, %v3835_v48 }
 0x427   : > { %v3300_v29 = vpop.xlane.xlu0 %3299 }
 0x428   : > { %v10470_v57 = vpop.eup %8517  ;;  %v3517_v35 = vmul.f32 1.442695, %v3419_v22  ;;  %7544 = vmatmul.mubr.msk.bf16.vlgmr.msra.gmra.mrb[88].mxu1 %vm3192_vm2, %v3898_v46  ;;  %v3420_v2 = vsub.f32 %v10216_v30, %v3300_v29 }
 0x429   : > { %7554 = vmatpush3.bf16.msra.mxu1 %v11920_v10  ;;  %v3303_v39 = vpop.xlane.xlu1 %3302  ;;  %v3667_v44 = vsel %vm3192_vm2, %v10470_v57, 0.0  ;;  %7555 = vmatprep.mubr.msk.bf16.mxu1 %vm9082_vm0, %v11919_v59 }
 0x42a   : > { %8529 = vpow2.f32 %v3517_v35  ;;  %v3519_v20 = vmul.f32 1.442695, %v3420_v2  ;;  %v3421_v27 = vsub.f32 %v10221_v42, %v3303_v39  ;;  %3668 = vadd.xlane.f32.xlu0 %v3667_v44  ;;  %7565 = vmatprep.subr.bf16.mxu1 %v11919_v59  ;;  %v10483_v12 = vpop.eup %8519 }
 0x42b   : > { %v3306_v30 = vpop.xlane.xlu0 %3305  ;;  %v3670_v13 = vsel %vm3192_vm2, %v10483_v12, 0.0 }
 0x42c   : > { %v10485_v19 = vpop.eup %8521  ;;  %v3521_v40 = vmul.f32 1.442695, %v3421_v27  ;;  %v3422_v51 = vsub.f32 %v10226_v45, %v3306_v30  ;;  %8531 = vpow2.f32 %v3519_v20 }
 0x42d   : > { %v8524_v3 = vpop.eup %8523  ;;  %v3597_v53 = vpop.xlane.xlu1 %3596  ;;  %v3673_v62 = vsel %vm3192_vm2, %v10485_v19, 0.0 }
 0x42e   : > { %v10490_v28 = vpop.eup %8525  ;;  %8533 = vpow2.f32 %v3521_v40  ;;  %v3523_v42 = vmul.f32 1.442695, %v3422_v51  ;;  %3674 = vadd.xlane.f32.xlu0 %v3673_v62  ;;  %v3837_v58 = vmul.f32 %v8524_v3, %v10204_v14 }
 0x42f   : > { %v8528_v7 = vpop.eup %8527  ;;  %8535 = vrcp.f32 %v3597_v53  ;;  %v3600_v54 = vpop.xlane.xlu0 %3599  ;;  %v3676_v48 = vsel %vm3192_vm2, %v10490_v28, 0.0 }
 0x430   : > { %v3838_v45 = vmul.f32 %v8528_v7, %v10210_v26  ;;  %8537 = vpow2.f32 %v3523_v42  ;;  %3677 = vadd.xlane.f32.xlu1 %v3676_v48  ;;  %v11921_v26 = vpack.c.bf16 %v9701_v38, %v9689_v17 }
 0x431   : > { %8539 = vrcp.f32 %v3600_v54  ;;  %v3309_v63 = vpop.xlane.xlu1 %3308 }
 0x432   : > { %v3423_v22 = vsub.f32 %v10230_v32, %v3309_v63  ;;  %3671 = vadd.xlane.f32.xlu0 %v3670_v13  ;;  %v3899_v46 = vpack.c.bf16 %v3838_v45, %v3837_v58 }
 0x433   : > { %v3312_v29 = vpop.xlane.xlu0 %3311 }
 0x434   : > { %v10499_v35 = vpop.eup %8529  ;;  %v3525_v2 = vmul.f32 1.442695, %v3423_v22  ;;  %7550 = vmatmul.mubr.msk.bf16.vlgmr.msra.gmra.mrb[92].mxu0 %vm3192_vm2, %v3899_v46  ;;  %v3424_v14 = vsub.f32 %v10236_v37, %v3312_v29  ;;  %v11924_v29 = vld [vmem:[#allocation24_spill] sm:$0xff] }
 0x435   : > { %7560 = vmatpush3.bf16.msra.mxu0 %v11921_v26  ;;  %v3315_v10 = vpop.xlane.xlu1 %3314  ;;  %v3679_v39 = vsel %vm3192_vm2, %v10499_v35, 0.0  ;;  %7561 = vmatprep.mubr.msk.bf16.mxu0 %vm9082_vm0, %v11919_v59 }
 0x436   : > { %8541 = vpow2.f32 %v3525_v2  ;;  %v3527_v32 = vmul.f32 1.442695, %v3424_v14  ;;  %v3425_v44 = vsub.f32 %v10242_v61, %v3315_v10  ;;  %3680 = vadd.xlane.f32.xlu1 %v3679_v39  ;;  %7571 = vmatprep.subr.bf16.mxu0 %v11919_v59  ;;  %v10512_v20 = vpop.eup %8531  ;;  %v11926_v10 = vld [vmem:[#allocation55_spill] sm:$0xff] }
 0x437   : > { %v3318_v37 = vpop.xlane.xlu0 %3317  ;;  %v3682_v48 = vsel %vm3192_vm2, %v10512_v20, 0.0 }
 0x438   : > { %v10514_v27 = vpop.eup %8533  ;;  %v3529_v17 = vmul.f32 1.442695, %v3425_v44  ;;  %v3426_v38 = vsub.f32 %v10246_v15, %v3318_v37  ;;  %8543 = vpow2.f32 %v3527_v32 }
 0x439   : > { %v8536_v30 = vpop.eup %8535  ;;  %v3603_v40 = vpop.xlane.xlu1 %3602  ;;  %v3685_v51 = vsel %vm3192_vm2, %v10514_v27, 0.0 }
 0x43a   : > { %v10519_v3 = vpop.eup %8537  ;;  %8545 = vpow2.f32 %v3529_v17  ;;  %v3531_v61 = vmul.f32 1.442695, %v3426_v38  ;;  %3686 = vadd.xlane.f32.xlu0 %v3685_v51  ;;  %v3839_v7 = vmul.f32 %v8536_v30, %v10234_v16  ;;  %v11922_v16 = vld [vmem:[#allocation54_spill] sm:$0xff]  ;;  %v11927_v38 = vld [vmem:[#allocation57_spill] sm:$0xff] }
 0x43b   : > { %v8540_v53 = vpop.eup %8539  ;;  %8547 = vrcp.f32 %v3603_v40  ;;  %v3606_v62 = vpop.xlane.xlu0 %3605  ;;  %v3688_v42 = vsel %vm3192_vm2, %v10519_v3, 0.0 }
 0x43c   : > { %v3840_v15 = vmul.f32 %v8540_v53, %v10240_v34  ;;  %8549 = vpow2.f32 %v3531_v61  ;;  %3689 = vadd.xlane.f32.xlu1 %v3688_v42  ;;  %v11923_v34 = vld [vmem:[#allocation25_spill] sm:$0xff] }
 0x43d   : > { %8551 = vrcp.f32 %v3606_v62  ;;  %v3321_v54 = vpop.xlane.xlu1 %3320  ;;  %v11925_v2 = vpack.c.bf16 %v11923_v34, %v11924_v29 }
 0x43e   : > { %v3427_v58 = vsub.f32 %v10251_v49, %v3321_v54  ;;  %3683 = vadd.xlane.f32.xlu0 %v3682_v48  ;;  %v3900_v45 = vpack.c.bf16 %v3840_v15, %v3839_v7  ;;  %v11928_v54 = vld [vmem:[#allocation56_spill] sm:$0xff] }
 0x43f   : > { %v3324_v63 = vpop.xlane.xlu0 %3323 }
 0x440   : > { %v10528_v13 = vpop.eup %8541  ;;  %v3533_v22 = vmul.f32 1.442695, %v3427_v58  ;;  %7556 = vmatmul.mubr.msk.bf16.vlgmr.msra.gmra.mrb[92].mxu1 %vm3192_vm2, %v3900_v45  ;;  %v3428_v46 = vsub.f32 %v11922_v16, %v3324_v63  ;;  %v11929_v58 = vld [vmem:[#allocation58_spill] sm:$0xff]  ;;  %v11930_v16 = vld [vmem:[#allocation59_spill] sm:$0xff] }
 0x441   : > { %7566 = vmatpush3.bf16.msra.mxu1 %v11925_v2  ;;  %v3327_v14 = vpop.xlane.xlu1 %3326  ;;  %v3691_v26 = vsel %vm3192_vm2, %v10528_v13, 0.0  ;;  %7567 = vmatprep.mubr.msk.bf16.mxu1 %vm9082_vm0, %v11919_v59 }
 0x442   : > { %8553 = vpow2.f32 %v3533_v22  ;;  %v3535_v49 = vmul.f32 1.442695, %v3428_v46  ;;  %v3429_v39 = vsub.f32 %v11926_v10, %v3327_v14  ;;  %3692 = vadd.xlane.f32.xlu1 %v3691_v26  ;;  %7577 = vmatprep.subr.bf16.mxu1 %v11919_v59  ;;  %v10541_v32 = vpop.eup %8543  ;;  %v11932_v10 = vld [vmem:[#allocation29_spill] sm:$0xff] }
 0x443   : > { %v3330_v44 = vpop.xlane.xlu0 %3329  ;;  %v3694_v22 = vsel %vm3192_vm2, %v10541_v32, 0.0 }
 0x444   : > { %v10543_v37 = vpop.eup %8545  ;;  %v3537_v17 = vmul.f32 1.442695, %v3429_v39  ;;  %v3430_v30 = vsub.f32 %v11927_v38, %v3330_v44  ;;  %8555 = vpow2.f32 %v3535_v49  ;;  %v11931_v49 = vld [vmem:[#allocation31_spill] sm:$0xff] }
 0x445   : > { %v8548_v40 = vpop.eup %8547  ;;  %v3609_v51 = vpop.xlane.xlu1 %3608  ;;  %v3697_v61 = vsel %vm3192_vm2, %v10543_v37, 0.0  ;;  %v11933_v39 = vpack.c.bf16 %v11931_v49, %v11932_v10 }
 0x446   : > { %v10548_v53 = vpop.eup %8549  ;;  %8557 = vpow2.f32 %v3537_v17  ;;  %v3539_v62 = vmul.f32 1.442695, %v3430_v30  ;;  %3698 = vadd.xlane.f32.xlu0 %v3697_v61  ;;  %v3841_v48 = vmul.f32 %v8548_v40, %v11928_v54 }
 0x447   : > { %v8552_v42 = vpop.eup %8551  ;;  %8559 = vrcp.f32 %v3609_v51  ;;  %v3612_v7 = vpop.xlane.xlu0 %3611  ;;  %v3700_v15 = vsel %vm3192_vm2, %v10548_v53, 0.0 }
 0x448   : > { %v3842_v45 = vmul.f32 %v8552_v42, %v11929_v58  ;;  %8561 = vpow2.f32 %v3539_v62  ;;  %3701 = vadd.xlane.f32.xlu1 %v3700_v15  ;;  %v11934_v62 = vld [vmem:[#allocation60_spill] sm:$0xff] }
 0x449   : > { %8563 = vrcp.f32 %v3612_v7  ;;  %v3333_v63 = vpop.xlane.xlu1 %3332 }
 0x44a   : > { %v3431_v46 = vsub.f32 %v11930_v16, %v3333_v63  ;;  %3695 = vadd.xlane.f32.xlu0 %v3694_v22  ;;  %v3901_v34 = vpack.c.bf16 %v3842_v45, %v3841_v48  ;;  %v11935_v22 = vld [vmem:[#allocation61_spill] sm:$0xff] }
 0x44b   : > { %v3336_v29 = vpop.xlane.xlu0 %3335 }
 0x44c   : > { %v10557_v2 = vpop.eup %8553  ;;  %v3541_v14 = vmul.f32 1.442695, %v3431_v46  ;;  %7562 = vmatmul.mubr.msk.bf16.vlgmr.msra.gmra.mrb[96].mxu0 %vm3192_vm2, %v3901_v34  ;;  %v3432_v26 = vsub.f32 %v10276_v43, %v3336_v29  ;;  %v11936_v46 = vld [vmem:[#allocation62_spill] sm:$0xff] }
 0x44d   : > { %7572 = vmatpush3.bf16.msra.mxu0 %v11933_v39  ;;  %v3339_v44 = vpop.xlane.xlu1 %3338  ;;  %v3703_v17 = vsel %vm3192_vm2, %v10557_v2, 0.0  ;;  %7573 = vmatprep.mubr.msk.bf16.mxu0 %vm9082_vm0, %v11919_v59 }
 0x44e   : > { %8565 = vpow2.f32 %v3541_v14  ;;  %v3543_v38 = vmul.f32 1.442695, %v3432_v26  ;;  %v3433_v30 = vsub.f32 %v10281_v31, %v3339_v44  ;;  %3704 = vadd.xlane.f32.xlu1 %v3703_v17  ;;  %7583 = vmatprep.subr.bf16.mxu0 %v11919_v59  ;;  %v10570_v40 = vpop.eup %8555 }
 0x44f   : > { %v3342_v43 = vpop.xlane.xlu0 %3341  ;;  %v3706_v14 = vsel %vm3192_vm2, %v10570_v40, 0.0 }
 0x450   : > { %v10572_v51 = vpop.eup %8557  ;;  %v3545_v61 = vmul.f32 1.442695, %v3433_v30  ;;  %v3434_v42 = vsub.f32 %v11934_v62, %v3342_v43  ;;  %8567 = vpow2.f32 %v3543_v38  ;;  %v11937_v38 = vld [vmem:[#allocation30_spill] sm:$0xff]  ;;  %v11938_v30 = vld [vmem:[#allocation28_spill] sm:$0xff] }
 0x451   : > { %v8560_v7 = vpop.eup %8559  ;;  %v3615_v15 = vpop.xlane.xlu1 %3614  ;;  %v3709_v54 = vsel %vm3192_vm2, %v10572_v51, 0.0  ;;  %v11939_v43 = vpack.c.bf16 %v11937_v38, %v11938_v30 }
 0x452   : > { %v10577_v48 = vpop.eup %8561  ;;  %8569 = vpow2.f32 %v3545_v61  ;;  %v3547_v31 = vmul.f32 1.442695, %v3434_v42  ;;  %3710 = vadd.xlane.f32.xlu0 %v3709_v54  ;;  %v3843_v16 = vmul.f32 %v8560_v7, %v11935_v22 }
 0x453   : > { %v8564_v58 = vpop.eup %8563  ;;  %8571 = vrcp.f32 %v3615_v15  ;;  %v3618_v45 = vpop.xlane.xlu0 %3617  ;;  %v3712_v63 = vsel %vm3192_vm2, %v10577_v48, 0.0 }
 0x454   : > { %v3844_v34 = vmul.f32 %v8564_v58, %v11936_v46  ;;  %8573 = vpow2.f32 %v3547_v31  ;;  %3713 = vadd.xlane.f32.xlu1 %v3712_v63  ;;  %v11940_v31 = vld [vmem:[#allocation63_spill] sm:$0xff] }
 0x455   : > { %8575 = vrcp.f32 %v3618_v45  ;;  %v3345_v29 = vpop.xlane.xlu1 %3344 }
 0x456   : > { %v3435_v26 = vsub.f32 %v10290_v23, %v3345_v29  ;;  %3707 = vadd.xlane.f32.xlu0 %v3706_v14  ;;  %v3902_v49 = vpack.c.bf16 %v3844_v34, %v3843_v16  ;;  %v11941_v34 = vld [vmem:[#allocation35_spill] sm:$0xff] }
 0x457   : > { %v3348_v10 = vpop.xlane.xlu0 %3347  ;;  %v8133_v29 = vunpack.i.h.bf16 %v11941_v34  ;;  %v8132_v14 = vunpack.i.l.bf16 %v11941_v34 }
 0x458   : > { %v10586_v39 = vpop.eup %8565  ;;  %v3549_v44 = vmul.f32 1.442695, %v3435_v26  ;;  %7568 = vmatmul.mubr.msk.bf16.vlgmr.msra.gmra.mrb[96].mxu1 %vm3192_vm2, %v3902_v49  ;;  %v3436_v17 = vsub.f32 %v10296_v24, %v3348_v10  ;;  %v11942_v10 = vld [vmem:[#allocation64_spill] sm:$0xff] }
 0x459   : > { %7578 = vmatpush3.bf16.msra.mxu1 %v11939_v43  ;;  %v3351_v61 = vpop.xlane.xlu1 %3350  ;;  %v3715_v62 = vsel %vm3192_vm2, %v10586_v39, 0.0  ;;  %7579 = vmatprep.mubr.msk.bf16.mxu1 %vm9082_vm0, %v11919_v59 }
 0x45a   : > { %8577 = vpow2.f32 %v3549_v44  ;;  %v3551_v23 = vmul.f32 1.442695, %v3436_v17  ;;  %v3437_v42 = vsub.f32 %v10302_v25, %v3351_v61  ;;  %3716 = vadd.xlane.f32.xlu1 %v3715_v62  ;;  %7589 = vmatprep.subr.bf16.mxu1 %v11919_v59  ;;  %v10599_v7 = vpop.eup %8567  ;;  %v11943_v17 = vld [vmem:[#allocation65_spill] sm:$0xff] }
 0x45b   : > { %v3354_v24 = vpop.xlane.xlu0 %3353  ;;  %v3718_v43 = vsel %vm3192_vm2, %v10599_v7, 0.0 }
 0x45c   : > { %v10601_v15 = vpop.eup %8569  ;;  %8579 = vpow2.f32 %v3551_v23  ;;  %v3553_v54 = vmul.f32 1.442695, %v3437_v42  ;;  %v3438_v58 = vsub.f32 %v11940_v31, %v3354_v24  ;;  %v1663_v23 = vpack.c.bf16 %v8133_v29, %v8132_v14 }
 0x45d   : > { %v8572_v45 = vpop.eup %8571  ;;  %v3621_v63 = vpop.xlane.xlu1 %3620  ;;  %v3721_v22 = vsel %vm3192_vm2, %v10601_v15, 0.0 }
 0x45e   : > { %v10606_v16 = vpop.eup %8573  ;;  %8581 = vpow2.f32 %v3553_v54  ;;  %v3555_v25 = vmul.f32 1.442695, %v3438_v58  ;;  %3722 = vadd.xlane.f32.xlu0 %v3721_v22  ;;  %v3845_v44 = vmul.f32 %v8572_v45, %v11942_v10  ;;  %v11944_v10 = vld [vmem:[#allocation37_spill] sm:$0xff] }
 0x45f   : > { %v8576_v46 = vpop.eup %8575  ;;  %8583 = vrcp.f32 %v3621_v63  ;;  %v3624_v26 = vpop.xlane.xlu0 %3623  ;;  %v3724_v49 = vsel %vm3192_vm2, %v10606_v16, 0.0 }
 0x460   : > { %v3846_v38 = vmul.f32 %v8576_v46, %v11943_v17  ;;  %8585 = vpow2.f32 %v3555_v25  ;;  %3725 = vadd.xlane.f32.xlu1 %v3724_v49 }
 0x461   : > { %8587 = vrcp.f32 %v3624_v26  ;;  %v3357_v30 = vpop.xlane.xlu1 %3356 }
 0x462   : > { %v3439_v61 = vsub.f32 %v10311_v8, %v3357_v30  ;;  %3719 = vadd.xlane.f32.xlu0 %v3718_v43  ;;  %v3903_v62 = vpack.c.bf16 %v3846_v38, %v3845_v44  ;;  %v8138_v44 = vunpack.i.h.bf16 %v11944_v10  ;;  %v11945_v38 = vld [vmem:[#allocation66_spill] sm:$0xff] }
 0x463   : > { %v3360_v42 = vpop.xlane.xlu0 %3359 }
 0x464   : > { %v10617_v24 = vpop.eup %8577  ;;  %v3557_v54 = vmul.f32 1.442695, %v3439_v61  ;;  %7574 = vmatmul.mubr.msk.bf16.vlgmr.msra.gmra.mrb[100].mxu0 %vm3192_vm2, %v3903_v62  ;;  %v3440_v31 = vsub.f32 %v10316_v36, %v3360_v42  ;;  %v8137_v61 = vunpack.i.l.bf16 %v11944_v10  ;;  %v11946_v62 = vld [vmem:[#allocation68_spill] sm:$0xff] }
 0x465   : > { %7584 = vmatpush3.bf16.msra.mxu0 %v1663_v23  ;;  %v3363_v58 = vpop.xlane.xlu1 %3362  ;;  %v3727_v45 = vsel %vm3192_vm2, %v10617_v24, 0.0  ;;  %7585 = vmatprep.mubr.msk.bf16.mxu0 %vm9082_vm0, %v11919_v59 }
 0x466   : > { %v10625_v8 = vpop.eup %8579  ;;  %8589 = vpow2.f32 %v3557_v54  ;;  %v3441_v63 = vsub.f32 %v10320_v11, %v3363_v58  ;;  %3728 = vadd.xlane.f32.xlu1 %v3727_v45  ;;  %7595 = vmatprep.subr.bf16.mxu0 %v11919_v59  ;;  %v3559_v22 = vmul.f32 1.442695, %v3440_v31  ;;  %v11947_v54 = vld [vmem:[#allocation70_spill] sm:$0xff] }
 0x467   : > { %v3366_v25 = vpop.xlane.xlu0 %3365  ;;  %v3730_v36 = vsel %vm3192_vm2, %v10625_v8, 0.0 }
 0x468   : > { %v10631_v46 = vpop.eup %8581  ;;  %v3561_v34 = vmul.f32 1.442695, %v3441_v63  ;;  %v3442_v29 = vsub.f32 %v10326_v41, %v3366_v25  ;;  %3731 = vadd.xlane.f32.xlu0 %v3730_v36  ;;  %v1664_v25 = vpack.c.bf16 %v8138_v44, %v8137_v61 }
 0x469   : > { %v8584_v14 = vpop.eup %8583  ;;  %v3369_v26 = vpop.xlane.xlu1 %3368  ;;  %v3733_v49 = vsel %vm3192_vm2, %v10631_v46, 0.0 }
 0x46a   : > { %v10636_v11 = vpop.eup %8585  ;;  %8591 = vpow2.f32 %v3561_v34  ;;  %v3563_v17 = vmul.f32 1.442695, %v3442_v29  ;;  %v3443_v30 = vsub.f32 %v11945_v38, %v3369_v26  ;;  %3734 = vadd.xlane.f32.xlu1 %v3733_v49  ;;  %v3847_v41 = vmul.f32 %v8584_v14, %v11946_v62 }
 0x46b   : > { %v8588_v43 = vpop.eup %8587  ;;  %8593 = vpow2.f32 %v3559_v22  ;;  %v3375_v23 = vpop.xlane.xlu0 %3374  ;;  %v3736_v42 = vsel %vm3192_vm2, %v10636_v11, 0.0  ;;  %v11948_v22 = vld [vmem:[#allocation67_spill] sm:$0xff] }
 0x46c   : > { %v3848_v31 = vmul.f32 %v8588_v43, %v11947_v54  ;;  %8595 = vpow2.f32 %v3563_v17  ;;  %v3565_v58 = vmul.f32 1.442695, %v3443_v30  ;;  %v3445_v45 = vsub.f32 %v10340_v52, %v3375_v23  ;;  %3737 = vadd.xlane.f32.xlu0 %v3736_v42 }
 0x46d   : > { %v10669_v62 = vpop.xlane.xlu1 %3383 }
 0x46e   : > { %v3904_v63 = vpack.c.bf16 %v3848_v31, %v3847_v41  ;;  %8597 = vpow2.f32 %v3565_v58  ;;  %v3569_v29 = vmul.f32 1.442695, %v3445_v45 }
 0x46f   : > { %v3372_v36 = vpop.xlane.xlu0 %3371 }
 0x470   : > { %v10646_v34 = vpop.eup %8589  ;;  %7580 = vmatmul.mubr.msk.bf16.vlgmr.msra.gmra.mrb[100].mxu1 %vm3192_vm2, %v3904_v63  ;;  %v3444_v14 = vsub.f32 %v11948_v22, %v3372_v36  ;;  %8599 = vpow2.f32 %v3569_v29  ;;  %v11949_v29 = vld [vmem:[#allocation26_spill] sm:$0xff] }
 0x471   : > { %7590 = vmatpush3.bf16.msra.mxu1 %v1664_v25  ;;  %v3739_v26 = vsel %vm3192_vm2, %v10646_v34, 0.0  ;;  %7591 = vmatprep.mubr.msk.bf16.mxu1 %vm9082_vm0, %v11919_v59 }
 0x472   : > { %3740 = vadd.xlane.f32.xlu1 %v3739_v26  ;;  %7601 = vmatprep.subr.bf16.mxu1 %v11919_v59  ;;  %v3567_v49 = vmul.f32 1.442695, %v3444_v14  ;;  %v11950_v26 = vld [vmem:[#allocation34_spill] sm:$0xff] }
 0x473   : > { %v3378_v38 = vpop.xlane.xlu0 %3377 }
 0x474   : > { %v10655_v52 = vpop.eup %8591  ;;  %8601 = vpow2.f32 %v3567_v49  ;;  %v8143_v49 = vunpack.i.h.bf16 %v11950_v26 }
 0x475   : > { %v10657_v10 = vpop.eup %8593  ;;  %v3745_v44 = vsel %vm3192_vm2, %v10655_v52, 0.0 }
 0x476   : > { %v10661_v17 = vpop.eup %8595  ;;  %3746 = vadd.xlane.f32.xlu0 %v3745_v44  ;;  %v3742_v43 = vsel %vm3192_vm2, %v10657_v10, 0.0  ;;  %v8142_v44 = vunpack.i.l.bf16 %v11950_v26 }
 0x477   : > { %v3748_v30 = vsel %vm3192_vm2, %v10661_v17, 0.0  ;;  %v10671_v41 = vpop.xlane.xlu0 %3380 }
 0x478   : > { %3749 = vadd.xlane.f32.xlu1 %v3748_v30  ;;  %v10667_v61 = vpop.eup %8597 }
 0x479   : > { %v3751_v23 = vsel %vm3192_vm2, %v10667_v61, 0.0 }
 0x47a   : > { %3743 = vadd.xlane.f32.xlu0 %v3742_v43  ;;  %v10675_v42 = vpop.eup %8599 }
 0x47b   : > { %v3757_v58 = vsel %vm3192_vm2, %v10675_v42, 0.0 }
 0x47e   : > { %3752 = vadd.xlane.f32.xlu0 %v3751_v23  ;;  %v10679_v45 = vpop.eup %8601 }
 0x47f   : > { %v3627_v54 = vpop.xlane.xlu1 %3626  ;;  %v3754_v63 = vsel %vm3192_vm2, %v10679_v45, 0.0 }
 0x480   : > { %8603 = vrcp.f32 %v3627_v54 }
 0x481   : > { %v3630_v31 = vpop.xlane.xlu0 %3629 }
 0x482   : > { %8605 = vrcp.f32 %v3630_v31  ;;  %3758 = vadd.xlane.f32.xlu0 %v3757_v58  ;;  %v1665_v31 = vpack.c.bf16 %v8143_v49, %v8142_v44 }
 0x486   : > { %3755 = vadd.xlane.f32.xlu0 %v3754_v63 }
 0x487   : > { %v3633_v25 = vpop.xlane.xlu1 %3632 }
 0x488   : > { %8607 = vrcp.f32 %v3633_v25 }
 0x489   : > { %v3636_v36 = vpop.xlane.xlu0 %3635  ;;  %8235 = vrot.lane.b32.xlu1 %v11949_v29, %s9085_s8 }
 0x48a   : > { %v8604_v22 = vpop.eup %8603  ;;  %8609 = vrcp.f32 %v3636_v36  ;;  %v11951_v36 = vld [vmem:[#allocation39_spill] sm:$0xff] }
 0x48b   : > { %v3849_v30 = vmul.f32 %v8604_v22, %v10388_v6  ;;  %v8148_v6 = vunpack.i.h.bf16 %v11951_v36 }
 0x48c   : > { %v8606_v14 = vpop.eup %8605 }
 0x48d   : > { %v3850_v43 = vmul.f32 %v8606_v14, %v10392_v5  ;;  %v8147_v5 = vunpack.i.l.bf16 %v11951_v36  ;;  %v3446_v14 = vsub.f32 %v10344_v9, %v3378_v38  ;;  %v11953_v38 = vld [vmem:[#allocation27_spill] sm:$0xff] }
 0x48f   : > { %v3639_v23 = vpop.xlane.xlu1 %3638  ;;  %v3905_v54 = vpack.c.bf16 %v3850_v43, %v3849_v30  ;;  %v1666_v44 = vpack.c.bf16 %v8148_v6, %v8147_v5 }
 0x490   : > { %8611 = vrcp.f32 %v3639_v23  ;;  %v3571_v23 = vmul.f32 1.442695, %v3446_v14  ;;  %v3447_v14 = vsub.f32 %v10348_v0, %v10671_v41 }
 0x491   : > { %v3642_v58 = vpop.xlane.xlu0 %3641  ;;  %7586 = vmatmul.mubr.msk.bf16.vlgmr.msra.gmra.mrb[104].mxu0 %vm3192_vm2, %v3905_v54 }
 0x492   : > { %v8608_v63 = vpop.eup %8607  ;;  %8613 = vrcp.f32 %v3642_v58  ;;  %7596 = vmatpush3.bf16.msra.mxu0 %v1665_v31  ;;  %7597 = vmatprep.mubr.msk.bf16.mxu0 %vm9082_vm0, %v11919_v59 }
 0x493   : > { %7607 = vmatprep.subr.bf16.mxu0 %v11919_v59  ;;  %v3851_v29 = vmul.f32 %v8608_v63, %v10398_v4 }
 0x494   : > { %v8610_v25 = vpop.eup %8609 }
 0x495   : > { %v3852_v22 = vmul.f32 %v8610_v25, %v10402_v60  ;;  %v11952_v60 = vld [vmem:[#allocation36_spill] sm:$0xff] }
 0x496   : > { %v8153_v54 = vunpack.i.h.bf16 %v11952_v60  ;;  %v8152_v9 = vunpack.i.l.bf16 %v11952_v60 }
 0x497   : > { %v3645_v26 = vpop.xlane.xlu1 %3644  ;;  %v3906_v49 = vpack.c.bf16 %v3852_v22, %v3851_v29 }
 0x498   : > { %8615 = vrcp.f32 %v3645_v26  ;;  %v1667_v36 = vpack.c.bf16 %v8153_v54, %v8152_v9  ;;  %v3573_v54 = vmul.f32 1.442695, %v3447_v14 }
 0x499   : > { %v3648_v30 = vpop.xlane.xlu0 %3647  ;;  %7592 = vmatmul.mubr.msk.bf16.vlgmr.msra.gmra.mrb[104].mxu1 %vm3192_vm2, %v3906_v49 }
 0x49a   : > { %v8612_v43 = vpop.eup %8611  ;;  %8617 = vrcp.f32 %v3648_v30  ;;  %7602 = vmatpush3.bf16.msra.mxu1 %v1666_v44  ;;  %7603 = vmatprep.mubr.msk.bf16.mxu1 %vm9082_vm0, %v11919_v59 }
 0x49b   : > { %7613 = vmatprep.subr.bf16.mxu1 %v11919_v59  ;;  %v3853_v31 = vmul.f32 %v8612_v43, %v10408_v55  ;;  %8619 = vpow2.f32 %v3571_v23  ;;  %v11954_v55 = vld [vmem:[#allocation41_spill] sm:$0xff] }
 0x49c   : > { %v8614_v4 = vpop.eup %8613  ;;  %8230 = vrot.lane.b32.xlu0 %v11953_v38, %s9085_s8  ;;  %v8158_v22 = vunpack.i.h.bf16 %v11954_v55 }
 0x49d   : > { %v3854_v58 = vmul.f32 %v8614_v4, %v10412_v47  ;;  %v8157_v47 = vunpack.i.l.bf16 %v11954_v55  ;;  %v11955_v4 = vld [vmem:[#allocation69_spill] sm:$0xff] }
 0x49e   : > { %v3448_v60 = vsub.f32 %v11955_v4, %v10669_v62 }
 0x49f   : > { %v3651_v63 = vpop.xlane.xlu1 %3650  ;;  %v3907_v25 = vpack.c.bf16 %v3854_v58, %v3853_v31  ;;  %v1668_v43 = vpack.c.bf16 %v8158_v22, %v8157_v47 }
 0x4a0   : > { %8621 = vrcp.f32 %v3651_v63  ;;  %v3575_v31 = vmul.f32 1.442695, %v3448_v60  ;;  %v11957_v63 = vld [vmem:[#allocation71_spill] sm:$0xff] }
 0x4a1   : > { %v3654_v6 = vpop.xlane.xlu0 %3653  ;;  %7598 = vmatmul.mubr.msk.bf16.vlgmr.msra.gmra.mrb[108].mxu0 %vm3192_vm2, %v3907_v25 }
 0x4a2   : > { %v8616_v5 = vpop.eup %8615  ;;  %8623 = vrcp.f32 %v3654_v6  ;;  %7608 = vmatpush3.bf16.msra.mxu0 %v1667_v36  ;;  %7609 = vmatprep.mubr.msk.bf16.mxu0 %vm9082_vm0, %v11919_v59 }
 0x4a3   : > { %7619 = vmatprep.subr.bf16.mxu0 %v11919_v59  ;;  %v3855_v26 = vmul.f32 %v8616_v5, %v10418_v33  ;;  %v11956_v33 = vld [vmem:[#allocation38_spill] sm:$0xff] }
 0x4a4   : > { %v8618_v29 = vpop.eup %8617  ;;  %v8162_v41 = vunpack.i.l.bf16 %v11956_v33 }
 0x4a5   : > { %v3856_v49 = vmul.f32 %v8618_v29, %v10422_v21  ;;  %v10718_v23 = vpop.eup %8619  ;;  %v8163_v21 = vunpack.i.h.bf16 %v11956_v33 }
 0x4a6   : > { %v3760_v62 = vsel %vm3192_vm2, %v10718_v23, 0.0 }
 0x4a7   : > { %v3657_v44 = vpop.xlane.xlu1 %3656  ;;  %v3908_v30 = vpack.c.bf16 %v3856_v49, %v3855_v26  ;;  %v1669_v5 = vpack.c.bf16 %v8163_v21, %v8162_v41  ;;  %v11959_v26 = vld [vmem:[#allocation72_spill] sm:$0xff] }
 0x4a8   : > { %8625 = vrcp.f32 %v3657_v44  ;;  %v11960_v21 = vld [vmem:[#allocation40_spill] sm:$0xff] }
 0x4a9   : > { %v3660_v9 = vpop.xlane.xlu0 %3659  ;;  %7604 = vmatmul.mubr.msk.bf16.vlgmr.msra.gmra.mrb[108].mxu1 %vm3192_vm2, %v3908_v30  ;;  %v8173_v41 = vunpack.i.h.bf16 %v11960_v21 }
 0x4aa   : > { %v8622_v38 = vpop.eup %8621  ;;  %8627 = vrcp.f32 %v3660_v9  ;;  %7614 = vmatpush3.bf16.msra.mxu1 %v1668_v43  ;;  %7615 = vmatprep.mubr.msk.bf16.mxu1 %vm9082_vm0, %v11919_v59 }
 0x4ab   : > { %7625 = vmatprep.subr.bf16.mxu1 %v11919_v59  ;;  %8629 = vpow2.f32 %v3573_v54  ;;  %v3857_v58 = vmul.f32 %v8622_v38, %v10428_v50  ;;  %v11958_v50 = vld [vmem:[#allocation43_spill] sm:$0xff] }
 0x4ac   : > { %v8624_v0 = vpop.eup %8623  ;;  %8631 = vpow2.f32 %v3575_v31  ;;  %v8168_v47 = vunpack.i.h.bf16 %v11958_v50  ;;  %v8167_v14 = vunpack.i.l.bf16 %v11958_v50  ;;  %v11961_v31 = vld [vmem:[#allocation33_spill] sm:$0xff] }
 0x4ad   : > { %v3858_v25 = vmul.f32 %v8624_v0, %v11957_v63  ;;  %3761 = vadd.xlane.f32.xlu1 %v3760_v62  ;;  %v8172_v62 = vunpack.i.l.bf16 %v11960_v21 }
 0x4ae   : > { %v1670_v60 = vpack.c.bf16 %v8168_v47, %v8167_v14  ;;  %v11962_v47 = vld [vmem:[#allocation42_spill] sm:$0xff] }
 0x4af   : > { %v3663_v36 = vpop.xlane.xlu0 %3662  ;;  %v3909_v6 = vpack.c.bf16 %v3858_v25, %v3857_v58  ;;  %v8182_v14 = vunpack.i.l.bf16 %v11962_v47 }
 0x4b0   : > { %8633 = vrcp.f32 %v3663_v36 }
 0x4b1   : > { %7610 = vmatmul.mubr.msk.bf16.vlgmr.msra.gmra.mrb[112].mxu0 %vm3192_vm2, %v3909_v6 }
 0x4b2   : > { %v8626_v29 = vpop.eup %8625  ;;  %7620 = vmatpush3.bf16.msra.mxu0 %v1669_v5  ;;  %7621 = vmatprep.mubr.msk.bf16.mxu0 %vm9082_vm0, %v11919_v59  ;;  %v1671_v5 = vpack.c.bf16 %v8173_v41, %v8172_v62 }
 0x4b3   : > { %v3666_v55 = vpop.xlane.xlu0 %3665  ;;  %7631 = vmatprep.subr.bf16.mxu0 %v11919_v59  ;;  %v3859_v49 = vmul.f32 %v8626_v29, %v11959_v26 }
 0x4b4   : > { %v8628_v22 = vpop.eup %8627  ;;  %8635 = vrcp.f32 %v3666_v55 }
 0x4b5   : > { %v3860_v44 = vmul.f32 %v8628_v22, %v10442_v1  ;;  %v10740_v30 = vpop.eup %8629 }
 0x4b6   : > { %v3763_v54 = vsel %vm3192_vm2, %v10740_v30, 0.0  ;;  %v10747_v9 = vpop.eup %8631 }
 0x4b7   : > { %v3669_v43 = vpop.xlane.xlu0 %3668  ;;  %v3910_v4 = vpack.c.bf16 %v3860_v44, %v3859_v49  ;;  %v3766_v58 = vsel %vm3192_vm2, %v10747_v9, 0.0 }
 0x4b9   : > { %7616 = vmatmul.mubr.msk.bf16.vlgmr.msra.gmra.mrb[112].mxu1 %vm3192_vm2, %v3910_v4  ;;  %v11963_v4 = vld [vmem:[#allocation45_spill] sm:$0xff] }
 0x4ba   : > { %7626 = vmatpush3.bf16.msra.mxu1 %v1670_v60  ;;  %7627 = vmatprep.mubr.msk.bf16.mxu1 %vm9082_vm0, %v11919_v59  ;;  %v8634_v1 = vpop.eup %8633  ;;  %v8178_v60 = vunpack.i.h.bf16 %v11963_v4 }
 0x4bb   : > { %3764 = vadd.xlane.f32.xlu0 %v3763_v54  ;;  %v3675_v38 = vpop.xlane.xlu0 %3674  ;;  %7637 = vmatprep.subr.bf16.mxu1 %v11919_v59  ;;  %v3861_v63 = vmul.f32 %v8634_v1, %v10451_v18  ;;  %v8177_v54 = vunpack.i.l.bf16 %v11963_v4 }
 0x4bc   : > { %8637 = vrcp.f32 %v3675_v38 }
 0x4bd   : > { %8639 = vrcp.f32 %v3669_v43  ;;  %v3678_v0 = vpop.xlane.xlu1 %3677 }
 0x4be   : > { %v8636_v33 = vpop.eup %8635  ;;  %8641 = vrcp.f32 %v3678_v0  ;;  %8240 = vrot.lane.b32.xlu1 %v11961_v31, %s9085_s8 }
 0x4bf   : > { %v3862_v25 = vmul.f32 %v8636_v33, %v10462_v56  ;;  %v3672_v36 = vpop.xlane.xlu0 %3671  ;;  %3767 = vadd.xlane.f32.xlu0 %v3766_v58  ;;  %v8183_v56 = vunpack.i.h.bf16 %v11962_v47  ;;  %v11964_v58 = vld [vmem:[#allocation44_spill] sm:$0xff] }
 0x4c0   : > { %8643 = vrcp.f32 %v3672_v36 }
 0x4c1   : > { %v3911_v6 = vpack.c.bf16 %v3862_v25, %v3861_v63  ;;  %v1673_v21 = vpack.c.bf16 %v8183_v56, %v8182_v14  ;;  %v8193_v63 = vunpack.i.h.bf16 %v11964_v58  ;;  %v8192_v25 = vunpack.i.l.bf16 %v11964_v58 }
 0x4c3   : > { %7622 = vmatmul.mubr.msk.bf16.vlgmr.msra.gmra.mrb[116].mxu0 %vm3192_vm2, %v3911_v6  ;;  %v3681_v29 = vpop.xlane.xlu1 %3680 }
 0x4c4   : > { %7632 = vmatpush3.bf16.msra.mxu0 %v1671_v5  ;;  %7633 = vmatprep.mubr.msk.bf16.mxu0 %vm9082_vm0, %v11919_v59  ;;  %v11965_v5 = vld [vmem:[#allocation32_spill] sm:$0xff] }
 0x4c5   : > { %7643 = vmatprep.subr.bf16.mxu0 %v11919_v59 }
 0x4c6   : > { %v8638_v55 = vpop.eup %8637 }
 0x4c7   : > { %v8640_v22 = vpop.eup %8639  ;;  %v3687_v50 = vpop.xlane.xlu0 %3686  ;;  %v3865_v26 = vmul.f32 %v8638_v55, %v10485_v19 }
 0x4c8   : > { %v8642_v18 = vpop.eup %8641  ;;  %8645 = vrcp.f32 %v3687_v50  ;;  %v3863_v38 = vmul.f32 %v8640_v22, %v10470_v57  ;;  %v11966_v22 = vld [vmem:[#allocation47_spill] sm:$0xff] }
 0x4c9   : > { %v3866_v49 = vmul.f32 %v8642_v18, %v10490_v28  ;;  %8647 = vrcp.f32 %v3681_v29  ;;  %v3690_v44 = vpop.xlane.xlu1 %3689  ;;  %v1672_v28 = vpack.c.bf16 %v8178_v60, %v8177_v54  ;;  %v8188_v50 = vunpack.i.h.bf16 %v11966_v22  ;;  %v11967_v60 = vld [vmem:[#allocation48_spill] sm:$0xff] }
 0x4ca   : > { %v8644_v43 = vpop.eup %8643  ;;  %8649 = vrcp.f32 %v3690_v44  ;;  %v8187_v18 = vunpack.i.l.bf16 %v11966_v22  ;;  %v8203_v54 = vunpack.i.h.bf16 %v11967_v60 }
 0x4cb   : > { %v3864_v1 = vmul.f32 %v8644_v43, %v10483_v12  ;;  %v3684_v0 = vpop.xlane.xlu0 %3683  ;;  %v3913_v33 = vpack.c.bf16 %v3866_v49, %v3865_v26 }
 0x4cc   : > { %8651 = vrcp.f32 %v3684_v0  ;;  %v1674_v49 = vpack.c.bf16 %v8188_v50, %v8187_v18 }
 0x4cd   : > { %7634 = vmatmul.mubr.msk.bf16.vlgmr.msra.gmra.mrb[120].mxu0 %vm3192_vm2, %v3913_v33  ;;  %v3912_v19 = vpack.c.bf16 %v3864_v1, %v3863_v38  ;;  %v8202_v38 = vunpack.i.l.bf16 %v11967_v60 }
 0x4ce   : > { %7644 = vmatpush3.bf16.msra.mxu0 %v1673_v21  ;;  %7645 = vmatprep.mubr.msk.bf16.mxu0 %vm9082_vm0, %v11919_v59 }
 0x4cf   : > { %7628 = vmatmul.mubr.msk.bf16.vlgmr.msra.gmra.mrb[116].mxu1 %vm3192_vm2, %v3912_v19  ;;  %7655 = vmatprep.subr.bf16.mxu0 %v11919_v59  ;;  %v3693_v57 = vpop.xlane.xlu1 %3692  ;;  %v11968_v19 = vld [vmem:[#allocation46_spill] sm:$0xff]  ;;  %v1677_v58 = vpack.c.bf16 %v8203_v54, %v8202_v38 }
 0x4d0   : > { %7638 = vmatpush3.bf16.msra.mxu1 %v1672_v28  ;;  %7639 = vmatprep.mubr.msk.bf16.mxu1 %vm9082_vm0, %v11919_v59  ;;  %v8198_v28 = vunpack.i.h.bf16 %v11968_v19 }
 0x4d1   : > { %7649 = vmatprep.subr.bf16.mxu1 %v11919_v59 }
 0x4d2   : > { %v8646_v12 = vpop.eup %8645 }
 0x4d3   : > { %v8648_v41 = vpop.eup %8647  ;;  %v3699_v62 = vpop.xlane.xlu0 %3698  ;;  %v3869_v36 = vmul.f32 %v8646_v12, %v10514_v27  ;;  %v1675_v27 = vpack.c.bf16 %v8193_v63, %v8192_v25 }
 0x4d4   : > { %v8650_v31 = vpop.eup %8649  ;;  %8653 = vrcp.f32 %v3699_v62  ;;  %v3867_v47 = vmul.f32 %v8648_v41, %v10499_v35 }
 0x4d5   : > { %v3870_v6 = vmul.f32 %v8650_v31, %v10519_v3  ;;  %8655 = vrcp.f32 %v3693_v57  ;;  %8245 = vrot.lane.b32.xlu0 %v11965_v5, %s9085_s8  ;;  %v3702_v29 = vpop.xlane.xlu1 %3701  ;;  %v8197_v57 = vunpack.i.l.bf16 %v11968_v19 }
 0x4d6   : > { %v8652_v55 = vpop.eup %8651  ;;  %8657 = vrcp.f32 %v3702_v29 }
 0x4d7   : > { %v3868_v56 = vmul.f32 %v8652_v55, %v10512_v20  ;;  %v3696_v14 = vpop.xlane.xlu0 %3695  ;;  %v3915_v26 = vpack.c.bf16 %v3870_v6, %v3869_v36  ;;  %v11969_v6 = vld [vmem:[#allocation50_spill] sm:$0xff] }
 0x4d8   : > { %8659 = vrcp.f32 %v3696_v14  ;;  %v8213_v5 = vunpack.i.h.bf16 %v11969_v6  ;;  %v8212_v29 = vunpack.i.l.bf16 %v11969_v6 }
 0x4d9   : > { %7646 = vmatmul.mubr.msk.bf16.vlgmr.msra.gmra.mrb[124].mxu0 %vm3192_vm2, %v3915_v26  ;;  %v3914_v3 = vpack.c.bf16 %v3868_v56, %v3867_v47  ;;  %v11970_v47 = vld [vmem:[#allocation49_spill] sm:$0xff] }
 0x4da   : > { %7656 = vmatpush3.bf16.msra.mxu0 %v1675_v27  ;;  %7657 = vmatprep.mubr.msk.bf16.mxu0 %vm9082_vm0, %v11919_v59  ;;  %v8208_v56 = vunpack.i.h.bf16 %v11970_v47  ;;  %v8207_v14 = vunpack.i.l.bf16 %v11970_v47 }
 0x4db   : > { %7640 = vmatmul.mubr.msk.bf16.vlgmr.msra.gmra.mrb[120].mxu1 %vm3192_vm2, %v3914_v3  ;;  %7667 = vmatprep.subr.bf16.mxu0 %v11919_v59  ;;  %v3705_v35 = vpop.xlane.xlu1 %3704 }
 0x4dc   : > { %7650 = vmatpush3.bf16.msra.mxu1 %v1674_v49  ;;  %7651 = vmatprep.mubr.msk.bf16.mxu1 %vm9082_vm0, %v11919_v59 }
 0x4dd   : > { %7661 = vmatprep.subr.bf16.mxu1 %v11919_v59 }
 0x4de   : > { %v8654_v20 = vpop.eup %8653 }
 0x4df   : > { %v8656_v44 = vpop.eup %8655  ;;  %v3711_v43 = vpop.xlane.xlu0 %3710  ;;  %v3873_v1 = vmul.f32 %v8654_v20, %v10543_v37 }
 0x4e0   : > { %v8658_v4 = vpop.eup %8657  ;;  %8661 = vrcp.f32 %v3711_v43  ;;  %v3871_v12 = vmul.f32 %v8656_v44, %v10528_v13 }
 0x4e1   : > { %v3874_v0 = vmul.f32 %v8658_v4, %v10548_v53  ;;  %8663 = vrcp.f32 %v3705_v35  ;;  %v3714_v33 = vpop.xlane.xlu1 %3713  ;;  %v1676_v53 = vpack.c.bf16 %v8198_v28, %v8197_v57  ;;  %v1679_v35 = vpack.c.bf16 %v8213_v5, %v8212_v29  ;;  %v11973_v29 = vld [vmem:[#allocation53_spill] sm:$0xff] }
 0x4e2   : > { %v8660_v21 = vpop.eup %8659  ;;  %8665 = vrcp.f32 %v3714_v33 }
 0x4e3   : > { %v3872_v41 = vmul.f32 %v8660_v21, %v10541_v32  ;;  %v3708_v62 = vpop.xlane.xlu0 %3707  ;;  %v3917_v31 = vpack.c.bf16 %v3874_v0, %v3873_v1  ;;  %v11971_v0 = vld [vmem:[#allocation52_spill] sm:$0xff] }
 0x4e4   : > { %8667 = vrcp.f32 %v3708_v62  ;;  %v8223_v33 = vunpack.i.h.bf16 %v11971_v0  ;;  %v8222_v21 = vunpack.i.l.bf16 %v11971_v0 }
 0x4e5   : > { %7658 = vmatmul.mubr.msk.bf16.vlgmr.msra.gmra.mrb[128].mxu0 %vm3192_vm2, %v3917_v31  ;;  %v3916_v37 = vpack.c.bf16 %v3872_v41, %v3871_v12  ;;  %v11972_v41 = vld [vmem:[#allocation51_spill] sm:$0xff] }
 0x4e6   : > { %7668 = vmatpush3.bf16.msra.mxu0 %v1677_v58  ;;  %7669 = vmatprep.mubr.msk.bf16.mxu0 %vm9082_vm0, %v11919_v59  ;;  %v8218_v62 = vunpack.i.h.bf16 %v11972_v41  ;;  %v8217_v31 = vunpack.i.l.bf16 %v11972_v41 }
 0x4e7   : > { %7652 = vmatmul.mubr.msk.bf16.vlgmr.msra.gmra.mrb[124].mxu1 %vm3192_vm2, %v3916_v37  ;;  %7679 = vmatprep.subr.bf16.mxu0 %v11919_v59  ;;  %v3717_v13 = vpop.xlane.xlu1 %3716 }
 0x4e8   : > { %7662 = vmatpush3.bf16.msra.mxu1 %v1676_v53  ;;  %7663 = vmatprep.mubr.msk.bf16.mxu1 %vm9082_vm0, %v11919_v59 }
 0x4e9   : > { %7673 = vmatprep.subr.bf16.mxu1 %v11919_v59 }
 0x4ea   : > { %v8662_v32 = vpop.eup %8661 }
 0x4eb   : > { %v8664_v63 = vpop.eup %8663  ;;  %v3723_v25 = vpop.xlane.xlu0 %3722  ;;  %v3877_v55 = vmul.f32 %v8662_v32, %v10572_v51  ;;  %v1681_v32 = vpack.c.bf16 %v8223_v33, %v8222_v21 }
 0x4ec   : > { %v8666_v36 = vpop.eup %8665  ;;  %8669 = vrcp.f32 %v3723_v25  ;;  %v3875_v26 = vmul.f32 %v8664_v63, %v10557_v2 }
 0x4ed   : > { %v3878_v22 = vmul.f32 %v8666_v36, %v10577_v48  ;;  %8671 = vrcp.f32 %v3717_v13  ;;  %v3726_v50 = vpop.xlane.xlu1 %3725  ;;  %v1678_v48 = vpack.c.bf16 %v8208_v56, %v8207_v14 }
 0x4ee   : > { %v8668_v18 = vpop.eup %8667  ;;  %8673 = vrcp.f32 %v3726_v50 }
 0x4ef   : > { %v3876_v27 = vmul.f32 %v8668_v18, %v10570_v40  ;;  %v3720_v3 = vpop.xlane.xlu0 %3719  ;;  %v3919_v49 = vpack.c.bf16 %v3878_v22, %v3877_v55  ;;  %v8228_v55 = vunpack.i.h.bf16 %v11973_v29  ;;  %v8227_v22 = vunpack.i.l.bf16 %v11973_v29 }
 0x4f0   : > { %8675 = vrcp.f32 %v3720_v3 }
 0x4f1   : > { %7670 = vmatmul.mubr.msk.bf16.vlgmr.msra.gmra.mrb[132].mxu0 %vm3192_vm2, %v3919_v49  ;;  %v3918_v51 = vpack.c.bf16 %v3876_v27, %v3875_v26  ;;  %v1682_v3 = vpack.c.bf16 %v8228_v55, %v8227_v22 }
 0x4f2   : > { %7680 = vmatpush3.bf16.msra.mxu0 %v1679_v35  ;;  %7681 = vmatprep.mubr.msk.bf16.mxu0 %vm9082_vm0, %v11919_v59 }
 0x4f3   : > { %v10823_v20 = vpop.f32.mrb[88].mxu0  ;;  %7664 = vmatmul.mubr.msk.bf16.vlgmr.msra.gmra.mrb[128].mxu1 %vm3192_vm2, %v3918_v51  ;;  %v3729_v44 = vpop.xlane.xlu1 %3728  ;;  %7691 = vmatprep.subr.bf16.mxu0 %v11919_v59 }
 0x4f4   : > { %v7539_v2 = vpop.f32.mrb[89].mxu0  ;;  %7674 = vmatpush3.bf16.msra.mxu1 %v1678_v48  ;;  %7675 = vmatprep.mubr.msk.bf16.mxu1 %vm9082_vm0, %v11919_v59  ;;  %8677 = vrcp.f32 %v3729_v44 }
 0x4f5   : > { %v10829_v40 = vpop.f32.mrb[90].mxu0  ;;  %v3732_v43 = vpop.xlane.xlu0 %3731  ;;  %7685 = vmatprep.subr.bf16.mxu1 %v11919_v59 }
 0x4f6   : > { %v8670_v4 = vpop.eup %8669  ;;  %v7540_v60 = vpop.f32.mrb[91].mxu0  ;;  %8679 = vrcp.f32 %v3732_v43 }
 0x4f7   : > { %v8672_v54 = vpop.eup %8671  ;;  %v3735_v38 = vpop.xlane.xlu1 %3734  ;;  %v3881_v19 = vmul.f32 %v8670_v4, %v10601_v15 }
 0x4f8   : > { %v8674_v1 = vpop.eup %8673  ;;  %8681 = vrcp.f32 %v3735_v38  ;;  %v3879_v58 = vmul.f32 %v8672_v54, %v10586_v39 }
 0x4f9   : > { %v3882_v28 = vmul.f32 %v8674_v1, %v10606_v16  ;;  %v3738_v57 = vpop.xlane.xlu0 %3737  ;;  %v1680_v16 = vpack.c.bf16 %v8218_v62, %v8217_v31 }
 0x4fa   : > { %v8676_v12 = vpop.eup %8675  ;;  %8683 = vrcp.f32 %v3738_v57 }
 0x4fb   : > { %v3880_v37 = vmul.f32 %v8676_v12, %v10599_v7  ;;  %v10840_v53 = vpop.f32.mrb[88].mxu1  ;;  %v3921_v13 = vpack.c.bf16 %v3882_v28, %v3881_v19 }
 0x4fc   : > { %v7545_v63 = vpop.f32.mrb[89].mxu1 }
 0x4fd   : > { %v10842_v25 = vpop.f32.mrb[90].mxu1  ;;  %7682 = vmatmul.mubr.msk.bf16.vlgmr.msra.gmra.mrb[136].mxu0 %vm3192_vm2, %v3921_v13  ;;  %v3920_v15 = vpack.c.bf16 %v3880_v37, %v3879_v58 }
 0x4fe   : > { %v7546_v36 = vpop.f32.mrb[91].mxu1  ;;  %7692 = vmatpush3.bf16.msra.mxu0 %v1681_v32  ;;  %7693 = vmatprep.mubr.msk.bf16.mxu0 %vm9082_vm0, %v11919_v59  ;;  %v8678_v6 = vpop.eup %8677 }
 0x4ff   : > { %7676 = vmatmul.mubr.msk.bf16.vlgmr.msra.gmra.mrb[132].mxu1 %vm3192_vm2, %v3920_v15  ;;  %7703 = vmatprep.subr.bf16.mxu0 %v11919_v59  ;;  %v3883_v50 = vmul.f32 %v8678_v6, %v10617_v24  ;;  %v3741_v18 = vpop.xlane.xlu1 %3740 }
 0x500   : > { %v8680_v39 = vpop.eup %8679  ;;  %7686 = vmatpush3.bf16.msra.mxu1 %v1680_v16  ;;  %7687 = vmatprep.mubr.msk.bf16.mxu1 %vm9082_vm0, %v11919_v59  ;;  %8685 = vrcp.f32 %v3741_v18 }
 0x501   : > { %v3884_v7 = vmul.f32 %v8680_v39, %v10625_v8  ;;  %7697 = vmatprep.subr.bf16.mxu1 %v11919_v59 }
 0x502   : > { %v8682_v5 = vpop.eup %8681 }
 0x503   : > { %v3747_v47 = vpop.xlane.xlu0 %3746  ;;  %v3885_v14 = vmul.f32 %v8682_v5, %v10631_v46  ;;  %v3922_v27 = vpack.c.bf16 %v3884_v7, %v3883_v50 }
 0x504   : > { %v8684_v56 = vpop.eup %8683 }
 0x505   : > { %v3886_v26 = vmul.f32 %v8684_v56, %v10636_v11  ;;  %v3750_v24 = vpop.xlane.xlu1 %3749 }
 0x507   : > { %v10858_v8 = vpop.f32.mrb[92].mxu0  ;;  %v3744_v49 = vpop.xlane.xlu0 %3743  ;;  %7688 = vmatmul.mubr.msk.bf16.vlgmr.msra.gmra.mrb[136].mxu1 %vm3192_vm2, %v3922_v27  ;;  %v3923_v35 = vpack.c.bf16 %v3886_v26, %v3885_v14 }
 0x508   : > { %v7551_v51 = vpop.f32.mrb[93].mxu0  ;;  %8687 = vrcp.f32 %v3744_v49  ;;  %7698 = vmatpush3.bf16.msra.mxu1 %v1682_v3  ;;  %7699 = vmatprep.mubr.msk.bf16.mxu1 %vm9082_vm0, %v11919_v59 }
 0x509   : > { %v10863_v48 = vpop.f32.mrb[94].mxu0  ;;  %7694 = vmatmul.mubr.msk.bf16.vlgmr.msra.gmra.mrb[140].mxu0 %vm3192_vm2, %v3923_v35  ;;  %7709 = vmatprep.subr.bf16.mxu1 %v11919_v59  ;;  %8689 = vrcp.f32 %v3750_v24  ;;  %v8236_v44 = vpop.permute.xlu1 %8235 }
 0x50a   : > { %v7552_v46 = vpop.f32.mrb[95].mxu0  ;;  %7705 = vmatprep.mubr.msk.bf16.mxu0 %vm9082_vm0, %v11919_v59  ;;  %8691 = vrcp.f32 %v3747_v47  ;;  %v8686_v43 = vpop.eup %8685  ;;  %v8238_v60 = vunpack.i.h.bf16 %v8236_v44  ;;  %v8237_v54 = vunpack.i.l.bf16 %v8236_v44 }
 0x50b   : > { %v3753_v11 = vpop.xlane.xlu0 %3752  ;;  %v3887_v38 = vmul.f32 %v8686_v43, %v10646_v34 }
 0x50c   : > { %8693 = vrcp.f32 %v3753_v11  ;;  %v1684_v12 = vpack.c.bf16 %v8238_v60, %v8237_v54 }
 0x50f   : > { %v3759_v2 = vpop.xlane.xlu0 %3758 }
 0x512   : > { %v8688_v4 = vpop.eup %8687 }
 0x513   : > { %v3888_v1 = vmul.f32 %v8688_v4, %v10657_v10  ;;  %v10871_v0 = vpop.f32.mrb[92].mxu1  ;;  %v3756_v33 = vpop.xlane.xlu0 %3755 }
 0x514   : > { %8695 = vrcp.f32 %v3756_v33  ;;  %v7557_v21 = vpop.f32.mrb[93].mxu1  ;;  %v8690_v57 = vpop.eup %8689 }
 0x515   : > { %v10873_v19 = vpop.f32.mrb[94].mxu1  ;;  %v3924_v28 = vpack.c.bf16 %v3888_v1, %v3887_v38  ;;  %v8692_v31 = vpop.eup %8691  ;;  %v3890_v34 = vmul.f32 %v8690_v57, %v10661_v17  ;;  %8697 = vrcp.f32 %v3759_v2 }
 0x516   : > { %v7558_v41 = vpop.f32.mrb[95].mxu1  ;;  %v3889_v13 = vmul.f32 %v8692_v31, %v10655_v52  ;;  %v8694_v32 = vpop.eup %8693 }
 0x517   : > { %v8231_v62 = vpop.permute.xlu0 %8230  ;;  %7700 = vmatmul.mubr.msk.bf16.vlgmr.msra.gmra.mrb[140].mxu1 %vm3192_vm2, %v3924_v28  ;;  %v3891_v16 = vmul.f32 %v8694_v32, %v10667_v61  ;;  %v11974_v28 = vmov 0  }
 0x518   : > { %v8233_v58 = vunpack.i.h.bf16 %v8231_v62  ;;  %v8232_v37 = vunpack.i.l.bf16 %v8231_v62  ;;  %7710 = vmatpush3.bf16.msra.mxu1 %v1684_v12  ;;  %7711 = vmatprep.mubr.msk.bf16.mxu1 %vm9082_vm0, %v11919_v59  ;;  %v3925_v63 = vpack.c.bf16 %v3890_v34, %v3889_v13 }
 0x519   : > { %7721 = vmatprep.subr.bf16.mxu1 %v11919_v59 }
 0x51a   : > { %v1683_v10 = vpack.c.bf16 %v8233_v58, %v8232_v37 }
 0x51c   : > { %7704 = vmatpush3.bf16.msra.mxu0 %v1683_v10 }
 0x51d   : > { %7715 = vmatprep.subr.bf16.mxu0 %v11919_v59 }
 0x51e   : > { %v8696_v15 = vpop.eup %8695 }
 0x51f   : > { %v3892_v36 = vmul.f32 %v8696_v15, %v10679_v45  ;;  %v10884_v6 = vpop.f32.mrb[96].mxu0  ;;  %7706 = vmatmul.mubr.msk.bf16.vlgmr.msra.gmra.mrb[144].mxu0 %vm3192_vm2, %v3925_v63 }
 0x520   : > { %v7563_v17 = vpop.f32.mrb[97].mxu0  ;;  %7717 = vmatprep.mubr.msk.bf16.mxu0 %vm9082_vm0, %v11919_v59 }
 0x521   : > { %v10889_v39 = vpop.f32.mrb[98].mxu0  ;;  %v3926_v52 = vpack.c.bf16 %v3892_v36, %v3891_v16 }
 0x522   : > { %v7564_v7 = vpop.f32.mrb[99].mxu0 }
 0x523   : > { %7712 = vmatmul.mubr.msk.bf16.vlgmr.msra.gmra.mrb[144].mxu1 %vm3192_vm2, %v3926_v52 }
 0x524   : > { %7723 = vmatprep.mubr.msk.bf16.mxu1 %vm9082_vm0, %v11919_v59  ;;  %v8698_v59 = vpop.eup %8697 }
 0x525   : > { %v3893_v24 = vmul.f32 %v8698_v59, %v10675_v42 }
 0x52b   : > { %v10894_v61 = vpop.f32.mrb[96].mxu1 }
 0x52c   : > { %v7569_v45 = vpop.f32.mrb[97].mxu1 }
 0x52d   : > { %v10896_v5 = vpop.f32.mrb[98].mxu1 }
 0x52e   : > { %v7570_v29 = vpop.f32.mrb[99].mxu1 }
 0x537   : > { %v10898_v55 = vpop.f32.mrb[100].mxu0 }
 0x538   : > { %v7575_v22 = vpop.f32.mrb[101].mxu0 }
 0x539   : > { %v10900_v50 = vpop.f32.mrb[102].mxu0 }
 0x53a   : > { %v7576_v18 = vpop.f32.mrb[103].mxu0  ;;  %v3762_v47 = vpop.xlane.xlu1 %3761 }
 0x53b   : > { %8699 = vrcp.f32 %v3762_v47 }
 0x53e   : > { %v8241_v56 = vpop.permute.xlu1 %8240 }
 0x53f   : > { %v8243_v14 = vunpack.i.h.bf16 %v8241_v56  ;;  %v8242_v26 = vunpack.i.l.bf16 %v8241_v56 }
 0x541   : > { %v1685_v27 = vpack.c.bf16 %v8243_v14, %v8242_v26 }
 0x543   : > { %v10902_v3 = vpop.f32.mrb[100].mxu1  ;;  %7716 = vmatpush3.bf16.msra.mxu0 %v1685_v27 }
 0x544   : > { %v7581_v49 = vpop.f32.mrb[101].mxu1 }
 0x545   : > { %v8700_v35 = vpop.eup %8699  ;;  %v10904_v51 = vpop.f32.mrb[102].mxu1 }
 0x546   : > { %v3894_v46 = vmul.f32 %v8700_v35, %v10718_v23  ;;  %v7582_v11 = vpop.f32.mrb[103].mxu1 }
 0x548   : > { %v3765_v44 = vpop.xlane.xlu0 %3764  ;;  %v3927_v2 = vpack.c.bf16 %v3894_v46, %v3893_v24 }
 0x549   : > { %8701 = vrcp.f32 %v3765_v44 }
 0x54a   : > { %7718 = vmatmul.mubr.msk.bf16.vlgmr.msra.gmra.mrb[148].mxu0 %vm3192_vm2, %v3927_v2 }
 0x54c   : > { %v3768_v43 = vpop.xlane.xlu0 %3767 }
 0x54d   : > { %8703 = vrcp.f32 %v3768_v43 }
 0x550   : > { %v8246_v4 = vpop.permute.xlu0 %8245 }
 0x551   : > { %v8248_v60 = vunpack.i.h.bf16 %v8246_v4  ;;  %v8247_v54 = vunpack.i.l.bf16 %v8246_v4 }
 0x553   : > { %v1686_v38 = vpack.c.bf16 %v8248_v60, %v8247_v54  ;;  %v8702_v1 = vpop.eup %8701 }
 0x554   : > { %v3895_v21 = vmul.f32 %v8702_v1, %v10740_v30 }
 0x555   : > { %7722 = vmatpush3.bf16.msra.mxu1 %v1686_v38 }
 0x557   : > { %v8704_v33 = vpop.eup %8703 }
 0x558   : > { %v3896_v42 = vmul.f32 %v8704_v33, %v10747_v9 }
 0x55a   : > { %v3928_v23 = vpack.c.bf16 %v3896_v42, %v3895_v21 }
 0x55c   : > { %7724 = vmatmul.mubr.msk.bf16.vlgmr.msra.gmra.mrb[148].mxu1 %vm3192_vm2, %v3928_v23 }
 0x55d   : > { %6142 = vmatprep.mubr.bf16.mxu1 %v11974_v28 }
 0x564   : > { %v4318_v57 = vpop.f32.mrb[104].mxu0 }
 0x565   : > { %v7587_v12 = vpop.f32.mrb[105].mxu0 }
 0x566   : > { %v4321_v41 = vpop.f32.mrb[106].mxu0 }
 0x567   : > { %v8249_v62 = vpack.i.bf16 %v4321_v41, %v4318_v57  ;;  %v7588_v31 = vpop.f32.mrb[107].mxu0 }
 0x569   : > { %8250 = vrot.lane.b32.xlu1 %v8249_v62, %s9085_s8 }
 0x56c   : > { %v4362_v58 = vpop.f32.mrb[104].mxu1 }
 0x56d   : > { %v7593_v37 = vpop.f32.mrb[105].mxu1 }
 0x56e   : > { %v4365_v34 = vpop.f32.mrb[106].mxu1 }
 0x56f   : > { %v8254_v10 = vpack.i.bf16 %v4365_v34, %v4362_v58  ;;  %v7594_v13 = vpop.f32.mrb[107].mxu1 }
 0x570   : > { %v8402_v13 = vld [vmem:[#allocation10 + $0x8] sm:$0xff]  }
 0x571   : > { %8255 = vrot.lane.b32.xlu0 %v8254_v10, %s9085_s8  ;;  %v8401_v10 = vld [vmem:[#allocation10] sm:$0xff]  }
 0x572   : > { %7727 = vmatprep.subr.bf16.mxu0 %v8401_v10 }
 0x573   : > { %7728 = vmatpush3.bf16.msra.mxu0 %v8401_v10  ;;  %v8407_v10 = vld [vmem:[#allocation10 + $0x30] sm:$0xff]  }
 0x574   : > { %v10915_v30 = vpop.f32.mrb[108].mxu0  ;;  %7729 = vmatprep.subr.bf16.mxu0 %v8402_v13 }
 0x575   : > { %v7599_v9 = vpop.f32.mrb[109].mxu0 }
 0x576   : > { %v10917_v32 = vpop.f32.mrb[110].mxu0 }
 0x577   : > { %v8279_v63 = vpack.i.bf16 %v10917_v32, %v10915_v30  ;;  %v7600_v15 = vpop.f32.mrb[111].mxu0  ;;  %7730 = vmatpush3.bf16.msra.mxu0 %v8402_v13 }
 0x578   : > { %v8403_v15 = vld [vmem:[#allocation10 + $0x10] sm:$0xff]  }
 0x579   : > { %7731 = vmatprep.subr.bf16.mxu0 %v8403_v15 }
 0x57b   : > { %7732 = vmatpush3.bf16.msra.mxu0 %v8403_v15 }
 0x57c   : > { %v10921_v16 = vpop.f32.mrb[108].mxu1 }
 0x57d   : > { %v7605_v36 = vpop.f32.mrb[109].mxu1 }
 0x57e   : > { %v10923_v17 = vpop.f32.mrb[110].mxu1 }
 0x57f   : > { %v8284_v52 = vpack.i.bf16 %v10923_v17, %v10921_v16  ;;  %v7606_v7 = vpop.f32.mrb[111].mxu1 }
 0x584   : > { %v10927_v45 = vpop.f32.mrb[112].mxu0 }
 0x585   : > { %v7611_v29 = vpop.f32.mrb[113].mxu0 }
 0x586   : > { %v10929_v22 = vpop.f32.mrb[114].mxu0 }
 0x587   : > { %v8309_v18 = vpack.i.bf16 %v10929_v22, %v10927_v45  ;;  %v7612_v47 = vpop.f32.mrb[115].mxu0 }
 0x58c   : > { %v10933_v56 = vpop.f32.mrb[112].mxu1 }
 0x58d   : > { %v7617_v14 = vpop.f32.mrb[113].mxu1 }
 0x58e   : > { %v10935_v26 = vpop.f32.mrb[114].mxu1 }
 0x58f   : > { %v8314_v27 = vpack.i.bf16 %v10935_v26, %v10933_v56  ;;  %v7618_v59 = vpop.f32.mrb[115].mxu1 }
 0x596   : > { %v10939_v49 = vpop.f32.mrb[116].mxu0 }
 0x597   : > { %v7623_v35 = vpop.f32.mrb[117].mxu0 }
 0x598   : > { %v10941_v24 = vpop.f32.mrb[118].mxu0 }
 0x599   : > { %v8339_v46 = vpack.i.bf16 %v10941_v24, %v10939_v49  ;;  %v7624_v11 = vpop.f32.mrb[119].mxu0 }
 0x59a   : > { %v8404_v11 = vld [vmem:[#allocation10 + $0x18] sm:$0xff]  }
 0x59b   : > { %7733 = vmatprep.subr.bf16.mxu0 %v8404_v11 }
 0x59c   : > { %7734 = vmatpush3.bf16.msra.mxu0 %v8404_v11 }
 0x5a0   : > { %v4670_v44 = vpop.f32.mrb[120].mxu0 }
 0x5a1   : > { %v7635_v2 = vpop.f32.mrb[121].mxu0 }
 0x5a2   : > { %v10945_v43 = vpop.f32.mrb[116].mxu1  ;;  %v4673_v4 = vpop.f32.mrb[122].mxu0 }
 0x5a3   : > { %v8259_v60 = vpack.i.bf16 %v4673_v4, %v4670_v44  ;;  %v7629_v54 = vpop.f32.mrb[117].mxu1  ;;  %v7636_v38 = vpop.f32.mrb[123].mxu0 }
 0x5a4   : > { %v10947_v1 = vpop.f32.mrb[118].mxu1 }
 0x5a5   : > { %v8344_v33 = vpack.i.bf16 %v10947_v1, %v10945_v43  ;;  %8260 = vrot.lane.b32.xlu1 %v8259_v60, %s9084_s4  ;;  %v7630_v21 = vpop.f32.mrb[119].mxu1 }
 0x5ac   : > { %v10952_v42 = vpop.f32.mrb[124].mxu0 }
 0x5ad   : > { %v7647_v23 = vpop.f32.mrb[125].mxu0 }
 0x5ae   : > { %v4714_v57 = vpop.f32.mrb[120].mxu1  ;;  %v10954_v12 = vpop.f32.mrb[126].mxu0 }
 0x5af   : > { %v8289_v41 = vpack.i.bf16 %v10954_v12, %v10952_v42  ;;  %v7641_v62 = vpop.f32.mrb[121].mxu1  ;;  %v7648_v31 = vpop.f32.mrb[127].mxu0 }
 0x5b0   : > { %v4717_v58 = vpop.f32.mrb[122].mxu1  ;;  %v8405_v62 = vld [vmem:[#allocation10 + $0x20] sm:$0xff]  }
 0x5b1   : > { %v8264_v37 = vpack.i.bf16 %v4717_v58, %v4714_v57  ;;  %v7642_v34 = vpop.f32.mrb[123].mxu1  ;;  %7735 = vmatprep.subr.bf16.mxu0 %v8405_v62 }
 0x5b2   : > { %7736 = vmatpush3.bf16.msra.mxu0 %v8405_v62  ;;  %v8406_v34 = vld [vmem:[#allocation10 + $0x28] sm:$0xff]  }
 0x5b3   : > { %8265 = vrot.lane.b32.xlu0 %v8264_v37, %s9084_s4  ;;  %7737 = vmatprep.subr.bf16.mxu0 %v8406_v34 }
 0x5b6   : > { %7738 = vmatpush3.bf16.msra.mxu0 %v8406_v34 }
 0x5b7   : > { %7739 = vmatprep.subr.bf16.mxu0 %v8407_v10 }
 0x5b8   : > { %v10959_v9 = vpop.f32.mrb[128].mxu0 }
 0x5b9   : > { %v7659_v36 = vpop.f32.mrb[129].mxu0 }
 0x5ba   : > { %v10961_v7 = vpop.f32.mrb[124].mxu1  ;;  %v10963_v29 = vpop.f32.mrb[130].mxu0  ;;  %7740 = vmatpush3.bf16.msra.mxu0 %v8407_v10 }
 0x5bb   : > { %v8319_v47 = vpack.i.bf16 %v10963_v29, %v10959_v9  ;;  %v7653_v14 = vpop.f32.mrb[125].mxu1  ;;  %v7660_v59 = vpop.f32.mrb[131].mxu0 }
 0x5bc   : > { %v4805_v35 = vpop.f32.mrb[126].mxu1  ;;  %v8408_v59 = vld [vmem:[#allocation10 + $0x38] sm:$0xff]  }
 0x5bd   : > { %v8294_v44 = vpack.i.bf16 %v4805_v35, %v10961_v7  ;;  %v7654_v2 = vpop.f32.mrb[127].mxu1  ;;  %7741 = vmatprep.subr.bf16.mxu0 %v8408_v59 }
 0x5be   : > { %7742 = vmatpush3.bf16.msra.mxu0 %v8408_v59 }
 0x5c4   : > { %v10968_v4 = vpop.f32.mrb[132].mxu0 }
 0x5c5   : > { %v7671_v60 = vpop.f32.mrb[133].mxu0 }
 0x5c6   : > { %v10970_v54 = vpop.f32.mrb[128].mxu1  ;;  %v10972_v38 = vpop.f32.mrb[134].mxu0 }
 0x5c7   : > { %v8349_v21 = vpack.i.bf16 %v10972_v38, %v10968_v4  ;;  %v7665_v23 = vpop.f32.mrb[129].mxu1  ;;  %v7672_v57 = vpop.f32.mrb[135].mxu0 }
 0x5c8   : > { %v4893_v31 = vpop.f32.mrb[130].mxu1 }
 0x5c9   : > { %v8324_v58 = vpack.i.bf16 %v4893_v31, %v10970_v54  ;;  %v7666_v37 = vpop.f32.mrb[131].mxu1 }
 0x5d0   : > { %v5022_v13 = vpop.f32.mrb[136].mxu0 }
 0x5d1   : > { %v7683_v9 = vpop.f32.mrb[137].mxu0 }
 0x5d2   : > { %v4978_v15 = vpop.f32.mrb[132].mxu1  ;;  %v5025_v36 = vpop.f32.mrb[138].mxu0 }
 0x5d3   : > { %v8269_v7 = vpack.i.bf16 %v5025_v36, %v5022_v13  ;;  %v7677_v29 = vpop.f32.mrb[133].mxu1  ;;  %v7684_v14 = vpop.f32.mrb[139].mxu0 }
 0x5d4   : > { %v4981_v35 = vpop.f32.mrb[134].mxu1 }
 0x5d5   : > { %v8354_v11 = vpack.i.bf16 %v4981_v35, %v4978_v15  ;;  %8270 = vrot.lane.b32.xlu1 %v8269_v7, %s9083_s15  ;;  %v7678_v2 = vpop.f32.mrb[135].mxu1 }
 0x5d9   : > { %8280 = vrot.lane.b32.xlu1 %v8279_v63, %s9085_s8 }
 0x5da   : > { %v5066_v60 = vpop.f32.mrb[136].mxu1 }
 0x5db   : > { %v7689_v54 = vpop.f32.mrb[137].mxu1  ;;  %v8251_v38 = vpop.permute.xlu1 %8250 }
 0x5dc   : > { %v5069_v23 = vpop.f32.mrb[138].mxu1  ;;  %v5110_v57 = vpop.f32.mrb[140].mxu0  ;;  %v8253_v43 = vunpack.i.h.bf16 %v8251_v38  ;;  %v8252_v1 = vunpack.i.l.bf16 %v8251_v38 }
 0x5dd   : > { %v8274_v62 = vpack.i.bf16 %v5069_v23, %v5066_v60  ;;  %8290 = vrot.lane.b32.xlu1 %v8289_v41, %s9084_s4  ;;  %v7690_v31 = vpop.f32.mrb[139].mxu1  ;;  %v7695_v37 = vpop.f32.mrb[141].mxu0 }
 0x5de   : > { %v5113_v34 = vpop.f32.mrb[142].mxu0  ;;  %v5530_v14 = vsel %vm1687_vm1, %v10829_v40, %v8253_v43  ;;  %v5529_v59 = vsel %vm1687_vm1, %v10823_v20, %v8252_v1 }
 0x5df   : > { %v8299_v10 = vpack.i.bf16 %v5113_v34, %v5110_v57  ;;  %v7696_v13 = vpop.f32.mrb[143].mxu0  ;;  %8275 = vrot.lane.b32.xlu0 %v8274_v62, %s9083_s15 }
 0x5e1   : > { %8300 = vrot.lane.b32.xlu1 %v8299_v10, %s9083_s15 }
 0x5e3   : > { %8285 = vrot.lane.b32.xlu0 %v8284_v52, %s9085_s8  ;;  %v8256_v35 = vpop.permute.xlu0 %8255 }
 0x5e4   : > { %v8258_v34 = vunpack.i.h.bf16 %v8256_v35  ;;  %v8257_v40 = vunpack.i.l.bf16 %v8256_v35 }
 0x5e5   : > { %8310 = vrot.lane.b32.xlu1 %v8309_v18, %s9085_s8 }
 0x5e7   : > { %8295 = vrot.lane.b32.xlu0 %v8294_v44, %s9084_s4 }
 0x5e9   : > { %8320 = vrot.lane.b32.xlu1 %v8319_v47, %s9084_s4 }
 0x5ea   : > { %v5154_v30 = vpop.f32.mrb[140].mxu1 }
 0x5eb   : > { %v7701_v32 = vpop.f32.mrb[141].mxu1 }
 0x5ec   : > { %v5157_v63 = vpop.f32.mrb[142].mxu1 }
 0x5ed   : > { %v8304_v42 = vpack.i.bf16 %v5157_v63, %v5154_v30  ;;  %v7702_v12 = vpop.f32.mrb[143].mxu1 }
 0x5ef   : > { %8305 = vrot.lane.b32.xlu0 %v8304_v42, %s9083_s15 }
 0x5f2   : > { %v5198_v41 = vpop.f32.mrb[144].mxu0 }
 0x5f3   : > { %v7707_v9 = vpop.f32.mrb[145].mxu0  ;;  %8315 = vrot.lane.b32.xlu0 %v8314_v27, %s9085_s8 }
 0x5f4   : > { %v5201_v16 = vpop.f32.mrb[146].mxu0  ;;  %v5531_v9 = vsel %vm1687_vm1, %v10840_v53, %v8257_v40 }
 0x5f5   : > { %v8329_v17 = vpack.i.bf16 %v5201_v16, %v5198_v41  ;;  %v7708_v52 = vpop.f32.mrb[147].mxu0  ;;  %v5532_v41 = vsel %vm1687_vm1, %v10842_v25, %v8258_v34 }
 0x5f6   : > { %v5242_v45 = vpop.f32.mrb[144].mxu1 }
 0x5f7   : > { %8330 = vrot.lane.b32.xlu1 %v8329_v17, %s9083_s15  ;;  %8325 = vrot.lane.b32.xlu0 %v8324_v58, %s9084_s4  ;;  %v7713_v22 = vpop.f32.mrb[145].mxu1 }
 0x5f8   : > { %v5245_v18 = vpop.f32.mrb[146].mxu1 }
 0x5f9   : > { %v8334_v47 = vpack.i.bf16 %v5245_v18, %v5242_v45  ;;  %v7714_v44 = vpop.f32.mrb[147].mxu1 }
 0x5fb   : > { %8340 = vrot.lane.b32.xlu1 %v8339_v46, %s9085_s8  ;;  %8335 = vrot.lane.b32.xlu0 %v8334_v47, %s9083_s15 }
 0x5ff   : > { %8350 = vrot.lane.b32.xlu1 %v8349_v21, %s9084_s4  ;;  %8345 = vrot.lane.b32.xlu0 %v8344_v33, %s9085_s8 }
 0x603   : > { %8355 = vrot.lane.b32.xlu0 %v8354_v11, %s9084_s4  ;;  %s11982_s4 = sld [smem:[#allocation83_spill]] }
 0x617   : > { %v8261_v21 = vpop.permute.xlu1 %8260 }
 0x618   : > { %v8263_v33 = vunpack.i.h.bf16 %v8261_v21  ;;  %v8262_v7 = vunpack.i.l.bf16 %v8261_v21 }
 0x61a   : > { %v5546_v60 = vsel %vm5545_vm3, %v5529_v59, %v8262_v7  ;;  %v5547_v54 = vsel %vm5545_vm3, %v5530_v14, %v8263_v33 }
 0x61d   : > { %v5286_v56 = vpop.f32.mrb[148].mxu0 }
 0x61e   : > { %v7719_v26 = vpop.f32.mrb[149].mxu0 }
 0x61f   : > { %v5289_v27 = vpop.f32.mrb[150].mxu0 }
 0x620   : > { %v8359_v58 = vpack.i.bf16 %v5289_v27, %v5286_v56  ;;  %v7720_v49 = vpop.f32.mrb[151].mxu0 }
 0x622   : > { %8360 = vrot.lane.b32.xlu1 %v8359_v58, %s9083_s15 }
 0x625   : > { %v8266_v37 = vpop.permute.xlu0 %8265 }
 0x626   : > { %v8268_v10 = vunpack.i.h.bf16 %v8266_v37  ;;  %v8267_v13 = vunpack.i.l.bf16 %v8266_v37 }
 0x628   : > { %v5549_v52 = vsel %vm5545_vm3, %v5532_v41, %v8268_v10  ;;  %v5548_v45 = vsel %vm5545_vm3, %v5531_v9, %v8267_v13 }
 0x62f   : > { %v5330_v24 = vpop.f32.mrb[148].mxu1 }
 0x630   : > { %v7725_v46 = vpop.f32.mrb[149].mxu1 }
 0x631   : > { %v5333_v15 = vpop.f32.mrb[150].mxu1 }
 0x632   : > { %v8364_v36 = vpack.i.bf16 %v5333_v15, %v5330_v24  ;;  %v7726_v4 = vpop.f32.mrb[151].mxu1 }
 0x634   : > { %8365 = vrot.lane.b32.xlu0 %v8364_v36, %s9083_s15  ;;  %s11981_s15 = sld [smem:[#allocation80_spill]] }
 0x647   : > { %v8271_v29 = vpop.permute.xlu1 %8270 }
 0x648   : > { %v8273_v11 = vunpack.i.h.bf16 %v8271_v29  ;;  %v8272_v2 = vunpack.i.l.bf16 %v8271_v29 }
 0x64a   : > { %v5563_v23 = vsel %vm5562_vm4, %v5546_v60, %v8272_v2  ;;  %v5564_v57 = vsel %vm5562_vm4, %v5547_v54, %v8273_v11 }
 0x64b   : > { %v8281_v62 = vpop.permute.xlu1 %8280  ;;  %v5579_v31 = vpack.c.bf16 %v5564_v57, %v5563_v23 }
 0x64c   : > { %v8283_v20 = vunpack.i.h.bf16 %v8281_v62  ;;  %v8282_v30 = vunpack.i.l.bf16 %v8281_v62 }
 0x64d   : > { %7743 = vmatprep.mubr.bf16.mxu0 %v5579_v31 }
 0x64e   : > { %v5534_v22 = vsel %vm1687_vm1, %v10863_v48, %v8283_v20  ;;  %v5533_v18 = vsel %vm1687_vm1, %v10858_v8, %v8282_v30 }
 0x64f   : > { %v8291_v32 = vpop.permute.xlu1 %8290 }
 0x650   : > { %v8293_v63 = vunpack.i.h.bf16 %v8291_v32  ;;  %v8292_v42 = vunpack.i.l.bf16 %v8291_v32 }
 0x651   : > { %v8276_v12 = vpop.permute.xlu0 %8275 }
 0x652   : > { %v8278_v16 = vunpack.i.h.bf16 %v8276_v12  ;;  %v8277_v17 = vunpack.i.l.bf16 %v8276_v12  ;;  %v5550_v53 = vsel %vm5545_vm3, %v5533_v18, %v8292_v42  ;;  %v5551_v27 = vsel %vm5545_vm3, %v5534_v22, %v8293_v63 }
 0x653   : > { %v8301_v47 = vpop.permute.xlu1 %8300 }
 0x654   : > { %v5566_v44 = vsel %vm5562_vm4, %v5549_v52, %v8278_v16  ;;  %v5565_v25 = vsel %vm5562_vm4, %v5548_v45, %v8277_v17  ;;  %v8303_v56 = vunpack.i.h.bf16 %v8301_v47  ;;  %v8302_v26 = vunpack.i.l.bf16 %v8301_v47 }
 0x655   : > { %v5580_v58 = vpack.c.bf16 %v5566_v44, %v5565_v25  ;;  %v8286_v49 = vpop.permute.xlu0 %8285 }
 0x656   : > { %v5567_v24 = vsel %vm5562_vm4, %v5550_v53, %v8302_v26  ;;  %v5568_v48 = vsel %vm5562_vm4, %v5551_v27, %v8303_v56  ;;  %v8288_v15 = vunpack.i.h.bf16 %v8286_v49  ;;  %v8287_v36 = vunpack.i.l.bf16 %v8286_v49 }
 0x657   : > { %7744 = vmatmul.mubr.bf16.vlgmr.msra.gmra.mrb[152].mxu0 %v5580_v58  ;;  %v5581_v46 = vpack.c.bf16 %v5568_v48, %v5567_v24  ;;  %v8311_v4 = vpop.permute.xlu1 %8310 }
 0x658   : > { %v5536_v1 = vsel %vm1687_vm1, %v10873_v19, %v8288_v15  ;;  %v5535_v33 = vsel %vm1687_vm1, %v10871_v0, %v8287_v36  ;;  %v8313_v60 = vunpack.i.h.bf16 %v8311_v4  ;;  %v8312_v54 = vunpack.i.l.bf16 %v8311_v4 }
 0x659   : > { %7747 = vmatprep.mubr.bf16.mxu0 %v5581_v46  ;;  %v8296_v8 = vpop.permute.xlu0 %8295 }
 0x65a   : > { %v8298_v38 = vunpack.i.h.bf16 %v8296_v8  ;;  %v8297_v21 = vunpack.i.l.bf16 %v8296_v8  ;;  %v5538_v0 = vsel %vm1687_vm1, %v10889_v39, %v8313_v60  ;;  %v5537_v31 = vsel %vm1687_vm1, %v10884_v6, %v8312_v54 }
 0x65b   : > { %v8321_v35 = vpop.permute.xlu1 %8320 }
 0x65c   : > { %v5552_v14 = vsel %vm5545_vm3, %v5535_v33, %v8297_v21  ;;  %v5553_v59 = vsel %vm5545_vm3, %v5536_v1, %v8298_v38  ;;  %v8323_v62 = vunpack.i.h.bf16 %v8321_v35  ;;  %v8322_v19 = vunpack.i.l.bf16 %v8321_v35 }
 0x65e   : > { %v5554_v30 = vsel %vm5545_vm3, %v5537_v31, %v8322_v19  ;;  %v5555_v32 = vsel %vm5545_vm3, %v5538_v0, %v8323_v62  ;;  %v8769_v0 = vld [vmem:[%s9467_s9] sm:$0xff] }
 0x661   : > { %v8306_v43 = vpop.permute.xlu0 %8305 }
 0x662   : > { %v8308_v7 = vunpack.i.h.bf16 %v8306_v43  ;;  %v8307_v29 = vunpack.i.l.bf16 %v8306_v43 }
 0x664   : > { %v5569_v11 = vsel %vm5562_vm4, %v5552_v14, %v8307_v29  ;;  %v5570_v2 = vsel %vm5562_vm4, %v5553_v59, %v8308_v7 }
 0x665   : > { %v8316_v23 = vpop.permute.xlu0 %8315  ;;  %v5582_v57 = vpack.c.bf16 %v5570_v2, %v5569_v11 }
 0x666   : > { %v8318_v40 = vunpack.i.h.bf16 %v8316_v23  ;;  %v8317_v10 = vunpack.i.l.bf16 %v8316_v23 }
 0x667   : > { %7748 = vmatmul.mubr.bf16.gmra.mrb[156].mxu0 %v5582_v57 }
 0x668   : > { %v5540_v6 = vsel %vm1687_vm1, %v10896_v5, %v8318_v40  ;;  %v5539_v16 = vsel %vm1687_vm1, %v10894_v61, %v8317_v10  ;;  %v8770_v10 = vld [vmem:[%s9467_s9 + $0x8] sm:$0xff] }
 0x669   : > { %v8331_v37 = vpop.permute.xlu1 %8330  ;;  %v8326_v34 = vpop.permute.xlu0 %8325 }
 0x66a   : > { %v8333_v13 = vunpack.i.h.bf16 %v8331_v37  ;;  %v8332_v20 = vunpack.i.l.bf16 %v8331_v37  ;;  %v8328_v63 = vunpack.i.h.bf16 %v8326_v34  ;;  %v8327_v42 = vunpack.i.l.bf16 %v8326_v34 }
 0x66c   : > { %v5571_v12 = vsel %vm5562_vm4, %v5554_v30, %v8332_v20  ;;  %v5572_v41 = vsel %vm5562_vm4, %v5555_v32, %v8333_v13  ;;  %v5556_v45 = vsel %vm5545_vm3, %v5539_v16, %v8327_v42  ;;  %v5557_v22 = vsel %vm5545_vm3, %v5540_v6, %v8328_v63  ;;  %v8771_v20 = vld [vmem:[%s9467_s9 + $0x18] sm:$0xff]  ;;  %v8772_v32 = vld [vmem:[%s9467_s9 + $0x10] sm:$0xff]  ;;  %v8773_v16 = vld [vmem:[%s9467_s9 + $0x20] sm:$0xff] }
 0x66d   : > { %v8336_v39 = vpop.permute.xlu0 %8335  ;;  %v5583_v9 = vpack.c.bf16 %v5572_v41, %v5571_v12  ;;  %v8341_v25 = vpop.permute.xlu1 %8340 }
 0x66e   : > { %v8338_v17 = vunpack.i.h.bf16 %v8336_v39  ;;  %v8337_v52 = vunpack.i.l.bf16 %v8336_v39  ;;  %v8343_v26 = vunpack.i.h.bf16 %v8341_v25  ;;  %v8342_v5 = vunpack.i.l.bf16 %v8341_v25  ;;  %v8776_v25 = vld [vmem:[%s9467_s9 + $0x38] sm:$0xff] }
 0x66f   : > { %7751 = vmatprep.mubr.bf16.mxu0 %v5583_v9 }
 0x670   : > { %v5573_v18 = vsel %vm5562_vm4, %v5556_v45, %v8337_v52  ;;  %v5574_v47 = vsel %vm5562_vm4, %v5557_v22, %v8338_v17  ;;  %v5542_v58 = vsel %vm1687_vm1, %v10900_v50, %v8343_v26  ;;  %v5541_v49 = vsel %vm1687_vm1, %v10898_v55, %v8342_v5  ;;  %v8774_v22 = vld [vmem:[%s9467_s9 + $0x28] sm:$0xff] }
 0x671   : > { %v5584_v44 = vpack.c.bf16 %v5574_v47, %v5573_v18  ;;  %v8351_v56 = vpop.permute.xlu1 %8350  ;;  %v8346_v38 = vpop.permute.xlu0 %8345  ;;  %v8775_v47 = vld [vmem:[%s9467_s9 + $0x30] sm:$0xff] }
 0x672   : > { %v8353_v53 = vunpack.i.h.bf16 %v8351_v56  ;;  %v8352_v27 = vunpack.i.l.bf16 %v8351_v56  ;;  %v8348_v43 = vunpack.i.h.bf16 %v8346_v38  ;;  %v8347_v1 = vunpack.i.l.bf16 %v8346_v38  ;;  %v8780_v38 = vld [vmem:[%s9467_s9 + $0x58] sm:$0xff] }
 0x673   : > { %7752 = vmatmul.mubr.bf16.gmra.mrb[160].mxu0 %v5584_v44 }
 0x674   : > { %v5558_v46 = vsel %vm5545_vm3, %v5541_v49, %v8352_v27  ;;  %v5559_v8 = vsel %vm5545_vm3, %v5542_v58, %v8353_v53  ;;  %v5544_v55 = vsel %vm1687_vm1, %v10904_v51, %v8348_v43  ;;  %v5543_v29 = vsel %vm1687_vm1, %v10902_v3, %v8347_v1  ;;  %v11088_v51 = vld [vmem:[%s11746_s7] ss:$0 sm:$0xff] }
 0x675   : > { %v8356_v21 = vpop.permute.xlu0 %8355  ;;  %v8777_v49 = vld [vmem:[%s9467_s9 + $0x40] sm:$0xff] }
 0x676   : > { %v8358_v50 = vunpack.i.h.bf16 %v8356_v21  ;;  %v8357_v33 = vunpack.i.l.bf16 %v8356_v21 }
 0x678   : > { %v5560_v35 = vsel %vm5545_vm3, %v5543_v29, %v8357_v33  ;;  %v5561_v11 = vsel %vm5545_vm3, %v5544_v55, %v8358_v50  ;;  %v8781_v29 = vld [vmem:[%s9467_s9 + $0x60] sm:$0xff] }
 0x694   : > { %v8361_v61 = vpop.permute.xlu1 %8360 }
 0x695   : > { %v8363_v24 = vunpack.i.h.bf16 %v8361_v61  ;;  %v8362_v48 = vunpack.i.l.bf16 %v8361_v61 }
 0x697   : > { %v5575_v15 = vsel %vm5562_vm4, %v5558_v46, %v8362_v48  ;;  %v5576_v36 = vsel %vm5562_vm4, %v5559_v8, %v8363_v24  ;;  %v8778_v8 = vld [vmem:[%s9467_s9 + $0x48] sm:$0xff] }
 0x698   : > { %v5585_v4 = vpack.c.bf16 %v5576_v36, %v5575_v15  ;;  %v8779_v36 = vld [vmem:[%s9467_s9 + $0x50] sm:$0xff] }
 0x69a   : > { %7755 = vmatprep.mubr.bf16.mxu0 %v5585_v4 }
 0x6a6   : > { %v8366_v7 = vpop.permute.xlu0 %8365 }
 0x6a7   : > { %v8368_v14 = vunpack.i.h.bf16 %v8366_v7  ;;  %v8367_v59 = vunpack.i.l.bf16 %v8366_v7 }
 0x6a9   : > { %v5577_v2 = vsel %vm5562_vm4, %v5560_v35, %v8367_v59  ;;  %v5578_v60 = vsel %vm5562_vm4, %v5561_v11, %v8368_v14  ;;  %v8782_v11 = vld [vmem:[%s9467_s9 + $0x68] sm:$0xff] }
 0x6aa   : > { %v5586_v54 = vpack.c.bf16 %v5578_v60, %v5577_v2  ;;  %v8783_v60 = vld [vmem:[%s9467_s9 + $0x70] sm:$0xff] }
 0x6ac   : > { %7756 = vmatmul.mubr.bf16.gmra.mrb[164].mxu0 %v5586_v54 }
 0x72a   : > { %v7745_v3 = vpop.f32.mrb[152].mxu0 }
 0x72b   : > { %v5692_v23 = vpop.f32.mrb[153].mxu0  ;;  %v5701_v40 = vadd.f32 %v7745_v3, %v11088_v51  ;;  %v8784_v3 = vld [vmem:[%s9467_s9 + $0x78] sm:$0xff]  ;;  %s11976_s9 = sld [smem:[#allocation82_spill]] }
 0x72c   : > { %v5693_v57 = vadd.f32 %v11088_v51, %v5692_v23  ;;  %v7746_v62 = vpop.f32.mrb[154].mxu0 }
 0x72d   : > { %v5695_v19 = vpop.f32.mrb[155].mxu0  ;;  %v5704_v37 = vadd.f32 %v7746_v62, %v11088_v51  ;;  %v11106_v63 = vadd.f32 %v8772_v32, %v5701_v40  ;;  %v8411_v62 = vld [vmem:[#allocation11 + $0x4] ss:$8 sps:$4 sm:$0xff]  }
 0x72e   : > { %v11092_v31 = vadd.f32 %v8769_v0, %v5693_v57  ;;  %v5696_v34 = vadd.f32 %v11088_v51, %v5695_v19  ;;  %v8409_v57 = vld [vmem:[#allocation11] ss:$8 sps:$4 sm:$0xff]   ;;  %6110 = vmatprep.subr.bf16.mxu1 %v8411_v62  ;;  %v8412_v19 = vld [vmem:[#allocation11 + $0x10] ss:$8 sps:$4 sm:$0xff]  }
 0x72f   : > { %v11102_v30 = vadd.f32 %v8771_v20, %v5704_v37  ;;  %6111 = vmatpush1.bf16.msra.mxu1 %v8409_v57  ;;  %v8424_v57 = vld [vmem:[#allocation11 + $0x50] ss:$8 sps:$4 sm:$0xff]  }
 0x730   : > { %v11098_v13 = vadd.f32 %v8770_v10, %v5696_v34  ;;  %5771 = vadd.xlane.f32.xlu1 %v11092_v31 }
 0x732   : > { %5773 = vadd.xlane.f32.xlu0 %v11098_v13 }
 0x734   : > { %5777 = vadd.xlane.f32.xlu1 %v11102_v30 }
 0x736   : > { %5775 = vadd.xlane.f32.xlu0 %v11106_v63 }
 0x73a   : > { %v7749_v42 = vpop.f32.mrb[156].mxu0 }
 0x73b   : > { %v5708_v12 = vpop.f32.mrb[157].mxu0  ;;  %v5717_v6 = vadd.f32 %v7749_v42, %v11088_v51 }
 0x73c   : > { %v5709_v41 = vadd.f32 %v11088_v51, %v5708_v12  ;;  %v7750_v39 = vpop.f32.mrb[158].mxu0 }
 0x73d   : > { %v5711_v9 = vpop.f32.mrb[159].mxu0  ;;  %v5720_v45 = vadd.f32 %v7750_v39, %v11088_v51  ;;  %v11122_v44 = vadd.f32 %v8775_v47, %v5717_v6 }
 0x73e   : > { %v11113_v17 = vadd.f32 %v8773_v16, %v5709_v41  ;;  %v5712_v52 = vadd.f32 %v11088_v51, %v5711_v9 }
 0x73f   : > { %v11126_v56 = vadd.f32 %v8776_v25, %v5720_v45 }
 0x740   : > { %v11118_v18 = vadd.f32 %v8774_v22, %v5712_v52  ;;  %5779 = vadd.xlane.f32.xlu0 %v11113_v17 }
 0x742   : > { %5781 = vadd.xlane.f32.xlu1 %v11118_v18 }
 0x744   : > { %5783 = vadd.xlane.f32.xlu0 %v11122_v44 }
 0x746   : > { %5785 = vadd.xlane.f32.xlu1 %v11126_v56  ;;  %v7753_v26 = vpop.f32.mrb[160].mxu0 }
 0x747   : > { %v5724_v5 = vpop.f32.mrb[161].mxu0  ;;  %v5733_v58 = vadd.f32 %v7753_v26, %v11088_v51 }
 0x748   : > { %v5725_v53 = vadd.f32 %v11088_v51, %v5724_v5  ;;  %v7754_v27 = vpop.f32.mrb[162].mxu0 }
 0x749   : > { %v5727_v61 = vpop.f32.mrb[163].mxu0  ;;  %v5736_v46 = vadd.f32 %v7754_v27, %v11088_v51  ;;  %v11142_v4 = vadd.f32 %v8779_v36, %v5733_v58  ;;  %v8417_v27 = vld [vmem:[#allocation11 + $0x24] ss:$8 sps:$4 sm:$0xff]  }
 0x74a   : > { %v11133_v24 = vadd.f32 %v8777_v49, %v5725_v53  ;;  %v5728_v48 = vadd.f32 %v11088_v51, %v5727_v61  ;;  %v8415_v49 = vld [vmem:[#allocation11 + $0x20] ss:$8 sps:$4 sm:$0xff]  }
 0x74b   : > { %v11146_v21 = vadd.f32 %v8780_v38, %v5736_v46  ;;  %v8420_v46 = vld [vmem:[#allocation11 + $0x34] ss:$8 sps:$4 sm:$0xff]  }
 0x74c   : > { %v11138_v15 = vadd.f32 %v8778_v8, %v5728_v48  ;;  %5787 = vadd.xlane.f32.xlu0 %v11133_v24  ;;  %v8418_v8 = vld [vmem:[#allocation11 + $0x30] ss:$8 sps:$4 sm:$0xff]  }
 0x74e   : > { %5789 = vadd.xlane.f32.xlu1 %v11138_v15 }
 0x750   : > { %5791 = vadd.xlane.f32.xlu0 %v11142_v4 }
 0x752   : > { %5793 = vadd.xlane.f32.xlu1 %v11146_v21 }
 0x77f   : > { %v7757_v43 = vpop.f32.mrb[164].mxu0 }
 0x780   : > { %v5740_v1 = vpop.f32.mrb[165].mxu0  ;;  %v5749_v55 = vadd.f32 %v7757_v43, %v11088_v51 }
 0x781   : > { %v5741_v50 = vadd.f32 %v11088_v51, %v5740_v1  ;;  %v7758_v33 = vpop.f32.mrb[166].mxu0  ;;  %v8423_v1 = vld [vmem:[#allocation11 + $0x44] ss:$8 sps:$4 sm:$0xff]  }
 0x782   : > { %v5743_v7 = vpop.f32.mrb[167].mxu0  ;;  %v5752_v35 = vadd.f32 %v7758_v33, %v11088_v51  ;;  %v11162_v54 = vadd.f32 %v8783_v60, %v5749_v55  ;;  %v8421_v33 = vld [vmem:[#allocation11 + $0x40] ss:$8 sps:$4 sm:$0xff]  }
 0x783   : > { %v11153_v14 = vadd.f32 %v8781_v29, %v5741_v50  ;;  %v5744_v59 = vadd.f32 %v11088_v51, %v5743_v7  ;;  %v8414_v51 = vld [vmem:[#allocation11 + $0x14] ss:$8 sps:$4 sm:$0xff]  }
 0x784   : > { %v11166_v23 = vadd.f32 %v8784_v3, %v5752_v35  ;;  %6112 = vmatprep.subr.bf16.mxu1 %v8414_v51  ;;  %v8429_v51 = vld [vmem:[#allocation11 + $0x64] ss:$8 sps:$4 sm:$0xff]  }
 0x785   : > { %v11158_v2 = vadd.f32 %v8782_v11, %v5744_v59  ;;  %5795 = vadd.xlane.f32.xlu0 %v11153_v14  ;;  %6113 = vmatpush1.bf16.msra.mxu1 %v8412_v19  ;;  %v8426_v11 = vld [vmem:[#allocation11 + $0x54] ss:$8 sps:$4 sm:$0xff]   ;;  %v8427_v19 = vld [vmem:[#allocation11 + $0x60] ss:$8 sps:$4 sm:$0xff]  }
 0x786   : > { %6114 = vmatprep.subr.bf16.mxu1 %v8417_v27 }
 0x787   : > { %5797 = vadd.xlane.f32.xlu1 %v11158_v2 }
 0x789   : > { %5799 = vadd.xlane.f32.xlu0 %v11162_v54  ;;  %6115 = vmatpush1.bf16.msra.mxu1 %v8415_v49  ;;  %v11267_v49 = vld [vmem:[#allocation13 + $0x18] sm:$0xff]  }
 0x78a   : > { %6116 = vmatprep.subr.bf16.mxu1 %v8420_v46 }
 0x78b   : > { %5801 = vadd.xlane.f32.xlu1 %v11166_v23 }
 0x78d   : > { %6117 = vmatpush1.bf16.msra.mxu1 %v8418_v8 }
 0x78e   : > { %6118 = vmatprep.subr.bf16.mxu1 %v8423_v1 }
 0x791   : > { %6119 = vmatpush1.bf16.msra.mxu1 %v8421_v33  ;;  %v11276_v33 = vld [vmem:[#allocation13 + $0x68] sm:$0xff]  }
 0x792   : > { %6120 = vmatprep.subr.bf16.mxu1 %v8426_v11 }
 0x795   : > { %6121 = vmatpush1.bf16.msra.mxu1 %v8424_v57 }
 0x796   : > { %6122 = vmatprep.subr.bf16.mxu1 %v8429_v51 }
 0x799   : > { %6123 = vmatpush1.bf16.msra.mxu1 %v8427_v19 }
 0x7bd   : > { %v5772_v0 = vpop.xlane.xlu1 %5771 }
 0x7be   : > { %v5804_v37 = vmul.f32 0.0078125, %v5772_v0  ;;  %v8432_v0 = vld [vmem:[#allocation11 + $0x74] ss:$8 sps:$4 sm:$0xff]  }
 0x7bf   : > { %v5774_v34 = vpop.xlane.xlu0 %5773  ;;  %6124 = vmatprep.subr.bf16.mxu1 %v8432_v0 }
 0x7c0   : > { %v11171_v40 = vsub.f32 %v11092_v31, %v5804_v37  ;;  %v5805_v10 = vmul.f32 0.0078125, %v5774_v34  ;;  %v8430_v37 = vld [vmem:[#allocation11 + $0x70] ss:$8 sps:$4 sm:$0xff]  }
 0x7c1   : > { %v5778_v20 = vpop.xlane.xlu1 %5777  ;;  %6125 = vmatpush1.bf16.msra.mxu1 %v8430_v37  ;;  %v11291_v37 = vld [vmem:[%s11976_s9] ss:$0 sm:$0xff]  ;;  %s11690_s9 = scalar_lea.hbm %s11984_s25, %s7086_s10 }
 0x7c2   : > { %v11174_v32 = vsub.f32 %v11098_v13, %v5805_v10  ;;  %v5807_v42 = vmul.f32 0.0078125, %v5778_v20  ;;  %v5836_v12 = vmul.f32 %v11171_v40, %v11171_v40 }
 0x7c3   : > { %v5776_v41 = vpop.xlane.xlu0 %5775 }
 0x7c4   : > { %v11179_v39 = vsub.f32 %v11102_v30, %v5807_v42  ;;  %v5806_v9 = vmul.f32 0.0078125, %v5776_v41  ;;  %5852 = vadd.xlane.f32.xlu0 %v5836_v12  ;;  %v5837_v6 = vmul.f32 %v11174_v32, %v11174_v32 }
 0x7c6   : > { %v11184_v31 = vsub.f32 %v11106_v63, %v5806_v9  ;;  %5854 = vadd.xlane.f32.xlu1 %v5837_v6  ;;  %v5839_v13 = vmul.f32 %v11179_v39, %v11179_v39 }
 0x7c8   : > { %v5838_v16 = vmul.f32 %v11184_v31, %v11184_v31 }
 0x7ca   : > { %5858 = vadd.xlane.f32.xlu1 %v5839_v13  ;;  %5856 = vadd.xlane.f32.xlu0 %v5838_v16 }
 0x7cd   : > { %v5780_v52 = vpop.xlane.xlu0 %5779 }
 0x7ce   : > { %v5808_v30 = vmul.f32 0.0078125, %v5780_v52 }
 0x7cf   : > { %v5782_v45 = vpop.xlane.xlu1 %5781 }
 0x7d0   : > { %v11191_v22 = vsub.f32 %v11113_v17, %v5808_v30  ;;  %v5809_v47 = vmul.f32 0.0078125, %v5782_v45 }
 0x7d1   : > { %v5784_v25 = vpop.xlane.xlu0 %5783 }
 0x7d2   : > { %v11194_v63 = vsub.f32 %v11118_v18, %v5809_v47  ;;  %v5810_v26 = vmul.f32 0.0078125, %v5784_v25  ;;  %v5840_v5 = vmul.f32 %v11191_v22, %v11191_v22  ;;  %v8433_v47 = vld [vmem:[#allocation13 + $0x40] sm:$0xff]   ;;  %v11252_v25 = vld [vmem:[#allocation13 + $0x48] sm:$0xff]  }
 0x7d3   : > { %v5786_v53 = vpop.xlane.xlu1 %5785  ;;  %7247 = vmatprep.subr.bf16.mxu0 %v8433_v47  ;;  %7759 = vmatprep.subr.bf16.mxu1 %v8433_v47 }
 0x7d4   : > { %v11199_v61 = vsub.f32 %v11122_v44, %v5810_v26  ;;  %v5811_v58 = vmul.f32 0.0078125, %v5786_v53  ;;  %5860 = vadd.xlane.f32.xlu0 %v5840_v5  ;;  %v5841_v17 = vmul.f32 %v11194_v63, %v11194_v63  ;;  %v11258_v26 = vld [vmem:[#allocation13 + $0x50] sm:$0xff]   ;;  %v11264_v53 = vld [vmem:[#allocation13 + $0x58] sm:$0xff]  }
 0x7d5   : > { %v11261_v5 = vld [vmem:[#allocation13 + $0x10] sm:$0xff]  }
 0x7d6   : > { %v11204_v48 = vsub.f32 %v11126_v56, %v5811_v58  ;;  %5862 = vadd.xlane.f32.xlu1 %v5841_v17  ;;  %v5842_v18 = vmul.f32 %v11199_v61, %v11199_v61 }
 0x7d8   : > { %5864 = vadd.xlane.f32.xlu0 %v5842_v18  ;;  %v5843_v44 = vmul.f32 %v11204_v48, %v11204_v48 }
 0x7d9   : > { %v5788_v36 = vpop.xlane.xlu0 %5787 }
 0x7da   : > { %v5812_v38 = vmul.f32 0.0078125, %v5788_v36  ;;  %5866 = vadd.xlane.f32.xlu1 %v5843_v44  ;;  %v11270_v44 = vld [vmem:[#allocation13 + $0x60] sm:$0xff]  }
 0x7db   : > { %v5790_v43 = vpop.xlane.xlu1 %5789 }
 0x7dc   : > { %v11211_v56 = vsub.f32 %v11133_v24, %v5812_v38  ;;  %v5813_v50 = vmul.f32 0.0078125, %v5790_v43  ;;  %v11273_v43 = vld [vmem:[#allocation13 + $0x20] sm:$0xff]  }
 0x7dd   : > { %v5792_v7 = vpop.xlane.xlu0 %5791 }
 0x7de   : > { %v11214_v55 = vsub.f32 %v11138_v15, %v5813_v50  ;;  %v5814_v29 = vmul.f32 0.0078125, %v5792_v7  ;;  %v5844_v59 = vmul.f32 %v11211_v56, %v11211_v56 }
 0x7df   : > { %v5794_v35 = vpop.xlane.xlu1 %5793 }
 0x7e0   : > { %v11219_v60 = vsub.f32 %v11142_v4, %v5814_v29  ;;  %v5815_v3 = vmul.f32 0.0078125, %v5794_v35  ;;  %5868 = vadd.xlane.f32.xlu0 %v5844_v59  ;;  %v5845_v24 = vmul.f32 %v11214_v55, %v11214_v55  ;;  %v11283_v35 = vld [vmem:[%s11975_s19] ss:$0 sm:$0xff] }
 0x7e2   : > { %v11224_v15 = vsub.f32 %v11146_v21, %v5815_v3  ;;  %5870 = vadd.xlane.f32.xlu1 %v5845_v24  ;;  %v5846_v62 = vmul.f32 %v11219_v60, %v11219_v60 }
 0x7e4   : > { %5872 = vadd.xlane.f32.xlu0 %v5846_v62  ;;  %v5847_v4 = vmul.f32 %v11224_v15, %v11224_v15 }
 0x7e6   : > { %5874 = vadd.xlane.f32.xlu1 %v5847_v4 }
 0x812   : > { %v5796_v21 = vpop.xlane.xlu0 %5795 }
 0x813   : > { %v5816_v34 = vmul.f32 0.0078125, %v5796_v21 }
 0x814   : > { %v5798_v10 = vpop.xlane.xlu1 %5797 }
 0x815   : > { %v11231_v20 = vsub.f32 %v11153_v14, %v5816_v34  ;;  %v5817_v42 = vmul.f32 0.0078125, %v5798_v10 }
 0x816   : > { %v5800_v12 = vpop.xlane.xlu0 %5799 }
 0x817   : > { %v11234_v41 = vsub.f32 %v11158_v2, %v5817_v42  ;;  %v5818_v9 = vmul.f32 0.0078125, %v5800_v12  ;;  %v5848_v6 = vmul.f32 %v11231_v20, %v11231_v20 }
 0x818   : > { %v5802_v13 = vpop.xlane.xlu1 %5801 }
 0x819   : > { %v11239_v16 = vsub.f32 %v11162_v54, %v5818_v9  ;;  %v5819_v52 = vmul.f32 0.0078125, %v5802_v13  ;;  %5876 = vadd.xlane.f32.xlu0 %v5848_v6  ;;  %v5849_v30 = vmul.f32 %v11234_v41, %v11234_v41  ;;  %v11250_v54 = vld [vmem:[#allocation13] sm:$0xff]  }
 0x81a   : > { %7248 = vmatpush3.bf16.msra.mxu0 %v11250_v54 }
 0x81b   : > { %v11244_v14 = vsub.f32 %v11166_v23, %v5819_v52  ;;  %5878 = vadd.xlane.f32.xlu1 %v5849_v30  ;;  %v5850_v2 = vmul.f32 %v11239_v16, %v11239_v16  ;;  %v11255_v23 = vld [vmem:[#allocation13 + $0x8] sm:$0xff]   ;;  %7249 = vmatprep.subr.bf16.mxu0 %v11252_v25 }
 0x81d   : > { %5880 = vadd.xlane.f32.xlu0 %v5850_v2  ;;  %v5851_v45 = vmul.f32 %v11244_v14, %v11244_v14 }
 0x81e   : > { %7250 = vmatpush3.bf16.msra.mxu0 %v11255_v23 }
 0x81f   : > { %5882 = vadd.xlane.f32.xlu1 %v5851_v45  ;;  %7251 = vmatprep.subr.bf16.mxu0 %v11258_v26 }
 0x822   : > { %7252 = vmatpush3.bf16.msra.mxu0 %v11261_v5 }
 0x823   : > { %7253 = vmatprep.subr.bf16.mxu0 %v11264_v53 }
 0x826   : > { %7254 = vmatpush3.bf16.msra.mxu0 %v11267_v49 }
 0x827   : > { %7255 = vmatprep.subr.bf16.mxu0 %v11270_v44 }
 0x82a   : > { %7256 = vmatpush3.bf16.msra.mxu0 %v11273_v43 }
 0x82b   : > { %7257 = vmatprep.subr.bf16.mxu0 %v11276_v33 }
 0x851   : > { %v5853_v27 = vpop.xlane.xlu0 %5852 }
 0x852   : > { %v5884_v58 = vmul.f32 0.0078125, %v5853_v27 }
 0x853   : > { %v5855_v17 = vpop.xlane.xlu1 %5854 }
 0x854   : > { %v5900_v18 = vadd.f32 1e-05, %v5884_v58  ;;  %v5885_v46 = vmul.f32 0.0078125, %v5855_v17 }
 0x856   : > { %8705 = vrsqrt.f32 %v5900_v18  ;;  %v5901_v8 = vadd.f32 1e-05, %v5885_v46 }
 0x857   : > { %v5859_v36 = vpop.xlane.xlu1 %5858  ;;  %v5857_v38 = vpop.xlane.xlu0 %5856 }
 0x858   : > { %8707 = vrsqrt.f32 %v5901_v8  ;;  %v5887_v1 = vmul.f32 0.0078125, %v5859_v36  ;;  %v5886_v50 = vmul.f32 0.0078125, %v5857_v38 }
 0x85a   : > { %v5903_v7 = vadd.f32 1e-05, %v5887_v1  ;;  %v5902_v29 = vadd.f32 1e-05, %v5886_v50 }
 0x85c   : > { %8709 = vrsqrt.f32 %v5903_v7 }
 0x85d   : > { %8711 = vrsqrt.f32 %v5902_v29 }
 0x860   : > { %v8706_v59 = vpop.eup %8705 }
 0x861   : > { %v5932_v11 = vmul.f32 %v8706_v59, %v11171_v40  ;;  %v5861_v3 = vpop.xlane.xlu0 %5860 }
 0x862   : > { %v8708_v24 = vpop.eup %8707  ;;  %v5888_v57 = vmul.f32 0.0078125, %v5861_v3 }
 0x863   : > { %v5933_v62 = vmul.f32 %v8708_v24, %v11174_v32  ;;  %v5863_v51 = vpop.xlane.xlu1 %5862  ;;  %v5955_v4 = vmul.f32 %v11283_v35, %v5932_v11 }
 0x864   : > { %v5904_v19 = vadd.f32 1e-05, %v5888_v57  ;;  %v5889_v0 = vmul.f32 0.0078125, %v5863_v51 }
 0x865   : > { %v5865_v21 = vpop.xlane.xlu0 %5864  ;;  %v5956_v34 = vmul.f32 %v11283_v35, %v5933_v62  ;;  %v11295_v32 = vadd.f32 %v11291_v37, %v5955_v4 }
 0x866   : > { %v8710_v10 = vpop.eup %8709  ;;  %8713 = vrsqrt.f32 %v5904_v19  ;;  %v5905_v40 = vadd.f32 1e-05, %v5889_v0  ;;  %v5890_v42 = vmul.f32 0.0078125, %v5865_v21 }
 0x867   : > { %v8712_v12 = vpop.eup %8711  ;;  %v5867_v9 = vpop.xlane.xlu1 %5866  ;;  %v11298_v6 = vadd.f32 %v11291_v37, %v5956_v34  ;;  %v5935_v13 = vmul.f32 %v8710_v10, %v11179_v39 }
 0x868   : > { %8715 = vrsqrt.f32 %v5905_v40  ;;  %v5906_v52 = vadd.f32 1e-05, %v5890_v42  ;;  %v5891_v30 = vmul.f32 0.0078125, %v5867_v9  ;;  %v5934_v2 = vmul.f32 %v8712_v12, %v11184_v31 }
 0x869   : > { %v5994_v45 = vpack.c.bf16 %v11298_v6, %v11295_v32  ;;  %v5958_v47 = vmul.f32 %v11283_v35, %v5935_v13 }
 0x86a   : > { %8717 = vrsqrt.f32 %v5906_v52  ;;  %v5907_v27 = vadd.f32 1e-05, %v5891_v30  ;;  %v5957_v58 = vmul.f32 %v11283_v35, %v5934_v2 }
 0x86b   : > { %6143 = vmatmul.mubr.bf16.vlgmr.msra.gmra.mrb[152].mxu1 %v5994_v45  ;;  %v11312_v31 = vadd.f32 %v11291_v37, %v5958_v47 }
 0x86c   : > { %8719 = vrsqrt.f32 %v5907_v27  ;;  %6152 = vmatprep.mubr.bf16.mxu1 %v11974_v28  ;;  %7767 = vmatpush3.bf16.msra.mxu1 %v11250_v54  ;;  %v11309_v17 = vadd.f32 %v11291_v37, %v5957_v58 }
 0x86d   : > { %v5869_v39 = vpop.xlane.xlu0 %5868  ;;  %7760 = vmatprep.subr.bf16.mxu1 %v11252_v25 }
 0x86e   : > { %v5892_v18 = vmul.f32 0.0078125, %v5869_v39  ;;  %v5995_v54 = vpack.c.bf16 %v11312_v31, %v11309_v17 }
 0x86f   : > { %v5871_v46 = vpop.xlane.xlu1 %5870 }
 0x870   : > { %v8714_v8 = vpop.eup %8713  ;;  %v5908_v36 = vadd.f32 1e-05, %v5892_v18  ;;  %v5893_v38 = vmul.f32 0.0078125, %v5871_v46  ;;  %7768 = vmatpush3.bf16.msra.mxu1 %v11255_v23 }
 0x871   : > { %v5873_v1 = vpop.xlane.xlu0 %5872  ;;  %v5936_v50 = vmul.f32 %v8714_v8, %v11191_v22  ;;  %7761 = vmatprep.subr.bf16.mxu1 %v11258_v26 }
 0x872   : > { %v8716_v7 = vpop.eup %8715  ;;  %8721 = vrsqrt.f32 %v5908_v36  ;;  %v5909_v29 = vadd.f32 1e-05, %v5893_v38  ;;  %v5894_v59 = vmul.f32 0.0078125, %v5873_v1 }
 0x873   : > { %v5875_v25 = vpop.xlane.xlu1 %5874  ;;  %6153 = vmatmul.mubr.bf16.gmra.mrb[156].mxu1 %v5995_v54  ;;  %v5937_v11 = vmul.f32 %v8716_v7, %v11194_v63  ;;  %v5959_v3 = vmul.f32 %v11283_v35, %v5936_v50 }
 0x874   : > { %v8718_v24 = vpop.eup %8717  ;;  %8723 = vrsqrt.f32 %v5909_v29  ;;  %v5895_v23 = vmul.f32 0.0078125, %v5875_v25  ;;  %6162 = vmatprep.mubr.bf16.mxu1 %v11974_v28  ;;  %7769 = vmatpush3.bf16.msra.mxu1 %v11261_v5  ;;  %v5910_v57 = vadd.f32 1e-05, %v5894_v59 }
 0x875   : > { %v5960_v22 = vmul.f32 %v11283_v35, %v5937_v11  ;;  %7762 = vmatprep.subr.bf16.mxu1 %v11264_v53  ;;  %v11327_v51 = vadd.f32 %v11291_v37, %v5959_v3  ;;  %v5938_v4 = vmul.f32 %v8718_v24, %v11199_v61 }
 0x876   : > { %v8720_v26 = vpop.eup %8719  ;;  %v5911_v62 = vadd.f32 1e-05, %v5895_v23 }
 0x877   : > { %v11330_v63 = vadd.f32 %v11291_v37, %v5960_v22  ;;  %v5939_v19 = vmul.f32 %v8720_v26, %v11204_v48  ;;  %v5961_v0 = vmul.f32 %v11283_v35, %v5938_v4 }
 0x878   : > { %8725 = vrsqrt.f32 %v5911_v62  ;;  %7770 = vmatpush3.bf16.msra.mxu1 %v11267_v49  ;;  %v8444_v62 = vld [vmem:[#allocation13 + $0x28] sm:$0xff]  }
 0x879   : > { %v5996_v5 = vpack.c.bf16 %v11330_v63, %v11327_v51  ;;  %v5962_v53 = vmul.f32 %v11283_v35, %v5939_v19  ;;  %7763 = vmatprep.subr.bf16.mxu1 %v11270_v44  ;;  %8727 = vrsqrt.f32 %v5910_v57  ;;  %v11347_v49 = vadd.f32 %v11291_v37, %v5961_v0  ;;  %7258 = vmatpush3.bf16.msra.mxu0 %v8444_v62  ;;  %v8445_v19 = vld [vmem:[#allocation13 + $0x70] sm:$0xff]   ;;  %v8448_v0 = vld [vmem:[#allocation13 + $0x38] sm:$0xff]  }
 0x87a   : > { %7259 = vmatprep.subr.bf16.mxu0 %v8445_v19 }
 0x87b   : > { %6163 = vmatmul.mubr.bf16.gmra.mrb[160].mxu1 %v5996_v5  ;;  %v11343_v61 = vadd.f32 %v11291_v37, %v5962_v53  ;;  %v8447_v53 = vld [vmem:[#allocation13 + $0x78] sm:$0xff]  }
 0x87c   : > { %v8722_v21 = vpop.eup %8721  ;;  %6172 = vmatprep.mubr.bf16.mxu1 %v11974_v28  ;;  %7771 = vmatpush3.bf16.msra.mxu1 %v11273_v43 }
 0x87d   : > { %7764 = vmatprep.subr.bf16.mxu1 %v11276_v33  ;;  %v5940_v44 = vmul.f32 %v8722_v21, %v11211_v56  ;;  %v5997_v10 = vpack.c.bf16 %v11343_v61, %v11347_v49  ;;  %v11978_v21 = vld [vmem:[#allocation23_spill] sm:$0xff] }
 0x87e   : > { %v8724_v48 = vpop.eup %8723 }
 0x87f   : > { %v5941_v34 = vmul.f32 %v8724_v48, %v11214_v55  ;;  %v5963_v43 = vmul.f32 %v11283_v35, %v5940_v44  ;;  %v11979_v48 = vsub.s32 0, %v11978_v21  ;;  %v11980_v44 = vsub.s32 1, %v11978_v21 }
 0x880   : > { %7772 = vmatpush3.bf16.msra.mxu1 %v8444_v62 }
 0x881   : > { %v5964_v40 = vmul.f32 %v11283_v35, %v5941_v34  ;;  %v11361_v56 = vadd.f32 %v11291_v37, %v5963_v43  ;;  %7765 = vmatprep.subr.bf16.mxu1 %v8445_v19 }
 0x882   : > { %v8726_v42 = vpop.eup %8725 }
 0x883   : > { %6173 = vmatmul.mubr.bf16.gmra.mrb[164].mxu1 %v5997_v10  ;;  %v8728_v12 = vpop.eup %8727  ;;  %v11357_v33 = vadd.f32 %v11291_v37, %v5964_v40  ;;  %v5943_v9 = vmul.f32 %v8726_v42, %v11224_v15 }
 0x884   : > { %6182 = vmatprep.mubr.bf16.mxu1 %v11974_v28  ;;  %v5942_v55 = vmul.f32 %v8728_v12, %v11219_v60 }
 0x885   : > { %v5998_v13 = vpack.c.bf16 %v11357_v33, %v11361_v56  ;;  %v5966_v52 = vmul.f32 %v11283_v35, %v5943_v9 }
 0x886   : > { %v5965_v30 = vmul.f32 %v11283_v35, %v5942_v55 }
 0x887   : > { %v11370_v2 = vadd.f32 %v11291_v37, %v5966_v52 }
 0x888   : > { %v11373_v15 = vadd.f32 %v11291_v37, %v5965_v30 }
 0x88a   : > { %v5999_v45 = vpack.c.bf16 %v11370_v2, %v11373_v15 }
 0x88b   : > { %6183 = vmatmul.mubr.bf16.gmra.mrb[168].mxu1 %v5998_v13 }
 0x88c   : > { %6192 = vmatprep.mubr.bf16.mxu1 %v11974_v28 }
 0x893   : > { %6193 = vmatmul.mubr.bf16.gmra.mrb[172].mxu1 %v5999_v45 }
 0x894   : > { %6202 = vmatprep.mubr.bf16.mxu1 %v11974_v28 }
 0x8a6   : > { %v5877_v60 = vpop.xlane.xlu0 %5876 }
 0x8a7   : > { %v5896_v47 = vmul.f32 0.0078125, %v5877_v60 }
 0x8a8   : > { %v5879_v27 = vpop.xlane.xlu1 %5878 }
 0x8a9   : > { %v5912_v58 = vadd.f32 1e-05, %v5896_v47  ;;  %v5897_v39 = vmul.f32 0.0078125, %v5879_v27 }
 0x8aa   : > { %v5881_v18 = vpop.xlane.xlu0 %5880 }
 0x8ab   : > { %8729 = vrsqrt.f32 %v5912_v58  ;;  %v5913_v46 = vadd.f32 1e-05, %v5897_v39  ;;  %v5898_v8 = vmul.f32 0.0078125, %v5881_v18 }
 0x8ac   : > { %v5883_v36 = vpop.xlane.xlu1 %5882 }
 0x8ad   : > { %8731 = vrsqrt.f32 %v5913_v46  ;;  %v5914_v38 = vadd.f32 1e-05, %v5898_v8  ;;  %v5899_v1 = vmul.f32 0.0078125, %v5883_v36 }
 0x8af   : > { %8733 = vrsqrt.f32 %v5914_v38  ;;  %v5915_v54 = vadd.f32 1e-05, %v5899_v1 }
 0x8b1   : > { %8735 = vrsqrt.f32 %v5915_v54 }
 0x8b5   : > { %v8730_v50 = vpop.eup %8729 }
 0x8b6   : > { %v5944_v7 = vmul.f32 %v8730_v50, %v11231_v20 }
 0x8b7   : > { %v8732_v29 = vpop.eup %8731 }
 0x8b8   : > { %v5945_v59 = vmul.f32 %v8732_v29, %v11234_v41  ;;  %v5967_v25 = vmul.f32 %v11283_v35, %v5944_v7 }
 0x8b9   : > { %v8734_v11 = vpop.eup %8733 }
 0x8ba   : > { %v5968_v3 = vmul.f32 %v11283_v35, %v5945_v59  ;;  %v11383_v23 = vadd.f32 %v11291_v37, %v5967_v25  ;;  %v5946_v26 = vmul.f32 %v8734_v11, %v11239_v16  ;;  %v8446_v16 = vld [vmem:[#allocation13 + $0x30] sm:$0xff]  }
 0x8bb   : > { %v8736_v24 = vpop.eup %8735  ;;  %7260 = vmatpush3.bf16.msra.mxu0 %v8446_v16  ;;  %7773 = vmatpush3.bf16.msra.mxu1 %v8446_v16 }
 0x8bc   : > { %v11386_v22 = vadd.f32 %v11291_v37, %v5968_v3  ;;  %v5947_v57 = vmul.f32 %v8736_v24, %v11244_v14  ;;  %v5969_v4 = vmul.f32 %v11283_v35, %v5946_v26  ;;  %7261 = vmatprep.subr.bf16.mxu0 %v8447_v53  ;;  %7766 = vmatprep.subr.bf16.mxu1 %v8447_v53 }
 0x8be   : > { %v6000_v20 = vpack.c.bf16 %v11386_v22, %v11383_v23  ;;  %v5970_v41 = vmul.f32 %v11283_v35, %v5947_v57  ;;  %v11399_v14 = vadd.f32 %v11291_v37, %v5969_v4 }
 0x8bf   : > { %7262 = vmatpush3.bf16.msra.mxu0 %v8448_v0  ;;  %7774 = vmatpush3.bf16.msra.mxu1 %v8448_v0 }
 0x8c0   : > { %6203 = vmatmul.mubr.bf16.gmra.mrb[176].mxu1 %v6000_v20  ;;  %v11396_v5 = vadd.f32 %v11291_v37, %v5970_v41 }
 0x8c1   : > { %6212 = vmatprep.mubr.bf16.mxu1 %v11974_v28  ;;  %v6018_v28 = vld [vmem:[%s11977_s18] sm:$0x3]  ;;  %s8989_s18 = sshll.u32 %s9086_s30, 4  ;;  %s8990_s18 = int_to_ptr.vmem [resolvable:$false] %s8989_s18 }
 0x8c2   : > { %v6001_v35 = vpack.c.bf16 %v11396_v5, %v11399_v14  ;;  %v11408_v37 = vrot.slane %v6018_v28, %v11979_v48  ;;  %v11412_v34 = vrot.slane %v6018_v28, %v11980_v44  ;;  %s8991_s26 = scalar_lea.vmem %s8990_s18, 4096  ;;  %p8992_p0 = scmp.lt.s32.totalorder %s11692_s13, %s8990_s18 }
 0x8c3   : > { %p8993_p5 = scmp.lt.s32.totalorder %s8991_s26, %s8985_s28 }
 0x8c5   : > { %p8994_p7 = por %p8993_p5, %p8992_p0 }
 0x8c7   : > { %p8995_p8 = pnand %p8994_p7, %p8988_p9 }
 0x8c8   : > { %6213 = vmatmul.mubr.bf16.gmra.mrb[180].mxu1 %v6001_v35 }
 0x93e   : > { %v6144_v10 = vpop.f32.mrb[152].mxu1 }
 0x93f   : > { %v6145_v40 = vadd.f32 %v6144_v10, %v11408_v37  ;;  %v6146_v42 = vpop.f32.mrb[153].mxu1 }
 0x940   : > { %v6147_v43 = vadd.f32 %v6146_v42, %v11412_v34  ;;  %v6148_v12 = vpop.f32.mrb[154].mxu1 }
 0x941   : > { %v6149_v9 = vadd.f32 %v6148_v12, %v11408_v37  ;;  %v6150_v55 = vpop.f32.mrb[155].mxu1  ;;  %v6223_v52 = vmax.f32 %v6145_v40, 0.0 }
 0x942   : > { %v6151_v13 = vadd.f32 %v6150_v55, %v11412_v34  ;;  %v6224_v45 = vmax.f32 %v6147_v43, 0.0 }
 0x943   : > { %v6225_v30 = vmax.f32 %v6149_v9, 0.0 }
 0x944   : > { %v6226_v60 = vmax.f32 %v6151_v13, 0.0 }
 0x945   : > { %v6255_v47 = vpack.c.bf16 %v6225_v30, %v6223_v52 }
 0x946   : > { %v6256_v27 = vpack.c.bf16 %v6226_v60, %v6224_v45  ;;  %v6154_v58 = vpop.f32.mrb[156].mxu1 }
 0x947   : > { %v6155_v39 = vadd.f32 %v6154_v58, %v11408_v37  ;;  %v6156_v18 = vpop.f32.mrb[157].mxu1 }
 0x948   : > { %v6157_v46 = vadd.f32 %v6156_v18, %v11412_v34  ;;  %v6158_v8 = vpop.f32.mrb[158].mxu1  ;;  %6438 = vmatprep.mubr.bf16.mxu0 %v6256_v27 }
 0x949   : > { %v6159_v36 = vadd.f32 %v6158_v8, %v11408_v37  ;;  %v6160_v38 = vpop.f32.mrb[159].mxu1  ;;  %6439 = vmatmul.mubr.bf16.vlgmr.msra.gmra.mrb[168].mxu0 %v6255_v47  ;;  %v6227_v54 = vmax.f32 %v6155_v39, 0.0 }
 0x94a   : > { %v6161_v1 = vadd.f32 %v6160_v38, %v11412_v34  ;;  %v6228_v7 = vmax.f32 %v6157_v46, 0.0 }
 0x94b   : > { %v6229_v50 = vmax.f32 %v6159_v36, 0.0 }
 0x94c   : > { %v6230_v29 = vmax.f32 %v6161_v1, 0.0 }
 0x94d   : > { %v6257_v59 = vpack.c.bf16 %v6229_v50, %v6227_v54 }
 0x94e   : > { %v6258_v25 = vpack.c.bf16 %v6230_v29, %v6228_v7  ;;  %v6164_v11 = vpop.f32.mrb[160].mxu1 }
 0x94f   : > { %v6165_v3 = vadd.f32 %v6164_v11, %v11408_v37  ;;  %v6166_v24 = vpop.f32.mrb[161].mxu1 }
 0x950   : > { %v6167_v26 = vadd.f32 %v6166_v24, %v11412_v34  ;;  %v6168_v57 = vpop.f32.mrb[162].mxu1  ;;  %6446 = vmatprep.mubr.bf16.mxu0 %v6258_v25 }
 0x951   : > { %v6169_v20 = vadd.f32 %v6168_v57, %v11408_v37  ;;  %v6170_v41 = vpop.f32.mrb[163].mxu1  ;;  %6447 = vmatmul.mubr.bf16.gmra.mrb[172].mxu0 %v6257_v59  ;;  %v6231_v4 = vmax.f32 %v6165_v3, 0.0 }
 0x952   : > { %v6171_v62 = vadd.f32 %v6170_v41, %v11412_v34  ;;  %v6232_v16 = vmax.f32 %v6167_v26, 0.0 }
 0x953   : > { %v6233_v19 = vmax.f32 %v6169_v20, 0.0 }
 0x954   : > { %v6234_v53 = vmax.f32 %v6171_v62, 0.0 }
 0x955   : > { %v6259_v35 = vpack.c.bf16 %v6233_v19, %v6231_v4 }
 0x956   : > { %v6260_v0 = vpack.c.bf16 %v6234_v53, %v6232_v16  ;;  %v6174_v28 = vpop.f32.mrb[164].mxu1 }
 0x957   : > { %v6175_v21 = vadd.f32 %v6174_v28, %v11408_v37  ;;  %v6176_v48 = vpop.f32.mrb[165].mxu1 }
 0x958   : > { %v6177_v44 = vadd.f32 %v6176_v48, %v11412_v34  ;;  %v6178_v10 = vpop.f32.mrb[166].mxu1  ;;  %6454 = vmatprep.mubr.bf16.mxu0 %v6260_v0 }
 0x959   : > { %v6179_v40 = vadd.f32 %v6178_v10, %v11408_v37  ;;  %v6180_v42 = vpop.f32.mrb[167].mxu1  ;;  %6455 = vmatmul.mubr.bf16.gmra.mrb[176].mxu0 %v6259_v35  ;;  %v6235_v12 = vmax.f32 %v6175_v21, 0.0 }
 0x95a   : > { %v6181_v43 = vadd.f32 %v6180_v42, %v11412_v34  ;;  %v6236_v55 = vmax.f32 %v6177_v44, 0.0 }
 0x95b   : > { %v6237_v9 = vmax.f32 %v6179_v40, 0.0 }
 0x95c   : > { %v6238_v13 = vmax.f32 %v6181_v43, 0.0 }
 0x95d   : > { %v6261_v52 = vpack.c.bf16 %v6237_v9, %v6235_v12 }
 0x95e   : > { %v6262_v30 = vpack.c.bf16 %v6238_v13, %v6236_v55  ;;  %v6184_v45 = vpop.f32.mrb[168].mxu1 }
 0x95f   : > { %v6185_v60 = vadd.f32 %v6184_v45, %v11408_v37  ;;  %v6186_v47 = vpop.f32.mrb[169].mxu1 }
 0x960   : > { %v6187_v27 = vadd.f32 %v6186_v47, %v11412_v34  ;;  %v6188_v58 = vpop.f32.mrb[170].mxu1  ;;  %6462 = vmatprep.mubr.bf16.mxu0 %v6262_v30 }
 0x961   : > { %v6189_v39 = vadd.f32 %v6188_v58, %v11408_v37  ;;  %v6190_v18 = vpop.f32.mrb[171].mxu1  ;;  %6463 = vmatmul.mubr.bf16.gmra.mrb[180].mxu0 %v6261_v52  ;;  %v6239_v8 = vmax.f32 %v6185_v60, 0.0 }
 0x962   : > { %v6191_v46 = vadd.f32 %v6190_v18, %v11412_v34  ;;  %v6240_v38 = vmax.f32 %v6187_v27, 0.0 }
 0x963   : > { %v6241_v36 = vmax.f32 %v6189_v39, 0.0 }
 0x964   : > { %v6242_v1 = vmax.f32 %v6191_v46, 0.0 }
 0x965   : > { %v6263_v54 = vpack.c.bf16 %v6241_v36, %v6239_v8 }
 0x966   : > { %v6264_v50 = vpack.c.bf16 %v6242_v1, %v6240_v38  ;;  %v6194_v7 = vpop.f32.mrb[172].mxu1  ;;  %v11449_v1 = vld [vmem:[%s11981_s15] ss:$0 sm:$0xff] }
 0x967   : > { %v6195_v29 = vadd.f32 %v6194_v7, %v11408_v37  ;;  %v6196_v59 = vpop.f32.mrb[173].mxu1 }
 0x968   : > { %v6197_v25 = vadd.f32 %v6196_v59, %v11412_v34  ;;  %v6198_v11 = vpop.f32.mrb[174].mxu1  ;;  %6470 = vmatprep.mubr.bf16.mxu0 %v6264_v50 }
 0x969   : > { %v6199_v3 = vadd.f32 %v6198_v11, %v11408_v37  ;;  %v6200_v24 = vpop.f32.mrb[175].mxu1  ;;  %6471 = vmatmul.mubr.bf16.gmra.mrb[184].mxu0 %v6263_v54  ;;  %v6243_v57 = vmax.f32 %v6195_v29, 0.0 }
 0x96a   : > { %v6201_v26 = vadd.f32 %v6200_v24, %v11412_v34  ;;  %v6244_v41 = vmax.f32 %v6197_v25, 0.0 }
 0x96b   : > { %v6245_v20 = vmax.f32 %v6199_v3, 0.0 }
 0x96c   : > { %v6246_v62 = vmax.f32 %v6201_v26, 0.0 }
 0x96d   : > { %v6265_v4 = vpack.c.bf16 %v6245_v20, %v6243_v57 }
 0x96e   : > { %v6266_v19 = vpack.c.bf16 %v6246_v62, %v6244_v41 }
 0x970   : > { %6478 = vmatprep.mubr.bf16.mxu0 %v6266_v19 }
 0x971   : > { %6479 = vmatmul.mubr.bf16.gmra.mrb[188].mxu0 %v6265_v4 }
 0x993   : > { %v6204_v16 = vpop.f32.mrb[176].mxu1 }
 0x994   : > { %v6205_v53 = vadd.f32 %v6204_v16, %v11408_v37  ;;  %v6206_v35 = vpop.f32.mrb[177].mxu1 }
 0x995   : > { %v6207_v0 = vadd.f32 %v6206_v35, %v11412_v34  ;;  %v6208_v28 = vpop.f32.mrb[178].mxu1 }
 0x996   : > { %v6209_v21 = vadd.f32 %v6208_v28, %v11408_v37  ;;  %v6210_v48 = vpop.f32.mrb[179].mxu1  ;;  %v6247_v10 = vmax.f32 %v6205_v53, 0.0 }
 0x997   : > { %v6211_v44 = vadd.f32 %v6210_v48, %v11412_v34  ;;  %v6248_v42 = vmax.f32 %v6207_v0, 0.0 }
 0x998   : > { %v6249_v40 = vmax.f32 %v6209_v21, 0.0 }
 0x999   : > { %v6250_v43 = vmax.f32 %v6211_v44, 0.0 }
 0x99a   : > { %v6267_v12 = vpack.c.bf16 %v6249_v40, %v6247_v10 }
 0x99b   : > { %v6268_v9 = vpack.c.bf16 %v6250_v43, %v6248_v42  ;;  %v6214_v55 = vpop.f32.mrb[180].mxu1 }
 0x99c   : > { %v6215_v13 = vadd.f32 %v6214_v55, %v11408_v37  ;;  %v6216_v52 = vpop.f32.mrb[181].mxu1 }
 0x99d   : > { %v6217_v30 = vadd.f32 %v6216_v52, %v11412_v34  ;;  %v6218_v45 = vpop.f32.mrb[182].mxu1  ;;  %6486 = vmatprep.mubr.bf16.mxu1 %v6268_v9 }
 0x99e   : > { %v6219_v60 = vadd.f32 %v6218_v45, %v11408_v37  ;;  %v6220_v47 = vpop.f32.mrb[183].mxu1  ;;  %6487 = vmatmul.mubr.bf16.vlgmr.msra.gmra.mrb[184].mxu1 %v6267_v12  ;;  %v6251_v58 = vmax.f32 %v6215_v13, 0.0 }
 0x99f   : > { %v6221_v27 = vadd.f32 %v6220_v47, %v11412_v34  ;;  %v6252_v18 = vmax.f32 %v6217_v30, 0.0 }
 0x9a0   : > { %v6253_v39 = vmax.f32 %v6219_v60, 0.0 }
 0x9a1   : > { %v6254_v46 = vmax.f32 %v6221_v27, 0.0 }
 0x9a2   : > { %v6269_v8 = vpack.c.bf16 %v6253_v39, %v6251_v58 }
 0x9a3   : > { %v6270_v36 = vpack.c.bf16 %v6254_v46, %v6252_v18 }
 0x9a5   : > { %6494 = vmatprep.mubr.bf16.mxu1 %v6270_v36 }
 0x9a6   : > { %6495 = vmatmul.mubr.bf16.gmra.mrb[188].mxu1 %v6269_v8 }
 0xa1c   : > { %v7263_v38 = vpop.f32.mrb[168].mxu0 }
 0xa1d   : > { %v7264_v54 = vpop.f32.mrb[169].mxu0 }
 0xa1e   : > { %v7265_v37 = vadd.f32 %v7264_v54, %v7263_v38  ;;  %v7266_v50 = vpop.f32.mrb[170].mxu0 }
 0xa1f   : > { %v7267_v7 = vpop.f32.mrb[171].mxu0 }
 0xa20   : > { %v6441_v34 = vadd.f32 %v7265_v37, %v11449_v1  ;;  %v7268_v29 = vadd.f32 %v7267_v7, %v7266_v50 }
 0xa22   : > { %v6444_v59 = vadd.f32 %v7268_v29, %v11449_v1  ;;  %v11454_v25 = vadd.f32 %v6441_v34, %v11295_v32 }
 0xa24   : > { %v7269_v11 = vpop.f32.mrb[172].mxu0  ;;  %6519 = vadd.xlane.f32.xlu0 %v11454_v25  ;;  %v11458_v3 = vadd.f32 %v6444_v59, %v11298_v6 }
 0xa25   : > { %v7270_v24 = vpop.f32.mrb[173].mxu0 }
 0xa26   : > { %v7271_v26 = vadd.f32 %v7270_v24, %v7269_v11  ;;  %v7272_v57 = vpop.f32.mrb[174].mxu0  ;;  %6521 = vadd.xlane.f32.xlu1 %v11458_v3 }
 0xa27   : > { %v7273_v20 = vpop.f32.mrb[175].mxu0 }
 0xa28   : > { %v6449_v41 = vadd.f32 %v7271_v26, %v11449_v1  ;;  %v7274_v62 = vadd.f32 %v7273_v20, %v7272_v57 }
 0xa2a   : > { %v6452_v4 = vadd.f32 %v7274_v62, %v11449_v1  ;;  %v11464_v32 = vadd.f32 %v6449_v41, %v11309_v17 }
 0xa2c   : > { %v7275_v19 = vpop.f32.mrb[176].mxu0  ;;  %6523 = vadd.xlane.f32.xlu0 %v11464_v32  ;;  %v11468_v6 = vadd.f32 %v6452_v4, %v11312_v31 }
 0xa2d   : > { %v7276_v16 = vpop.f32.mrb[177].mxu0 }
 0xa2e   : > { %v7277_v53 = vadd.f32 %v7276_v16, %v7275_v19  ;;  %v7278_v35 = vpop.f32.mrb[178].mxu0  ;;  %6525 = vadd.xlane.f32.xlu1 %v11468_v6 }
 0xa2f   : > { %v7279_v0 = vpop.f32.mrb[179].mxu0 }
 0xa30   : > { %v6457_v28 = vadd.f32 %v7277_v53, %v11449_v1  ;;  %v7280_v21 = vadd.f32 %v7279_v0, %v7278_v35 }
 0xa32   : > { %v6460_v48 = vadd.f32 %v7280_v21, %v11449_v1  ;;  %v11474_v17 = vadd.f32 %v6457_v28, %v11327_v51 }
 0xa34   : > { %v7281_v44 = vpop.f32.mrb[180].mxu0  ;;  %6527 = vadd.xlane.f32.xlu0 %v11474_v17  ;;  %v11478_v31 = vadd.f32 %v6460_v48, %v11330_v63 }
 0xa35   : > { %v7282_v10 = vpop.f32.mrb[181].mxu0 }
 0xa36   : > { %v7283_v40 = vadd.f32 %v7282_v10, %v7281_v44  ;;  %v7284_v42 = vpop.f32.mrb[182].mxu0  ;;  %6529 = vadd.xlane.f32.xlu1 %v11478_v31 }
 0xa37   : > { %v7285_v43 = vpop.f32.mrb[183].mxu0 }
 0xa38   : > { %v6465_v12 = vadd.f32 %v7283_v40, %v11449_v1  ;;  %v7286_v9 = vadd.f32 %v7285_v43, %v7284_v42 }
 0xa3a   : > { %v6468_v55 = vadd.f32 %v7286_v9, %v11449_v1  ;;  %v11484_v51 = vadd.f32 %v6465_v12, %v11347_v49 }
 0xa3c   : > { %v7287_v13 = vpop.f32.mrb[184].mxu0  ;;  %6531 = vadd.xlane.f32.xlu0 %v11484_v51  ;;  %v11488_v63 = vadd.f32 %v6468_v55, %v11343_v61 }
 0xa3d   : > { %v7288_v52 = vpop.f32.mrb[185].mxu0 }
 0xa3e   : > { %v7289_v30 = vadd.f32 %v7288_v52, %v7287_v13  ;;  %v7290_v45 = vpop.f32.mrb[186].mxu0  ;;  %6533 = vadd.xlane.f32.xlu1 %v11488_v63 }
 0xa3f   : > { %v7291_v60 = vpop.f32.mrb[187].mxu0 }
 0xa40   : > { %v6473_v47 = vadd.f32 %v7289_v30, %v11449_v1  ;;  %v7292_v27 = vadd.f32 %v7291_v60, %v7290_v45 }
 0xa42   : > { %v6476_v58 = vadd.f32 %v7292_v27, %v11449_v1  ;;  %v11494_v49 = vadd.f32 %v6473_v47, %v11361_v56 }
 0xa44   : > { %v7293_v39 = vpop.f32.mrb[188].mxu0  ;;  %6535 = vadd.xlane.f32.xlu0 %v11494_v49  ;;  %v11498_v61 = vadd.f32 %v6476_v58, %v11357_v33 }
 0xa45   : > { %v7294_v18 = vpop.f32.mrb[189].mxu0 }
 0xa46   : > { %v7295_v46 = vadd.f32 %v7294_v18, %v7293_v39  ;;  %v7296_v8 = vpop.f32.mrb[190].mxu0  ;;  %6537 = vadd.xlane.f32.xlu1 %v11498_v61 }
 0xa47   : > { %v7297_v36 = vpop.f32.mrb[191].mxu0 }
 0xa48   : > { %v6481_v38 = vadd.f32 %v7295_v46, %v11449_v1  ;;  %v7298_v54 = vadd.f32 %v7297_v36, %v7296_v8 }
 0xa4a   : > { %v6484_v37 = vadd.f32 %v7298_v54, %v11449_v1  ;;  %v11504_v56 = vadd.f32 %v6481_v38, %v11373_v15 }
 0xa4c   : > { %6539 = vadd.xlane.f32.xlu0 %v11504_v56  ;;  %v11508_v50 = vadd.f32 %v6484_v37, %v11370_v2 }
 0xa4e   : > { %6541 = vadd.xlane.f32.xlu1 %v11508_v50 }
 0xa71   : > { %v7299_v33 = vpop.f32.mrb[184].mxu1 }
 0xa72   : > { %v7300_v7 = vpop.f32.mrb[185].mxu1 }
 0xa73   : > { %v7301_v34 = vadd.f32 %v7300_v7, %v7299_v33  ;;  %v7302_v29 = vpop.f32.mrb[186].mxu1 }
 0xa74   : > { %v7303_v59 = vpop.f32.mrb[187].mxu1 }
 0xa75   : > { %v6489_v11 = vadd.f32 %v7301_v34, %v11449_v1  ;;  %v7304_v24 = vadd.f32 %v7303_v59, %v7302_v29 }
 0xa77   : > { %v6492_v26 = vadd.f32 %v7304_v24, %v11449_v1  ;;  %v11514_v15 = vadd.f32 %v6489_v11, %v11383_v23 }
 0xa79   : > { %v7305_v57 = vpop.f32.mrb[188].mxu1  ;;  %6543 = vadd.xlane.f32.xlu0 %v11514_v15  ;;  %v11518_v2 = vadd.f32 %v6492_v26, %v11386_v22 }
 0xa7a   : > { %v7306_v20 = vpop.f32.mrb[189].mxu1 }
 0xa7b   : > { %v7307_v41 = vadd.f32 %v7306_v20, %v7305_v57  ;;  %v7308_v62 = vpop.f32.mrb[190].mxu1  ;;  %6545 = vadd.xlane.f32.xlu1 %v11518_v2 }
 0xa7c   : > { %v7309_v4 = vpop.f32.mrb[191].mxu1 }
 0xa7d   : > { %v6497_v19 = vadd.f32 %v7307_v41, %v11449_v1  ;;  %v7310_v16 = vadd.f32 %v7309_v4, %v7308_v62 }
 0xa7f   : > { %v6500_v53 = vadd.f32 %v7310_v16, %v11449_v1  ;;  %v11524_v23 = vadd.f32 %v6497_v19, %v11399_v14 }
 0xa81   : > { %6547 = vadd.xlane.f32.xlu0 %v11524_v23  ;;  %v11528_v35 = vadd.f32 %v6500_v53, %v11396_v5 }
 0xa83   : > { %6549 = vadd.xlane.f32.xlu1 %v11528_v35 }
 0xab1   : > { %v6520_v22 = vpop.xlane.xlu0 %6519 }
 0xab2   : > { %v6551_v0 = vmul.f32 0.0078125, %v6520_v22 }
 0xab3   : > { %v6522_v28 = vpop.xlane.xlu1 %6521 }
 0xab4   : > { %v11532_v21 = vsub.f32 %v11454_v25, %v6551_v0  ;;  %v6552_v48 = vmul.f32 0.0078125, %v6522_v28 }
 0xab6   : > { %v11535_v44 = vsub.f32 %v11458_v3, %v6552_v48  ;;  %v6583_v14 = vmul.f32 %v11532_v21, %v11532_v21 }
 0xab8   : > { %6599 = vadd.xlane.f32.xlu0 %v6583_v14  ;;  %v6584_v5 = vmul.f32 %v11535_v44, %v11535_v44 }
 0xab9   : > { %v6524_v1 = vpop.xlane.xlu0 %6523 }
 0xaba   : > { %v6553_v10 = vmul.f32 0.0078125, %v6524_v1  ;;  %6601 = vadd.xlane.f32.xlu1 %v6584_v5 }
 0xabb   : > { %v6526_v40 = vpop.xlane.xlu1 %6525 }
 0xabc   : > { %v11542_v42 = vsub.f32 %v11464_v32, %v6553_v10  ;;  %v6554_v25 = vmul.f32 0.0078125, %v6526_v40 }
 0xabe   : > { %v11545_v43 = vsub.f32 %v11468_v6, %v6554_v25  ;;  %v6585_v3 = vmul.f32 %v11542_v42, %v11542_v42 }
 0xac0   : > { %6603 = vadd.xlane.f32.xlu0 %v6585_v3  ;;  %v6586_v12 = vmul.f32 %v11545_v43, %v11545_v43 }
 0xac1   : > { %v6528_v9 = vpop.xlane.xlu0 %6527 }
 0xac2   : > { %v6555_v55 = vmul.f32 0.0078125, %v6528_v9  ;;  %6605 = vadd.xlane.f32.xlu1 %v6586_v12 }
 0xac3   : > { %v6530_v13 = vpop.xlane.xlu1 %6529 }
 0xac4   : > { %v11552_v52 = vsub.f32 %v11474_v17, %v6555_v55  ;;  %v6556_v32 = vmul.f32 0.0078125, %v6530_v13  ;;  %v11614_v55 = vld [vmem:[%s11982_s4] ss:$0 sm:$0xff] }
 0xac6   : > { %v11555_v30 = vsub.f32 %v11478_v31, %v6556_v32  ;;  %v6587_v6 = vmul.f32 %v11552_v52, %v11552_v52 }
 0xac8   : > { %6607 = vadd.xlane.f32.xlu0 %v6587_v6  ;;  %v6588_v45 = vmul.f32 %v11555_v30, %v11555_v30 }
 0xac9   : > { %v6532_v60 = vpop.xlane.xlu0 %6531 }
 0xaca   : > { %v6557_v47 = vmul.f32 0.0078125, %v6532_v60  ;;  %6609 = vadd.xlane.f32.xlu1 %v6588_v45  ;;  %v11620_v45 = vld [vmem:[%s11983_s23] ss:$0 sm:$0xff] }
 0xacb   : > { %v6534_v27 = vpop.xlane.xlu1 %6533 }
 0xacc   : > { %v11562_v58 = vsub.f32 %v11484_v51, %v6557_v47  ;;  %v6558_v17 = vmul.f32 0.0078125, %v6534_v27 }
 0xace   : > { %v11565_v39 = vsub.f32 %v11488_v63, %v6558_v17  ;;  %v6589_v31 = vmul.f32 %v11562_v58, %v11562_v58 }
 0xad0   : > { %6611 = vadd.xlane.f32.xlu0 %v6589_v31  ;;  %v6590_v18 = vmul.f32 %v11565_v39, %v11565_v39 }
 0xad1   : > { %v6536_v46 = vpop.xlane.xlu0 %6535 }
 0xad2   : > { %v6559_v8 = vmul.f32 0.0078125, %v6536_v46  ;;  %6613 = vadd.xlane.f32.xlu1 %v6590_v18 }
 0xad3   : > { %v6538_v36 = vpop.xlane.xlu1 %6537 }
 0xad4   : > { %v11572_v38 = vsub.f32 %v11494_v49, %v6559_v8  ;;  %v6560_v51 = vmul.f32 0.0078125, %v6538_v36 }
 0xad6   : > { %v11575_v54 = vsub.f32 %v11498_v61, %v6560_v51  ;;  %v6591_v63 = vmul.f32 %v11572_v38, %v11572_v38 }
 0xad8   : > { %6615 = vadd.xlane.f32.xlu0 %v6591_v63  ;;  %v6592_v37 = vmul.f32 %v11575_v54, %v11575_v54 }
 0xad9   : > { %v6540_v33 = vpop.xlane.xlu0 %6539 }
 0xada   : > { %v6561_v7 = vmul.f32 0.0078125, %v6540_v33  ;;  %6617 = vadd.xlane.f32.xlu1 %v6592_v37 }
 0xadb   : > { %v6542_v34 = vpop.xlane.xlu1 %6541 }
 0xadc   : > { %v11582_v29 = vsub.f32 %v11504_v56, %v6561_v7  ;;  %v6562_v49 = vmul.f32 0.0078125, %v6542_v34 }
 0xade   : > { %v11585_v59 = vsub.f32 %v11508_v50, %v6562_v49  ;;  %v6593_v61 = vmul.f32 %v11582_v29, %v11582_v29 }
 0xae0   : > { %6619 = vadd.xlane.f32.xlu0 %v6593_v61  ;;  %v6594_v11 = vmul.f32 %v11585_v59, %v11585_v59 }
 0xae2   : > { %6621 = vadd.xlane.f32.xlu1 %v6594_v11 }
 0xb06   : > { %v6544_v24 = vpop.xlane.xlu0 %6543 }
 0xb07   : > { %v6563_v26 = vmul.f32 0.0078125, %v6544_v24 }
 0xb08   : > { %v6546_v57 = vpop.xlane.xlu1 %6545 }
 0xb09   : > { %v11592_v20 = vsub.f32 %v11514_v15, %v6563_v26  ;;  %v6564_v56 = vmul.f32 0.0078125, %v6546_v57 }
 0xb0b   : > { %v11595_v41 = vsub.f32 %v11518_v2, %v6564_v56  ;;  %v6595_v50 = vmul.f32 %v11592_v20, %v11592_v20 }
 0xb0d   : > { %6623 = vadd.xlane.f32.xlu0 %v6595_v50  ;;  %v6596_v62 = vmul.f32 %v11595_v41, %v11595_v41 }
 0xb0e   : > { %v6548_v4 = vpop.xlane.xlu0 %6547 }
 0xb0f   : > { %v6565_v19 = vmul.f32 0.0078125, %v6548_v4  ;;  %6625 = vadd.xlane.f32.xlu1 %v6596_v62 }
 0xb10   : > { %v6550_v16 = vpop.xlane.xlu1 %6549 }
 0xb11   : > { %v11602_v53 = vsub.f32 %v11524_v23, %v6565_v19  ;;  %v6566_v15 = vmul.f32 0.0078125, %v6550_v16 }
 0xb13   : > { %v11605_v22 = vsub.f32 %v11528_v35, %v6566_v15  ;;  %v6597_v2 = vmul.f32 %v11602_v53, %v11602_v53 }
 0xb15   : > { %6627 = vadd.xlane.f32.xlu0 %v6597_v2  ;;  %v6598_v0 = vmul.f32 %v11605_v22, %v11605_v22 }
 0xb17   : > { %6629 = vadd.xlane.f32.xlu1 %v6598_v0 }
 0xb45   : > { %v6600_v28 = vpop.xlane.xlu0 %6599 }
 0xb46   : > { %v6631_v48 = vmul.f32 0.0078125, %v6600_v28 }
 0xb47   : > { %v6602_v14 = vpop.xlane.xlu1 %6601 }
 0xb48   : > { %v6647_v5 = vadd.f32 1e-05, %v6631_v48  ;;  %v6632_v1 = vmul.f32 0.0078125, %v6602_v14 }
 0xb4a   : > { %8737 = vrsqrt.f32 %v6647_v5  ;;  %v6648_v23 = vadd.f32 1e-05, %v6632_v1 }
 0xb4c   : > { %8739 = vrsqrt.f32 %v6648_v23 }
 0xb4d   : > { %v6604_v10 = vpop.xlane.xlu0 %6603 }
 0xb4e   : > { %v6633_v40 = vmul.f32 0.0078125, %v6604_v10 }
 0xb4f   : > { %v6606_v35 = vpop.xlane.xlu1 %6605 }
 0xb50   : > { %v6649_v25 = vadd.f32 1e-05, %v6633_v40  ;;  %v6634_v3 = vmul.f32 0.0078125, %v6606_v35 }
 0xb52   : > { %8741 = vrsqrt.f32 %v6649_v25  ;;  %v6650_v12 = vadd.f32 1e-05, %v6634_v3 }
 0xb54   : > { %v8738_v9 = vpop.eup %8737  ;;  %8743 = vrsqrt.f32 %v6650_v12 }
 0xb55   : > { %v6679_v13 = vmul.f32 %v8738_v9, %v11532_v21  ;;  %v6608_v32 = vpop.xlane.xlu0 %6607 }
 0xb56   : > { %v8740_v6 = vpop.eup %8739  ;;  %v6635_v60 = vmul.f32 0.0078125, %v6608_v32 }
 0xb57   : > { %v6702_v47 = vmul.f32 %v11614_v55, %v6679_v13  ;;  %v6680_v27 = vmul.f32 %v8740_v6, %v11535_v44  ;;  %v6610_v17 = vpop.xlane.xlu1 %6609 }
 0xb58   : > { %v6651_v31 = vadd.f32 1e-05, %v6635_v60  ;;  %v6636_v18 = vmul.f32 0.0078125, %v6610_v17 }
 0xb59   : > { %v6725_v46 = vadd.f32 %v11620_v45, %v6702_v47  ;;  %v6703_v8 = vmul.f32 %v11614_v55, %v6680_v27 }
 0xb5a   : > { %8745 = vrsqrt.f32 %v6651_v31  ;;  %v6652_v21 = vadd.f32 1e-05, %v6636_v18 }
 0xb5b   : > { %6741 = vst [vmem:[%s11627_s12] sm:$0xff] %v6725_v46  ;;  %v6726_v36 = vadd.f32 %v11620_v45, %v6703_v8 }
 0xb5c   : > { %v8742_v51 = vpop.eup %8741  ;;  %8747 = vrsqrt.f32 %v6652_v21 }
 0xb5d   : > { %6742 = vst [vmem:[%s11627_s12 + $0x8] sm:$0xff] %v6726_v36  ;;  %v6681_v44 = vmul.f32 %v8742_v51, %v11542_v42  ;;  %v6612_v63 = vpop.xlane.xlu0 %6611 }
 0xb5e   : > { %v8744_v37 = vpop.eup %8743  ;;  %v6637_v33 = vmul.f32 0.0078125, %v6612_v63 }
 0xb5f   : > { %v6704_v7 = vmul.f32 %v11614_v55, %v6681_v44  ;;  %v6682_v34 = vmul.f32 %v8744_v37, %v11545_v43  ;;  %v6614_v49 = vpop.xlane.xlu1 %6613 }
 0xb60   : > { %v6653_v61 = vadd.f32 1e-05, %v6637_v33  ;;  %v6638_v11 = vmul.f32 0.0078125, %v6614_v49 }
 0xb61   : > { %v6727_v24 = vadd.f32 %v11620_v45, %v6704_v7  ;;  %v6705_v26 = vmul.f32 %v11614_v55, %v6682_v34 }
 0xb62   : > { %8749 = vrsqrt.f32 %v6653_v61  ;;  %v6654_v57 = vadd.f32 1e-05, %v6638_v11 }
 0xb63   : > { %6743 = vst [vmem:[%s11627_s12 + $0x10] sm:$0xff] %v6727_v24  ;;  %v6728_v42 = vadd.f32 %v11620_v45, %v6705_v26 }
 0xb64   : > { %v8746_v56 = vpop.eup %8745  ;;  %8751 = vrsqrt.f32 %v6654_v57 }
 0xb65   : > { %6744 = vst [vmem:[%s11627_s12 + $0x18] sm:$0xff] %v6728_v42  ;;  %v6683_v50 = vmul.f32 %v8746_v56, %v11552_v52  ;;  %v6616_v62 = vpop.xlane.xlu0 %6615 }
 0xb66   : > { %v8748_v43 = vpop.eup %8747  ;;  %v6639_v4 = vmul.f32 0.0078125, %v6616_v62 }
 0xb67   : > { %v6706_v19 = vmul.f32 %v11614_v55, %v6683_v50  ;;  %v6684_v16 = vmul.f32 %v8748_v43, %v11555_v30  ;;  %v6618_v15 = vpop.xlane.xlu1 %6617 }
 0xb68   : > { %v6655_v2 = vadd.f32 1e-05, %v6639_v4  ;;  %v6640_v0 = vmul.f32 0.0078125, %v6618_v15 }
 0xb69   : > { %v6729_v28 = vadd.f32 %v11620_v45, %v6706_v19  ;;  %v6707_v48 = vmul.f32 %v11614_v55, %v6684_v16 }
 0xb6a   : > { %8753 = vrsqrt.f32 %v6655_v2  ;;  %v6656_v14 = vadd.f32 1e-05, %v6640_v0 }
 0xb6b   : > { %6745 = vst [vmem:[%s11627_s12 + $0x20] sm:$0xff] %v6729_v28  ;;  %v6730_v52 = vadd.f32 %v11620_v45, %v6707_v48 }
 0xb6c   : > { %v8750_v5 = vpop.eup %8749  ;;  %8755 = vrsqrt.f32 %v6656_v14 }
 0xb6d   : > { %6746 = vst [vmem:[%s11627_s12 + $0x28] sm:$0xff] %v6730_v52  ;;  %v6685_v1 = vmul.f32 %v8750_v5, %v11562_v58  ;;  %v6620_v23 = vpop.xlane.xlu0 %6619 }
 0xb6e   : > { %v8752_v30 = vpop.eup %8751  ;;  %v6641_v10 = vmul.f32 0.0078125, %v6620_v23 }
 0xb6f   : > { %v6708_v40 = vmul.f32 %v11614_v55, %v6685_v1  ;;  %v6686_v35 = vmul.f32 %v8752_v30, %v11565_v39  ;;  %v6622_v25 = vpop.xlane.xlu1 %6621 }
 0xb70   : > { %v6657_v3 = vadd.f32 1e-05, %v6641_v10  ;;  %v6642_v12 = vmul.f32 0.0078125, %v6622_v25 }
 0xb71   : > { %v6731_v9 = vadd.f32 %v11620_v45, %v6708_v40  ;;  %v6709_v13 = vmul.f32 %v11614_v55, %v6686_v35 }
 0xb72   : > { %8757 = vrsqrt.f32 %v6657_v3  ;;  %v6658_v32 = vadd.f32 1e-05, %v6642_v12 }
 0xb73   : > { %6747 = vst [vmem:[%s11627_s12 + $0x30] sm:$0xff] %v6731_v9  ;;  %v6732_v58 = vadd.f32 %v11620_v45, %v6709_v13 }
 0xb74   : > { %v8754_v6 = vpop.eup %8753  ;;  %8759 = vrsqrt.f32 %v6658_v32 }
 0xb75   : > { %6748 = vst [vmem:[%s11627_s12 + $0x38] sm:$0xff] %v6732_v58  ;;  %v6687_v60 = vmul.f32 %v8754_v6, %v11572_v38 }
 0xb76   : > { %v8756_v39 = vpop.eup %8755 }
 0xb77   : > { %v6710_v47 = vmul.f32 %v11614_v55, %v6687_v60  ;;  %v6688_v27 = vmul.f32 %v8756_v39, %v11575_v54 }
 0xb79   : > { %v6733_v17 = vadd.f32 %v11620_v45, %v6710_v47  ;;  %v6711_v31 = vmul.f32 %v11614_v55, %v6688_v27 }
 0xb7b   : > { %6749 = vst [vmem:[%s11627_s12 + $0x40] sm:$0xff] %v6733_v17  ;;  %v6734_v18 = vadd.f32 %v11620_v45, %v6711_v31 }
 0xb7c   : > { %v8758_v46 = vpop.eup %8757 }
 0xb7d   : > { %6750 = vst [vmem:[%s11627_s12 + $0x48] sm:$0xff] %v6734_v18  ;;  %v6689_v8 = vmul.f32 %v8758_v46, %v11582_v29 }
 0xb7e   : > { %v8760_v21 = vpop.eup %8759 }
 0xb7f   : > { %v6712_v38 = vmul.f32 %v11614_v55, %v6689_v8  ;;  %v6690_v36 = vmul.f32 %v8760_v21, %v11585_v59 }
 0xb81   : > { %v6735_v51 = vadd.f32 %v11620_v45, %v6712_v38  ;;  %v6713_v54 = vmul.f32 %v11614_v55, %v6690_v36 }
 0xb83   : > { %6751 = vst [vmem:[%s11627_s12 + $0x50] sm:$0xff] %v6735_v51  ;;  %v6736_v44 = vadd.f32 %v11620_v45, %v6713_v54 }
 0xb85   : > { %6752 = vst [vmem:[%s11627_s12 + $0x58] sm:$0xff] %v6736_v44 }
 0xb9a   : > { %v6624_v63 = vpop.xlane.xlu0 %6623 }
 0xb9b   : > { %v6643_v37 = vmul.f32 0.0078125, %v6624_v63 }
 0xb9c   : > { %v6626_v33 = vpop.xlane.xlu1 %6625 }
 0xb9d   : > { %v6659_v7 = vadd.f32 1e-05, %v6643_v37  ;;  %v6644_v34 = vmul.f32 0.0078125, %v6626_v33 }
 0xb9f   : > { %8761 = vrsqrt.f32 %v6659_v7  ;;  %v6660_v29 = vadd.f32 1e-05, %v6644_v34 }
 0xba1   : > { %8763 = vrsqrt.f32 %v6660_v29 }
 0xba2   : > { %v6628_v49 = vpop.xlane.xlu0 %6627 }
 0xba3   : > { %v6645_v61 = vmul.f32 0.0078125, %v6628_v49 }
 0xba4   : > { %v6630_v59 = vpop.xlane.xlu1 %6629 }
 0xba5   : > { %v6661_v11 = vadd.f32 1e-05, %v6645_v61  ;;  %v6646_v24 = vmul.f32 0.0078125, %v6630_v59 }
 0xba7   : > { %8765 = vrsqrt.f32 %v6661_v11  ;;  %v6662_v26 = vadd.f32 1e-05, %v6646_v24 }
 0xba9   : > { %v8762_v57 = vpop.eup %8761  ;;  %8767 = vrsqrt.f32 %v6662_v26 }
 0xbaa   : > { %v6691_v42 = vmul.f32 %v8762_v57, %v11592_v20 }
 0xbab   : > { %v8764_v56 = vpop.eup %8763 }
 0xbac   : > { %v6714_v50 = vmul.f32 %v11614_v55, %v6691_v42  ;;  %v6692_v62 = vmul.f32 %v8764_v56, %v11595_v41 }
 0xbae   : > { %v6737_v43 = vadd.f32 %v11620_v45, %v6714_v50  ;;  %v6715_v4 = vmul.f32 %v11614_v55, %v6692_v62 }
 0xbb0   : > { %6753 = vst [vmem:[%s11627_s12 + $0x60] sm:$0xff] %v6737_v43  ;;  %v6738_v19 = vadd.f32 %v11620_v45, %v6715_v4 }
 0xbb1   : > { %v8766_v16 = vpop.eup %8765 }
 0xbb2   : > { %6754 = vst [vmem:[%s11627_s12 + $0x68] sm:$0xff] %v6738_v19  ;;  %v6693_v15 = vmul.f32 %v8766_v16, %v11602_v53 }
 0xbb3   : > { %v8768_v20 = vpop.eup %8767 }
 0xbb4   : > { %v6716_v2 = vmul.f32 %v11614_v55, %v6693_v15  ;;  %v6694_v41 = vmul.f32 %v8768_v20, %v11605_v22 }
 0xbb6   : > { %v6739_v0 = vadd.f32 %v11620_v45, %v6716_v2  ;;  %v6717_v28 = vmul.f32 %v11614_v55, %v6694_v41 }
 0xbb8   : > { %6755 = vst [vmem:[%s11627_s12 + $0x70] sm:$0xff] %v6739_v0  ;;  %v6740_v53 = vadd.f32 %v11620_v45, %v6717_v28 }
 0xbba   : > { %6756 = vst [vmem:[%s11627_s12 + $0x78] sm:$0xff] %v6740_v53 }
 0xbbb   : > { %8998 = shalt.err (!%p8995_p8)
}
 0xbbc   : > { %s8999_s6 = scalar_lea.hbm %s11690_s9, 2048  ;;  %s9003_s0 = scalar_lea.hbm %s11984_s25, 4096 }
 0xbbd   : > { %p9000_p4 = scmp.ne.s32.totalorder %s11690_s9, %s8999_s6  ;;  %p9004_p1 = scmp.lt.u32.totalorder %s11690_s9, %s11984_s25 }
 0xbbe   : > { %p9005_p11 = scmp.lt.u32.totalorder %s9003_s0, %s8999_s6  ;;  %p9007_p2 = scmp.lt.u32.totalorder %s8999_s6, %s11690_s9 }
 0xbbf   : > { %p9001_p3 = pnand %p9000_p4, %p11985_p13 }
 0xbc0   : > { %p9006_p12 = por %p9005_p11, %p9004_p1 }
 0xbc1   : > { %p9002_p10 = pneg %p9001_p3 }
 0xbc2   : > { %p9008_p6 = por %p9007_p2, %p9006_p12 }
 0xbc4   : > { %p9009_p9 = pnand %p9008_p6, %p9002_p10 }
 0xbc6   : > { %9012 = shalt.err (!%p9009_p9)
}
 0xbc7   : > { %s9087_s14 = smov 128   ;;  %s9088_s23 = smov 8  }
 0xbc8   : > { %7799 = dma.vmem_to_hbm [thread:$0]  (%p11985_p13), %s11692_s13, 2048, %s11690_s9, %s6758_s27, %s9087_s14, %s9087_s14, %s9088_s23  }
 0xbc9 PF: > { %s6787_s12 = sand.u32 1, %s9055_s21   ;;  %p11986_p0 = scmp.ne.s32.totalorder %s11857_s11, 0 }
 0xbca   : > { %p11987_p5 = scmp.ge.s32.totalorder %s9067_s24, 2  ;;  %s6788_s10 = scalar_lea.sflag [#allocation4], %s6787_s12 }
 0xbcc   : > { %p7825_p7 = pnand %p11987_p5, %p11986_p0 }
 0xbce   : > { %9050 = dma.done.wait (!%p7825_p7), %s6788_s10, 2048  }
 0xbcf   : > { %9052 = vsyncadd (!%p7825_p7), %s6788_s10, 4294965248  ;;  %s11988_s19 = sld [smem:[#allocation21_spill]]  ;;  %s11989_s23 = sld [smem:[#allocation22_spill]] }
 0xbd0   : > { %p34_p8 = scmp.ge.s32.totalorder %s9343_s29, 4   ;;  %s11990_s21 = smov %s9059_s22 }
 0xbd1   : > { %s11992_s24 = smov %s9343_s29 }
 0xbd2   :  { %36 = sbr.rel (!%p34_p8) target bundleno = 23 (0x17), region = 162 }
 0xbd5   : > { %s11991_s22 = smov %s11988_s19 }
 0xbd9   :  { %6793 = vsyncpa [#allocation3], 1 }
 0xbda   :  { %6795 = vsyncpa [#allocation3 + $0x1], 1 }
 0xbdb   :  { %6796 = vsyncpa [#allocation6], 1 }
 0xbdc   :  { %6798 = vsyncpa [#allocation6 + $0x1], 1 }
 0xbdd   :  { %6799 = vsyncpa [#allocation9], 1 }
 0xbde   :  { %6800 = vsyncpa [#allocation12], 1 }
 0xbdf   :  { %6801 = vsyncpa [#allocation4], 1 }
 0xbe0   :  { %6803 = vsyncpa [#allocation4 + $0x1], 1 }

</bundles_post_ra>
